<compile_context>
chip_gen: v7x
topology: tpu7x:2x2x1
jax: 0.10.0
libtpu: 0.0.40
codegen_flags: <defaults>
</compile_context>

<pallas_src>
import functools

import jax
import jax.numpy as jnp
from jax.experimental import pallas as pl
from jax.experimental.pallas import tpu as pltpu


# ----------------------------------------------------------------------------
# Fused Pallas kernel (one batch element per grid step)
# ----------------------------------------------------------------------------
def _inception_kernel(x_ref, wa_ref, ba_ref, wb_ref, bb_ref, wc_ref, bc_ref,
                      o_ref, xpad_ref, b2pad_ref, t1pad_ref, *, H, W, Cin):
    """Fused Inception forward for one image.

    x_ref  : (1, H, W, Cin)        unpadded NHWC input
    wa_ref : (3, 3, Cin, 128)      [0:24]=conv1_1/9 tiled, [24:40]=conv1_2 @ centre tap
    wb_ref : (5, 5, 16, 128)       [40:64]=conv5, [88:112]=con3_1 padded to 5x5
    wc_ref : (3, 3, 24, 128)       [64:88]=con3_2
    b*_ref : (1, 128)              biases at the same column offsets
    o_ref  : (1, 88, H*W)          lane-dense NC(HW) output (concat order)
    *pad_ref: VMEM scratch for in-kernel zero padding
    """
    HW = H * W
    f32 = jnp.float32

    def conv_taps(src_ref, w_ref, b_ref, K, cin):
        # stride-1 "valid" conv over an already-padded VMEM scratch, expressed
        # as K*K MXU matmuls with a 128-wide (lane-dense) packed Cout.
        acc = jnp.zeros((HW, 128), f32)
        for kh in range(K):
            for kw in range(K):
                patch = src_ref[kh:kh + H, kw:kw + W, :].reshape(HW, cin)
                acc += jnp.dot(patch, w_ref[kh, kw],
                               preferred_element_type=f32)
        return acc + b_ref[...]

    # ---- stage A: 3x3 over zero-padded x ------------------------------------
    #   cols  0:24  = conv1_1(avg_pool3(x))   (avgpool folded into weights/9)
    #   cols 24:40  = conv1_2(x)              (1x1 weight at the centre tap)
    xpad_ref[...] = jnp.zeros_like(xpad_ref)
    xpad_ref[1:H + 1, 1:W + 1, :] = x_ref[0].astype(f32)
    acc_a = conv_taps(xpad_ref, wa_ref, ba_ref, 3, Cin)
    # branch_1 / branch_2 -> output channels [0:40], stored (C, H*W) lane-dense.
    o_ref[0, 0:40, :] = acc_a.T[0:40, :]

    # ---- stage B: 5x5 over zero-padded conv1_2 output ------------------------
    #   cols 40:64  = conv5(b2)       (branch_3)
    #   cols 88:112 = con3_1(b2)      (intermediate, never stored)
    b2pad_ref[...] = jnp.zeros_like(b2pad_ref)
    b2pad_ref[2:H + 2, 2:W + 2, :] = acc_a[:, 24:40].reshape(H, W, 16)
    acc_b = conv_taps(b2pad_ref, wb_ref, bb_ref, 5, 16)
    o_ref[0, 40:64, :] = acc_b.T[40:64, :]

    # ---- stage C: con3_2 (3x3) over zero-padded con3_1 output ----------------
    #   cols 64:88 = con3_2(con3_1(b2))   (branch_4)
    t1pad_ref[...] = jnp.zeros_like(t1pad_ref)
    t1pad_ref[1:H + 1, 1:W + 1, :] = acc_b[:, 88:112].reshape(H, W, 24)
    acc_c = conv_taps(t1pad_ref, wc_ref, bc_ref, 3, 24)
    o_ref[0, 64:88, :] = acc_c.T[64:88, :]


# ----------------------------------------------------------------------------
# Weight packing: fold avgpool into conv1_1, embed 1x1/3x3 into shared tap
# loops, and place every branch's Cout at its final concat offset (<=128).
# ----------------------------------------------------------------------------
def _pack_weights(params, Cin):
    w11, b11 = params["conv1_1"]   # (1,1,Cin,24)
    w12, b12 = params["conv1_2"]   # (1,1,Cin,16)
    w5, b5 = params["conv5"]       # (5,5,16,24)
    w31, b31 = params["con3_1"]    # (3,3,16,24)
    w32, b32 = params["con3_2"]    # (3,3,24,24)

    # stage A: 3x3, Cin -> 128
    wa = jnp.zeros((3, 3, Cin, 128), jnp.float32)
    wa = wa.at[:, :, :, 0:24].set(
        jnp.broadcast_to(w11[0, 0] / 9.0, (3, 3, Cin, 24)))   # avgpool folded
    wa = wa.at[1, 1, :, 24:40].set(w12[0, 0])                 # 1x1 at centre
    ba = jnp.zeros((1, 128), jnp.float32)
    ba = ba.at[0, 0:24].set(b11).at[0, 24:40].set(b12)

    # stage B: 5x5, 16 -> 128
    wb = jnp.zeros((5, 5, 16, 128), jnp.float32)
    wb = wb.at[:, :, :, 40:64].set(w5)
    wb = wb.at[1:4, 1:4, :, 88:112].set(w31)                  # 3x3 inside 5x5
    bb = jnp.zeros((1, 128), jnp.float32)
    bb = bb.at[0, 40:64].set(b5).at[0, 88:112].set(b31)

    # stage C: 3x3, 24 -> 128
    wc = jnp.zeros((3, 3, 24, 128), jnp.float32)
    wc = wc.at[:, :, :, 64:88].set(w32)
    bc = jnp.zeros((1, 128), jnp.float32)
    bc = bc.at[0, 64:88].set(b32)
    return wa, ba, wb, bb, wc, bc


# ----------------------------------------------------------------------------
# Public forward: NCHW in -> NCHW out (matches the PyTorch module)
# ----------------------------------------------------------------------------
def inception_forward(params, x_nchw):
    N, Cin, H, W = x_nchw.shape
    HW = H * W
    x = jnp.transpose(x_nchw, (0, 2, 3, 1)).astype(jnp.float32)   # NHWC (tiny)
    wa, ba, wb, bb, wc, bc = _pack_weights(params, Cin)

    kernel = functools.partial(_inception_kernel, H=H, W=W, Cin=Cin)
    out = pl.pallas_call(
        kernel,
        out_shape=jax.ShapeDtypeStruct((N, 88, HW), jnp.float32),
        grid=(N,),
        in_specs=[
            pl.BlockSpec((1, H, W, Cin), lambda n: (n, 0, 0, 0)),
            pl.BlockSpec((3, 3, Cin, 128), lambda n: (0, 0, 0, 0)),
            pl.BlockSpec((1, 128), lambda n: (0, 0)),
            pl.BlockSpec((5, 5, 16, 128), lambda n: (0, 0, 0, 0)),
            pl.BlockSpec((1, 128), lambda n: (0, 0)),
            pl.BlockSpec((3, 3, 24, 128), lambda n: (0, 0, 0, 0)),
            pl.BlockSpec((1, 128), lambda n: (0, 0)),
        ],
        out_specs=pl.BlockSpec((1, 88, HW), lambda n: (n, 0, 0)),
        scratch_shapes=[
            pltpu.VMEM((H + 2, W + 2, Cin), jnp.float32),   # padded x
            pltpu.VMEM((H + 4, W + 4, 16), jnp.float32),    # padded conv1_2 out
            pltpu.VMEM((H + 2, W + 2, 24), jnp.float32),    # padded con3_1 out
        ],
        compiler_params=pltpu.CompilerParams(
            dimension_semantics=("parallel",)),
    )(x, wa, ba, wb, bb, wc, bc)

    # Trailing-dim split only (no relayout): (N, 88, H*W) -> (N, 88, H, W).
    return out.reshape(N, 88, H, W)


# ----------------------------------------------------------------------------
# Parameter init (deterministic, PyTorch-Conv2d-style uniform bounds, HWIO)
# ----------------------------------------------------------------------------
def _conv_init(key, K, cin, cout):
    kw, kb = jax.random.split(key)
    bound = 1.0 / (cin * K * K) ** 0.5
    w = jax.random.uniform(kw, (K, K, cin, cout), jnp.float32, -bound, bound)
    b = jax.random.uniform(kb, (cout,), jnp.float32, -bound, bound)
    return w, b


def init_inception_params(key, in_channel):
    ks = jax.random.split(key, 5)
    return {
        "conv1_1": _conv_init(ks[0], 1, in_channel, 24),
        "conv1_2": _conv_init(ks[1], 1, in_channel, 16),
        "conv5":   _conv_init(ks[2], 5, 16, 24),
        "con3_1":  _conv_init(ks[3], 3, 16, 24),
        "con3_2":  _conv_init(ks[4], 3, 24, 24),
    }


# ----------------------------------------------------------------------------
# Pure-JAX reference (sanity check against the fused Pallas kernel)
# ----------------------------------------------------------------------------
def _ref_conv(x, w, b, pad):
    y = jax.lax.conv_general_dilated(
        x, w, window_strides=(1, 1), padding=[(pad, pad), (pad, pad)],
        dimension_numbers=("NHWC", "HWIO", "NHWC"))
    return y + b


def _ref_forward(params, x_nchw):
    x = jnp.transpose(x_nchw, (0, 2, 3, 1)).astype(jnp.float32)
    H, W = x.shape[1], x.shape[2]
    xp = jnp.pad(x, ((0, 0), (1, 1), (1, 1), (0, 0)))
    pool = sum(xp[:, kh:kh + H, kw:kw + W, :]
               for kh in range(3) for kw in range(3)) / 9.0
    b1 = _ref_conv(pool, *params["conv1_1"], pad=0)
    b2 = _ref_conv(x, *params["conv1_2"], pad=0)
    b3 = _ref_conv(b2, *params["conv5"], pad=2)
    b4 = _ref_conv(_ref_conv(b2, *params["con3_1"], pad=1),
                   *params["con3_2"], pad=1)
    out = jnp.concatenate([b1, b2, b3, b4], axis=-1)
    return jnp.transpose(out, (0, 3, 1, 2))


# ----------------------------------------------------------------------------
if __name__ == "__main__":
    key = jax.random.PRNGKey(0)
    k_params, k_x = jax.random.split(key)

    in_channel = 4
    x = jax.random.normal(k_x, (2, in_channel, 16, 16), dtype=jnp.float32)
    params = init_inception_params(k_params, in_channel)

    fwd = jax.jit(inception_forward)
    out = jax.block_until_ready(fwd(params, x))
    assert out.shape == (2, 88, 16, 16), out.shape

    ref = jax.block_until_ready(_ref_forward(params, x))
    max_err = float(jnp.max(jnp.abs(out - ref)))
    assert jnp.allclose(out, ref, atol=1e-4, rtol=1e-4), max_err

    print("KERNEL_OK")
</pallas_src>

<mosaic_0001>
module attributes {stable_mosaic.version = 11 : i64} {
  func.func @_inception_kernel(%arg0: i32, %arg1: memref<1x16x16x4xf32, #tpu.memory_space<vmem>>, %arg2: memref<3x3x4x128xf32, #tpu.memory_space<vmem>>, %arg3: memref<1x128xf32, #tpu.memory_space<vmem>>, %arg4: memref<5x5x16x128xf32, #tpu.memory_space<vmem>>, %arg5: memref<1x128xf32, #tpu.memory_space<vmem>>, %arg6: memref<3x3x24x128xf32, #tpu.memory_space<vmem>>, %arg7: memref<1x128xf32, #tpu.memory_space<vmem>>, %arg8: memref<1x88x256xf32, #tpu.memory_space<vmem>>, %arg9: memref<18x18x4xf32, #tpu.memory_space<vmem>>, %arg10: memref<20x20x16xf32, #tpu.memory_space<vmem>>, %arg11: memref<18x18x24xf32, #tpu.memory_space<vmem>>) attributes {dimension_semantics = [#tpu.dimension_semantics<parallel>], iteration_bounds = array<i64: 2>, scalar_prefetch = 0 : i64, scratch_operands = 3 : i64, tpu.core_type = #tpu.core_type<tc>, window_params = [{transform_indices = @transform_0, window_bounds = array<i64: 1, 16, 16, 4>}, {pipeline_mode = #tpu.pipeline_mode<synchronous>, transform_indices = @transform_1, window_bounds = array<i64: 3, 3, 4, 128>}, {pipeline_mode = #tpu.pipeline_mode<synchronous>, transform_indices = @transform_2, window_bounds = array<i64: 1, 128>}, {pipeline_mode = #tpu.pipeline_mode<synchronous>, transform_indices = @transform_3, window_bounds = array<i64: 5, 5, 16, 128>}, {pipeline_mode = #tpu.pipeline_mode<synchronous>, transform_indices = @transform_4, window_bounds = array<i64: 1, 128>}, {pipeline_mode = #tpu.pipeline_mode<synchronous>, transform_indices = @transform_5, window_bounds = array<i64: 3, 3, 24, 128>}, {pipeline_mode = #tpu.pipeline_mode<synchronous>, transform_indices = @transform_6, window_bounds = array<i64: 1, 128>}, {transform_indices = @transform_7, window_bounds = array<i64: 1, 88, 256>}]} {
    %cst = arith.constant 0.000000e+00 : f32
    %0 = vector.broadcast %cst : f32 to vector<18x18x4xf32>
    %c0 = arith.constant 0 : index
    %c0_0 = arith.constant 0 : index
    %c0_1 = arith.constant 0 : index
    %1 = vector.load %arg9[%c0, %c0_0, %c0_1] : memref<18x18x4xf32, #tpu.memory_space<vmem>>, vector<18x18x4xf32>
    tpu.vector_store %arg9[%c0, %c0_0, %c0_1], %0 {strides = array<i32>} : memref<18x18x4xf32, #tpu.memory_space<vmem>>, vector<18x18x4xf32>,
    %c0_2 = arith.constant 0 : index
    %c0_3 = arith.constant 0 : index
    %c0_4 = arith.constant 0 : index
    %c0_5 = arith.constant 0 : index
    %2 = vector.load %arg1[%c0_2, %c0_3, %c0_4, %c0_5] : memref<1x16x16x4xf32, #tpu.memory_space<vmem>>, vector<1x16x16x4xf32>
    %3 = vector.shape_cast %2 : vector<1x16x16x4xf32> to vector<16x16x4xf32>
    %c1 = arith.constant 1 : index
    %c1_6 = arith.constant 1 : index
    %c0_7 = arith.constant 0 : index
    %4 = vector.load %arg9[%c1, %c1_6, %c0_7] : memref<18x18x4xf32, #tpu.memory_space<vmem>>, vector<16x16x4xf32>
    tpu.vector_store %arg9[%c1, %c1_6, %c0_7], %3 {strides = array<i32>} : memref<18x18x4xf32, #tpu.memory_space<vmem>>, vector<16x16x4xf32>,
    %cst_8 = arith.constant 0.000000e+00 : f32
    %5 = vector.broadcast %cst_8 : f32 to vector<256x128xf32>
    %c0_9 = arith.constant 0 : index
    %c0_10 = arith.constant 0 : index
    %c0_11 = arith.constant 0 : index
    %6 = vector.load %arg9[%c0_9, %c0_10, %c0_11] : memref<18x18x4xf32, #tpu.memory_space<vmem>>, vector<16x16x4xf32>
    %7 = vector.shape_cast %6 : vector<16x16x4xf32> to vector<256x4xf32>
    %c0_12 = arith.constant 0 : index
    %c0_13 = arith.constant 0 : index
    %c0_14 = arith.constant 0 : index
    %c0_15 = arith.constant 0 : index
    %8 = vector.load %arg2[%c0_12, %c0_13, %c0_14, %c0_15] : memref<3x3x4x128xf32, #tpu.memory_space<vmem>>, vector<1x1x4x128xf32>
    %9 = vector.shape_cast %8 : vector<1x1x4x128xf32> to vector<4x128xf32>
    %cst_16 = arith.constant dense<0.000000e+00> : vector<256x128xf32>
    %10 = tpu.matmul %7, %9, %cst_16 {dimension_numbers = #tpu.dot_dimension_numbers<[1], [0], [0], [1], [0, 0, 1, 1], [], []>} : vector<256x4xf32>, vector<4x128xf32>, vector<256x128xf32> -> vector<256x128xf32>
    %11 = arith.addf %5, %10 : vector<256x128xf32>
    %c0_17 = arith.constant 0 : index
    %c1_18 = arith.constant 1 : index
    %c0_19 = arith.constant 0 : index
    %12 = vector.load %arg9[%c0_17, %c1_18, %c0_19] : memref<18x18x4xf32, #tpu.memory_space<vmem>>, vector<16x16x4xf32>
    %13 = vector.shape_cast %12 : vector<16x16x4xf32> to vector<256x4xf32>
    %c0_20 = arith.constant 0 : index
    %c1_21 = arith.constant 1 : index
    %c0_22 = arith.constant 0 : index
    %c0_23 = arith.constant 0 : index
    %14 = vector.load %arg2[%c0_20, %c1_21, %c0_22, %c0_23] : memref<3x3x4x128xf32, #tpu.memory_space<vmem>>, vector<1x1x4x128xf32>
    %15 = vector.shape_cast %14 : vector<1x1x4x128xf32> to vector<4x128xf32>
    %cst_24 = arith.constant dense<0.000000e+00> : vector<256x128xf32>
    %16 = tpu.matmul %13, %15, %cst_24 {dimension_numbers = #tpu.dot_dimension_numbers<[1], [0], [0], [1], [0, 0, 1, 1], [], []>} : vector<256x4xf32>, vector<4x128xf32>, vector<256x128xf32> -> vector<256x128xf32>
    %17 = arith.addf %11, %16 : vector<256x128xf32>
    %c0_25 = arith.constant 0 : index
    %c2 = arith.constant 2 : index
    %c0_26 = arith.constant 0 : index
    %18 = vector.load %arg9[%c0_25, %c2, %c0_26] : memref<18x18x4xf32, #tpu.memory_space<vmem>>, vector<16x16x4xf32>
    %19 = vector.shape_cast %18 : vector<16x16x4xf32> to vector<256x4xf32>
    %c0_27 = arith.constant 0 : index
    %c2_28 = arith.constant 2 : index
    %c0_29 = arith.constant 0 : index
    %c0_30 = arith.constant 0 : index
    %20 = vector.load %arg2[%c0_27, %c2_28, %c0_29, %c0_30] : memref<3x3x4x128xf32, #tpu.memory_space<vmem>>, vector<1x1x4x128xf32>
    %21 = vector.shape_cast %20 : vector<1x1x4x128xf32> to vector<4x128xf32>
    %cst_31 = arith.constant dense<0.000000e+00> : vector<256x128xf32>
    %22 = tpu.matmul %19, %21, %cst_31 {dimension_numbers = #tpu.dot_dimension_numbers<[1], [0], [0], [1], [0, 0, 1, 1], [], []>} : vector<256x4xf32>, vector<4x128xf32>, vector<256x128xf32> -> vector<256x128xf32>
    %23 = arith.addf %17, %22 : vector<256x128xf32>
    %c1_32 = arith.constant 1 : index
    %c0_33 = arith.constant 0 : index
    %c0_34 = arith.constant 0 : index
    %24 = vector.load %arg9[%c1_32, %c0_33, %c0_34] : memref<18x18x4xf32, #tpu.memory_space<vmem>>, vector<16x16x4xf32>
    %25 = vector.shape_cast %24 : vector<16x16x4xf32> to vector<256x4xf32>
    %c1_35 = arith.constant 1 : index
    %c0_36 = arith.constant 0 : index
    %c0_37 = arith.constant 0 : index
    %c0_38 = arith.constant 0 : index
    %26 = vector.load %arg2[%c1_35, %c0_36, %c0_37, %c0_38] : memref<3x3x4x128xf32, #tpu.memory_space<vmem>>, vector<1x1x4x128xf32>
    %27 = vector.shape_cast %26 : vector<1x1x4x128xf32> to vector<4x128xf32>
    %cst_39 = arith.constant dense<0.000000e+00> : vector<256x128xf32>
    %28 = tpu.matmul %25, %27, %cst_39 {dimension_numbers = #tpu.dot_dimension_numbers<[1], [0], [0], [1], [0, 0, 1, 1], [], []>} : vector<256x4xf32>, vector<4x128xf32>, vector<256x128xf32> -> vector<256x128xf32>
    %29 = arith.addf %23, %28 : vector<256x128xf32>
    %c1_40 = arith.constant 1 : index
    %c1_41 = arith.constant 1 : index
    %c0_42 = arith.constant 0 : index
    %30 = vector.load %arg9[%c1_40, %c1_41, %c0_42] : memref<18x18x4xf32, #tpu.memory_space<vmem>>, vector<16x16x4xf32>
    %31 = vector.shape_cast %30 : vector<16x16x4xf32> to vector<256x4xf32>
    %c1_43 = arith.constant 1 : index
    %c1_44 = arith.constant 1 : index
    %c0_45 = arith.constant 0 : index
    %c0_46 = arith.constant 0 : index
    %32 = vector.load %arg2[%c1_43, %c1_44, %c0_45, %c0_46] : memref<3x3x4x128xf32, #tpu.memory_space<vmem>>, vector<1x1x4x128xf32>
    %33 = vector.shape_cast %32 : vector<1x1x4x128xf32> to vector<4x128xf32>
    %cst_47 = arith.constant dense<0.000000e+00> : vector<256x128xf32>
    %34 = tpu.matmul %31, %33, %cst_47 {dimension_numbers = #tpu.dot_dimension_numbers<[1], [0], [0], [1], [0, 0, 1, 1], [], []>} : vector<256x4xf32>, vector<4x128xf32>, vector<256x128xf32> -> vector<256x128xf32>
    %35 = arith.addf %29, %34 : vector<256x128xf32>
    %c1_48 = arith.constant 1 : index
    %c2_49 = arith.constant 2 : index
    %c0_50 = arith.constant 0 : index
    %36 = vector.load %arg9[%c1_48, %c2_49, %c0_50] : memref<18x18x4xf32, #tpu.memory_space<vmem>>, vector<16x16x4xf32>
    %37 = vector.shape_cast %36 : vector<16x16x4xf32> to vector<256x4xf32>
    %c1_51 = arith.constant 1 : index
    %c2_52 = arith.constant 2 : index
    %c0_53 = arith.constant 0 : index
    %c0_54 = arith.constant 0 : index
    %38 = vector.load %arg2[%c1_51, %c2_52, %c0_53, %c0_54] : memref<3x3x4x128xf32, #tpu.memory_space<vmem>>, vector<1x1x4x128xf32>
    %39 = vector.shape_cast %38 : vector<1x1x4x128xf32> to vector<4x128xf32>
    %cst_55 = arith.constant dense<0.000000e+00> : vector<256x128xf32>
    %40 = tpu.matmul %37, %39, %cst_55 {dimension_numbers = #tpu.dot_dimension_numbers<[1], [0], [0], [1], [0, 0, 1, 1], [], []>} : vector<256x4xf32>, vector<4x128xf32>, vector<256x128xf32> -> vector<256x128xf32>
    %41 = arith.addf %35, %40 : vector<256x128xf32>
    %c2_56 = arith.constant 2 : index
    %c0_57 = arith.constant 0 : index
    %c0_58 = arith.constant 0 : index
    %42 = vector.load %arg9[%c2_56, %c0_57, %c0_58] : memref<18x18x4xf32, #tpu.memory_space<vmem>>, vector<16x16x4xf32>
    %43 = vector.shape_cast %42 : vector<16x16x4xf32> to vector<256x4xf32>
    %c2_59 = arith.constant 2 : index
    %c0_60 = arith.constant 0 : index
    %c0_61 = arith.constant 0 : index
    %c0_62 = arith.constant 0 : index
    %44 = vector.load %arg2[%c2_59, %c0_60, %c0_61, %c0_62] : memref<3x3x4x128xf32, #tpu.memory_space<vmem>>, vector<1x1x4x128xf32>
    %45 = vector.shape_cast %44 : vector<1x1x4x128xf32> to vector<4x128xf32>
    %cst_63 = arith.constant dense<0.000000e+00> : vector<256x128xf32>
    %46 = tpu.matmul %43, %45, %cst_63 {dimension_numbers = #tpu.dot_dimension_numbers<[1], [0], [0], [1], [0, 0, 1, 1], [], []>} : vector<256x4xf32>, vector<4x128xf32>, vector<256x128xf32> -> vector<256x128xf32>
    %47 = arith.addf %41, %46 : vector<256x128xf32>
    %c2_64 = arith.constant 2 : index
    %c1_65 = arith.constant 1 : index
    %c0_66 = arith.constant 0 : index
    %48 = vector.load %arg9[%c2_64, %c1_65, %c0_66] : memref<18x18x4xf32, #tpu.memory_space<vmem>>, vector<16x16x4xf32>
    %49 = vector.shape_cast %48 : vector<16x16x4xf32> to vector<256x4xf32>
    %c2_67 = arith.constant 2 : index
    %c1_68 = arith.constant 1 : index
    %c0_69 = arith.constant 0 : index
    %c0_70 = arith.constant 0 : index
    %50 = vector.load %arg2[%c2_67, %c1_68, %c0_69, %c0_70] : memref<3x3x4x128xf32, #tpu.memory_space<vmem>>, vector<1x1x4x128xf32>
    %51 = vector.shape_cast %50 : vector<1x1x4x128xf32> to vector<4x128xf32>
    %cst_71 = arith.constant dense<0.000000e+00> : vector<256x128xf32>
    %52 = tpu.matmul %49, %51, %cst_71 {dimension_numbers = #tpu.dot_dimension_numbers<[1], [0], [0], [1], [0, 0, 1, 1], [], []>} : vector<256x4xf32>, vector<4x128xf32>, vector<256x128xf32> -> vector<256x128xf32>
    %53 = arith.addf %47, %52 : vector<256x128xf32>
    %c2_72 = arith.constant 2 : index
    %c2_73 = arith.constant 2 : index
    %c0_74 = arith.constant 0 : index
    %54 = vector.load %arg9[%c2_72, %c2_73, %c0_74] : memref<18x18x4xf32, #tpu.memory_space<vmem>>, vector<16x16x4xf32>
    %55 = vector.shape_cast %54 : vector<16x16x4xf32> to vector<256x4xf32>
    %c2_75 = arith.constant 2 : index
    %c2_76 = arith.constant 2 : index
    %c0_77 = arith.constant 0 : index
    %c0_78 = arith.constant 0 : index
    %56 = vector.load %arg2[%c2_75, %c2_76, %c0_77, %c0_78] : memref<3x3x4x128xf32, #tpu.memory_space<vmem>>, vector<1x1x4x128xf32>
    %57 = vector.shape_cast %56 : vector<1x1x4x128xf32> to vector<4x128xf32>
    %cst_79 = arith.constant dense<0.000000e+00> : vector<256x128xf32>
    %58 = tpu.matmul %55, %57, %cst_79 {dimension_numbers = #tpu.dot_dimension_numbers<[1], [0], [0], [1], [0, 0, 1, 1], [], []>} : vector<256x4xf32>, vector<4x128xf32>, vector<256x128xf32> -> vector<256x128xf32>
    %59 = arith.addf %53, %58 : vector<256x128xf32>
    %c0_80 = arith.constant 0 : index
    %c0_81 = arith.constant 0 : index
    %60 = vector.load %arg3[%c0_80, %c0_81] : memref<1x128xf32, #tpu.memory_space<vmem>>, vector<1x128xf32>
    %61 = vector.broadcast %60 : vector<1x128xf32> to vector<256x128xf32>
    %62 = arith.addf %59, %61 : vector<256x128xf32>
    %63 = tpu.transpose %62, [1, 0] : vector<256x128xf32> -> vector<128x256xf32>
    %64 = vector.extract_strided_slice %63 {offsets = [0, 0], sizes = [40, 256], strides = [1, 1]} : vector<128x256xf32> to vector<40x256xf32>
    %c0_82 = arith.constant 0 : index
    %c0_83 = arith.constant 0 : index
    %c0_84 = arith.constant 0 : index
    %65 = vector.load %arg8[%c0_82, %c0_83, %c0_84] : memref<1x88x256xf32, #tpu.memory_space<vmem>>, vector<1x40x256xf32>
    %66 = vector.shape_cast %65 : vector<1x40x256xf32> to vector<40x256xf32>
    %67 = vector.shape_cast %64 : vector<40x256xf32> to vector<1x40x256xf32>
    tpu.vector_store %arg8[%c0_82, %c0_83, %c0_84], %67 {strides = array<i32>} : memref<1x88x256xf32, #tpu.memory_space<vmem>>, vector<1x40x256xf32>,
    %cst_85 = arith.constant 0.000000e+00 : f32
    %68 = vector.broadcast %cst_85 : f32 to vector<20x20x16xf32>
    %c0_86 = arith.constant 0 : index
    %c0_87 = arith.constant 0 : index
    %c0_88 = arith.constant 0 : index
    %69 = vector.load %arg10[%c0_86, %c0_87, %c0_88] : memref<20x20x16xf32, #tpu.memory_space<vmem>>, vector<20x20x16xf32>
    tpu.vector_store %arg10[%c0_86, %c0_87, %c0_88], %68 {strides = array<i32>} : memref<20x20x16xf32, #tpu.memory_space<vmem>>, vector<20x20x16xf32>,
    %70 = vector.extract_strided_slice %62 {offsets = [0, 24], sizes = [256, 16], strides = [1, 1]} : vector<256x128xf32> to vector<256x16xf32>
    %71 = vector.shape_cast %70 : vector<256x16xf32> to vector<16x16x16xf32>
    %c2_89 = arith.constant 2 : index
    %c2_90 = arith.constant 2 : index
    %c0_91 = arith.constant 0 : index
    %72 = vector.load %arg10[%c2_89, %c2_90, %c0_91] : memref<20x20x16xf32, #tpu.memory_space<vmem>>, vector<16x16x16xf32>
    tpu.vector_store %arg10[%c2_89, %c2_90, %c0_91], %71 {strides = array<i32>} : memref<20x20x16xf32, #tpu.memory_space<vmem>>, vector<16x16x16xf32>,
    %cst_92 = arith.constant 0.000000e+00 : f32
    %73 = vector.broadcast %cst_92 : f32 to vector<256x128xf32>
    %c0_93 = arith.constant 0 : index
    %c0_94 = arith.constant 0 : index
    %c0_95 = arith.constant 0 : index
    %74 = vector.load %arg10[%c0_93, %c0_94, %c0_95] : memref<20x20x16xf32, #tpu.memory_space<vmem>>, vector<16x16x16xf32>
    %75 = vector.shape_cast %74 : vector<16x16x16xf32> to vector<256x16xf32>
    %c0_96 = arith.constant 0 : index
    %c0_97 = arith.constant 0 : index
    %c0_98 = arith.constant 0 : index
    %c0_99 = arith.constant 0 : index
    %76 = vector.load %arg4[%c0_96, %c0_97, %c0_98, %c0_99] : memref<5x5x16x128xf32, #tpu.memory_space<vmem>>, vector<1x1x16x128xf32>
    %77 = vector.shape_cast %76 : vector<1x1x16x128xf32> to vector<16x128xf32>
    %cst_100 = arith.constant dense<0.000000e+00> : vector<256x128xf32>
    %78 = tpu.matmul %75, %77, %cst_100 {dimension_numbers = #tpu.dot_dimension_numbers<[1], [0], [0], [1], [0, 0, 1, 1], [], []>} : vector<256x16xf32>, vector<16x128xf32>, vector<256x128xf32> -> vector<256x128xf32>
    %79 = arith.addf %73, %78 : vector<256x128xf32>
    %c0_101 = arith.constant 0 : index
    %c1_102 = arith.constant 1 : index
    %c0_103 = arith.constant 0 : index
    %80 = vector.load %arg10[%c0_101, %c1_102, %c0_103] : memref<20x20x16xf32, #tpu.memory_space<vmem>>, vector<16x16x16xf32>
    %81 = vector.shape_cast %80 : vector<16x16x16xf32> to vector<256x16xf32>
    %c0_104 = arith.constant 0 : index
    %c1_105 = arith.constant 1 : index
    %c0_106 = arith.constant 0 : index
    %c0_107 = arith.constant 0 : index
    %82 = vector.load %arg4[%c0_104, %c1_105, %c0_106, %c0_107] : memref<5x5x16x128xf32, #tpu.memory_space<vmem>>, vector<1x1x16x128xf32>
    %83 = vector.shape_cast %82 : vector<1x1x16x128xf32> to vector<16x128xf32>
    %cst_108 = arith.constant dense<0.000000e+00> : vector<256x128xf32>
    %84 = tpu.matmul %81, %83, %cst_108 {dimension_numbers = #tpu.dot_dimension_numbers<[1], [0], [0], [1], [0, 0, 1, 1], [], []>} : vector<256x16xf32>, vector<16x128xf32>, vector<256x128xf32> -> vector<256x128xf32>
    %85 = arith.addf %79, %84 : vector<256x128xf32>
    %c0_109 = arith.constant 0 : index
    %c2_110 = arith.constant 2 : index
    %c0_111 = arith.constant 0 : index
    %86 = vector.load %arg10[%c0_109, %c2_110, %c0_111] : memref<20x20x16xf32, #tpu.memory_space<vmem>>, vector<16x16x16xf32>
    %87 = vector.shape_cast %86 : vector<16x16x16xf32> to vector<256x16xf32>
    %c0_112 = arith.constant 0 : index
    %c2_113 = arith.constant 2 : index
    %c0_114 = arith.constant 0 : index
    %c0_115 = arith.constant 0 : index
    %88 = vector.load %arg4[%c0_112, %c2_113, %c0_114, %c0_115] : memref<5x5x16x128xf32, #tpu.memory_space<vmem>>, vector<1x1x16x128xf32>
    %89 = vector.shape_cast %88 : vector<1x1x16x128xf32> to vector<16x128xf32>
    %cst_116 = arith.constant dense<0.000000e+00> : vector<256x128xf32>
    %90 = tpu.matmul %87, %89, %cst_116 {dimension_numbers = #tpu.dot_dimension_numbers<[1], [0], [0], [1], [0, 0, 1, 1], [], []>} : vector<256x16xf32>, vector<16x128xf32>, vector<256x128xf32> -> vector<256x128xf32>
    %91 = arith.addf %85, %90 : vector<256x128xf32>
    %c0_117 = arith.constant 0 : index
    %c3 = arith.constant 3 : index
    %c0_118 = arith.constant 0 : index
    %92 = vector.load %arg10[%c0_117, %c3, %c0_118] : memref<20x20x16xf32, #tpu.memory_space<vmem>>, vector<16x16x16xf32>
    %93 = vector.shape_cast %92 : vector<16x16x16xf32> to vector<256x16xf32>
    %c0_119 = arith.constant 0 : index
    %c3_120 = arith.constant 3 : index
    %c0_121 = arith.constant 0 : index
    %c0_122 = arith.constant 0 : index
    %94 = vector.load %arg4[%c0_119, %c3_120, %c0_121, %c0_122] : memref<5x5x16x128xf32, #tpu.memory_space<vmem>>, vector<1x1x16x128xf32>
    %95 = vector.shape_cast %94 : vector<1x1x16x128xf32> to vector<16x128xf32>
    %cst_123 = arith.constant dense<0.000000e+00> : vector<256x128xf32>
    %96 = tpu.matmul %93, %95, %cst_123 {dimension_numbers = #tpu.dot_dimension_numbers<[1], [0], [0], [1], [0, 0, 1, 1], [], []>} : vector<256x16xf32>, vector<16x128xf32>, vector<256x128xf32> -> vector<256x128xf32>
    %97 = arith.addf %91, %96 : vector<256x128xf32>
    %c0_124 = arith.constant 0 : index
    %c4 = arith.constant 4 : index
    %c0_125 = arith.constant 0 : index
    %98 = vector.load %arg10[%c0_124, %c4, %c0_125] : memref<20x20x16xf32, #tpu.memory_space<vmem>>, vector<16x16x16xf32>
    %99 = vector.shape_cast %98 : vector<16x16x16xf32> to vector<256x16xf32>
    %c0_126 = arith.constant 0 : index
    %c4_127 = arith.constant 4 : index
    %c0_128 = arith.constant 0 : index
    %c0_129 = arith.constant 0 : index
    %100 = vector.load %arg4[%c0_126, %c4_127, %c0_128, %c0_129] : memref<5x5x16x128xf32, #tpu.memory_space<vmem>>, vector<1x1x16x128xf32>
    %101 = vector.shape_cast %100 : vector<1x1x16x128xf32> to vector<16x128xf32>
    %cst_130 = arith.constant dense<0.000000e+00> : vector<256x128xf32>
    %102 = tpu.matmul %99, %101, %cst_130 {dimension_numbers = #tpu.dot_dimension_numbers<[1], [0], [0], [1], [0, 0, 1, 1], [], []>} : vector<256x16xf32>, vector<16x128xf32>, vector<256x128xf32> -> vector<256x128xf32>
    %103 = arith.addf %97, %102 : vector<256x128xf32>
    %c1_131 = arith.constant 1 : index
    %c0_132 = arith.constant 0 : index
    %c0_133 = arith.constant 0 : index
    %104 = vector.load %arg10[%c1_131, %c0_132, %c0_133] : memref<20x20x16xf32, #tpu.memory_space<vmem>>, vector<16x16x16xf32>
    %105 = vector.shape_cast %104 : vector<16x16x16xf32> to vector<256x16xf32>
    %c1_134 = arith.constant 1 : index
    %c0_135 = arith.constant 0 : index
    %c0_136 = arith.constant 0 : index
    %c0_137 = arith.constant 0 : index
    %106 = vector.load %arg4[%c1_134, %c0_135, %c0_136, %c0_137] : memref<5x5x16x128xf32, #tpu.memory_space<vmem>>, vector<1x1x16x128xf32>
    %107 = vector.shape_cast %106 : vector<1x1x16x128xf32> to vector<16x128xf32>
    %cst_138 = arith.constant dense<0.000000e+00> : vector<256x128xf32>
    %108 = tpu.matmul %105, %107, %cst_138 {dimension_numbers = #tpu.dot_dimension_numbers<[1], [0], [0], [1], [0, 0, 1, 1], [], []>} : vector<256x16xf32>, vector<16x128xf32>, vector<256x128xf32> -> vector<256x128xf32>
    %109 = arith.addf %103, %108 : vector<256x128xf32>
    %c1_139 = arith.constant 1 : index
    %c1_140 = arith.constant 1 : index
    %c0_141 = arith.constant 0 : index
    %110 = vector.load %arg10[%c1_139, %c1_140, %c0_141] : memref<20x20x16xf32, #tpu.memory_space<vmem>>, vector<16x16x16xf32>
    %111 = vector.shape_cast %110 : vector<16x16x16xf32> to vector<256x16xf32>
    %c1_142 = arith.constant 1 : index
    %c1_143 = arith.constant 1 : index
    %c0_144 = arith.constant 0 : index
    %c0_145 = arith.constant 0 : index
    %112 = vector.load %arg4[%c1_142, %c1_143, %c0_144, %c0_145] : memref<5x5x16x128xf32, #tpu.memory_space<vmem>>, vector<1x1x16x128xf32>
    %113 = vector.shape_cast %112 : vector<1x1x16x128xf32> to vector<16x128xf32>
    %cst_146 = arith.constant dense<0.000000e+00> : vector<256x128xf32>
    %114 = tpu.matmul %111, %113, %cst_146 {dimension_numbers = #tpu.dot_dimension_numbers<[1], [0], [0], [1], [0, 0, 1, 1], [], []>} : vector<256x16xf32>, vector<16x128xf32>, vector<256x128xf32> -> vector<256x128xf32>
    %115 = arith.addf %109, %114 : vector<256x128xf32>
    %c1_147 = arith.constant 1 : index
    %c2_148 = arith.constant 2 : index
    %c0_149 = arith.constant 0 : index
    %116 = vector.load %arg10[%c1_147, %c2_148, %c0_149] : memref<20x20x16xf32, #tpu.memory_space<vmem>>, vector<16x16x16xf32>
    %117 = vector.shape_cast %116 : vector<16x16x16xf32> to vector<256x16xf32>
    %c1_150 = arith.constant 1 : index
    %c2_151 = arith.constant 2 : index
    %c0_152 = arith.constant 0 : index
    %c0_153 = arith.constant 0 : index
    %118 = vector.load %arg4[%c1_150, %c2_151, %c0_152, %c0_153] : memref<5x5x16x128xf32, #tpu.memory_space<vmem>>, vector<1x1x16x128xf32>
    %119 = vector.shape_cast %118 : vector<1x1x16x128xf32> to vector<16x128xf32>
    %cst_154 = arith.constant dense<0.000000e+00> : vector<256x128xf32>
    %120 = tpu.matmul %117, %119, %cst_154 {dimension_numbers = #tpu.dot_dimension_numbers<[1], [0], [0], [1], [0, 0, 1, 1], [], []>} : vector<256x16xf32>, vector<16x128xf32>, vector<256x128xf32> -> vector<256x128xf32>
    %121 = arith.addf %115, %120 : vector<256x128xf32>
    %c1_155 = arith.constant 1 : index
    %c3_156 = arith.constant 3 : index
    %c0_157 = arith.constant 0 : index
    %122 = vector.load %arg10[%c1_155, %c3_156, %c0_157] : memref<20x20x16xf32, #tpu.memory_space<vmem>>, vector<16x16x16xf32>
    %123 = vector.shape_cast %122 : vector<16x16x16xf32> to vector<256x16xf32>
    %c1_158 = arith.constant 1 : index
    %c3_159 = arith.constant 3 : index
    %c0_160 = arith.constant 0 : index
    %c0_161 = arith.constant 0 : index
    %124 = vector.load %arg4[%c1_158, %c3_159, %c0_160, %c0_161] : memref<5x5x16x128xf32, #tpu.memory_space<vmem>>, vector<1x1x16x128xf32>
    %125 = vector.shape_cast %124 : vector<1x1x16x128xf32> to vector<16x128xf32>
    %cst_162 = arith.constant dense<0.000000e+00> : vector<256x128xf32>
    %126 = tpu.matmul %123, %125, %cst_162 {dimension_numbers = #tpu.dot_dimension_numbers<[1], [0], [0], [1], [0, 0, 1, 1], [], []>} : vector<256x16xf32>, vector<16x128xf32>, vector<256x128xf32> -> vector<256x128xf32>
    %127 = arith.addf %121, %126 : vector<256x128xf32>
    %c1_163 = arith.constant 1 : index
    %c4_164 = arith.constant 4 : index
    %c0_165 = arith.constant 0 : index
    %128 = vector.load %arg10[%c1_163, %c4_164, %c0_165] : memref<20x20x16xf32, #tpu.memory_space<vmem>>, vector<16x16x16xf32>
    %129 = vector.shape_cast %128 : vector<16x16x16xf32> to vector<256x16xf32>
    %c1_166 = arith.constant 1 : index
    %c4_167 = arith.constant 4 : index
    %c0_168 = arith.constant 0 : index
    %c0_169 = arith.constant 0 : index
    %130 = vector.load %arg4[%c1_166, %c4_167, %c0_168, %c0_169] : memref<5x5x16x128xf32, #tpu.memory_space<vmem>>, vector<1x1x16x128xf32>
    %131 = vector.shape_cast %130 : vector<1x1x16x128xf32> to vector<16x128xf32>
    %cst_170 = arith.constant dense<0.000000e+00> : vector<256x128xf32>
    %132 = tpu.matmul %129, %131, %cst_170 {dimension_numbers = #tpu.dot_dimension_numbers<[1], [0], [0], [1], [0, 0, 1, 1], [], []>} : vector<256x16xf32>, vector<16x128xf32>, vector<256x128xf32> -> vector<256x128xf32>
    %133 = arith.addf %127, %132 : vector<256x128xf32>
    %c2_171 = arith.constant 2 : index
    %c0_172 = arith.constant 0 : index
    %c0_173 = arith.constant 0 : index
    %134 = vector.load %arg10[%c2_171, %c0_172, %c0_173] : memref<20x20x16xf32, #tpu.memory_space<vmem>>, vector<16x16x16xf32>
    %135 = vector.shape_cast %134 : vector<16x16x16xf32> to vector<256x16xf32>
    %c2_174 = arith.constant 2 : index
    %c0_175 = arith.constant 0 : index
    %c0_176 = arith.constant 0 : index
    %c0_177 = arith.constant 0 : index
    %136 = vector.load %arg4[%c2_174, %c0_175, %c0_176, %c0_177] : memref<5x5x16x128xf32, #tpu.memory_space<vmem>>, vector<1x1x16x128xf32>
    %137 = vector.shape_cast %136 : vector<1x1x16x128xf32> to vector<16x128xf32>
    %cst_178 = arith.constant dense<0.000000e+00> : vector<256x128xf32>
    %138 = tpu.matmul %135, %137, %cst_178 {dimension_numbers = #tpu.dot_dimension_numbers<[1], [0], [0], [1], [0, 0, 1, 1], [], []>} : vector<256x16xf32>, vector<16x128xf32>, vector<256x128xf32> -> vector<256x128xf32>
    %139 = arith.addf %133, %138 : vector<256x128xf32>
    %c2_179 = arith.constant 2 : index
    %c1_180 = arith.constant 1 : index
    %c0_181 = arith.constant 0 : index
    %140 = vector.load %arg10[%c2_179, %c1_180, %c0_181] : memref<20x20x16xf32, #tpu.memory_space<vmem>>, vector<16x16x16xf32>
    %141 = vector.shape_cast %140 : vector<16x16x16xf32> to vector<256x16xf32>
    %c2_182 = arith.constant 2 : index
    %c1_183 = arith.constant 1 : index
    %c0_184 = arith.constant 0 : index
    %c0_185 = arith.constant 0 : index
    %142 = vector.load %arg4[%c2_182, %c1_183, %c0_184, %c0_185] : memref<5x5x16x128xf32, #tpu.memory_space<vmem>>, vector<1x1x16x128xf32>
    %143 = vector.shape_cast %142 : vector<1x1x16x128xf32> to vector<16x128xf32>
    %cst_186 = arith.constant dense<0.000000e+00> : vector<256x128xf32>
    %144 = tpu.matmul %141, %143, %cst_186 {dimension_numbers = #tpu.dot_dimension_numbers<[1], [0], [0], [1], [0, 0, 1, 1], [], []>} : vector<256x16xf32>, vector<16x128xf32>, vector<256x128xf32> -> vector<256x128xf32>
    %145 = arith.addf %139, %144 : vector<256x128xf32>
    %c2_187 = arith.constant 2 : index
    %c2_188 = arith.constant 2 : index
    %c0_189 = arith.constant 0 : index
    %146 = vector.load %arg10[%c2_187, %c2_188, %c0_189] : memref<20x20x16xf32, #tpu.memory_space<vmem>>, vector<16x16x16xf32>
    %147 = vector.shape_cast %146 : vector<16x16x16xf32> to vector<256x16xf32>
    %c2_190 = arith.constant 2 : index
    %c2_191 = arith.constant 2 : index
    %c0_192 = arith.constant 0 : index
    %c0_193 = arith.constant 0 : index
    %148 = vector.load %arg4[%c2_190, %c2_191, %c0_192, %c0_193] : memref<5x5x16x128xf32, #tpu.memory_space<vmem>>, vector<1x1x16x128xf32>
    %149 = vector.shape_cast %148 : vector<1x1x16x128xf32> to vector<16x128xf32>
    %cst_194 = arith.constant dense<0.000000e+00> : vector<256x128xf32>
    %150 = tpu.matmul %147, %149, %cst_194 {dimension_numbers = #tpu.dot_dimension_numbers<[1], [0], [0], [1], [0, 0, 1, 1], [], []>} : vector<256x16xf32>, vector<16x128xf32>, vector<256x128xf32> -> vector<256x128xf32>
    %151 = arith.addf %145, %150 : vector<256x128xf32>
    %c2_195 = arith.constant 2 : index
    %c3_196 = arith.constant 3 : index
    %c0_197 = arith.constant 0 : index
    %152 = vector.load %arg10[%c2_195, %c3_196, %c0_197] : memref<20x20x16xf32, #tpu.memory_space<vmem>>, vector<16x16x16xf32>
    %153 = vector.shape_cast %152 : vector<16x16x16xf32> to vector<256x16xf32>
    %c2_198 = arith.constant 2 : index
    %c3_199 = arith.constant 3 : index
    %c0_200 = arith.constant 0 : index
    %c0_201 = arith.constant 0 : index
    %154 = vector.load %arg4[%c2_198, %c3_199, %c0_200, %c0_201] : memref<5x5x16x128xf32, #tpu.memory_space<vmem>>, vector<1x1x16x128xf32>
    %155 = vector.shape_cast %154 : vector<1x1x16x128xf32> to vector<16x128xf32>
    %cst_202 = arith.constant dense<0.000000e+00> : vector<256x128xf32>
    %156 = tpu.matmul %153, %155, %cst_202 {dimension_numbers = #tpu.dot_dimension_numbers<[1], [0], [0], [1], [0, 0, 1, 1], [], []>} : vector<256x16xf32>, vector<16x128xf32>, vector<256x128xf32> -> vector<256x128xf32>
    %157 = arith.addf %151, %156 : vector<256x128xf32>
    %c2_203 = arith.constant 2 : index
    %c4_204 = arith.constant 4 : index
    %c0_205 = arith.constant 0 : index
    %158 = vector.load %arg10[%c2_203, %c4_204, %c0_205] : memref<20x20x16xf32, #tpu.memory_space<vmem>>, vector<16x16x16xf32>
    %159 = vector.shape_cast %158 : vector<16x16x16xf32> to vector<256x16xf32>
    %c2_206 = arith.constant 2 : index
    %c4_207 = arith.constant 4 : index
    %c0_208 = arith.constant 0 : index
    %c0_209 = arith.constant 0 : index
    %160 = vector.load %arg4[%c2_206, %c4_207, %c0_208, %c0_209] : memref<5x5x16x128xf32, #tpu.memory_space<vmem>>, vector<1x1x16x128xf32>
    %161 = vector.shape_cast %160 : vector<1x1x16x128xf32> to vector<16x128xf32>
    %cst_210 = arith.constant dense<0.000000e+00> : vector<256x128xf32>
    %162 = tpu.matmul %159, %161, %cst_210 {dimension_numbers = #tpu.dot_dimension_numbers<[1], [0], [0], [1], [0, 0, 1, 1], [], []>} : vector<256x16xf32>, vector<16x128xf32>, vector<256x128xf32> -> vector<256x128xf32>
    %163 = arith.addf %157, %162 : vector<256x128xf32>
    %c3_211 = arith.constant 3 : index
    %c0_212 = arith.constant 0 : index
    %c0_213 = arith.constant 0 : index
    %164 = vector.load %arg10[%c3_211, %c0_212, %c0_213] : memref<20x20x16xf32, #tpu.memory_space<vmem>>, vector<16x16x16xf32>
    %165 = vector.shape_cast %164 : vector<16x16x16xf32> to vector<256x16xf32>
    %c3_214 = arith.constant 3 : index
    %c0_215 = arith.constant 0 : index
    %c0_216 = arith.constant 0 : index
    %c0_217 = arith.constant 0 : index
    %166 = vector.load %arg4[%c3_214, %c0_215, %c0_216, %c0_217] : memref<5x5x16x128xf32, #tpu.memory_space<vmem>>, vector<1x1x16x128xf32>
    %167 = vector.shape_cast %166 : vector<1x1x16x128xf32> to vector<16x128xf32>
    %cst_218 = arith.constant dense<0.000000e+00> : vector<256x128xf32>
    %168 = tpu.matmul %165, %167, %cst_218 {dimension_numbers = #tpu.dot_dimension_numbers<[1], [0], [0], [1], [0, 0, 1, 1], [], []>} : vector<256x16xf32>, vector<16x128xf32>, vector<256x128xf32> -> vector<256x128xf32>
    %169 = arith.addf %163, %168 : vector<256x128xf32>
    %c3_219 = arith.constant 3 : index
    %c1_220 = arith.constant 1 : index
    %c0_221 = arith.constant 0 : index
    %170 = vector.load %arg10[%c3_219, %c1_220, %c0_221] : memref<20x20x16xf32, #tpu.memory_space<vmem>>, vector<16x16x16xf32>
    %171 = vector.shape_cast %170 : vector<16x16x16xf32> to vector<256x16xf32>
    %c3_222 = arith.constant 3 : index
    %c1_223 = arith.constant 1 : index
    %c0_224 = arith.constant 0 : index
    %c0_225 = arith.constant 0 : index
    %172 = vector.load %arg4[%c3_222, %c1_223, %c0_224, %c0_225] : memref<5x5x16x128xf32, #tpu.memory_space<vmem>>, vector<1x1x16x128xf32>
    %173 = vector.shape_cast %172 : vector<1x1x16x128xf32> to vector<16x128xf32>
    %cst_226 = arith.constant dense<0.000000e+00> : vector<256x128xf32>
    %174 = tpu.matmul %171, %173, %cst_226 {dimension_numbers = #tpu.dot_dimension_numbers<[1], [0], [0], [1], [0, 0, 1, 1], [], []>} : vector<256x16xf32>, vector<16x128xf32>, vector<256x128xf32> -> vector<256x128xf32>
    %175 = arith.addf %169, %174 : vector<256x128xf32>
    %c3_227 = arith.constant 3 : index
    %c2_228 = arith.constant 2 : index
    %c0_229 = arith.constant 0 : index
    %176 = vector.load %arg10[%c3_227, %c2_228, %c0_229] : memref<20x20x16xf32, #tpu.memory_space<vmem>>, vector<16x16x16xf32>
    %177 = vector.shape_cast %176 : vector<16x16x16xf32> to vector<256x16xf32>
    %c3_230 = arith.constant 3 : index
    %c2_231 = arith.constant 2 : index
    %c0_232 = arith.constant 0 : index
    %c0_233 = arith.constant 0 : index
    %178 = vector.load %arg4[%c3_230, %c2_231, %c0_232, %c0_233] : memref<5x5x16x128xf32, #tpu.memory_space<vmem>>, vector<1x1x16x128xf32>
    %179 = vector.shape_cast %178 : vector<1x1x16x128xf32> to vector<16x128xf32>
    %cst_234 = arith.constant dense<0.000000e+00> : vector<256x128xf32>
    %180 = tpu.matmul %177, %179, %cst_234 {dimension_numbers = #tpu.dot_dimension_numbers<[1], [0], [0], [1], [0, 0, 1, 1], [], []>} : vector<256x16xf32>, vector<16x128xf32>, vector<256x128xf32> -> vector<256x128xf32>
    %181 = arith.addf %175, %180 : vector<256x128xf32>
    %c3_235 = arith.constant 3 : index
    %c3_236 = arith.constant 3 : index
    %c0_237 = arith.constant 0 : index
    %182 = vector.load %arg10[%c3_235, %c3_236, %c0_237] : memref<20x20x16xf32, #tpu.memory_space<vmem>>, vector<16x16x16xf32>
    %183 = vector.shape_cast %182 : vector<16x16x16xf32> to vector<256x16xf32>
    %c3_238 = arith.constant 3 : index
    %c3_239 = arith.constant 3 : index
    %c0_240 = arith.constant 0 : index
    %c0_241 = arith.constant 0 : index
    %184 = vector.load %arg4[%c3_238, %c3_239, %c0_240, %c0_241] : memref<5x5x16x128xf32, #tpu.memory_space<vmem>>, vector<1x1x16x128xf32>
    %185 = vector.shape_cast %184 : vector<1x1x16x128xf32> to vector<16x128xf32>
    %cst_242 = arith.constant dense<0.000000e+00> : vector<256x128xf32>
    %186 = tpu.matmul %183, %185, %cst_242 {dimension_numbers = #tpu.dot_dimension_numbers<[1], [0], [0], [1], [0, 0, 1, 1], [], []>} : vector<256x16xf32>, vector<16x128xf32>, vector<256x128xf32> -> vector<256x128xf32>
    %187 = arith.addf %181, %186 : vector<256x128xf32>
    %c3_243 = arith.constant 3 : index
    %c4_244 = arith.constant 4 : index
    %c0_245 = arith.constant 0 : index
    %188 = vector.load %arg10[%c3_243, %c4_244, %c0_245] : memref<20x20x16xf32, #tpu.memory_space<vmem>>, vector<16x16x16xf32>
    %189 = vector.shape_cast %188 : vector<16x16x16xf32> to vector<256x16xf32>
    %c3_246 = arith.constant 3 : index
    %c4_247 = arith.constant 4 : index
    %c0_248 = arith.constant 0 : index
    %c0_249 = arith.constant 0 : index
    %190 = vector.load %arg4[%c3_246, %c4_247, %c0_248, %c0_249] : memref<5x5x16x128xf32, #tpu.memory_space<vmem>>, vector<1x1x16x128xf32>
    %191 = vector.shape_cast %190 : vector<1x1x16x128xf32> to vector<16x128xf32>
    %cst_250 = arith.constant dense<0.000000e+00> : vector<256x128xf32>
    %192 = tpu.matmul %189, %191, %cst_250 {dimension_numbers = #tpu.dot_dimension_numbers<[1], [0], [0], [1], [0, 0, 1, 1], [], []>} : vector<256x16xf32>, vector<16x128xf32>, vector<256x128xf32> -> vector<256x128xf32>
    %193 = arith.addf %187, %192 : vector<256x128xf32>
    %c4_251 = arith.constant 4 : index
    %c0_252 = arith.constant 0 : index
    %c0_253 = arith.constant 0 : index
    %194 = vector.load %arg10[%c4_251, %c0_252, %c0_253] : memref<20x20x16xf32, #tpu.memory_space<vmem>>, vector<16x16x16xf32>
    %195 = vector.shape_cast %194 : vector<16x16x16xf32> to vector<256x16xf32>
    %c4_254 = arith.constant 4 : index
    %c0_255 = arith.constant 0 : index
    %c0_256 = arith.constant 0 : index
    %c0_257 = arith.constant 0 : index
    %196 = vector.load %arg4[%c4_254, %c0_255, %c0_256, %c0_257] : memref<5x5x16x128xf32, #tpu.memory_space<vmem>>, vector<1x1x16x128xf32>
    %197 = vector.shape_cast %196 : vector<1x1x16x128xf32> to vector<16x128xf32>
    %cst_258 = arith.constant dense<0.000000e+00> : vector<256x128xf32>
    %198 = tpu.matmul %195, %197, %cst_258 {dimension_numbers = #tpu.dot_dimension_numbers<[1], [0], [0], [1], [0, 0, 1, 1], [], []>} : vector<256x16xf32>, vector<16x128xf32>, vector<256x128xf32> -> vector<256x128xf32>
    %199 = arith.addf %193, %198 : vector<256x128xf32>
    %c4_259 = arith.constant 4 : index
    %c1_260 = arith.constant 1 : index
    %c0_261 = arith.constant 0 : index
    %200 = vector.load %arg10[%c4_259, %c1_260, %c0_261] : memref<20x20x16xf32, #tpu.memory_space<vmem>>, vector<16x16x16xf32>
    %201 = vector.shape_cast %200 : vector<16x16x16xf32> to vector<256x16xf32>
    %c4_262 = arith.constant 4 : index
    %c1_263 = arith.constant 1 : index
    %c0_264 = arith.constant 0 : index
    %c0_265 = arith.constant 0 : index
    %202 = vector.load %arg4[%c4_262, %c1_263, %c0_264, %c0_265] : memref<5x5x16x128xf32, #tpu.memory_space<vmem>>, vector<1x1x16x128xf32>
    %203 = vector.shape_cast %202 : vector<1x1x16x128xf32> to vector<16x128xf32>
    %cst_266 = arith.constant dense<0.000000e+00> : vector<256x128xf32>
    %204 = tpu.matmul %201, %203, %cst_266 {dimension_numbers = #tpu.dot_dimension_numbers<[1], [0], [0], [1], [0, 0, 1, 1], [], []>} : vector<256x16xf32>, vector<16x128xf32>, vector<256x128xf32> -> vector<256x128xf32>
    %205 = arith.addf %199, %204 : vector<256x128xf32>
    %c4_267 = arith.constant 4 : index
    %c2_268 = arith.constant 2 : index
    %c0_269 = arith.constant 0 : index
    %206 = vector.load %arg10[%c4_267, %c2_268, %c0_269] : memref<20x20x16xf32, #tpu.memory_space<vmem>>, vector<16x16x16xf32>
    %207 = vector.shape_cast %206 : vector<16x16x16xf32> to vector<256x16xf32>
    %c4_270 = arith.constant 4 : index
    %c2_271 = arith.constant 2 : index
    %c0_272 = arith.constant 0 : index
    %c0_273 = arith.constant 0 : index
    %208 = vector.load %arg4[%c4_270, %c2_271, %c0_272, %c0_273] : memref<5x5x16x128xf32, #tpu.memory_space<vmem>>, vector<1x1x16x128xf32>
    %209 = vector.shape_cast %208 : vector<1x1x16x128xf32> to vector<16x128xf32>
    %cst_274 = arith.constant dense<0.000000e+00> : vector<256x128xf32>
    %210 = tpu.matmul %207, %209, %cst_274 {dimension_numbers = #tpu.dot_dimension_numbers<[1], [0], [0], [1], [0, 0, 1, 1], [], []>} : vector<256x16xf32>, vector<16x128xf32>, vector<256x128xf32> -> vector<256x128xf32>
    %211 = arith.addf %205, %210 : vector<256x128xf32>
    %c4_275 = arith.constant 4 : index
    %c3_276 = arith.constant 3 : index
    %c0_277 = arith.constant 0 : index
    %212 = vector.load %arg10[%c4_275, %c3_276, %c0_277] : memref<20x20x16xf32, #tpu.memory_space<vmem>>, vector<16x16x16xf32>
    %213 = vector.shape_cast %212 : vector<16x16x16xf32> to vector<256x16xf32>
    %c4_278 = arith.constant 4 : index
    %c3_279 = arith.constant 3 : index
    %c0_280 = arith.constant 0 : index
    %c0_281 = arith.constant 0 : index
    %214 = vector.load %arg4[%c4_278, %c3_279, %c0_280, %c0_281] : memref<5x5x16x128xf32, #tpu.memory_space<vmem>>, vector<1x1x16x128xf32>
    %215 = vector.shape_cast %214 : vector<1x1x16x128xf32> to vector<16x128xf32>
    %cst_282 = arith.constant dense<0.000000e+00> : vector<256x128xf32>
    %216 = tpu.matmul %213, %215, %cst_282 {dimension_numbers = #tpu.dot_dimension_numbers<[1], [0], [0], [1], [0, 0, 1, 1], [], []>} : vector<256x16xf32>, vector<16x128xf32>, vector<256x128xf32> -> vector<256x128xf32>
    %217 = arith.addf %211, %216 : vector<256x128xf32>
    %c4_283 = arith.constant 4 : index
    %c4_284 = arith.constant 4 : index
    %c0_285 = arith.constant 0 : index
    %218 = vector.load %arg10[%c4_283, %c4_284, %c0_285] : memref<20x20x16xf32, #tpu.memory_space<vmem>>, vector<16x16x16xf32>
    %219 = vector.shape_cast %218 : vector<16x16x16xf32> to vector<256x16xf32>
    %c4_286 = arith.constant 4 : index
    %c4_287 = arith.constant 4 : index
    %c0_288 = arith.constant 0 : index
    %c0_289 = arith.constant 0 : index
    %220 = vector.load %arg4[%c4_286, %c4_287, %c0_288, %c0_289] : memref<5x5x16x128xf32, #tpu.memory_space<vmem>>, vector<1x1x16x128xf32>
    %221 = vector.shape_cast %220 : vector<1x1x16x128xf32> to vector<16x128xf32>
    %cst_290 = arith.constant dense<0.000000e+00> : vector<256x128xf32>
    %222 = tpu.matmul %219, %221, %cst_290 {dimension_numbers = #tpu.dot_dimension_numbers<[1], [0], [0], [1], [0, 0, 1, 1], [], []>} : vector<256x16xf32>, vector<16x128xf32>, vector<256x128xf32> -> vector<256x128xf32>
    %223 = arith.addf %217, %222 : vector<256x128xf32>
    %c0_291 = arith.constant 0 : index
    %c0_292 = arith.constant 0 : index
    %224 = vector.load %arg5[%c0_291, %c0_292] : memref<1x128xf32, #tpu.memory_space<vmem>>, vector<1x128xf32>
    %225 = vector.broadcast %224 : vector<1x128xf32> to vector<256x128xf32>
    %226 = arith.addf %223, %225 : vector<256x128xf32>
    %227 = tpu.transpose %226, [1, 0] : vector<256x128xf32> -> vector<128x256xf32>
    %228 = vector.extract_strided_slice %227 {offsets = [40, 0], sizes = [24, 256], strides = [1, 1]} : vector<128x256xf32> to vector<24x256xf32>
    %c0_293 = arith.constant 0 : index
    %c40 = arith.constant 40 : index
    %c0_294 = arith.constant 0 : index
    %229 = vector.load %arg8[%c0_293, %c40, %c0_294] : memref<1x88x256xf32, #tpu.memory_space<vmem>>, vector<1x24x256xf32>
    %230 = vector.shape_cast %229 : vector<1x24x256xf32> to vector<24x256xf32>
    %231 = vector.shape_cast %228 : vector<24x256xf32> to vector<1x24x256xf32>
    tpu.vector_store %arg8[%c0_293, %c40, %c0_294], %231 {strides = array<i32>} : memref<1x88x256xf32, #tpu.memory_space<vmem>>, vector<1x24x256xf32>,
    %cst_295 = arith.constant 0.000000e+00 : f32
    %232 = vector.broadcast %cst_295 : f32 to vector<18x18x24xf32>
    %c0_296 = arith.constant 0 : index
    %c0_297 = arith.constant 0 : index
    %c0_298 = arith.constant 0 : index
    %233 = vector.load %arg11[%c0_296, %c0_297, %c0_298] : memref<18x18x24xf32, #tpu.memory_space<vmem>>, vector<18x18x24xf32>
    tpu.vector_store %arg11[%c0_296, %c0_297, %c0_298], %232 {strides = array<i32>} : memref<18x18x24xf32, #tpu.memory_space<vmem>>, vector<18x18x24xf32>,
    %234 = vector.extract_strided_slice %226 {offsets = [0, 88], sizes = [256, 24], strides = [1, 1]} : vector<256x128xf32> to vector<256x24xf32>
    %235 = vector.shape_cast %234 : vector<256x24xf32> to vector<16x16x24xf32>
    %c1_299 = arith.constant 1 : index
    %c1_300 = arith.constant 1 : index
    %c0_301 = arith.constant 0 : index
    %236 = vector.load %arg11[%c1_299, %c1_300, %c0_301] : memref<18x18x24xf32, #tpu.memory_space<vmem>>, vector<16x16x24xf32>
    tpu.vector_store %arg11[%c1_299, %c1_300, %c0_301], %235 {strides = array<i32>} : memref<18x18x24xf32, #tpu.memory_space<vmem>>, vector<16x16x24xf32>,
    %cst_302 = arith.constant 0.000000e+00 : f32
    %237 = vector.broadcast %cst_302 : f32 to vector<256x128xf32>
    %c0_303 = arith.constant 0 : index
    %c0_304 = arith.constant 0 : index
    %c0_305 = arith.constant 0 : index
    %238 = vector.load %arg11[%c0_303, %c0_304, %c0_305] : memref<18x18x24xf32, #tpu.memory_space<vmem>>, vector<16x16x24xf32>
    %239 = vector.shape_cast %238 : vector<16x16x24xf32> to vector<256x24xf32>
    %c0_306 = arith.constant 0 : index
    %c0_307 = arith.constant 0 : index
    %c0_308 = arith.constant 0 : index
    %c0_309 = arith.constant 0 : index
    %240 = vector.load %arg6[%c0_306, %c0_307, %c0_308, %c0_309] : memref<3x3x24x128xf32, #tpu.memory_space<vmem>>, vector<1x1x24x128xf32>
    %241 = vector.shape_cast %240 : vector<1x1x24x128xf32> to vector<24x128xf32>
    %cst_310 = arith.constant dense<0.000000e+00> : vector<256x128xf32>
    %242 = tpu.matmul %239, %241, %cst_310 {dimension_numbers = #tpu.dot_dimension_numbers<[1], [0], [0], [1], [0, 0, 1, 1], [], []>} : vector<256x24xf32>, vector<24x128xf32>, vector<256x128xf32> -> vector<256x128xf32>
    %243 = arith.addf %237, %242 : vector<256x128xf32>
    %c0_311 = arith.constant 0 : index
    %c1_312 = arith.constant 1 : index
    %c0_313 = arith.constant 0 : index
    %244 = vector.load %arg11[%c0_311, %c1_312, %c0_313] : memref<18x18x24xf32, #tpu.memory_space<vmem>>, vector<16x16x24xf32>
    %245 = vector.shape_cast %244 : vector<16x16x24xf32> to vector<256x24xf32>
    %c0_314 = arith.constant 0 : index
    %c1_315 = arith.constant 1 : index
    %c0_316 = arith.constant 0 : index
    %c0_317 = arith.constant 0 : index
    %246 = vector.load %arg6[%c0_314, %c1_315, %c0_316, %c0_317] : memref<3x3x24x128xf32, #tpu.memory_space<vmem>>, vector<1x1x24x128xf32>
    %247 = vector.shape_cast %246 : vector<1x1x24x128xf32> to vector<24x128xf32>
    %cst_318 = arith.constant dense<0.000000e+00> : vector<256x128xf32>
    %248 = tpu.matmul %245, %247, %cst_318 {dimension_numbers = #tpu.dot_dimension_numbers<[1], [0], [0], [1], [0, 0, 1, 1], [], []>} : vector<256x24xf32>, vector<24x128xf32>, vector<256x128xf32> -> vector<256x128xf32>
    %249 = arith.addf %243, %248 : vector<256x128xf32>
    %c0_319 = arith.constant 0 : index
    %c2_320 = arith.constant 2 : index
    %c0_321 = arith.constant 0 : index
    %250 = vector.load %arg11[%c0_319, %c2_320, %c0_321] : memref<18x18x24xf32, #tpu.memory_space<vmem>>, vector<16x16x24xf32>
    %251 = vector.shape_cast %250 : vector<16x16x24xf32> to vector<256x24xf32>
    %c0_322 = arith.constant 0 : index
    %c2_323 = arith.constant 2 : index
    %c0_324 = arith.constant 0 : index
    %c0_325 = arith.constant 0 : index
    %252 = vector.load %arg6[%c0_322, %c2_323, %c0_324, %c0_325] : memref<3x3x24x128xf32, #tpu.memory_space<vmem>>, vector<1x1x24x128xf32>
    %253 = vector.shape_cast %252 : vector<1x1x24x128xf32> to vector<24x128xf32>
    %cst_326 = arith.constant dense<0.000000e+00> : vector<256x128xf32>
    %254 = tpu.matmul %251, %253, %cst_326 {dimension_numbers = #tpu.dot_dimension_numbers<[1], [0], [0], [1], [0, 0, 1, 1], [], []>} : vector<256x24xf32>, vector<24x128xf32>, vector<256x128xf32> -> vector<256x128xf32>
    %255 = arith.addf %249, %254 : vector<256x128xf32>
    %c1_327 = arith.constant 1 : index
    %c0_328 = arith.constant 0 : index
    %c0_329 = arith.constant 0 : index
    %256 = vector.load %arg11[%c1_327, %c0_328, %c0_329] : memref<18x18x24xf32, #tpu.memory_space<vmem>>, vector<16x16x24xf32>
    %257 = vector.shape_cast %256 : vector<16x16x24xf32> to vector<256x24xf32>
    %c1_330 = arith.constant 1 : index
    %c0_331 = arith.constant 0 : index
    %c0_332 = arith.constant 0 : index
    %c0_333 = arith.constant 0 : index
    %258 = vector.load %arg6[%c1_330, %c0_331, %c0_332, %c0_333] : memref<3x3x24x128xf32, #tpu.memory_space<vmem>>, vector<1x1x24x128xf32>
    %259 = vector.shape_cast %258 : vector<1x1x24x128xf32> to vector<24x128xf32>
    %cst_334 = arith.constant dense<0.000000e+00> : vector<256x128xf32>
    %260 = tpu.matmul %257, %259, %cst_334 {dimension_numbers = #tpu.dot_dimension_numbers<[1], [0], [0], [1], [0, 0, 1, 1], [], []>} : vector<256x24xf32>, vector<24x128xf32>, vector<256x128xf32> -> vector<256x128xf32>
    %261 = arith.addf %255, %260 : vector<256x128xf32>
    %c1_335 = arith.constant 1 : index
    %c1_336 = arith.constant 1 : index
    %c0_337 = arith.constant 0 : index
    %262 = vector.load %arg11[%c1_335, %c1_336, %c0_337] : memref<18x18x24xf32, #tpu.memory_space<vmem>>, vector<16x16x24xf32>
    %263 = vector.shape_cast %262 : vector<16x16x24xf32> to vector<256x24xf32>
    %c1_338 = arith.constant 1 : index
    %c1_339 = arith.constant 1 : index
    %c0_340 = arith.constant 0 : index
    %c0_341 = arith.constant 0 : index
    %264 = vector.load %arg6[%c1_338, %c1_339, %c0_340, %c0_341] : memref<3x3x24x128xf32, #tpu.memory_space<vmem>>, vector<1x1x24x128xf32>
    %265 = vector.shape_cast %264 : vector<1x1x24x128xf32> to vector<24x128xf32>
    %cst_342 = arith.constant dense<0.000000e+00> : vector<256x128xf32>
    %266 = tpu.matmul %263, %265, %cst_342 {dimension_numbers = #tpu.dot_dimension_numbers<[1], [0], [0], [1], [0, 0, 1, 1], [], []>} : vector<256x24xf32>, vector<24x128xf32>, vector<256x128xf32> -> vector<256x128xf32>
    %267 = arith.addf %261, %266 : vector<256x128xf32>
    %c1_343 = arith.constant 1 : index
    %c2_344 = arith.constant 2 : index
    %c0_345 = arith.constant 0 : index
    %268 = vector.load %arg11[%c1_343, %c2_344, %c0_345] : memref<18x18x24xf32, #tpu.memory_space<vmem>>, vector<16x16x24xf32>
    %269 = vector.shape_cast %268 : vector<16x16x24xf32> to vector<256x24xf32>
    %c1_346 = arith.constant 1 : index
    %c2_347 = arith.constant 2 : index
    %c0_348 = arith.constant 0 : index
    %c0_349 = arith.constant 0 : index
    %270 = vector.load %arg6[%c1_346, %c2_347, %c0_348, %c0_349] : memref<3x3x24x128xf32, #tpu.memory_space<vmem>>, vector<1x1x24x128xf32>
    %271 = vector.shape_cast %270 : vector<1x1x24x128xf32> to vector<24x128xf32>
    %cst_350 = arith.constant dense<0.000000e+00> : vector<256x128xf32>
    %272 = tpu.matmul %269, %271, %cst_350 {dimension_numbers = #tpu.dot_dimension_numbers<[1], [0], [0], [1], [0, 0, 1, 1], [], []>} : vector<256x24xf32>, vector<24x128xf32>, vector<256x128xf32> -> vector<256x128xf32>
    %273 = arith.addf %267, %272 : vector<256x128xf32>
    %c2_351 = arith.constant 2 : index
    %c0_352 = arith.constant 0 : index
    %c0_353 = arith.constant 0 : index
    %274 = vector.load %arg11[%c2_351, %c0_352, %c0_353] : memref<18x18x24xf32, #tpu.memory_space<vmem>>, vector<16x16x24xf32>
    %275 = vector.shape_cast %274 : vector<16x16x24xf32> to vector<256x24xf32>
    %c2_354 = arith.constant 2 : index
    %c0_355 = arith.constant 0 : index
    %c0_356 = arith.constant 0 : index
    %c0_357 = arith.constant 0 : index
    %276 = vector.load %arg6[%c2_354, %c0_355, %c0_356, %c0_357] : memref<3x3x24x128xf32, #tpu.memory_space<vmem>>, vector<1x1x24x128xf32>
    %277 = vector.shape_cast %276 : vector<1x1x24x128xf32> to vector<24x128xf32>
    %cst_358 = arith.constant dense<0.000000e+00> : vector<256x128xf32>
    %278 = tpu.matmul %275, %277, %cst_358 {dimension_numbers = #tpu.dot_dimension_numbers<[1], [0], [0], [1], [0, 0, 1, 1], [], []>} : vector<256x24xf32>, vector<24x128xf32>, vector<256x128xf32> -> vector<256x128xf32>
    %279 = arith.addf %273, %278 : vector<256x128xf32>
    %c2_359 = arith.constant 2 : index
    %c1_360 = arith.constant 1 : index
    %c0_361 = arith.constant 0 : index
    %280 = vector.load %arg11[%c2_359, %c1_360, %c0_361] : memref<18x18x24xf32, #tpu.memory_space<vmem>>, vector<16x16x24xf32>
    %281 = vector.shape_cast %280 : vector<16x16x24xf32> to vector<256x24xf32>
    %c2_362 = arith.constant 2 : index
    %c1_363 = arith.constant 1 : index
    %c0_364 = arith.constant 0 : index
    %c0_365 = arith.constant 0 : index
    %282 = vector.load %arg6[%c2_362, %c1_363, %c0_364, %c0_365] : memref<3x3x24x128xf32, #tpu.memory_space<vmem>>, vector<1x1x24x128xf32>
    %283 = vector.shape_cast %282 : vector<1x1x24x128xf32> to vector<24x128xf32>
    %cst_366 = arith.constant dense<0.000000e+00> : vector<256x128xf32>
    %284 = tpu.matmul %281, %283, %cst_366 {dimension_numbers = #tpu.dot_dimension_numbers<[1], [0], [0], [1], [0, 0, 1, 1], [], []>} : vector<256x24xf32>, vector<24x128xf32>, vector<256x128xf32> -> vector<256x128xf32>
    %285 = arith.addf %279, %284 : vector<256x128xf32>
    %c2_367 = arith.constant 2 : index
    %c2_368 = arith.constant 2 : index
    %c0_369 = arith.constant 0 : index
    %286 = vector.load %arg11[%c2_367, %c2_368, %c0_369] : memref<18x18x24xf32, #tpu.memory_space<vmem>>, vector<16x16x24xf32>
    %287 = vector.shape_cast %286 : vector<16x16x24xf32> to vector<256x24xf32>
    %c2_370 = arith.constant 2 : index
    %c2_371 = arith.constant 2 : index
    %c0_372 = arith.constant 0 : index
    %c0_373 = arith.constant 0 : index
    %288 = vector.load %arg6[%c2_370, %c2_371, %c0_372, %c0_373] : memref<3x3x24x128xf32, #tpu.memory_space<vmem>>, vector<1x1x24x128xf32>
    %289 = vector.shape_cast %288 : vector<1x1x24x128xf32> to vector<24x128xf32>
    %cst_374 = arith.constant dense<0.000000e+00> : vector<256x128xf32>
    %290 = tpu.matmul %287, %289, %cst_374 {dimension_numbers = #tpu.dot_dimension_numbers<[1], [0], [0], [1], [0, 0, 1, 1], [], []>} : vector<256x24xf32>, vector<24x128xf32>, vector<256x128xf32> -> vector<256x128xf32>
    %291 = arith.addf %285, %290 : vector<256x128xf32>
    %c0_375 = arith.constant 0 : index
    %c0_376 = arith.constant 0 : index
    %292 = vector.load %arg7[%c0_375, %c0_376] : memref<1x128xf32, #tpu.memory_space<vmem>>, vector<1x128xf32>
    %293 = vector.broadcast %292 : vector<1x128xf32> to vector<256x128xf32>
    %294 = arith.addf %291, %293 : vector<256x128xf32>
    %295 = tpu.transpose %294, [1, 0] : vector<256x128xf32> -> vector<128x256xf32>
    %296 = vector.extract_strided_slice %295 {offsets = [64, 0], sizes = [24, 256], strides = [1, 1]} : vector<128x256xf32> to vector<24x256xf32>
    %c0_377 = arith.constant 0 : index
    %c64 = arith.constant 64 : index
    %c0_378 = arith.constant 0 : index
    %297 = vector.load %arg8[%c0_377, %c64, %c0_378] : memref<1x88x256xf32, #tpu.memory_space<vmem>>, vector<1x24x256xf32>
    %298 = vector.shape_cast %297 : vector<1x24x256xf32> to vector<24x256xf32>
    %299 = vector.shape_cast %296 : vector<24x256xf32> to vector<1x24x256xf32>
    tpu.vector_store %arg8[%c0_377, %c64, %c0_378], %299 {strides = array<i32>} : memref<1x88x256xf32, #tpu.memory_space<vmem>>, vector<1x24x256xf32>,
    return
  }
  func.func @transform_0(%arg0: i32) -> (i32, i32, i32, i32) {
    %c0_i32 = arith.constant 0 : i32
    %c0_i32_0 = arith.constant 0 : i32
    %c0_i32_1 = arith.constant 0 : i32
    %c0_i32_2 = arith.constant 0 : i32
    return %arg0, %c0_i32, %c0_i32_0, %c0_i32_1 : i32, i32, i32, i32
  }
  func.func @transform_1(%arg0: i32) -> (i32, i32, i32, i32) {
    %c0_i32 = arith.constant 0 : i32
    %c0_i32_0 = arith.constant 0 : i32
    %c0_i32_1 = arith.constant 0 : i32
    %c0_i32_2 = arith.constant 0 : i32
    %c0_i32_3 = arith.constant 0 : i32
    return %c0_i32, %c0_i32_0, %c0_i32_1, %c0_i32_2 : i32, i32, i32, i32
  }
  func.func @transform_2(%arg0: i32) -> (i32, i32) {
    %c0_i32 = arith.constant 0 : i32
    %c0_i32_0 = arith.constant 0 : i32
    %c0_i32_1 = arith.constant 0 : i32
    return %c0_i32, %c0_i32_0 : i32, i32
  }
  func.func @transform_3(%arg0: i32) -> (i32, i32, i32, i32) {
    %c0_i32 = arith.constant 0 : i32
    %c0_i32_0 = arith.constant 0 : i32
    %c0_i32_1 = arith.constant 0 : i32
    %c0_i32_2 = arith.constant 0 : i32
    %c0_i32_3 = arith.constant 0 : i32
    return %c0_i32, %c0_i32_0, %c0_i32_1, %c0_i32_2 : i32, i32, i32, i32
  }
  func.func @transform_4(%arg0: i32) -> (i32, i32) {
    %c0_i32 = arith.constant 0 : i32
    %c0_i32_0 = arith.constant 0 : i32
    %c0_i32_1 = arith.constant 0 : i32
    return %c0_i32, %c0_i32_0 : i32, i32
  }
  func.func @transform_5(%arg0: i32) -> (i32, i32, i32, i32) {
    %c0_i32 = arith.constant 0 : i32
    %c0_i32_0 = arith.constant 0 : i32
    %c0_i32_1 = arith.constant 0 : i32
    %c0_i32_2 = arith.constant 0 : i32
    %c0_i32_3 = arith.constant 0 : i32
    return %c0_i32, %c0_i32_0, %c0_i32_1, %c0_i32_2 : i32, i32, i32, i32
  }
  func.func @transform_6(%arg0: i32) -> (i32, i32) {
    %c0_i32 = arith.constant 0 : i32
    %c0_i32_0 = arith.constant 0 : i32
    %c0_i32_1 = arith.constant 0 : i32
    return %c0_i32, %c0_i32_0 : i32, i32
  }
  func.func @transform_7(%arg0: i32) -> (i32, i32, i32) {
    %c0_i32 = arith.constant 0 : i32
    %c0_i32_0 = arith.constant 0 : i32
    %c0_i32_1 = arith.constant 0 : i32
    return %arg0, %c0_i32, %c0_i32_0 : i32, i32, i32
  }
}

</mosaic_0001>

<bundles_post_ra>
// kernel: inception_forward.1
= control target key start
LH: loop header
LB: loop body
LE: loop exit
PB: predicated region body
PF: predicated region fallthrough
CT: control target
= control target key end

     0   :  { %s24406_s24 = smov 0   ;;  %s29401_s0 = inlined_call_operand.vmem [shape: f32[2,16,16,4], index: 0, kind: input, shape index: {}]   ;;  %s29402_s1 = inlined_call_operand.vmem [shape: f32[3,3,4,128], index: 1, kind: input, shape index: {}]   ;;  %s29403_s2 = inlined_call_operand.vmem [shape: f32[1,128], index: 2, kind: input, shape index: {}]   ;;  %s29404_s3 = inlined_call_operand.vmem [shape: f32[5,5,16,128], index: 3, kind: input, shape index: {}]   ;;  %s29405_s4 = inlined_call_operand.vmem [shape: f32[1,128], index: 4, kind: input, shape index: {}]   ;;  %s29406_s5 = inlined_call_operand.vmem [shape: f32[3,3,24,128], index: 5, kind: input, shape index: {}]   ;;  %s29407_s6 = inlined_call_operand.vmem [shape: f32[1,128], index: 6, kind: input, shape index: {}]   ;;  %s29408_s7 = inlined_call_operand.vmem [shape: f32[2,88,256], index: 7, kind: output, shape index: {}]  }
   0x1 LB: > { %s17748_s25 = sadd.s32 4294967295, %s24361_s24   ;;  %p17752_p0 = scmp.ge.s32.totalorder %s24361_s24, 1  ;;  %s24361_s24 = sphi %s24406_s24, %s17_s24  }
   0x2   : > { %p237_p1 = scmp.lt.s32.totalorder %s24361_s24, 3 }
   0x4   : > { %p238_p2 = pnand %p17752_p0, %p237_p1 }
   0x6   : > { %241 = sbr.rel (%p238_p2) target bundleno = 3503 (0xdaf), region = 48 }
   0xd   : > { %v17756_v0 = vld [vmem:[%s29402_s1 + $0x4] sm:$0xf]  ;;  %vm563_vm0 = vcmask 1043456   ;;  %vm279_vm1 = vcmask 31744   ;;  %vm282_vm2 = vcmask 25600   ;;  %v29409_v1 = vmov 0.0  }
   0xe   : > { %20689 = vmatprep.subr.msk.mxu0 %vm563_vm0, %v17756_v0  ;;  %280 = vst.msk [vmem:[#allocation2] sm:$0xff] %vm279_vm1, %v29409_v1  ;;  %281 = vst.msk [vmem:[#allocation2 + $0x8] sm:$0xff] %vm279_vm1, %v29409_v1  ;;  %v432_v2 = vld [vmem:[%s29402_s1] sm:$0xf]  ;;  %p269_p3 = scmp.lt.s32.totalorder %s17748_s25, 1  ;;  %vm3960_vm3 = vcmask 130048  }
   0xf   : > { %284 = vst.msk [vmem:[#allocation2 + $0x18] sm:$0xff] %vm279_vm1, %v29409_v1  ;;  %285 = vst.msk [vmem:[#allocation2 + $0x20] sm:$0xff] %vm279_vm1, %v29409_v1  ;;  %20690 = vmatpush3.msk.msra.mxu0 %vm563_vm0, %v17756_v0  ;;  %v24549_v6 = vld [vmem:[%s29402_s1 + $0x8] sm:$0xf]  ;;  %vm3963_vm4 = vcmask 125952   ;;  %s24364_s14 = smov 104  }
  0x10   : > { %287 = vst.msk [vmem:[#allocation2 + $0x30] sm:$0xff] %vm279_vm1, %v29409_v1  ;;  %288 = vst.msk [vmem:[#allocation2 + $0x38] sm:$0xff] %vm279_vm1, %v29409_v1  ;;  %20739 = vmatprep.subr.msk.mxu0 %vm563_vm0, %v432_v2  ;;  %s30150_s25 = smov (!%p269_p3, %s17748_s25), 1  ;;  %vm13930_vm5 = vcmask 195584   ;;  %vm13933_vm6 = vcmask 189440  }
  0x11   : > { %290 = vst.msk [vmem:[#allocation2 + $0x48] sm:$0xff] %vm279_vm1, %v29409_v1  ;;  %291 = vst.msk [vmem:[#allocation2 + $0x50] sm:$0xff] %vm279_vm1, %v29409_v1  ;;  %s19226_s30 = sshll.u32 %s30150_s25, 8  ;;  %s24343_s17 = smul.u32 176, %s30150_s25 }
  0x12   : > { %293 = vst.msk [vmem:[#allocation2 + $0x60] sm:$0xff] %vm279_vm1, %v29409_v1  ;;  %294 = vst.msk [vmem:[#allocation2 + $0x68] sm:$0xff] %vm279_vm1, %v29409_v1  ;;  %s24541_s10 = scalar_lea.vmem %s29401_s0, %s19226_s30 }
  0x13   : > { %296 = vst.msk [vmem:[#allocation2 + $0x78] sm:$0xff] %vm279_vm1, %v29409_v1  ;;  %297 = vst.msk [vmem:[#allocation2 + $0x80] sm:$0xff] %vm279_vm1, %v29409_v1  ;;  %v335_v3 = vld [vmem:[%s24541_s10] sm:$0xff]  ;;  %v336_v4 = vld [vmem:[%s24541_s10 + $0x8] sm:$0xff]  ;;  %s29337_s20 = scalar_lea.vmem %s29408_s7, %s24343_s17 }
  0x14   : > { %299 = vst.msk [vmem:[#allocation2 + $0x90] sm:$0xff] %vm279_vm1, %v29409_v1  ;;  %300 = vst.msk [vmem:[#allocation2 + $0x98] sm:$0xff] %vm279_vm1, %v29409_v1  ;;  %v337_v5 = vld [vmem:[%s24541_s10 + $0x10] sm:$0xff]  ;;  %v338_v9 = vld [vmem:[%s24541_s10 + $0x18] sm:$0xff] }
  0x15   : > { %302 = vst.msk [vmem:[#allocation2 + $0xa8] sm:$0xff] %vm279_vm1, %v29409_v1  ;;  %303 = vst.msk [vmem:[#allocation2 + $0xb0] sm:$0xff] %vm279_vm1, %v29409_v1  ;;  %v433_v7 = vld [vmem:[#allocation2 + $0x1] sm:$0xff]  ;;  %v341_v12 = vld [vmem:[%s24541_s10 + $0x30] sm:$0xff] }
  0x16   : > { %305 = vst.msk [vmem:[#allocation2 + $0xc0] sm:$0xff] %vm279_vm1, %v29409_v1  ;;  %306 = vst.msk [vmem:[#allocation2 + $0xc8] sm:$0xff] %vm279_vm1, %v29409_v1  ;;  %20691 = vmatprep.mubr.msk.f32.mxu0 %vm279_vm1, %v433_v7  ;;  %v339_v10 = vld [vmem:[%s24541_s10 + $0x20] sm:$0xff]  ;;  %v340_v11 = vld [vmem:[%s24541_s10 + $0x28] sm:$0xff] }
  0x17   : > { %308 = vst.msk [vmem:[#allocation2 + $0xd8] sm:$0xff] %vm279_vm1, %v29409_v1  ;;  %309 = vst.msk [vmem:[#allocation2 + $0xe0] sm:$0xff] %vm279_vm1, %v29409_v1  ;;  %v342_v13 = vld [vmem:[%s24541_s10 + $0x38] sm:$0xff]  ;;  %v343_v14 = vld [vmem:[%s24541_s10 + $0x40] sm:$0xff] }
  0x18   : > { %311 = vst.msk [vmem:[#allocation2 + $0xf0] sm:$0xff] %vm279_vm1, %v29409_v1  ;;  %312 = vst.msk [vmem:[#allocation2 + $0xf8] sm:$0xff] %vm279_vm1, %v29409_v1  ;;  %v344_v15 = vld [vmem:[%s24541_s10 + $0x48] sm:$0xff]  ;;  %v345_v16 = vld [vmem:[%s24541_s10 + $0x50] sm:$0xff] }
  0x19   : > { %314 = vst.msk [vmem:[#allocation2 + $0x108] sm:$0xff] %vm279_vm1, %v29409_v1  ;;  %315 = vst.msk [vmem:[#allocation2 + $0x110] sm:$0xff] %vm279_vm1, %v29409_v1  ;;  %v346_v17 = vld [vmem:[%s24541_s10 + $0x58] sm:$0xff]  ;;  %v347_v18 = vld [vmem:[%s24541_s10 + $0x60] sm:$0xff] }
  0x1a   : > { %317 = vst.msk [vmem:[#allocation2 + $0x120] sm:$0xff] %vm279_vm1, %v29409_v1  ;;  %318 = vst.msk [vmem:[#allocation2 + $0x128] sm:$0xff] %vm279_vm1, %v29409_v1  ;;  %v348_v19 = vld [vmem:[%s24541_s10 + $0x68] sm:$0xff]  ;;  %v349_v20 = vld [vmem:[%s24541_s10 + $0x70] sm:$0xff] }
  0x1b   : > { %320 = vst.msk [vmem:[#allocation2 + $0x138] sm:$0xff] %vm279_vm1, %v29409_v1  ;;  %321 = vst.msk [vmem:[#allocation2 + $0x140] sm:$0xff] %vm279_vm1, %v29409_v1  ;;  %v350_v21 = vld [vmem:[%s24541_s10 + $0x78] sm:$0xff]  ;;  %v351_v22 = vld [vmem:[%s24541_s10 + $0x80] sm:$0xff] }
  0x1c   : > { %323 = vst.msk [vmem:[#allocation2 + $0x150] sm:$0xff] %vm279_vm1, %v29409_v1  ;;  %324 = vst.msk [vmem:[#allocation2 + $0x158] sm:$0xff] %vm279_vm1, %v29409_v1  ;;  %v352_v23 = vld [vmem:[%s24541_s10 + $0x88] sm:$0xff]  ;;  %v353_v24 = vld [vmem:[%s24541_s10 + $0x90] sm:$0xff] }
  0x1d   : > { %326 = vst.msk [vmem:[#allocation2 + $0x168] sm:$0xff] %vm279_vm1, %v29409_v1  ;;  %327 = vst.msk [vmem:[#allocation2 + $0x170] sm:$0xff] %vm279_vm1, %v29409_v1  ;;  %v354_v25 = vld [vmem:[%s24541_s10 + $0x98] sm:$0xff]  ;;  %v355_v26 = vld [vmem:[%s24541_s10 + $0xa0] sm:$0xff] }
  0x1e   : > { %329 = vst.msk [vmem:[#allocation2 + $0x180] sm:$0xff] %vm279_vm1, %v29409_v1  ;;  %330 = vst.msk [vmem:[#allocation2 + $0x188] sm:$0xff] %vm279_vm1, %v29409_v1  ;;  %v356_v27 = vld [vmem:[%s24541_s10 + $0xa8] sm:$0xff]  ;;  %v357_v31 = vld [vmem:[%s24541_s10 + $0xb0] sm:$0xff] }
  0x1f   : > { %332 = vst.msk [vmem:[#allocation2 + $0x198] sm:$0xff] %vm279_vm1, %v29409_v1  ;;  %333 = vst.msk [vmem:[#allocation2 + $0x1a0] sm:$0xff] %vm279_vm1, %v29409_v1  ;;  %v358_v32 = vld [vmem:[%s24541_s10 + $0xb8] sm:$0xff]  ;;  %v359_v37 = vld [vmem:[%s24541_s10 + $0xc0] sm:$0xff] }
  0x20   : > { %283 = vst.msk [vmem:[#allocation2 + $0x10] sm:$0x3] %vm282_vm2, %v29409_v1  ;;  %286 = vst.msk [vmem:[#allocation2 + $0x28] sm:$0x3] %vm282_vm2, %v29409_v1  ;;  %v360_v38 = vld [vmem:[%s24541_s10 + $0xc8] sm:$0xff]  ;;  %v361_v39 = vld [vmem:[%s24541_s10 + $0xd0] sm:$0xff] }
  0x21   : > { %289 = vst.msk [vmem:[#allocation2 + $0x40] sm:$0x3] %vm282_vm2, %v29409_v1  ;;  %292 = vst.msk [vmem:[#allocation2 + $0x58] sm:$0x3] %vm282_vm2, %v29409_v1  ;;  %v362_v40 = vld [vmem:[%s24541_s10 + $0xd8] sm:$0xff]  ;;  %v363_v41 = vld [vmem:[%s24541_s10 + $0xe0] sm:$0xff] }
  0x22   : > { %295 = vst.msk [vmem:[#allocation2 + $0x70] sm:$0x3] %vm282_vm2, %v29409_v1  ;;  %298 = vst.msk [vmem:[#allocation2 + $0x88] sm:$0x3] %vm282_vm2, %v29409_v1  ;;  %v364_v42 = vld [vmem:[%s24541_s10 + $0xe8] sm:$0xff] }
  0x23   : > { %301 = vst.msk [vmem:[#allocation2 + $0xa0] sm:$0x3] %vm282_vm2, %v29409_v1  ;;  %304 = vst.msk [vmem:[#allocation2 + $0xb8] sm:$0x3] %vm282_vm2, %v29409_v1  ;;  %v24739_v7 = vld [vmem:[%s29402_s1 + $0xc] sm:$0xf] }
  0x24   : > { %307 = vst.msk [vmem:[#allocation2 + $0xd0] sm:$0x3] %vm282_vm2, %v29409_v1  ;;  %310 = vst.msk [vmem:[#allocation2 + $0xe8] sm:$0x3] %vm282_vm2, %v29409_v1 }
  0x25   : > { %313 = vst.msk [vmem:[#allocation2 + $0x100] sm:$0x3] %vm282_vm2, %v29409_v1  ;;  %316 = vst.msk [vmem:[#allocation2 + $0x118] sm:$0x3] %vm282_vm2, %v29409_v1 }
  0x26   : > { %319 = vst.msk [vmem:[#allocation2 + $0x130] sm:$0x3] %vm282_vm2, %v29409_v1  ;;  %322 = vst.msk [vmem:[#allocation2 + $0x148] sm:$0x3] %vm282_vm2, %v29409_v1 }
  0x27   : > { %325 = vst.msk [vmem:[#allocation2 + $0x160] sm:$0x3] %vm282_vm2, %v29409_v1  ;;  %328 = vst.msk [vmem:[#allocation2 + $0x178] sm:$0x3] %vm282_vm2, %v29409_v1  ;;  %v434_v8 = vld [vmem:[#allocation2 + $0x9] sm:$0xff] }
  0x28   : > { %331 = vst.msk [vmem:[#allocation2 + $0x190] sm:$0x3] %vm282_vm2, %v29409_v1  ;;  %334 = vst.msk [vmem:[#allocation2 + $0x1a8] sm:$0x3] %vm282_vm2, %v29409_v1  ;;  %20692 = vmatmul.mubr.msk.f32.vlgmr.msra.gmra.mrb[0].mxu0 %vm279_vm1, %v434_v8 }
  0x29   : > { %368 = vst.msk [vmem:[#allocation2 + $0x19] sm:$0xff] %vm279_vm1, %v335_v3  ;;  %369 = vst.msk [vmem:[#allocation2 + $0x21] sm:$0xff] %vm279_vm1, %v336_v4  ;;  %20740 = vmatpush3.msk.msra.mxu0 %vm563_vm0, %v432_v2  ;;  %v400_v3 = vld [vmem:[#allocation2] sm:$0xff]  ;;  %v401_v4 = vld [vmem:[#allocation2 + $0x8] sm:$0xff] }
  0x2a   : > { %370 = vst.msk [vmem:[#allocation2 + $0x31] sm:$0xff] %vm279_vm1, %v337_v5  ;;  %371 = vst.msk [vmem:[#allocation2 + $0x39] sm:$0xff] %vm279_vm1, %v338_v9  ;;  %20789 = vmatprep.subr.msk.mxu0 %vm563_vm0, %v24549_v6 }
  0x2b   : > { %372 = vst.msk [vmem:[#allocation2 + $0x49] sm:$0xff] %vm279_vm1, %v339_v10  ;;  %373 = vst.msk [vmem:[#allocation2 + $0x51] sm:$0xff] %vm279_vm1, %v340_v11 }
  0x2c   : > { %374 = vst.msk [vmem:[#allocation2 + $0x61] sm:$0xff] %vm279_vm1, %v341_v12  ;;  %375 = vst.msk [vmem:[#allocation2 + $0x69] sm:$0xff] %vm279_vm1, %v342_v13 }
  0x2d   : > { %376 = vst.msk [vmem:[#allocation2 + $0x79] sm:$0xff] %vm279_vm1, %v343_v14  ;;  %377 = vst.msk [vmem:[#allocation2 + $0x81] sm:$0xff] %vm279_vm1, %v344_v15 }
  0x2e   : > { %378 = vst.msk [vmem:[#allocation2 + $0x91] sm:$0xff] %vm279_vm1, %v345_v16  ;;  %379 = vst.msk [vmem:[#allocation2 + $0x99] sm:$0xff] %vm279_vm1, %v346_v17 }
  0x2f   : > { %380 = vst.msk [vmem:[#allocation2 + $0xa9] sm:$0xff] %vm279_vm1, %v347_v18  ;;  %381 = vst.msk [vmem:[#allocation2 + $0xb1] sm:$0xff] %vm279_vm1, %v348_v19 }
  0x30   : > { %382 = vst.msk [vmem:[#allocation2 + $0xc1] sm:$0xff] %vm279_vm1, %v349_v20  ;;  %383 = vst.msk [vmem:[#allocation2 + $0xc9] sm:$0xff] %vm279_vm1, %v350_v21  ;;  %v24594_v28 = vld [vmem:[#allocation2 + $0x19] sm:$0xff]  ;;  %v24596_v29 = vld [vmem:[#allocation2 + $0x21] sm:$0xff] }
  0x31   : > { %384 = vst.msk [vmem:[#allocation2 + $0xd9] sm:$0xff] %vm279_vm1, %v351_v22  ;;  %385 = vst.msk [vmem:[#allocation2 + $0xe1] sm:$0xff] %vm279_vm1, %v352_v23  ;;  %v24598_v30 = vld [vmem:[#allocation2 + $0x31] sm:$0xff]  ;;  %20694 = vmatprep.mubr.msk.f32.mxu0 %vm279_vm1, %v24594_v28  ;;  %v24613_v33 = vld [vmem:[#allocation2 + $0x39] sm:$0xff] }
  0x32   : > { %386 = vst.msk [vmem:[#allocation2 + $0xf1] sm:$0xff] %vm279_vm1, %v353_v24  ;;  %387 = vst.msk [vmem:[#allocation2 + $0xf9] sm:$0xff] %vm279_vm1, %v354_v25  ;;  %20695 = vmatmul.mubr.msk.f32.gmra.mrb[2].mxu0 %vm279_vm1, %v24596_v29  ;;  %v24615_v34 = vld [vmem:[#allocation2 + $0x49] sm:$0xff]  ;;  %v24621_v35 = vld [vmem:[#allocation2 + $0x51] sm:$0xff] }
  0x33   : > { %388 = vst.msk [vmem:[#allocation2 + $0x109] sm:$0xff] %vm279_vm1, %v355_v26  ;;  %389 = vst.msk [vmem:[#allocation2 + $0x111] sm:$0xff] %vm279_vm1, %v356_v27  ;;  %20697 = vmatprep.mubr.msk.f32.mxu0 %vm279_vm1, %v24598_v30  ;;  %v24623_v36 = vld [vmem:[#allocation2 + $0x61] sm:$0xff]  ;;  %v24639_v43 = vld [vmem:[#allocation2 + $0x69] sm:$0xff] }
  0x34   : > { %390 = vst.msk [vmem:[#allocation2 + $0x121] sm:$0xff] %vm279_vm1, %v357_v31  ;;  %391 = vst.msk [vmem:[#allocation2 + $0x129] sm:$0xff] %vm279_vm1, %v358_v32  ;;  %v24643_v44 = vld [vmem:[#allocation2 + $0x79] sm:$0xff]  ;;  %v24649_v45 = vld [vmem:[#allocation2 + $0x81] sm:$0xff] }
  0x35   : > { %392 = vst.msk [vmem:[#allocation2 + $0x139] sm:$0xff] %vm279_vm1, %v359_v37  ;;  %393 = vst.msk [vmem:[#allocation2 + $0x141] sm:$0xff] %vm279_vm1, %v360_v38  ;;  %v24651_v46 = vld [vmem:[#allocation2 + $0x91] sm:$0xff]  ;;  %v24657_v47 = vld [vmem:[#allocation2 + $0x99] sm:$0xff] }
  0x36   : > { %20698 = vmatmul.mubr.msk.f32.gmra.mrb[4].mxu0 %vm279_vm1, %v24613_v33  ;;  %394 = vst.msk [vmem:[#allocation2 + $0x151] sm:$0xff] %vm279_vm1, %v361_v39  ;;  %395 = vst.msk [vmem:[#allocation2 + $0x159] sm:$0xff] %vm279_vm1, %v362_v40  ;;  %v24659_v48 = vld [vmem:[#allocation2 + $0xa9] sm:$0xff]  ;;  %v24665_v49 = vld [vmem:[#allocation2 + $0xb1] sm:$0xff] }
  0x37   : > { %20700 = vmatprep.mubr.msk.f32.mxu0 %vm279_vm1, %v24615_v34  ;;  %396 = vst.msk [vmem:[#allocation2 + $0x169] sm:$0xff] %vm279_vm1, %v363_v41  ;;  %397 = vst.msk [vmem:[#allocation2 + $0x171] sm:$0xff] %vm279_vm1, %v364_v42  ;;  %v24667_v50 = vld [vmem:[#allocation2 + $0xc1] sm:$0xff]  ;;  %v24673_v51 = vld [vmem:[#allocation2 + $0xc9] sm:$0xff] }
  0x38   : > { %v24675_v52 = vld [vmem:[#allocation2 + $0xd9] sm:$0xff]  ;;  %v24681_v53 = vld [vmem:[#allocation2 + $0xe1] sm:$0xff]  ;;  %v24748_v9 = vld [vmem:[#allocation2 + $0x30] sm:$0xff] }
  0x39   : > { %v24683_v54 = vld [vmem:[#allocation2 + $0xf1] sm:$0xff]  ;;  %v24689_v55 = vld [vmem:[#allocation2 + $0xf9] sm:$0xff]  ;;  %v24758_v11 = vld [vmem:[#allocation2 + $0x48] sm:$0xff] }
  0x3a   : > { %20701 = vmatmul.mubr.msk.f32.gmra.mrb[6].mxu0 %vm279_vm1, %v24621_v35  ;;  %v24691_v56 = vld [vmem:[#allocation2 + $0x109] sm:$0xff]  ;;  %v24697_v57 = vld [vmem:[#allocation2 + $0x111] sm:$0xff]  ;;  %v24746_v8 = vld [vmem:[#allocation2 + $0x20] sm:$0xff] }
  0x3b   : > { %20703 = vmatprep.mubr.msk.f32.mxu0 %vm279_vm1, %v24623_v36  ;;  %v24699_v58 = vld [vmem:[#allocation2 + $0x121] sm:$0xff]  ;;  %v24705_v59 = vld [vmem:[#allocation2 + $0x129] sm:$0xff]  ;;  %v24734_v5 = vld [vmem:[#allocation2 + $0x18] sm:$0xff] }
  0x3c   : > { %v24707_v60 = vld [vmem:[#allocation2 + $0x139] sm:$0xff]  ;;  %v24713_v61 = vld [vmem:[#allocation2 + $0x141] sm:$0xff]  ;;  %v24782_v16 = vld [vmem:[#allocation2 + $0x90] sm:$0xff] }
  0x3d   : > { %v24715_v62 = vld [vmem:[#allocation2 + $0x151] sm:$0xff]  ;;  %v24721_v63 = vld [vmem:[#allocation2 + $0x159] sm:$0xff]  ;;  %v24772_v13 = vld [vmem:[#allocation2 + $0x68] sm:$0xff] }
  0x3e   : > { %20704 = vmatmul.mubr.msk.f32.gmra.mrb[8].mxu0 %vm279_vm1, %v24639_v43  ;;  %29663 = vst [vmem:[#allocation5_spill] sm:$0xff] %v24715_v62  ;;  %29664 = vst [vmem:[#allocation6_spill] sm:$0xff] %v24721_v63  ;;  %v24723_v0 = vld [vmem:[#allocation2 + $0x169] sm:$0xff]  ;;  %v24729_v2 = vld [vmem:[#allocation2 + $0x171] sm:$0xff] }
  0x3f   : > { %20706 = vmatprep.mubr.msk.f32.mxu0 %vm279_vm1, %v24643_v44  ;;  %29665 = vst [vmem:[#allocation7_spill] sm:$0xff] %v24723_v0  ;;  %29666 = vst [vmem:[#allocation8_spill] sm:$0xff] %v24729_v2  ;;  %v24756_v10 = vld [vmem:[#allocation2 + $0x38] sm:$0xff]  ;;  %v24766_v12 = vld [vmem:[#allocation2 + $0x60] sm:$0xff] }
  0x40   : > { %v24774_v14 = vld [vmem:[#allocation2 + $0x78] sm:$0xff]  ;;  %v24780_v15 = vld [vmem:[#allocation2 + $0x80] sm:$0xff]  ;;  %v24790_v18 = vld [vmem:[#allocation2 + $0xa8] sm:$0xff] }
  0x41   : > { %v24788_v17 = vld [vmem:[#allocation2 + $0x98] sm:$0xff]  ;;  %v24796_v19 = vld [vmem:[#allocation2 + $0xb0] sm:$0xff]  ;;  %v24798_v20 = vld [vmem:[#allocation2 + $0xc0] sm:$0xff] }
  0x42   : > { %20707 = vmatmul.mubr.msk.f32.gmra.mrb[10].mxu0 %vm279_vm1, %v24649_v45  ;;  %v24804_v21 = vld [vmem:[#allocation2 + $0xc8] sm:$0xff]  ;;  %v24806_v22 = vld [vmem:[#allocation2 + $0xd8] sm:$0xff]  ;;  %v24812_v23 = vld [vmem:[#allocation2 + $0xe0] sm:$0xff] }
  0x43   : > { %20709 = vmatprep.mubr.msk.f32.mxu0 %vm279_vm1, %v24651_v46  ;;  %v24814_v24 = vld [vmem:[#allocation2 + $0xf0] sm:$0xff]  ;;  %v24820_v25 = vld [vmem:[#allocation2 + $0xf8] sm:$0xff]  ;;  %v24822_v26 = vld [vmem:[#allocation2 + $0x108] sm:$0xff] }
  0x44   : > { %v24828_v27 = vld [vmem:[#allocation2 + $0x110] sm:$0xff]  ;;  %v24830_v31 = vld [vmem:[#allocation2 + $0x120] sm:$0xff]  ;;  %v24836_v32 = vld [vmem:[#allocation2 + $0x128] sm:$0xff] }
  0x45   : > { %v24838_v37 = vld [vmem:[#allocation2 + $0x138] sm:$0xff]  ;;  %v24844_v38 = vld [vmem:[#allocation2 + $0x140] sm:$0xff]  ;;  %v24846_v39 = vld [vmem:[#allocation2 + $0x150] sm:$0xff] }
  0x46   : > { %20710 = vmatmul.mubr.msk.f32.gmra.mrb[12].mxu0 %vm279_vm1, %v24657_v47  ;;  %v365_v40 = vld [vmem:[%s24541_s10 + $0xf0] sm:$0xff]  ;;  %v366_v41 = vld [vmem:[%s24541_s10 + $0xf8] sm:$0xff] }
  0x47   : > { %20712 = vmatprep.mubr.msk.f32.mxu0 %vm279_vm1, %v24659_v48  ;;  %398 = vst.msk [vmem:[#allocation2 + $0x181] sm:$0xff] %vm279_vm1, %v365_v40  ;;  %399 = vst.msk [vmem:[#allocation2 + $0x189] sm:$0xff] %vm279_vm1, %v366_v41  ;;  %v24856_v42 = vld [vmem:[#allocation2 + $0x158] sm:$0xff]  ;;  %v1116_v40 = vld [vmem:[#allocation2 + $0x2] sm:$0xff] }
  0x48   : > { %v1117_v41 = vld [vmem:[#allocation2 + $0xa] sm:$0xff]  ;;  %v24869_v1 = vld [vmem:[#allocation2 + $0x1a] sm:$0xff] }
  0x49   : > { %29667 = vst [vmem:[#allocation9_spill] sm:$0xff] %v24869_v1 }
  0x4a   : > { %20713 = vmatmul.mubr.msk.f32.gmra.mrb[14].mxu0 %vm279_vm1, %v24665_v49 }
  0x4b   : > { %20715 = vmatprep.mubr.msk.f32.mxu0 %vm279_vm1, %v24667_v50 }
  0x4e   : > { %20716 = vmatmul.mubr.msk.f32.gmra.mrb[16].mxu0 %vm279_vm1, %v24673_v51 }
  0x4f   : > { %20718 = vmatprep.mubr.msk.f32.mxu0 %vm279_vm1, %v24675_v52 }
  0x52   : > { %20719 = vmatmul.mubr.msk.f32.gmra.mrb[18].mxu0 %vm279_vm1, %v24681_v53 }
  0x53   : > { %20721 = vmatprep.mubr.msk.f32.mxu0 %vm279_vm1, %v24683_v54 }
  0x56   : > { %20722 = vmatmul.mubr.msk.f32.gmra.mrb[20].mxu0 %vm279_vm1, %v24689_v55 }
  0x57   : > { %20724 = vmatprep.mubr.msk.f32.mxu0 %vm279_vm1, %v24691_v56 }
  0x5a   : > { %20725 = vmatmul.mubr.msk.f32.gmra.mrb[22].mxu0 %vm279_vm1, %v24697_v57 }
  0x5b   : > { %20727 = vmatprep.mubr.msk.f32.mxu0 %vm279_vm1, %v24699_v58 }
  0x5e   : > { %20728 = vmatmul.mubr.msk.f32.gmra.mrb[24].mxu0 %vm279_vm1, %v24705_v59 }
  0x5f   : > { %20730 = vmatprep.mubr.msk.f32.mxu0 %vm279_vm1, %v24707_v60 }
  0x62   : > { %20731 = vmatmul.mubr.msk.f32.gmra.mrb[26].mxu0 %vm279_vm1, %v24713_v61 }
  0x63   : > { %20733 = vmatprep.mubr.msk.f32.mxu0 %vm279_vm1, %v24715_v62 }
  0x66   : > { %20734 = vmatmul.mubr.msk.f32.gmra.mrb[28].mxu0 %vm279_vm1, %v24721_v63  ;;  %v24883_v63 = vld [vmem:[#allocation2 + $0x32] sm:$0xff] }
  0x67   : > { %20736 = vmatprep.mubr.msk.f32.mxu0 %vm279_vm1, %v24723_v0  ;;  %v24881_v0 = vld [vmem:[#allocation2 + $0x22] sm:$0xff]  ;;  %29669 = vst [vmem:[#allocation11_spill] sm:$0xff] %v24883_v63 }
  0x68   : > { %29668 = vst [vmem:[#allocation10_spill] sm:$0xff] %v24881_v0 }
  0x6a   : > { %20737 = vmatmul.mubr.msk.f32.gmra.mrb[30].mxu0 %vm279_vm1, %v24729_v2  ;;  %v24874_v2 = vld [vmem:[%s29402_s1 + $0x10] sm:$0xf] }
  0x6b   : > { %20741 = vmatprep.mubr.msk.f32.mxu0 %vm279_vm1, %v400_v3  ;;  %v24858_v3 = vld [vmem:[#allocation2 + $0x168] sm:$0xff] }
  0x6e   : > { %20742 = vmatmul.mubr.msk.f32.vlgmr.msra.gmra.mrb[0].mxu0 %vm279_vm1, %v401_v4  ;;  %v24864_v4 = vld [vmem:[#allocation2 + $0x170] sm:$0xff] }
  0x6f   : > { %20790 = vmatpush3.msk.msra.mxu0 %vm563_vm0, %v24549_v6  ;;  %20744 = vmatprep.mubr.msk.f32.mxu0 %vm279_vm1, %v24734_v5  ;;  %v24764_v6 = vld [vmem:[#allocation2 + $0x50] sm:$0xff] }
  0x70   : > { %20839 = vmatprep.subr.msk.mxu0 %vm563_vm0, %v24739_v7 }
  0x72   : > { %20745 = vmatmul.mubr.msk.f32.gmra.mrb[2].mxu0 %vm279_vm1, %v24746_v8 }
  0x73   : > { %20747 = vmatprep.mubr.msk.f32.mxu0 %vm279_vm1, %v24748_v9 }
  0x76   : > { %20748 = vmatmul.mubr.msk.f32.gmra.mrb[4].mxu0 %vm279_vm1, %v24756_v10 }
  0x77   : > { %20750 = vmatprep.mubr.msk.f32.mxu0 %vm279_vm1, %v24758_v11 }
  0x7a   : > { %20751 = vmatmul.mubr.msk.f32.gmra.mrb[6].mxu0 %vm279_vm1, %v24764_v6 }
  0x7b   : > { %20753 = vmatprep.mubr.msk.f32.mxu0 %vm279_vm1, %v24766_v12 }
  0x7e   : > { %20754 = vmatmul.mubr.msk.f32.gmra.mrb[8].mxu0 %vm279_vm1, %v24772_v13 }
  0x7f   : > { %20756 = vmatprep.mubr.msk.f32.mxu0 %vm279_vm1, %v24774_v14 }
  0x82   : > { %20757 = vmatmul.mubr.msk.f32.gmra.mrb[10].mxu0 %vm279_vm1, %v24780_v15 }
  0x83   : > { %20759 = vmatprep.mubr.msk.f32.mxu0 %vm279_vm1, %v24782_v16 }
  0x86   : > { %20760 = vmatmul.mubr.msk.f32.gmra.mrb[12].mxu0 %vm279_vm1, %v24788_v17 }
  0x87   : > { %20762 = vmatprep.mubr.msk.f32.mxu0 %vm279_vm1, %v24790_v18 }
  0x8a   : > { %20763 = vmatmul.mubr.msk.f32.gmra.mrb[14].mxu0 %vm279_vm1, %v24796_v19 }
  0x8b   : > { %20765 = vmatprep.mubr.msk.f32.mxu0 %vm279_vm1, %v24798_v20 }
  0x8e   : > { %20766 = vmatmul.mubr.msk.f32.gmra.mrb[16].mxu0 %vm279_vm1, %v24804_v21 }
  0x8f   : > { %20768 = vmatprep.mubr.msk.f32.mxu0 %vm279_vm1, %v24806_v22 }
  0x92   : > { %20769 = vmatmul.mubr.msk.f32.gmra.mrb[18].mxu0 %vm279_vm1, %v24812_v23 }
  0x93   : > { %20771 = vmatprep.mubr.msk.f32.mxu0 %vm279_vm1, %v24814_v24 }
  0x96   : > { %20772 = vmatmul.mubr.msk.f32.gmra.mrb[20].mxu0 %vm279_vm1, %v24820_v25 }
  0x97   : > { %20774 = vmatprep.mubr.msk.f32.mxu0 %vm279_vm1, %v24822_v26 }
  0x9a   : > { %20775 = vmatmul.mubr.msk.f32.gmra.mrb[22].mxu0 %vm279_vm1, %v24828_v27 }
  0x9b   : > { %20777 = vmatprep.mubr.msk.f32.mxu0 %vm279_vm1, %v24830_v31 }
  0x9e   : > { %20778 = vmatmul.mubr.msk.f32.gmra.mrb[24].mxu0 %vm279_vm1, %v24836_v32 }
  0x9f   : > { %20780 = vmatprep.mubr.msk.f32.mxu0 %vm279_vm1, %v24838_v37 }
  0xa2   : > { %20781 = vmatmul.mubr.msk.f32.gmra.mrb[26].mxu0 %vm279_vm1, %v24844_v38 }
  0xa3   : > { %20783 = vmatprep.mubr.msk.f32.mxu0 %vm279_vm1, %v24846_v39 }
  0xa6   : > { %20784 = vmatmul.mubr.msk.f32.gmra.mrb[28].mxu0 %vm279_vm1, %v24856_v42 }
  0xa7   : > { %20786 = vmatprep.mubr.msk.f32.mxu0 %vm279_vm1, %v24858_v3 }
  0xaa   : > { %20787 = vmatmul.mubr.msk.f32.gmra.mrb[30].mxu0 %vm279_vm1, %v24864_v4 }
  0xab   : > { %20791 = vmatprep.mubr.msk.f32.mxu0 %vm279_vm1, %v1116_v40  ;;  %v24891_v40 = vld [vmem:[#allocation2 + $0x3a] sm:$0xff] }
  0xac   : > { %29670 = vst [vmem:[#allocation12_spill] sm:$0xff] %v24891_v40 }
  0xae   : > { %20792 = vmatmul.mubr.msk.f32.vlgmr.msra.gmra.mrb[0].mxu0 %vm279_vm1, %v1117_v41  ;;  %v24893_v41 = vld [vmem:[#allocation2 + $0x4a] sm:$0xff] }
  0xaf   : > { %20840 = vmatpush3.msk.msra.mxu0 %vm563_vm0, %v24739_v7  ;;  %20794 = vmatprep.mubr.msk.f32.mxu0 %vm279_vm1, %v24869_v1  ;;  %29671 = vst [vmem:[#allocation13_spill] sm:$0xff] %v24893_v41  ;;  %v24899_v7 = vld [vmem:[#allocation2 + $0x52] sm:$0xff]  ;;  %v24901_v1 = vld [vmem:[#allocation2 + $0x62] sm:$0xff] }
  0xb0   : > { %20889 = vmatprep.subr.msk.mxu0 %vm563_vm0, %v24874_v2  ;;  %29672 = vst [vmem:[#allocation14_spill] sm:$0xff] %v24899_v7  ;;  %29673 = vst [vmem:[#allocation15_spill] sm:$0xff] %v24901_v1 }
  0xb2   : > { %20795 = vmatmul.mubr.msk.f32.gmra.mrb[2].mxu0 %vm279_vm1, %v24881_v0  ;;  %v24909_v0 = vld [vmem:[#allocation2 + $0x7a] sm:$0xff] }
  0xb3   : > { %20797 = vmatprep.mubr.msk.f32.mxu0 %vm279_vm1, %v24883_v63  ;;  %v24907_v63 = vld [vmem:[#allocation2 + $0x6a] sm:$0xff]  ;;  %29675 = vst [vmem:[#allocation17_spill] sm:$0xff] %v24909_v0 }
  0xb4   : > { %29674 = vst [vmem:[#allocation16_spill] sm:$0xff] %v24907_v63 }
  0xb6   : > { %20798 = vmatmul.mubr.msk.f32.gmra.mrb[4].mxu0 %vm279_vm1, %v24891_v40  ;;  %v24917_v40 = vld [vmem:[#allocation2 + $0x92] sm:$0xff] }
  0xb7   : > { %20800 = vmatprep.mubr.msk.f32.mxu0 %vm279_vm1, %v24893_v41  ;;  %v24915_v41 = vld [vmem:[#allocation2 + $0x82] sm:$0xff]  ;;  %29677 = vst [vmem:[#allocation19_spill] sm:$0xff] %v24917_v40 }
  0xb8   : > { %29676 = vst [vmem:[#allocation18_spill] sm:$0xff] %v24915_v41 }
  0xba   : > { %20801 = vmatmul.mubr.msk.f32.gmra.mrb[6].mxu0 %vm279_vm1, %v24899_v7  ;;  %v24925_v7 = vld [vmem:[#allocation2 + $0xaa] sm:$0xff] }
  0xbb   : > { %20803 = vmatprep.mubr.msk.f32.mxu0 %vm279_vm1, %v24901_v1  ;;  %v24923_v1 = vld [vmem:[#allocation2 + $0x9a] sm:$0xff]  ;;  %29679 = vst [vmem:[#allocation21_spill] sm:$0xff] %v24925_v7 }
  0xbc   : > { %29678 = vst [vmem:[#allocation20_spill] sm:$0xff] %v24923_v1 }
  0xbe   : > { %20804 = vmatmul.mubr.msk.f32.gmra.mrb[8].mxu0 %vm279_vm1, %v24907_v63  ;;  %v24933_v63 = vld [vmem:[#allocation2 + $0xc2] sm:$0xff] }
  0xbf   : > { %20806 = vmatprep.mubr.msk.f32.mxu0 %vm279_vm1, %v24909_v0  ;;  %v24931_v0 = vld [vmem:[#allocation2 + $0xb2] sm:$0xff]  ;;  %29681 = vst [vmem:[#allocation23_spill] sm:$0xff] %v24933_v63 }
  0xc0   : > { %29680 = vst [vmem:[#allocation22_spill] sm:$0xff] %v24931_v0 }
  0xc2   : > { %20807 = vmatmul.mubr.msk.f32.gmra.mrb[10].mxu0 %vm279_vm1, %v24915_v41  ;;  %v24941_v41 = vld [vmem:[#allocation2 + $0xda] sm:$0xff] }
  0xc3   : > { %20809 = vmatprep.mubr.msk.f32.mxu0 %vm279_vm1, %v24917_v40  ;;  %v24939_v40 = vld [vmem:[#allocation2 + $0xca] sm:$0xff]  ;;  %29683 = vst [vmem:[#allocation25_spill] sm:$0xff] %v24941_v41 }
  0xc4   : > { %29682 = vst [vmem:[#allocation24_spill] sm:$0xff] %v24939_v40 }
  0xc6   : > { %20810 = vmatmul.mubr.msk.f32.gmra.mrb[12].mxu0 %vm279_vm1, %v24923_v1  ;;  %v24949_v1 = vld [vmem:[#allocation2 + $0xf2] sm:$0xff] }
  0xc7   : > { %20812 = vmatprep.mubr.msk.f32.mxu0 %vm279_vm1, %v24925_v7  ;;  %v24947_v7 = vld [vmem:[#allocation2 + $0xe2] sm:$0xff]  ;;  %29685 = vst [vmem:[#allocation27_spill] sm:$0xff] %v24949_v1 }
  0xc8   : > { %29684 = vst [vmem:[#allocation26_spill] sm:$0xff] %v24947_v7 }
  0xca   : > { %20813 = vmatmul.mubr.msk.f32.gmra.mrb[14].mxu0 %vm279_vm1, %v24931_v0  ;;  %v24957_v0 = vld [vmem:[#allocation2 + $0x10a] sm:$0xff] }
  0xcb   : > { %20815 = vmatprep.mubr.msk.f32.mxu0 %vm279_vm1, %v24933_v63  ;;  %v24955_v63 = vld [vmem:[#allocation2 + $0xfa] sm:$0xff]  ;;  %29687 = vst [vmem:[#allocation29_spill] sm:$0xff] %v24957_v0 }
  0xcc   : > { %29686 = vst [vmem:[#allocation28_spill] sm:$0xff] %v24955_v63 }
  0xce   : > { %20816 = vmatmul.mubr.msk.f32.gmra.mrb[16].mxu0 %vm279_vm1, %v24939_v40  ;;  %v24965_v40 = vld [vmem:[#allocation2 + $0x122] sm:$0xff] }
  0xcf   : > { %20818 = vmatprep.mubr.msk.f32.mxu0 %vm279_vm1, %v24941_v41  ;;  %v24963_v41 = vld [vmem:[#allocation2 + $0x112] sm:$0xff]  ;;  %29689 = vst [vmem:[#allocation31_spill] sm:$0xff] %v24965_v40 }
  0xd0   : > { %29688 = vst [vmem:[#allocation30_spill] sm:$0xff] %v24963_v41 }
  0xd2   : > { %20819 = vmatmul.mubr.msk.f32.gmra.mrb[18].mxu0 %vm279_vm1, %v24947_v7  ;;  %v24973_v7 = vld [vmem:[#allocation2 + $0x13a] sm:$0xff] }
  0xd3   : > { %20821 = vmatprep.mubr.msk.f32.mxu0 %vm279_vm1, %v24949_v1  ;;  %v24971_v1 = vld [vmem:[#allocation2 + $0x12a] sm:$0xff]  ;;  %29690 = vst [vmem:[#allocation32_spill] sm:$0xff] %v24973_v7 }
  0xd6   : > { %20822 = vmatmul.mubr.msk.f32.gmra.mrb[20].mxu0 %vm279_vm1, %v24955_v63  ;;  %v24981_v63 = vld [vmem:[#allocation2 + $0x152] sm:$0xff] }
  0xd7   : > { %20824 = vmatprep.mubr.msk.f32.mxu0 %vm279_vm1, %v24957_v0  ;;  %v24979_v0 = vld [vmem:[#allocation2 + $0x142] sm:$0xff]  ;;  %29691 = vst [vmem:[#allocation33_spill] sm:$0xff] %v24981_v63 }
  0xda   : > { %20825 = vmatmul.mubr.msk.f32.gmra.mrb[22].mxu0 %vm279_vm1, %v24963_v41  ;;  %v24989_v41 = vld [vmem:[#allocation2 + $0x16a] sm:$0xff] }
  0xdb   : > { %20827 = vmatprep.mubr.msk.f32.mxu0 %vm279_vm1, %v24965_v40  ;;  %v24987_v40 = vld [vmem:[#allocation2 + $0x15a] sm:$0xff]  ;;  %29692 = vst [vmem:[#allocation34_spill] sm:$0xff] %v24989_v41 }
  0xde   : > { %20828 = vmatmul.mubr.msk.f32.gmra.mrb[24].mxu0 %vm279_vm1, %v24971_v1 }
  0xdf   : > { %20830 = vmatprep.mubr.msk.f32.mxu0 %vm279_vm1, %v24973_v7  ;;  %v24995_v7 = vld [vmem:[#allocation2 + $0x172] sm:$0xff] }
  0xe2   : > { %20831 = vmatmul.mubr.msk.f32.gmra.mrb[26].mxu0 %vm279_vm1, %v24979_v0 }
  0xe3   : > { %20833 = vmatprep.mubr.msk.f32.mxu0 %vm279_vm1, %v24981_v63  ;;  %v17925_v63 = vld [vmem:[%s29402_s1 + $0x14] sm:$0xf] }
  0xe6   : > { %20834 = vmatmul.mubr.msk.f32.gmra.mrb[28].mxu0 %vm279_vm1, %v24987_v40 }
  0xe7   : > { %20836 = vmatprep.mubr.msk.f32.mxu0 %vm279_vm1, %v24989_v41 }
  0xea   : > { %20837 = vmatmul.mubr.msk.f32.gmra.mrb[30].mxu0 %vm279_vm1, %v24995_v7 }
  0xeb   : > { %20841 = vmatprep.mubr.msk.f32.mxu0 %vm279_vm1, %v24734_v5  ;;  %v25069_v5 = vld [vmem:[#allocation2 + $0x188] sm:$0xff] }
  0xee   : > { %20842 = vmatmul.mubr.msk.f32.vlgmr.msra.gmra.mrb[0].mxu0 %vm279_vm1, %v24746_v8  ;;  %v17959_v8 = vld [vmem:[%s29402_s1 + $0x18] sm:$0xf] }
  0xef   : > { %20890 = vmatpush3.msk.msra.mxu0 %vm563_vm0, %v24874_v2  ;;  %20844 = vmatprep.mubr.msk.f32.mxu0 %vm279_vm1, %v24748_v9  ;;  %v25063_v2 = vld [vmem:[#allocation2 + $0x180] sm:$0xff] }
  0xf0   : > { %20939 = vmatprep.subr.msk.mxu0 %vm563_vm0, %v17925_v63 }
  0xf2   : > { %20845 = vmatmul.mubr.msk.f32.gmra.mrb[2].mxu0 %vm279_vm1, %v24756_v10 }
  0xf3   : > { %20847 = vmatprep.mubr.msk.f32.mxu0 %vm279_vm1, %v24758_v11 }
  0xf6   : > { %20848 = vmatmul.mubr.msk.f32.gmra.mrb[4].mxu0 %vm279_vm1, %v24764_v6 }
  0xf7   : > { %20850 = vmatprep.mubr.msk.f32.mxu0 %vm279_vm1, %v24766_v12 }
  0xfa   : > { %20851 = vmatmul.mubr.msk.f32.gmra.mrb[6].mxu0 %vm279_vm1, %v24772_v13 }
  0xfb   : > { %20853 = vmatprep.mubr.msk.f32.mxu0 %vm279_vm1, %v24774_v14 }
  0xfe   : > { %20854 = vmatmul.mubr.msk.f32.gmra.mrb[8].mxu0 %vm279_vm1, %v24780_v15 }
  0xff   : > { %20856 = vmatprep.mubr.msk.f32.mxu0 %vm279_vm1, %v24782_v16 }
 0x102   : > { %20857 = vmatmul.mubr.msk.f32.gmra.mrb[10].mxu0 %vm279_vm1, %v24788_v17 }
 0x103   : > { %20859 = vmatprep.mubr.msk.f32.mxu0 %vm279_vm1, %v24790_v18 }
 0x106   : > { %20860 = vmatmul.mubr.msk.f32.gmra.mrb[12].mxu0 %vm279_vm1, %v24796_v19 }
 0x107   : > { %20862 = vmatprep.mubr.msk.f32.mxu0 %vm279_vm1, %v24798_v20 }
 0x10a   : > { %20863 = vmatmul.mubr.msk.f32.gmra.mrb[14].mxu0 %vm279_vm1, %v24804_v21 }
 0x10b   : > { %20865 = vmatprep.mubr.msk.f32.mxu0 %vm279_vm1, %v24806_v22 }
 0x10e   : > { %20866 = vmatmul.mubr.msk.f32.gmra.mrb[16].mxu0 %vm279_vm1, %v24812_v23 }
 0x10f   : > { %20868 = vmatprep.mubr.msk.f32.mxu0 %vm279_vm1, %v24814_v24 }
 0x112   : > { %20869 = vmatmul.mubr.msk.f32.gmra.mrb[18].mxu0 %vm279_vm1, %v24820_v25 }
 0x113   : > { %20871 = vmatprep.mubr.msk.f32.mxu0 %vm279_vm1, %v24822_v26 }
 0x116   : > { %20872 = vmatmul.mubr.msk.f32.gmra.mrb[20].mxu0 %vm279_vm1, %v24828_v27 }
 0x117   : > { %20874 = vmatprep.mubr.msk.f32.mxu0 %vm279_vm1, %v24830_v31 }
 0x11a   : > { %20875 = vmatmul.mubr.msk.f32.gmra.mrb[22].mxu0 %vm279_vm1, %v24836_v32 }
 0x11b   : > { %20877 = vmatprep.mubr.msk.f32.mxu0 %vm279_vm1, %v24838_v37 }
 0x11e   : > { %20878 = vmatmul.mubr.msk.f32.gmra.mrb[24].mxu0 %vm279_vm1, %v24844_v38 }
 0x11f   : > { %20880 = vmatprep.mubr.msk.f32.mxu0 %vm279_vm1, %v24846_v39 }
 0x122   : > { %20881 = vmatmul.mubr.msk.f32.gmra.mrb[26].mxu0 %vm279_vm1, %v24856_v42 }
 0x123   : > { %20883 = vmatprep.mubr.msk.f32.mxu0 %vm279_vm1, %v24858_v3 }
 0x126   : > { %20884 = vmatmul.mubr.msk.f32.gmra.mrb[28].mxu0 %vm279_vm1, %v24864_v4 }
 0x127   : > { %20886 = vmatprep.mubr.msk.f32.mxu0 %vm279_vm1, %v25063_v2 }
 0x12a   : > { %20887 = vmatmul.mubr.msk.f32.gmra.mrb[30].mxu0 %vm279_vm1, %v25069_v5 }
 0x12b   : > { %20891 = vmatprep.mubr.msk.f32.mxu0 %vm279_vm1, %v24594_v28  ;;  %v29693_v28 = vld [vmem:[#allocation6_spill] sm:$0xff] }
 0x12e   : > { %20892 = vmatmul.mubr.msk.f32.vlgmr.msra.gmra.mrb[0].mxu0 %vm279_vm1, %v24596_v29  ;;  %v29694_v29 = vld [vmem:[#allocation7_spill] sm:$0xff] }
 0x12f   : > { %20940 = vmatpush3.msk.msra.mxu0 %vm563_vm0, %v17925_v63  ;;  %20894 = vmatprep.mubr.msk.f32.mxu0 %vm279_vm1, %v24598_v30  ;;  %v25136_v30 = vld [vmem:[#allocation2 + $0x181] sm:$0xff]  ;;  %v17993_v63 = vld [vmem:[%s29402_s1 + $0x1c] sm:$0xf] }
 0x130   : > { %20989 = vmatprep.subr.msk.mxu0 %vm563_vm0, %v17959_v8  ;;  %29695 = vst [vmem:[#allocation35_spill] sm:$0xff] %v25136_v30 }
 0x132   : > { %20895 = vmatmul.mubr.msk.f32.gmra.mrb[2].mxu0 %vm279_vm1, %v24613_v33  ;;  %v29696_v33 = vld [vmem:[#allocation8_spill] sm:$0xff] }
 0x133   : > { %20897 = vmatprep.mubr.msk.f32.mxu0 %vm279_vm1, %v24615_v34  ;;  %v25142_v34 = vld [vmem:[#allocation2 + $0x189] sm:$0xff] }
 0x134   : > { %29697 = vst [vmem:[#allocation36_spill] sm:$0xff] %v25142_v34 }
 0x136   : > { %20898 = vmatmul.mubr.msk.f32.gmra.mrb[4].mxu0 %vm279_vm1, %v24621_v35  ;;  %v29698_v35 = vld [vmem:[#allocation9_spill] sm:$0xff] }
 0x137   : > { %20900 = vmatprep.mubr.msk.f32.mxu0 %vm279_vm1, %v24623_v36 }
 0x13a   : > { %20901 = vmatmul.mubr.msk.f32.gmra.mrb[6].mxu0 %vm279_vm1, %v24639_v43 }
 0x13b   : > { %20903 = vmatprep.mubr.msk.f32.mxu0 %vm279_vm1, %v24643_v44 }
 0x13e   : > { %20904 = vmatmul.mubr.msk.f32.gmra.mrb[8].mxu0 %vm279_vm1, %v24649_v45 }
 0x13f   : > { %20906 = vmatprep.mubr.msk.f32.mxu0 %vm279_vm1, %v24651_v46 }
 0x142   : > { %20907 = vmatmul.mubr.msk.f32.gmra.mrb[10].mxu0 %vm279_vm1, %v24657_v47 }
 0x143   : > { %20909 = vmatprep.mubr.msk.f32.mxu0 %vm279_vm1, %v24659_v48 }
 0x146   : > { %20910 = vmatmul.mubr.msk.f32.gmra.mrb[12].mxu0 %vm279_vm1, %v24665_v49 }
 0x147   : > { %20912 = vmatprep.mubr.msk.f32.mxu0 %vm279_vm1, %v24667_v50 }
 0x14a   : > { %20913 = vmatmul.mubr.msk.f32.gmra.mrb[14].mxu0 %vm279_vm1, %v24673_v51 }
 0x14b   : > { %20915 = vmatprep.mubr.msk.f32.mxu0 %vm279_vm1, %v24675_v52 }
 0x14e   : > { %20916 = vmatmul.mubr.msk.f32.gmra.mrb[16].mxu0 %vm279_vm1, %v24681_v53 }
 0x14f   : > { %20918 = vmatprep.mubr.msk.f32.mxu0 %vm279_vm1, %v24683_v54 }
 0x152   : > { %20919 = vmatmul.mubr.msk.f32.gmra.mrb[18].mxu0 %vm279_vm1, %v24689_v55 }
 0x153   : > { %20921 = vmatprep.mubr.msk.f32.mxu0 %vm279_vm1, %v24691_v56 }
 0x156   : > { %20922 = vmatmul.mubr.msk.f32.gmra.mrb[20].mxu0 %vm279_vm1, %v24697_v57 }
 0x157   : > { %20924 = vmatprep.mubr.msk.f32.mxu0 %vm279_vm1, %v24699_v58 }
 0x15a   : > { %20925 = vmatmul.mubr.msk.f32.gmra.mrb[22].mxu0 %vm279_vm1, %v24705_v59 }
 0x15b   : > { %20927 = vmatprep.mubr.msk.f32.mxu0 %vm279_vm1, %v24707_v60 }
 0x15e   : > { %20928 = vmatmul.mubr.msk.f32.gmra.mrb[24].mxu0 %vm279_vm1, %v24713_v61 }
 0x15f   : > { %20930 = vmatprep.mubr.msk.f32.mxu0 %vm279_vm1, %v24715_v62  ;;  %v29708_v62 = vld [vmem:[#allocation19_spill] sm:$0xff] }
 0x162   : > { %20931 = vmatmul.mubr.msk.f32.gmra.mrb[26].mxu0 %vm279_vm1, %v29693_v28  ;;  %v29704_v28 = vld [vmem:[#allocation15_spill] sm:$0xff] }
 0x163   : > { %20933 = vmatprep.mubr.msk.f32.mxu0 %vm279_vm1, %v29694_v29  ;;  %v29699_v29 = vld [vmem:[#allocation10_spill] sm:$0xff] }
 0x166   : > { %20934 = vmatmul.mubr.msk.f32.gmra.mrb[28].mxu0 %vm279_vm1, %v29696_v33  ;;  %v29700_v33 = vld [vmem:[#allocation11_spill] sm:$0xff] }
 0x167   : > { %20936 = vmatprep.mubr.msk.f32.mxu0 %vm279_vm1, %v25136_v30  ;;  %v29701_v30 = vld [vmem:[#allocation12_spill] sm:$0xff] }
 0x16a   : > { %20937 = vmatmul.mubr.msk.f32.gmra.mrb[30].mxu0 %vm279_vm1, %v25142_v34  ;;  %v29702_v34 = vld [vmem:[#allocation13_spill] sm:$0xff] }
 0x16b   : > { %20941 = vmatprep.mubr.msk.f32.mxu0 %vm279_vm1, %v29698_v35  ;;  %v29703_v35 = vld [vmem:[#allocation14_spill] sm:$0xff] }
 0x16e   : > { %20942 = vmatmul.mubr.msk.f32.vlgmr.msra.gmra.mrb[0].mxu0 %vm279_vm1, %v29699_v29  ;;  %v29705_v29 = vld [vmem:[#allocation16_spill] sm:$0xff] }
 0x16f   : > { %20990 = vmatpush3.msk.msra.mxu0 %vm563_vm0, %v17959_v8  ;;  %20944 = vmatprep.mubr.msk.f32.mxu0 %vm279_vm1, %v29700_v33  ;;  %v29706_v8 = vld [vmem:[#allocation17_spill] sm:$0xff]  ;;  %v29707_v33 = vld [vmem:[#allocation18_spill] sm:$0xff] }
 0x170   : > { %21039 = vmatprep.subr.msk.mxu0 %vm563_vm0, %v17993_v63 }
 0x172   : > { %20945 = vmatmul.mubr.msk.f32.gmra.mrb[2].mxu0 %vm279_vm1, %v29701_v30  ;;  %v29709_v30 = vld [vmem:[#allocation20_spill] sm:$0xff] }
 0x173   : > { %20947 = vmatprep.mubr.msk.f32.mxu0 %vm279_vm1, %v29702_v34  ;;  %v29710_v34 = vld [vmem:[#allocation21_spill] sm:$0xff] }
 0x176   : > { %20948 = vmatmul.mubr.msk.f32.gmra.mrb[4].mxu0 %vm279_vm1, %v29703_v35  ;;  %v29711_v35 = vld [vmem:[#allocation22_spill] sm:$0xff] }
 0x177   : > { %20950 = vmatprep.mubr.msk.f32.mxu0 %vm279_vm1, %v29704_v28  ;;  %v29712_v28 = vld [vmem:[#allocation23_spill] sm:$0xff] }
 0x17a   : > { %20951 = vmatmul.mubr.msk.f32.gmra.mrb[6].mxu0 %vm279_vm1, %v29705_v29  ;;  %v29713_v29 = vld [vmem:[#allocation24_spill] sm:$0xff] }
 0x17b   : > { %20953 = vmatprep.mubr.msk.f32.mxu0 %vm279_vm1, %v29706_v8  ;;  %v29714_v8 = vld [vmem:[#allocation25_spill] sm:$0xff] }
 0x17e   : > { %20954 = vmatmul.mubr.msk.f32.gmra.mrb[8].mxu0 %vm279_vm1, %v29707_v33  ;;  %v29715_v33 = vld [vmem:[#allocation26_spill] sm:$0xff] }
 0x17f   : > { %20956 = vmatprep.mubr.msk.f32.mxu0 %vm279_vm1, %v29708_v62  ;;  %v29716_v62 = vld [vmem:[#allocation27_spill] sm:$0xff] }
 0x182   : > { %20957 = vmatmul.mubr.msk.f32.gmra.mrb[10].mxu0 %vm279_vm1, %v29709_v30  ;;  %v29717_v30 = vld [vmem:[#allocation28_spill] sm:$0xff] }
 0x183   : > { %20959 = vmatprep.mubr.msk.f32.mxu0 %vm279_vm1, %v29710_v34  ;;  %v29718_v34 = vld [vmem:[#allocation29_spill] sm:$0xff] }
 0x186   : > { %20960 = vmatmul.mubr.msk.f32.gmra.mrb[12].mxu0 %vm279_vm1, %v29711_v35  ;;  %v29719_v35 = vld [vmem:[#allocation30_spill] sm:$0xff] }
 0x187   : > { %20962 = vmatprep.mubr.msk.f32.mxu0 %vm279_vm1, %v29712_v28  ;;  %v29720_v28 = vld [vmem:[#allocation31_spill] sm:$0xff] }
 0x18a   : > { %20963 = vmatmul.mubr.msk.f32.gmra.mrb[14].mxu0 %vm279_vm1, %v29713_v29 }
 0x18b   : > { %20965 = vmatprep.mubr.msk.f32.mxu0 %vm279_vm1, %v29714_v8  ;;  %v29721_v8 = vld [vmem:[#allocation32_spill] sm:$0xff] }
 0x18e   : > { %20966 = vmatmul.mubr.msk.f32.gmra.mrb[16].mxu0 %vm279_vm1, %v29715_v33 }
 0x18f   : > { %20968 = vmatprep.mubr.msk.f32.mxu0 %vm279_vm1, %v29716_v62  ;;  %v29722_v62 = vld [vmem:[#allocation33_spill] sm:$0xff] }
 0x192   : > { %20969 = vmatmul.mubr.msk.f32.gmra.mrb[18].mxu0 %vm279_vm1, %v29717_v30 }
 0x193   : > { %20971 = vmatprep.mubr.msk.f32.mxu0 %vm279_vm1, %v29718_v34 }
 0x196   : > { %20972 = vmatmul.mubr.msk.f32.gmra.mrb[20].mxu0 %vm279_vm1, %v29719_v35  ;;  %v25209_v35 = vld [vmem:[#allocation2 + $0x182] sm:$0xff] }
 0x197   : > { %20974 = vmatprep.mubr.msk.f32.mxu0 %vm279_vm1, %v29720_v28 }
 0x19a   : > { %20975 = vmatmul.mubr.msk.f32.gmra.mrb[22].mxu0 %vm279_vm1, %v24971_v1 }
 0x19b   : > { %20977 = vmatprep.mubr.msk.f32.mxu0 %vm279_vm1, %v29721_v8  ;;  %v25215_v8 = vld [vmem:[#allocation2 + $0x18a] sm:$0xff] }
 0x19e   : > { %20978 = vmatmul.mubr.msk.f32.gmra.mrb[24].mxu0 %vm279_vm1, %v24979_v0 }
 0x19f   : > { %20980 = vmatprep.mubr.msk.f32.mxu0 %vm279_vm1, %v29722_v62 }
 0x1a2   : > { %20981 = vmatmul.mubr.msk.f32.gmra.mrb[26].mxu0 %vm279_vm1, %v24987_v40 }
 0x1a3   : > { %20983 = vmatprep.mubr.msk.f32.mxu0 %vm279_vm1, %v24989_v41  ;;  %v18027_v41 = vld [vmem:[%s29402_s1 + $0x20] sm:$0xf] }
 0x1a6   : > { %20984 = vmatmul.mubr.msk.f32.gmra.mrb[28].mxu0 %vm279_vm1, %v24995_v7 }
 0x1a7   : > { %20986 = vmatprep.mubr.msk.f32.mxu0 %vm279_vm1, %v25209_v35 }
 0x1aa   : > { %20987 = vmatmul.mubr.msk.f32.gmra.mrb[30].mxu0 %vm279_vm1, %v25215_v8 }
 0x1ab   : > { %20991 = vmatprep.mubr.msk.f32.mxu0 %vm279_vm1, %v24748_v9  ;;  %v2707_v9 = vld [vmem:[#allocation2 + $0x198] sm:$0xff] }
 0x1ae   : > { %20992 = vmatmul.mubr.msk.f32.vlgmr.msra.gmra.mrb[0].mxu0 %vm279_vm1, %v24756_v10  ;;  %v2708_v10 = vld [vmem:[#allocation2 + $0x1a0] sm:$0xff] }
 0x1af   : > { %21040 = vmatpush3.msk.msra.mxu0 %vm563_vm0, %v17993_v63  ;;  %20994 = vmatprep.mubr.msk.f32.mxu0 %vm279_vm1, %v24758_v11  ;;  %v3067_v11 = vld [vmem:[#allocation2 + $0x31] sm:$0xff] }
 0x1b0   : > { %21089 = vmatprep.subr.msk.mxu0 %vm563_vm0, %v18027_v41 }
 0x1b2   : > { %20995 = vmatmul.mubr.msk.f32.gmra.mrb[2].mxu0 %vm279_vm1, %v24764_v6  ;;  %v3068_v6 = vld [vmem:[#allocation2 + $0x39] sm:$0xff] }
 0x1b3   : > { %20997 = vmatprep.mubr.msk.f32.mxu0 %vm279_vm1, %v24766_v12  ;;  %v3069_v12 = vld [vmem:[#allocation2 + $0x49] sm:$0xff] }
 0x1b6   : > { %20998 = vmatmul.mubr.msk.f32.gmra.mrb[4].mxu0 %vm279_vm1, %v24772_v13  ;;  %v3070_v13 = vld [vmem:[#allocation2 + $0x51] sm:$0xff] }
 0x1b7   : > { %21000 = vmatprep.mubr.msk.f32.mxu0 %vm279_vm1, %v24774_v14  ;;  %v29741_v14 = vld [vmem:[#allocation23_spill] sm:$0xff] }
 0x1ba   : > { %21001 = vmatmul.mubr.msk.f32.gmra.mrb[6].mxu0 %vm279_vm1, %v24780_v15  ;;  %v29742_v15 = vld [vmem:[#allocation25_spill] sm:$0xff] }
 0x1bb   : > { %21003 = vmatprep.mubr.msk.f32.mxu0 %vm279_vm1, %v24782_v16  ;;  %v29743_v16 = vld [vmem:[#allocation27_spill] sm:$0xff] }
 0x1be   : > { %21004 = vmatmul.mubr.msk.f32.gmra.mrb[8].mxu0 %vm279_vm1, %v24788_v17  ;;  %v29744_v17 = vld [vmem:[#allocation30_spill] sm:$0xff] }
 0x1bf   : > { %21006 = vmatprep.mubr.msk.f32.mxu0 %vm279_vm1, %v24790_v18  ;;  %v29745_v18 = vld [vmem:[#allocation32_spill] sm:$0xff] }
 0x1c2   : > { %21007 = vmatmul.mubr.msk.f32.gmra.mrb[10].mxu0 %vm279_vm1, %v24796_v19  ;;  %v29746_v19 = vld [vmem:[#allocation34_spill] sm:$0xff] }
 0x1c3   : > { %21009 = vmatprep.mubr.msk.f32.mxu0 %vm279_vm1, %v24798_v20 }
 0x1c6   : > { %21010 = vmatmul.mubr.msk.f32.gmra.mrb[12].mxu0 %vm279_vm1, %v24804_v21 }
 0x1c7   : > { %21012 = vmatprep.mubr.msk.f32.mxu0 %vm279_vm1, %v24806_v22 }
 0x1ca   : > { %21013 = vmatmul.mubr.msk.f32.gmra.mrb[14].mxu0 %vm279_vm1, %v24812_v23 }
 0x1cb   : > { %21015 = vmatprep.mubr.msk.f32.mxu0 %vm279_vm1, %v24814_v24 }
 0x1ce   : > { %21016 = vmatmul.mubr.msk.f32.gmra.mrb[16].mxu0 %vm279_vm1, %v24820_v25 }
 0x1cf   : > { %21018 = vmatprep.mubr.msk.f32.mxu0 %vm279_vm1, %v24822_v26 }
 0x1d2   : > { %21019 = vmatmul.mubr.msk.f32.gmra.mrb[18].mxu0 %vm279_vm1, %v24828_v27 }
 0x1d3   : > { %21021 = vmatprep.mubr.msk.f32.mxu0 %vm279_vm1, %v24830_v31 }
 0x1d6   : > { %21022 = vmatmul.mubr.msk.f32.gmra.mrb[20].mxu0 %vm279_vm1, %v24836_v32 }
 0x1d7   : > { %21024 = vmatprep.mubr.msk.f32.mxu0 %vm279_vm1, %v24838_v37 }
 0x1da   : > { %21025 = vmatmul.mubr.msk.f32.gmra.mrb[22].mxu0 %vm279_vm1, %v24844_v38 }
 0x1db   : > { %21027 = vmatprep.mubr.msk.f32.mxu0 %vm279_vm1, %v24846_v39  ;;  %v18162_v39 = vld [vmem:[%s29404_s3 + $0x30] sm:$0xff] }
 0x1de   : > { %21028 = vmatmul.mubr.msk.f32.gmra.mrb[24].mxu0 %vm279_vm1, %v24856_v42  ;;  %v18163_v42 = vld [vmem:[%s29404_s3 + $0x38] sm:$0xff] }
 0x1df   : > { %21030 = vmatprep.mubr.msk.f32.mxu0 %vm279_vm1, %v24858_v3  ;;  %v25557_v3 = vpack.c.bf16 %v18163_v42, %v18162_v39 }
 0x1e1   : > { %23061 = vmatprep.subr.bf16.mxu1 %v25557_v3 }
 0x1e2   : > { %21031 = vmatmul.mubr.msk.f32.gmra.mrb[26].mxu0 %vm279_vm1, %v24864_v4  ;;  %23062 = vmatpush3.bf16.msra.mxu1 %v25557_v3 }
 0x1e3   : > { %21033 = vmatprep.mubr.msk.f32.mxu0 %vm279_vm1, %v25063_v2  ;;  %v18196_v2 = vld [vmem:[%s29404_s3 + $0x40] sm:$0xff] }
 0x1e6   : > { %21034 = vmatmul.mubr.msk.f32.gmra.mrb[28].mxu0 %vm279_vm1, %v25069_v5  ;;  %v18197_v5 = vld [vmem:[%s29404_s3 + $0x48] sm:$0xff] }
 0x1e7   : > { %21036 = vmatprep.mubr.msk.f32.mxu0 %vm279_vm1, %v2707_v9 }
 0x1ea   : > { %21037 = vmatmul.mubr.msk.f32.gmra.mrb[30].mxu0 %vm279_vm1, %v2708_v10 }
 0x1eb   : > { %21041 = vmatprep.mubr.msk.f32.mxu0 %vm279_vm1, %v3067_v11 }
 0x1ee   : > { %21042 = vmatmul.mubr.msk.f32.vlgmr.msra.gmra.mrb[0].mxu0 %vm279_vm1, %v3068_v6 }
 0x1ef   : > { %21090 = vmatpush3.msk.msra.mxu0 %vm563_vm0, %v18027_v41  ;;  %21044 = vmatprep.mubr.msk.f32.mxu0 %vm279_vm1, %v3069_v12 }
 0x1f2   : > { %21045 = vmatmul.mubr.msk.f32.gmra.mrb[2].mxu0 %vm279_vm1, %v3070_v13 }
 0x1f3   : > { %21047 = vmatprep.mubr.msk.f32.mxu0 %vm279_vm1, %v24623_v36  ;;  %v29723_v36 = vld [vmem:[#allocation5_spill] sm:$0xff] }
 0x1f6   : > { %21048 = vmatmul.mubr.msk.f32.gmra.mrb[4].mxu0 %vm279_vm1, %v24639_v43  ;;  %v29724_v43 = vld [vmem:[#allocation6_spill] sm:$0xff] }
 0x1f7   : > { %21050 = vmatprep.mubr.msk.f32.mxu0 %vm279_vm1, %v24643_v44  ;;  %v29725_v44 = vld [vmem:[#allocation7_spill] sm:$0xff] }
 0x1fa   : > { %21051 = vmatmul.mubr.msk.f32.gmra.mrb[6].mxu0 %vm279_vm1, %v24649_v45  ;;  %v29726_v45 = vld [vmem:[#allocation8_spill] sm:$0xff] }
 0x1fb   : > { %21053 = vmatprep.mubr.msk.f32.mxu0 %vm279_vm1, %v24651_v46  ;;  %v29727_v46 = vld [vmem:[#allocation35_spill] sm:$0xff] }
 0x1fe   : > { %21054 = vmatmul.mubr.msk.f32.gmra.mrb[8].mxu0 %vm279_vm1, %v24657_v47  ;;  %v3097_v47 = vld [vmem:[#allocation2 + $0x199] sm:$0xff] }
 0x1ff   : > { %21056 = vmatprep.mubr.msk.f32.mxu0 %vm279_vm1, %v24659_v48  ;;  %v29728_v48 = vld [vmem:[#allocation36_spill] sm:$0xff] }
 0x202   : > { %21057 = vmatmul.mubr.msk.f32.gmra.mrb[10].mxu0 %vm279_vm1, %v24665_v49  ;;  %v3098_v49 = vld [vmem:[#allocation2 + $0x1a1] sm:$0xff] }
 0x203   : > { %21059 = vmatprep.mubr.msk.f32.mxu0 %vm279_vm1, %v24667_v50  ;;  %v29729_v50 = vld [vmem:[#allocation11_spill] sm:$0xff] }
 0x206   : > { %21060 = vmatmul.mubr.msk.f32.gmra.mrb[12].mxu0 %vm279_vm1, %v24673_v51  ;;  %v29730_v51 = vld [vmem:[#allocation12_spill] sm:$0xff] }
 0x207   : > { %21062 = vmatprep.mubr.msk.f32.mxu0 %vm279_vm1, %v24675_v52  ;;  %v29731_v52 = vld [vmem:[#allocation13_spill] sm:$0xff] }
 0x20a   : > { %21063 = vmatmul.mubr.msk.f32.gmra.mrb[14].mxu0 %vm279_vm1, %v24681_v53  ;;  %v29732_v53 = vld [vmem:[#allocation14_spill] sm:$0xff] }
 0x20b   : > { %21065 = vmatprep.mubr.msk.f32.mxu0 %vm279_vm1, %v24683_v54  ;;  %v29733_v54 = vld [vmem:[#allocation15_spill] sm:$0xff] }
 0x20e   : > { %21066 = vmatmul.mubr.msk.f32.gmra.mrb[16].mxu0 %vm279_vm1, %v24689_v55  ;;  %v29734_v55 = vld [vmem:[#allocation16_spill] sm:$0xff] }
 0x20f   : > { %21068 = vmatprep.mubr.msk.f32.mxu0 %vm279_vm1, %v24691_v56  ;;  %v29735_v56 = vld [vmem:[#allocation17_spill] sm:$0xff] }
 0x212   : > { %21069 = vmatmul.mubr.msk.f32.gmra.mrb[18].mxu0 %vm279_vm1, %v24697_v57  ;;  %v29736_v57 = vld [vmem:[#allocation18_spill] sm:$0xff] }
 0x213   : > { %21071 = vmatprep.mubr.msk.f32.mxu0 %vm279_vm1, %v24699_v58  ;;  %v29737_v58 = vld [vmem:[#allocation19_spill] sm:$0xff] }
 0x216   : > { %21072 = vmatmul.mubr.msk.f32.gmra.mrb[20].mxu0 %vm279_vm1, %v24705_v59  ;;  %v29738_v59 = vld [vmem:[#allocation20_spill] sm:$0xff] }
 0x217   : > { %21074 = vmatprep.mubr.msk.f32.mxu0 %vm279_vm1, %v24707_v60  ;;  %v29739_v60 = vld [vmem:[#allocation21_spill] sm:$0xff] }
 0x21a   : > { %21075 = vmatmul.mubr.msk.f32.gmra.mrb[22].mxu0 %vm279_vm1, %v24713_v61  ;;  %v29740_v61 = vld [vmem:[#allocation22_spill] sm:$0xff] }
 0x21b   : > { %21077 = vmatprep.mubr.msk.f32.mxu0 %vm279_vm1, %v29723_v36 }
 0x21e   : > { %21078 = vmatmul.mubr.msk.f32.gmra.mrb[24].mxu0 %vm279_vm1, %v29724_v43 }
 0x21f   : > { %21080 = vmatprep.mubr.msk.f32.mxu0 %vm279_vm1, %v29725_v44 }
 0x222   : > { %21081 = vmatmul.mubr.msk.f32.gmra.mrb[26].mxu0 %vm279_vm1, %v29726_v45  ;;  %v18062_v45 = vld [vmem:[%s29404_s3 + $0x10] sm:$0xff] }
 0x223   : > { %21083 = vmatprep.mubr.msk.f32.mxu0 %vm279_vm1, %v29727_v46  ;;  %v18063_v46 = vld [vmem:[%s29404_s3 + $0x18] sm:$0xff] }
 0x226   : > { %21084 = vmatmul.mubr.msk.f32.gmra.mrb[28].mxu0 %vm279_vm1, %v29728_v48  ;;  %v22925_v48 = vpack.c.bf16 %v18063_v46, %v18062_v45 }
 0x227   : > { %21086 = vmatprep.mubr.msk.f32.mxu0 %vm279_vm1, %v3097_v47 }
 0x228   : > { %22926 = vmatprep.subr.bf16.mxu0 %v22925_v48 }
 0x22a   : > { %21087 = vmatmul.mubr.msk.f32.gmra.mrb[30].mxu0 %vm279_vm1, %v3098_v49 }
 0x22b   : > { %21091 = vmatprep.mubr.msk.f32.mxu0 %vm279_vm1, %v29729_v50 }
 0x22e   : > { %21092 = vmatmul.mubr.msk.f32.vlgmr.msra.gmra.mrb[0].mxu0 %vm279_vm1, %v29730_v51 }
 0x22f   : > { %21094 = vmatprep.mubr.msk.f32.mxu0 %vm279_vm1, %v29731_v52  ;;  %22928 = vmatpush3.bf16.msra.mxu0 %v22925_v48 }
 0x232   : > { %21095 = vmatmul.mubr.msk.f32.gmra.mrb[2].mxu0 %vm279_vm1, %v29732_v53 }
 0x233   : > { %21097 = vmatprep.mubr.msk.f32.mxu0 %vm279_vm1, %v29733_v54 }
 0x236   : > { %21098 = vmatmul.mubr.msk.f32.gmra.mrb[4].mxu0 %vm279_vm1, %v29734_v55 }
 0x237   : > { %21100 = vmatprep.mubr.msk.f32.mxu0 %vm279_vm1, %v29735_v56 }
 0x23a   : > { %21101 = vmatmul.mubr.msk.f32.gmra.mrb[6].mxu0 %vm279_vm1, %v29736_v57 }
 0x23b   : > { %21103 = vmatprep.mubr.msk.f32.mxu0 %vm279_vm1, %v29737_v58 }
 0x23e   : > { %21104 = vmatmul.mubr.msk.f32.gmra.mrb[8].mxu0 %vm279_vm1, %v29738_v59 }
 0x23f   : > { %21106 = vmatprep.mubr.msk.f32.mxu0 %vm279_vm1, %v29739_v60 }
 0x242   : > { %21107 = vmatmul.mubr.msk.f32.gmra.mrb[10].mxu0 %vm279_vm1, %v29740_v61 }
 0x243   : > { %21109 = vmatprep.mubr.msk.f32.mxu0 %vm279_vm1, %v29741_v14 }
 0x246   : > { %21110 = vmatmul.mubr.msk.f32.gmra.mrb[12].mxu0 %vm279_vm1, %v29713_v29 }
 0x247   : > { %21112 = vmatprep.mubr.msk.f32.mxu0 %vm279_vm1, %v29742_v15 }
 0x24a   : > { %21113 = vmatmul.mubr.msk.f32.gmra.mrb[14].mxu0 %vm279_vm1, %v29715_v33 }
 0x24b   : > { %21115 = vmatprep.mubr.msk.f32.mxu0 %vm279_vm1, %v29743_v16 }
 0x24e   : > { %21116 = vmatmul.mubr.msk.f32.gmra.mrb[16].mxu0 %vm279_vm1, %v29717_v30  ;;  %v25577_v30 = vpack.c.bf16 %v18197_v5, %v18196_v2  ;;  %v4216_v2 = vld [vmem:[%s29404_s3 + $0x8] sm:$0xff] }
 0x24f   : > { %21118 = vmatprep.mubr.msk.f32.mxu0 %vm279_vm1, %v29718_v34 }
 0x250   : > { %22942 = vmatprep.subr.bf16.mxu1 %v25577_v30 }
 0x252   : > { %21119 = vmatmul.mubr.msk.f32.gmra.mrb[18].mxu0 %vm279_vm1, %v29744_v17 }
 0x253   : > { %21121 = vmatprep.mubr.msk.f32.mxu0 %vm279_vm1, %v29720_v28 }
 0x256   : > { %21122 = vmatmul.mubr.msk.f32.gmra.mrb[20].mxu0 %vm279_vm1, %v24971_v1  ;;  %v3487_v1 = vld [vmem:[#allocation2 + $0x19a] sm:$0xff] }
 0x257   : > { %21124 = vmatprep.mubr.msk.f32.mxu0 %vm279_vm1, %v29745_v18 }
 0x25a   : > { %21125 = vmatmul.mubr.msk.f32.gmra.mrb[22].mxu0 %vm279_vm1, %v24979_v0  ;;  %v3488_v0 = vld [vmem:[#allocation2 + $0x1a2] sm:$0xff] }
 0x25b   : > { %21127 = vmatprep.mubr.msk.f32.mxu0 %vm279_vm1, %v29722_v62  ;;  %v29747_v62 = vmov 0.0  }
 0x25c   : > { %3986 = vst.msk [vmem:[#allocation3 + $0xc0] sm:$0xff] %vm3960_vm3, %v29747_v62  ;;  %3987 = vst.msk [vmem:[#allocation3 + $0xc8] sm:$0xff] %vm3960_vm3, %v29747_v62 }
 0x25d   : > { %3961 = vst.msk [vmem:[#allocation3] sm:$0xff] %vm3960_vm3, %v29747_v62  ;;  %3962 = vst.msk [vmem:[#allocation3 + $0x8] sm:$0xff] %vm3960_vm3, %v29747_v62 }
 0x25e   : > { %21128 = vmatmul.mubr.msk.f32.gmra.mrb[24].mxu0 %vm279_vm1, %v24987_v40  ;;  %3965 = vst.msk [vmem:[#allocation3 + $0x18] sm:$0xff] %vm3960_vm3, %v29747_v62  ;;  %3966 = vst.msk [vmem:[#allocation3 + $0x20] sm:$0xff] %vm3960_vm3, %v29747_v62  ;;  %v25563_v40 = vld [vmem:[%s29403_s2] ss:$0 sm:$0xff] }
 0x25f   : > { %21130 = vmatprep.mubr.msk.f32.mxu0 %vm279_vm1, %v29746_v19  ;;  %3968 = vst.msk [vmem:[#allocation3 + $0x30] sm:$0xff] %vm3960_vm3, %v29747_v62  ;;  %3969 = vst.msk [vmem:[#allocation3 + $0x38] sm:$0xff] %vm3960_vm3, %v29747_v62 }
 0x260   : > { %3971 = vst.msk [vmem:[#allocation3 + $0x48] sm:$0xff] %vm3960_vm3, %v29747_v62  ;;  %3972 = vst.msk [vmem:[#allocation3 + $0x50] sm:$0xff] %vm3960_vm3, %v29747_v62 }
 0x261   : > { %3974 = vst.msk [vmem:[#allocation3 + $0x60] sm:$0xff] %vm3960_vm3, %v29747_v62  ;;  %3975 = vst.msk [vmem:[#allocation3 + $0x68] sm:$0xff] %vm3960_vm3, %v29747_v62 }
 0x262   : > { %21131 = vmatmul.mubr.msk.f32.gmra.mrb[26].mxu0 %vm279_vm1, %v24995_v7  ;;  %3977 = vst.msk [vmem:[#allocation3 + $0x78] sm:$0xff] %vm3960_vm3, %v29747_v62  ;;  %3978 = vst.msk [vmem:[#allocation3 + $0x80] sm:$0xff] %vm3960_vm3, %v29747_v62 }
 0x263   : > { %21133 = vmatprep.mubr.msk.f32.mxu0 %vm279_vm1, %v25209_v35  ;;  %3980 = vst.msk [vmem:[#allocation3 + $0x90] sm:$0xff] %vm3960_vm3, %v29747_v62  ;;  %3981 = vst.msk [vmem:[#allocation3 + $0x98] sm:$0xff] %vm3960_vm3, %v29747_v62 }
 0x264   : > { %3983 = vst.msk [vmem:[#allocation3 + $0xa8] sm:$0xff] %vm3960_vm3, %v29747_v62  ;;  %3984 = vst.msk [vmem:[#allocation3 + $0xb0] sm:$0xff] %vm3960_vm3, %v29747_v62  ;;  %v4217_v53 = vld [vmem:[#allocation3 + $0x1] sm:$0xff] }
 0x265   : > { %3989 = vst.msk [vmem:[#allocation3 + $0xd8] sm:$0xff] %vm3960_vm3, %v29747_v62  ;;  %3990 = vst.msk [vmem:[#allocation3 + $0xe0] sm:$0xff] %vm3960_vm3, %v29747_v62  ;;  %v25648_v59 = vld [vmem:[#allocation3 + $0x19] sm:$0xff] }
 0x266   : > { %21134 = vmatmul.mubr.msk.f32.gmra.mrb[28].mxu0 %vm279_vm1, %v25215_v8  ;;  %3992 = vst.msk [vmem:[#allocation3 + $0xf0] sm:$0xff] %vm3960_vm3, %v29747_v62  ;;  %3993 = vst.msk [vmem:[#allocation3 + $0xf8] sm:$0xff] %vm3960_vm3, %v29747_v62 }
 0x267   : > { %21136 = vmatprep.mubr.msk.f32.mxu0 %vm279_vm1, %v3487_v1  ;;  %3995 = vst.msk [vmem:[#allocation3 + $0x108] sm:$0xff] %vm3960_vm3, %v29747_v62  ;;  %3996 = vst.msk [vmem:[#allocation3 + $0x110] sm:$0xff] %vm3960_vm3, %v29747_v62 }
 0x268   : > { %3998 = vst.msk [vmem:[#allocation3 + $0x120] sm:$0xff] %vm3960_vm3, %v29747_v62  ;;  %3999 = vst.msk [vmem:[#allocation3 + $0x128] sm:$0xff] %vm3960_vm3, %v29747_v62 }
 0x269   : > { %4001 = vst.msk [vmem:[#allocation3 + $0x138] sm:$0xff] %vm3960_vm3, %v29747_v62  ;;  %4002 = vst.msk [vmem:[#allocation3 + $0x140] sm:$0xff] %vm3960_vm3, %v29747_v62 }
 0x26a   : > { %21137 = vmatmul.mubr.msk.f32.gmra.mrb[30].mxu0 %vm279_vm1, %v3488_v0  ;;  %4004 = vst.msk [vmem:[#allocation3 + $0x150] sm:$0xff] %vm3960_vm3, %v29747_v62  ;;  %4005 = vst.msk [vmem:[#allocation3 + $0x158] sm:$0xff] %vm3960_vm3, %v29747_v62 }
 0x26b   : > { %4007 = vst.msk [vmem:[#allocation3 + $0x168] sm:$0xff] %vm3960_vm3, %v29747_v62  ;;  %4008 = vst.msk [vmem:[#allocation3 + $0x170] sm:$0xff] %vm3960_vm3, %v29747_v62  ;;  %21143 = vmatprep.mubr.msk.f32.mxu0 %vm3960_vm3, %v4217_v53 }
 0x26c   : > { %4010 = vst.msk [vmem:[#allocation3 + $0x180] sm:$0xff] %vm3960_vm3, %v29747_v62  ;;  %4011 = vst.msk [vmem:[#allocation3 + $0x188] sm:$0xff] %vm3960_vm3, %v29747_v62 }
 0x26d   : > { %4013 = vst.msk [vmem:[#allocation3 + $0x198] sm:$0xff] %vm3960_vm3, %v29747_v62  ;;  %4014 = vst.msk [vmem:[#allocation3 + $0x1a0] sm:$0xff] %vm3960_vm3, %v29747_v62 }
 0x26e   : > { %4016 = vst.msk [vmem:[#allocation3 + $0x1b0] sm:$0xff] %vm3960_vm3, %v29747_v62  ;;  %4017 = vst.msk [vmem:[#allocation3 + $0x1b8] sm:$0xff] %vm3960_vm3, %v29747_v62 }
 0x26f   : > { %4019 = vst.msk [vmem:[#allocation3 + $0x1c8] sm:$0xff] %vm3960_vm3, %v29747_v62  ;;  %4020 = vst.msk [vmem:[#allocation3 + $0x1d0] sm:$0xff] %vm3960_vm3, %v29747_v62 }
 0x270   : > { %3991 = vst.msk [vmem:[#allocation3 + $0xe8] sm:$0xf] %vm3963_vm4, %v29747_v62  ;;  %3964 = vst.msk [vmem:[#allocation3 + $0x10] sm:$0xf] %vm3963_vm4, %v29747_v62 }
 0x271   : > { %3967 = vst.msk [vmem:[#allocation3 + $0x28] sm:$0xf] %vm3963_vm4, %v29747_v62  ;;  %3970 = vst.msk [vmem:[#allocation3 + $0x40] sm:$0xf] %vm3963_vm4, %v29747_v62 }
 0x272   : > { %3973 = vst.msk [vmem:[#allocation3 + $0x58] sm:$0xf] %vm3963_vm4, %v29747_v62  ;;  %3976 = vst.msk [vmem:[#allocation3 + $0x70] sm:$0xf] %vm3963_vm4, %v29747_v62 }
 0x273   : > { %3979 = vst.msk [vmem:[#allocation3 + $0x88] sm:$0xf] %vm3963_vm4, %v29747_v62  ;;  %3982 = vst.msk [vmem:[#allocation3 + $0xa0] sm:$0xf] %vm3963_vm4, %v29747_v62 }
 0x274   : > { %3985 = vst.msk [vmem:[#allocation3 + $0xb8] sm:$0xf] %vm3963_vm4, %v29747_v62  ;;  %3988 = vst.msk [vmem:[#allocation3 + $0xd0] sm:$0xf] %vm3963_vm4, %v29747_v62 }
 0x275   : > { %3994 = vst.msk [vmem:[#allocation3 + $0x100] sm:$0xf] %vm3963_vm4, %v29747_v62  ;;  %3997 = vst.msk [vmem:[#allocation3 + $0x118] sm:$0xf] %vm3963_vm4, %v29747_v62 }
 0x276   : > { %4000 = vst.msk [vmem:[#allocation3 + $0x130] sm:$0xf] %vm3963_vm4, %v29747_v62  ;;  %4003 = vst.msk [vmem:[#allocation3 + $0x148] sm:$0xf] %vm3963_vm4, %v29747_v62 }
 0x277   : > { %4006 = vst.msk [vmem:[#allocation3 + $0x160] sm:$0xf] %vm3963_vm4, %v29747_v62  ;;  %4009 = vst.msk [vmem:[#allocation3 + $0x178] sm:$0xf] %vm3963_vm4, %v29747_v62  ;;  %v4218_v56 = vld [vmem:[#allocation3 + $0x9] sm:$0xff] }
 0x278   : > { %4012 = vst.msk [vmem:[#allocation3 + $0x190] sm:$0xf] %vm3963_vm4, %v29747_v62  ;;  %4015 = vst.msk [vmem:[#allocation3 + $0x1a8] sm:$0xf] %vm3963_vm4, %v29747_v62  ;;  %21144 = vmatmul.mubr.msk.f32.vlgmr.msra.gmra.mrb[32].mxu0 %vm3960_vm3, %v4218_v56  ;;  %v25655_v14 = vld [vmem:[#allocation3 + $0x21] sm:$0xff] }
 0x279   : > { %4018 = vst.msk [vmem:[#allocation3 + $0x1c0] sm:$0xf] %vm3963_vm4, %v29747_v62  ;;  %4021 = vst.msk [vmem:[#allocation3 + $0x1d8] sm:$0xf] %vm3963_vm4, %v29747_v62  ;;  %21146 = vmatprep.mubr.msk.f32.mxu0 %vm3960_vm3, %v25648_v59  ;;  %v26172_v62 = vld [vmem:[#allocation3 + $0x1a] sm:$0xff] }
 0x27c   : > { %21147 = vmatmul.mubr.msk.f32.gmra.mrb[34].mxu0 %vm3960_vm3, %v25655_v14 }
 0x301   : > { %v25487_v20 = vpop.f32.mrb[0].mxu0 }
 0x302   : > { %v25489_v21 = vpop.f32.mrb[1].mxu0  ;;  %v25679_v0 = vadd.f32 %v25487_v20, %v25563_v40 }
 0x303   : > { %v25671_v19 = vadd.f32 %v25563_v40, %v25489_v21 }
 0x304   : > { %29765 = vst [vmem:[#allocation14_spill] sm:$0xff] %v25679_v0 }
 0x305   : > { %v25491_v22 = vpop.f32.mrb[2].mxu0  ;;  %29764 = vst [vmem:[#allocation13_spill] sm:$0xff] %v25671_v19 }
 0x306   : > { %v25493_v23 = vpop.f32.mrb[3].mxu0  ;;  %v25691_v21 = vadd.f32 %v25491_v22, %v25563_v40 }
 0x307   : > { %v25683_v42 = vadd.f32 %v25563_v40, %v25493_v23 }
 0x308   : > { %29767 = vst [vmem:[#allocation16_spill] sm:$0xff] %v25691_v21 }
 0x309   : > { %v25495_v24 = vpop.f32.mrb[4].mxu0  ;;  %29766 = vst [vmem:[#allocation15_spill] sm:$0xff] %v25683_v42 }
 0x30a   : > { %v25497_v25 = vpop.f32.mrb[5].mxu0  ;;  %v25703_v20 = vadd.f32 %v25495_v24, %v25563_v40 }
 0x30c   : > { %29769 = vst [vmem:[#allocation18_spill] sm:$0xff] %v25703_v20 }
 0x30d   : > { %v25499_v26 = vpop.f32.mrb[6].mxu0 }
 0x30e   : > { %v25501_v27 = vpop.f32.mrb[7].mxu0  ;;  %v25715_v22 = vadd.f32 %v25499_v26, %v25563_v40 }
 0x30f   : > { %v25707_v23 = vadd.f32 %v25563_v40, %v25501_v27 }
 0x310   : > { %29771 = vst [vmem:[#allocation20_spill] sm:$0xff] %v25715_v22 }
 0x311   : > { %v25503_v31 = vpop.f32.mrb[8].mxu0  ;;  %29770 = vst [vmem:[#allocation19_spill] sm:$0xff] %v25707_v23 }
 0x312   : > { %v25545_v32 = vpop.f32.mrb[9].mxu0  ;;  %v25727_v24 = vadd.f32 %v25503_v31, %v25563_v40 }
 0x314   : > { %29773 = vst [vmem:[#allocation22_spill] sm:$0xff] %v25727_v24 }
 0x315   : > { %v25547_v37 = vpop.f32.mrb[10].mxu0 }
 0x316   : > { %v25549_v38 = vpop.f32.mrb[11].mxu0  ;;  %v25739_v26 = vadd.f32 %v25547_v37, %v25563_v40 }
 0x317   : > { %v25731_v27 = vadd.f32 %v25563_v40, %v25549_v38 }
 0x318   : > { %29775 = vst [vmem:[#allocation25_spill] sm:$0xff] %v25739_v26 }
 0x319   : > { %v21111_v4 = vpop.f32.mrb[12].mxu0  ;;  %29774 = vst [vmem:[#allocation23_spill] sm:$0xff] %v25731_v27 }
 0x31a   : > { %v3716_v41 = vpop.f32.mrb[13].mxu0  ;;  %v25583_v63 = vadd.f32 %v21111_v4, %v25563_v40  ;;  %v25695_v4 = vadd.f32 %v25563_v40, %v25497_v25  ;;  %v25719_v25 = vadd.f32 %v25563_v40, %v25545_v32 }
 0x31b   : > { %v25567_v7 = vadd.f32 %v25563_v40, %v3716_v41  ;;  %v4215_v41 = vld [vmem:[%s29404_s3] sm:$0xff] }
 0x31c   : > { %29750 = vst [vmem:[#allocation24_spill] sm:$0xff] %v25583_v63  ;;  %29768 = vst [vmem:[#allocation17_spill] sm:$0xff] %v25695_v4  ;;  %v22929_v5 = vpack.c.bf16 %v4216_v2, %v4215_v41 }
 0x31d   : > { %29748 = vst [vmem:[#allocation9_spill] sm:$0xff] %v25567_v7  ;;  %4078 = vrot.lane.b32.xlu0 %v25567_v7, %s24364_s14  ;;  %v21114_v28 = vpop.f32.mrb[14].mxu0  ;;  %29772 = vst [vmem:[#allocation21_spill] sm:$0xff] %v25719_v25 }
 0x31e   : > { %v25580_v33 = vadd.f32 %v21114_v28, %v25563_v40  ;;  %v3726_v34 = vpop.f32.mrb[15].mxu0  ;;  %22930 = vmatprep.subr.bf16.mxu0 %v22929_v5 }
 0x31f   : > { %v25591_v29 = vadd.f32 %v25563_v40, %v3726_v34  ;;  %22932 = vmatpush3.bf16.msra.mxu0 %v22929_v5 }
 0x320   : > { %29749 = vst [vmem:[#allocation10_spill] sm:$0xff] %v25580_v33  ;;  %4084 = vrot.lane.b32.xlu1 %v25580_v33, %s24364_s14 }
 0x321   : > { %4080 = vrot.lane.b32.xlu0 %v25583_v63, %s24364_s14  ;;  %v21117_v35 = vpop.f32.mrb[16].mxu0  ;;  %29751 = vst [vmem:[#allocation26_spill] sm:$0xff] %v25591_v29 }
 0x322   : > { %v3736_v8 = vpop.f32.mrb[17].mxu0  ;;  %v25601_v11 = vadd.f32 %v21117_v35, %v25563_v40 }
 0x323   : > { %v25594_v9 = vadd.f32 %v25563_v40, %v3736_v8 }
 0x324   : > { %4082 = vrot.lane.b32.xlu1 %v25591_v29, %s24364_s14  ;;  %29753 = vst [vmem:[#allocation29_spill] sm:$0xff] %v25601_v11  ;;  %v4183_v29 = vld [vmem:[#allocation3] sm:$0xff] }
 0x325   : > { %29752 = vst [vmem:[#allocation28_spill] sm:$0xff] %v25594_v9  ;;  %4086 = vrot.lane.b32.xlu0 %v25594_v9, %s24364_s14  ;;  %v21120_v10 = vpop.f32.mrb[18].mxu0 }
 0x326   : > { %v3746_v6 = vpop.f32.mrb[19].mxu0  ;;  %v25611_v36 = vadd.f32 %v21120_v10, %v25563_v40  ;;  %v18230_v10 = vld [vmem:[%s29404_s3 + $0x50] sm:$0xff] }
 0x327   : > { %v25604_v12 = vadd.f32 %v25563_v40, %v3746_v6  ;;  %v18231_v6 = vld [vmem:[%s29404_s3 + $0x58] sm:$0xff] }
 0x328   : > { %4088 = vrot.lane.b32.xlu1 %v25601_v11, %s24364_s14  ;;  %29755 = vst [vmem:[#allocation33_spill] sm:$0xff] %v25611_v36 }
 0x329   : > { %29754 = vst [vmem:[#allocation31_spill] sm:$0xff] %v25604_v12  ;;  %4090 = vrot.lane.b32.xlu0 %v25604_v12, %s24364_s14  ;;  %v21123_v13 = vpop.f32.mrb[20].mxu0 }
 0x32a   : > { %v3756_v43 = vpop.f32.mrb[21].mxu0  ;;  %v25627_v49 = vadd.f32 %v21123_v13, %v25563_v40 }
 0x32b   : > { %v25614_v44 = vadd.f32 %v25563_v40, %v3756_v43 }
 0x32c   : > { %4092 = vrot.lane.b32.xlu1 %v25611_v36, %s24364_s14  ;;  %29757 = vst [vmem:[#allocation6_spill] sm:$0xff] %v25627_v49 }
 0x32d   : > { %29756 = vst [vmem:[#allocation5_spill] sm:$0xff] %v25614_v44  ;;  %4094 = vrot.lane.b32.xlu0 %v25614_v44, %s24364_s14  ;;  %v21126_v47 = vpop.f32.mrb[22].mxu0 }
 0x32e   : > { %v3766_v50 = vpop.f32.mrb[23].mxu0  ;;  %v25637_v54 = vadd.f32 %v21126_v47, %v25563_v40  ;;  %v25781_v47 = vpack.c.bf16 %v18231_v6, %v18230_v10  ;;  %v18129_v10 = vld [vmem:[%s29404_s3 + $0x28] sm:$0xff] }
 0x32f   : > { %v25630_v51 = vadd.f32 %v25563_v40, %v3766_v50 }
 0x330   : > { %4096 = vrot.lane.b32.xlu1 %v25627_v49, %s24364_s14  ;;  %29759 = vst [vmem:[#allocation8_spill] sm:$0xff] %v25637_v54 }
 0x331   : > { %29758 = vst [vmem:[#allocation7_spill] sm:$0xff] %v25630_v51  ;;  %4098 = vrot.lane.b32.xlu0 %v25630_v51, %s24364_s14  ;;  %v21129_v52 = vpop.f32.mrb[24].mxu0 }
 0x332   : > { %v3776_v55 = vpop.f32.mrb[25].mxu0  ;;  %v25651_v60 = vadd.f32 %v21129_v52, %v25563_v40 }
 0x333   : > { %v25641_v57 = vadd.f32 %v25563_v40, %v3776_v55 }
 0x334   : > { %4100 = vrot.lane.b32.xlu1 %v25637_v54, %s24364_s14  ;;  %29761 = vst [vmem:[#allocation36_spill] sm:$0xff] %v25651_v60 }
 0x335   : > { %29760 = vst [vmem:[#allocation35_spill] sm:$0xff] %v25641_v57  ;;  %4102 = vrot.lane.b32.xlu0 %v25641_v57, %s24364_s14  ;;  %v21132_v58 = vpop.f32.mrb[26].mxu0 }
 0x336   : > { %v3786_v61 = vpop.f32.mrb[27].mxu0  ;;  %v25667_v17 = vadd.f32 %v21132_v58, %v25563_v40 }
 0x337   : > { %v25658_v15 = vadd.f32 %v25563_v40, %v3786_v61 }
 0x338   : > { %4104 = vrot.lane.b32.xlu1 %v25651_v60, %s24364_s14  ;;  %29763 = vst [vmem:[#allocation12_spill] sm:$0xff] %v25667_v17  ;;  %v18299_v60 = vld [vmem:[%s29404_s3 + $0x78] sm:$0xff] }
 0x339   : > { %29762 = vst [vmem:[#allocation11_spill] sm:$0xff] %v25658_v15  ;;  %4106 = vrot.lane.b32.xlu0 %v25658_v15, %s24364_s14  ;;  %v21135_v16 = vpop.f32.mrb[28].mxu0  ;;  %v4186_v15 = vld [vmem:[#allocation3 + $0x20] sm:$0xff] }
 0x33a   : > { %v3796_v18 = vpop.f32.mrb[29].mxu0  ;;  %v25749_v31 = vadd.f32 %v21135_v16, %v25563_v40 }
 0x33b   : > { %v25742_v32 = vadd.f32 %v25563_v40, %v3796_v18 }
 0x33c   : > { %4108 = vrot.lane.b32.xlu1 %v25667_v17, %s24364_s14  ;;  %29777 = vst [vmem:[#allocation30_spill] sm:$0xff] %v25749_v31  ;;  %v4184_v17 = vld [vmem:[#allocation3 + $0x8] sm:$0xff] }
 0x33d   : > { %4054 = vrot.lane.b32.xlu0 %v25671_v19, %s24364_s14  ;;  %v21138_v1 = vpop.f32.mrb[30].mxu0  ;;  %29776 = vst [vmem:[#allocation27_spill] sm:$0xff] %v25742_v32  ;;  %v4895_v19 = vld [vmem:[#allocation3 + $0xa] sm:$0xff] }
 0x33e   : > { %v3806_v39 = vpop.f32.mrb[31].mxu0  ;;  %v25759_v37 = vadd.f32 %v21138_v1, %v25563_v40 }
 0x33f   : > { %v25752_v38 = vadd.f32 %v25563_v40, %v3806_v39 }
 0x340   : > { %4056 = vrot.lane.b32.xlu1 %v25679_v0, %s24364_s14  ;;  %29779 = vst [vmem:[#allocation34_spill] sm:$0xff] %v25759_v37 }
 0x341   : > { %4058 = vrot.lane.b32.xlu0 %v25683_v42, %s24364_s14  ;;  %29778 = vst [vmem:[#allocation32_spill] sm:$0xff] %v25752_v38  ;;  %v4894_v42 = vld [vmem:[#allocation3 + $0x2] sm:$0xff] }
 0x344   : > { %4060 = vrot.lane.b32.xlu1 %v25691_v21, %s24364_s14 }
 0x345   : > { %4062 = vrot.lane.b32.xlu0 %v25695_v4, %s24364_s14 }
 0x348   : > { %4064 = vrot.lane.b32.xlu1 %v25703_v20, %s24364_s14 }
 0x349   : > { %4066 = vrot.lane.b32.xlu0 %v25707_v23, %s24364_s14 }
 0x34c   : > { %4068 = vrot.lane.b32.xlu1 %v25715_v22, %s24364_s14 }
 0x34d   : > { %4070 = vrot.lane.b32.xlu0 %v25719_v25, %s24364_s14 }
 0x350   : > { %4072 = vrot.lane.b32.xlu1 %v25727_v24, %s24364_s14 }
 0x351   : > { %4074 = vrot.lane.b32.xlu0 %v25731_v27, %s24364_s14 }
 0x354   : > { %4076 = vrot.lane.b32.xlu1 %v25739_v26, %s24364_s14 }
 0x355   : > { %4110 = vrot.lane.b32.xlu0 %v25742_v32, %s24364_s14 }
 0x358   : > { %4112 = vrot.lane.b32.xlu1 %v25749_v31, %s24364_s14 }
 0x359   : > { %4114 = vrot.lane.b32.xlu0 %v25752_v38, %s24364_s14 }
 0x35c   : > { %4116 = vrot.lane.b32.xlu1 %v25759_v37, %s24364_s14  ;;  %s24365_s14 = smov 40  }
 0x38f   : > { %v4079_v28 = vpop.permute.xlu0 %4078 }
 0x390   : > { %4163 = vst.msk [vmem:[#allocation3 + $0xc2] sm:$0xff] %vm3960_vm3, %v4079_v28 }
 0x392   : > { %v4085_v34 = vpop.permute.xlu1 %4084 }
 0x393   : > { %4166 = vst.msk [vmem:[#allocation3 + $0xe2] sm:$0xff] %vm3960_vm3, %v4085_v34  ;;  %v4081_v40 = vpop.permute.xlu0 %4080 }
 0x394   : > { %4164 = vst.msk [vmem:[#allocation3 + $0xca] sm:$0xff] %vm3960_vm3, %v4081_v40 }
 0x396   : > { %v4083_v35 = vpop.permute.xlu1 %4082 }
 0x397   : > { %4165 = vst.msk [vmem:[#allocation3 + $0xda] sm:$0xff] %vm3960_vm3, %v4083_v35  ;;  %v4087_v8 = vpop.permute.xlu0 %4086 }
 0x398   : > { %4167 = vst.msk [vmem:[#allocation3 + $0xf2] sm:$0xff] %vm3960_vm3, %v4087_v8  ;;  %v18128_v8 = vld [vmem:[%s29404_s3 + $0x20] sm:$0xff] }
 0x39a   : > { %v4089_v13 = vpop.permute.xlu1 %4088  ;;  %v5301_v53 = vld [vmem:[#allocation3 + $0xe3] sm:$0xff] }
 0x39b   : > { %4168 = vst.msk [vmem:[#allocation3 + $0xfa] sm:$0xff] %vm3960_vm3, %v4089_v13  ;;  %v4091_v43 = vpop.permute.xlu0 %4090  ;;  %v5298_v45 = vld [vmem:[#allocation3 + $0xc3] sm:$0xff]  ;;  %v5299_v46 = vld [vmem:[#allocation3 + $0xcb] sm:$0xff] }
 0x39c   : > { %4169 = vst.msk [vmem:[#allocation3 + $0x10a] sm:$0xff] %vm3960_vm3, %v4091_v43  ;;  %21323 = vmatprep.mubr.msk.f32.mxu1 %vm3960_vm3, %v5298_v45  ;;  %v25814_v43 = vpack.c.bf16 %v18129_v10, %v18128_v8 }
 0x39d   : > { %21324 = vmatmul.mubr.msk.f32.vlgmr.msra.gmra.mrb[0].mxu1 %vm3960_vm3, %v5299_v46 }
 0x39e   : > { %22944 = vmatpush3.bf16.msra.mxu1 %v25577_v30  ;;  %v4093_v48 = vpop.permute.xlu1 %4092  ;;  %v5300_v50 = vld [vmem:[#allocation3 + $0xdb] sm:$0xff]  ;;  %22934 = vmatprep.subr.bf16.mxu0 %v25814_v43 }
 0x39f   : > { %4170 = vst.msk [vmem:[#allocation3 + $0x112] sm:$0xff] %vm3960_vm3, %v4093_v48  ;;  %21326 = vmatprep.mubr.msk.f32.mxu1 %vm3960_vm3, %v5300_v50  ;;  %v4095_v52 = vpop.permute.xlu0 %4094  ;;  %22946 = vmatprep.subr.bf16.mxu1 %v25781_v47  ;;  %v26085_v51 = vld [vmem:[#allocation3 + $0xd8] sm:$0xff]  ;;  %v26093_v25 = vld [vmem:[#allocation3 + $0xe0] sm:$0xff]  ;;  %v26097_v49 = vld [vmem:[#allocation3 + $0xf0] sm:$0xff] }
 0x3a0   : > { %4171 = vst.msk [vmem:[#allocation3 + $0x122] sm:$0xff] %vm3960_vm3, %v4095_v52 }
 0x3a1   : > { %21327 = vmatmul.mubr.msk.f32.gmra.mrb[2].mxu1 %vm3960_vm3, %v5301_v53 }
 0x3a2   : > { %v4097_v55 = vpop.permute.xlu1 %4096  ;;  %v5302_v56 = vld [vmem:[#allocation3 + $0xf3] sm:$0xff]  ;;  %v5303_v58 = vld [vmem:[#allocation3 + $0xfb] sm:$0xff] }
 0x3a3   : > { %4172 = vst.msk [vmem:[#allocation3 + $0x12a] sm:$0xff] %vm3960_vm3, %v4097_v55  ;;  %21329 = vmatprep.mubr.msk.f32.mxu1 %vm3960_vm3, %v5302_v56  ;;  %v4099_v30 = vpop.permute.xlu0 %4098  ;;  %v5670_v55 = vld [vmem:[#allocation3 + $0x4] sm:$0xff]  ;;  %v26105_v22 = vld [vmem:[#allocation3 + $0xf8] sm:$0xff] }
 0x3a4   : > { %4173 = vst.msk [vmem:[#allocation3 + $0x13a] sm:$0xff] %vm3960_vm3, %v4099_v30  ;;  %v18264_v30 = vld [vmem:[%s29404_s3 + $0x60] sm:$0xff]  ;;  %v26109_v44 = vld [vmem:[#allocation3 + $0x108] sm:$0xff] }
 0x3a5   : > { %21330 = vmatmul.mubr.msk.f32.gmra.mrb[4].mxu1 %vm3960_vm3, %v5303_v58  ;;  %v18265_v58 = vld [vmem:[%s29404_s3 + $0x68] sm:$0xff] }
 0x3a6   : > { %v4101_v61 = vpop.permute.xlu1 %4100  ;;  %v5304_v16 = vld [vmem:[#allocation3 + $0x10b] sm:$0xff]  ;;  %v5305_v1 = vld [vmem:[#allocation3 + $0x113] sm:$0xff] }
 0x3a7   : > { %4174 = vst.msk [vmem:[#allocation3 + $0x142] sm:$0xff] %vm3960_vm3, %v4101_v61  ;;  %21332 = vmatprep.mubr.msk.f32.mxu1 %vm3960_vm3, %v5304_v16  ;;  %v4103_v18 = vpop.permute.xlu0 %4102  ;;  %v5692_v37 = vld [vmem:[#allocation3 + $0x10c] sm:$0xff]  ;;  %v5693_v38 = vld [vmem:[#allocation3 + $0x114] sm:$0xff]  ;;  %v26121_v36 = vld [vmem:[#allocation3 + $0x120] sm:$0xff] }
 0x3a8   : > { %4175 = vst.msk [vmem:[#allocation3 + $0x152] sm:$0xff] %vm3960_vm3, %v4103_v18  ;;  %v5671_v18 = vld [vmem:[#allocation3 + $0xc] sm:$0xff] }
 0x3a9   : > { %21333 = vmatmul.mubr.msk.f32.gmra.mrb[6].mxu1 %vm3960_vm3, %v5305_v1  ;;  %v26117_v23 = vld [vmem:[#allocation3 + $0x110] sm:$0xff] }
 0x3aa   : > { %v4105_v39 = vpop.permute.xlu1 %4104  ;;  %v5306_v41 = vld [vmem:[#allocation3 + $0x123] sm:$0xff]  ;;  %v5307_v5 = vld [vmem:[#allocation3 + $0x12b] sm:$0xff] }
 0x3ab   : > { %4176 = vst.msk [vmem:[#allocation3 + $0x15a] sm:$0xff] %vm3960_vm3, %v4105_v39  ;;  %21335 = vmatprep.mubr.msk.f32.mxu1 %vm3960_vm3, %v5306_v41  ;;  %v4107_v2 = vpop.permute.xlu0 %4106  ;;  %v5672_v41 = vld [vmem:[#allocation3 + $0x1c] sm:$0xff]  ;;  %v5694_v31 = vld [vmem:[#allocation3 + $0x124] sm:$0xff]  ;;  %v5695_v33 = vld [vmem:[#allocation3 + $0x12c] sm:$0xff] }
 0x3ac   : > { %4177 = vst.msk [vmem:[#allocation3 + $0x16a] sm:$0xff] %vm3960_vm3, %v4107_v2  ;;  %v25843_v2 = vpack.c.bf16 %v18265_v58, %v18264_v30  ;;  %v26129_v20 = vld [vmem:[#allocation3 + $0x128] sm:$0xff]  ;;  %v26133_v12 = vld [vmem:[#allocation3 + $0x138] sm:$0xff] }
 0x3ad   : > { %21336 = vmatmul.mubr.msk.f32.gmra.mrb[8].mxu1 %vm3960_vm3, %v5307_v5 }
 0x3ae   : > { %v4109_v28 = vpop.permute.xlu1 %4108  ;;  %v5308_v34 = vld [vmem:[#allocation3 + $0x13b] sm:$0xff]  ;;  %v5309_v35 = vld [vmem:[#allocation3 + $0x143] sm:$0xff] }
 0x3af   : > { %4178 = vst.msk [vmem:[#allocation3 + $0x172] sm:$0xff] %vm3960_vm3, %v4109_v28  ;;  %21338 = vmatprep.mubr.msk.f32.mxu1 %vm3960_vm3, %v5308_v34  ;;  %v4055_v40 = vpop.permute.xlu0 %4054  ;;  %v5673_v34 = vld [vmem:[#allocation3 + $0x24] sm:$0xff]  ;;  %v5696_v32 = vld [vmem:[#allocation3 + $0x13c] sm:$0xff]  ;;  %v26145_v11 = vld [vmem:[#allocation3 + $0x150] sm:$0xff] }
 0x3b0   : > { %4151 = vst.msk [vmem:[#allocation3 + $0x32] sm:$0xff] %vm3960_vm3, %v4055_v40  ;;  %v26141_v4 = vld [vmem:[#allocation3 + $0x140] sm:$0xff]  ;;  %29781 = vst [vmem:[#allocation38_spill] sm:$0xff] %v26145_v11 }
 0x3b1   : > { %21339 = vmatmul.mubr.msk.f32.gmra.mrb[10].mxu1 %vm3960_vm3, %v5309_v35  ;;  %29780 = vst [vmem:[#allocation37_spill] sm:$0xff] %v26141_v4 }
 0x3b2   : > { %v4057_v6 = vpop.permute.xlu1 %4056  ;;  %v5310_v13 = vld [vmem:[#allocation3 + $0x153] sm:$0xff]  ;;  %v5311_v46 = vld [vmem:[#allocation3 + $0x15b] sm:$0xff] }
 0x3b3   : > { %4152 = vst.msk [vmem:[#allocation3 + $0x3a] sm:$0xff] %vm3960_vm3, %v4057_v6  ;;  %21341 = vmatprep.mubr.msk.f32.mxu1 %vm3960_vm3, %v5310_v13  ;;  %v4059_v45 = vpop.permute.xlu0 %4058  ;;  %v25990_v63 = vld [vmem:[#allocation3 + $0x154] sm:$0xff]  ;;  %v26157_v9 = vld [vmem:[#allocation3 + $0x168] sm:$0xff] }
 0x3b4   : > { %4153 = vst.msk [vmem:[#allocation3 + $0x4a] sm:$0xff] %vm3960_vm3, %v4059_v45  ;;  %v26153_v21 = vld [vmem:[#allocation3 + $0x158] sm:$0xff]  ;;  %29783 = vst [vmem:[#allocation40_spill] sm:$0xff] %v26157_v9 }
 0x3b5   : > { %21342 = vmatmul.mubr.msk.f32.gmra.mrb[12].mxu1 %vm3960_vm3, %v5311_v46  ;;  %29782 = vst [vmem:[#allocation39_spill] sm:$0xff] %v26153_v21 }
 0x3b6   : > { %v4061_v48 = vpop.permute.xlu1 %4060  ;;  %v5312_v50 = vld [vmem:[#allocation3 + $0x16b] sm:$0xff]  ;;  %v5313_v56 = vld [vmem:[#allocation3 + $0x173] sm:$0xff] }
 0x3b7   : > { %4154 = vst.msk [vmem:[#allocation3 + $0x52] sm:$0xff] %vm3960_vm3, %v4061_v48  ;;  %21344 = vmatprep.mubr.msk.f32.mxu1 %vm3960_vm3, %v5312_v50  ;;  %v4063_v52 = vpop.permute.xlu0 %4062  ;;  %v25823_v53 = vld [vmem:[#allocation3 + $0x31] sm:$0xff] }
 0x3b8   : > { %4155 = vst.msk [vmem:[#allocation3 + $0x62] sm:$0xff] %vm3960_vm3, %v4063_v52  ;;  %21149 = vmatprep.mubr.msk.f32.mxu0 %vm3960_vm3, %v25823_v53  ;;  %v26008_v7 = vld [vmem:[#allocation3 + $0x174] sm:$0xff] }
 0x3b9   : > { %21345 = vmatmul.mubr.msk.f32.gmra.mrb[14].mxu1 %vm3960_vm3, %v5313_v56  ;;  %v26165_v0 = vld [vmem:[#allocation3 + $0x170] sm:$0xff] }
 0x3ba   : > { %v4065_v61 = vpop.permute.xlu1 %4064  ;;  %v25835_v16 = vld [vmem:[#allocation3 + $0x39] sm:$0xff]  ;;  %21351 = vmatprep.mubr.msk.f32.mxu1 %vm3960_vm3, %v5670_v55  ;;  %29784 = vst [vmem:[#allocation41_spill] sm:$0xff] %v26165_v0 }
 0x3bb   : > { %4156 = vst.msk [vmem:[#allocation3 + $0x6a] sm:$0xff] %vm3960_vm3, %v4065_v61  ;;  %21150 = vmatmul.mubr.msk.f32.gmra.mrb[36].mxu0 %vm3960_vm3, %v25835_v16  ;;  %v4067_v1 = vpop.permute.xlu0 %4066  ;;  %v25841_v39 = vld [vmem:[#allocation3 + $0x49] sm:$0xff]  ;;  %v5675_v45 = vld [vmem:[#allocation3 + $0x3c] sm:$0xff] }
 0x3bc   : > { %4157 = vst.msk [vmem:[#allocation3 + $0x7a] sm:$0xff] %vm3960_vm3, %v4067_v1  ;;  %21152 = vmatprep.mubr.msk.f32.mxu0 %vm3960_vm3, %v25841_v39  ;;  %v4188_v26 = vld [vmem:[#allocation3 + $0x38] sm:$0xff]  ;;  %v4189_v57 = vld [vmem:[#allocation3 + $0x48] sm:$0xff] }
 0x3bd   : > { %21352 = vmatmul.mubr.msk.f32.vlgmr.msra.gmra.mrb[16].mxu1 %vm3960_vm3, %v5671_v18 }
 0x3be   : > { %22948 = vmatpush3.bf16.msra.mxu1 %v25781_v47  ;;  %v4069_v5 = vpop.permute.xlu1 %4068  ;;  %v25850_v28 = vld [vmem:[#allocation3 + $0x51] sm:$0xff]  ;;  %21354 = vmatprep.mubr.msk.f32.mxu1 %vm3960_vm3, %v5672_v41 }
 0x3bf   : > { %4158 = vst.msk [vmem:[#allocation3 + $0x82] sm:$0xff] %vm3960_vm3, %v4069_v5  ;;  %21153 = vmatmul.mubr.msk.f32.gmra.mrb[38].mxu0 %vm3960_vm3, %v25850_v28  ;;  %v4071_v40 = vpop.permute.xlu0 %4070  ;;  %v25856_v35 = vld [vmem:[#allocation3 + $0x61] sm:$0xff]  ;;  %22950 = vmatprep.subr.bf16.mxu1 %v25843_v2  ;;  %v5674_v47 = vld [vmem:[#allocation3 + $0x34] sm:$0xff]  ;;  %v5676_v46 = vld [vmem:[#allocation3 + $0x4c] sm:$0xff] }
 0x3c0   : > { %4159 = vst.msk [vmem:[#allocation3 + $0x92] sm:$0xff] %vm3960_vm3, %v4071_v40  ;;  %21155 = vmatprep.mubr.msk.f32.mxu0 %vm3960_vm3, %v25856_v35  ;;  %v5677_v56 = vld [vmem:[#allocation3 + $0x54] sm:$0xff]  ;;  %v4191_v24 = vld [vmem:[#allocation3 + $0x60] sm:$0xff] }
 0x3c1   : > { %21355 = vmatmul.mubr.msk.f32.gmra.mrb[18].mxu1 %vm3960_vm3, %v5673_v34  ;;  %v26026_v54 = vld [vmem:[#allocation3 + $0x50] sm:$0xff] }
 0x3c2   : > { %v4073_v8 = vpop.permute.xlu1 %4072  ;;  %21357 = vmatprep.mubr.msk.f32.mxu1 %vm3960_vm3, %v5674_v47  ;;  %v25864_v10 = vld [vmem:[#allocation3 + $0x69] sm:$0xff]  ;;  %v25905_v47 = vld [vmem:[#allocation3 + $0xc1] sm:$0xff] }
 0x3c3   : > { %4160 = vst.msk [vmem:[#allocation3 + $0x9a] sm:$0xff] %vm3960_vm3, %v4073_v8  ;;  %21156 = vmatmul.mubr.msk.f32.gmra.mrb[40].mxu0 %vm3960_vm3, %v25864_v10  ;;  %v4075_v6 = vpop.permute.xlu0 %4074  ;;  %v25869_v13 = vld [vmem:[#allocation3 + $0x79] sm:$0xff]  ;;  %v5678_v30 = vld [vmem:[#allocation3 + $0x64] sm:$0xff]  ;;  %v5679_v41 = vld [vmem:[#allocation3 + $0x6c] sm:$0xff] }
 0x3c4   : > { %4161 = vst.msk [vmem:[#allocation3 + $0xaa] sm:$0xff] %vm3960_vm3, %v4075_v6  ;;  %21158 = vmatprep.mubr.msk.f32.mxu0 %vm3960_vm3, %v25869_v13 }
 0x3c5   : > { %21358 = vmatmul.mubr.msk.f32.gmra.mrb[20].mxu1 %vm3960_vm3, %v5675_v45  ;;  %v25911_v45 = vld [vmem:[#allocation3 + $0xc9] sm:$0xff] }
 0x3c6   : > { %v4077_v48 = vpop.permute.xlu1 %4076  ;;  %21360 = vmatprep.mubr.msk.f32.mxu1 %vm3960_vm3, %v5676_v46  ;;  %v25876_v50 = vld [vmem:[#allocation3 + $0x81] sm:$0xff]  ;;  %v25915_v46 = vld [vmem:[#allocation3 + $0xd9] sm:$0xff] }
 0x3c7   : > { %4162 = vst.msk [vmem:[#allocation3 + $0xb2] sm:$0xff] %vm3960_vm3, %v4077_v48  ;;  %21159 = vmatmul.mubr.msk.f32.gmra.mrb[42].mxu0 %vm3960_vm3, %v25876_v50  ;;  %v4111_v52 = vpop.permute.xlu0 %4110  ;;  %v25881_v55 = vld [vmem:[#allocation3 + $0x91] sm:$0xff]  ;;  %v5680_v5 = vld [vmem:[#allocation3 + $0x7c] sm:$0xff]  ;;  %v5681_v8 = vld [vmem:[#allocation3 + $0x84] sm:$0xff] }
 0x3c8   : > { %4179 = vst.msk [vmem:[#allocation3 + $0x182] sm:$0xff] %vm3960_vm3, %v4111_v52  ;;  %21161 = vmatprep.mubr.msk.f32.mxu0 %vm3960_vm3, %v25881_v55 }
 0x3c9   : > { %21361 = vmatmul.mubr.msk.f32.gmra.mrb[22].mxu1 %vm3960_vm3, %v5677_v56  ;;  %v25921_v56 = vld [vmem:[#allocation3 + $0xe1] sm:$0xff] }
 0x3ca   : > { %21363 = vmatprep.mubr.msk.f32.mxu1 %vm3960_vm3, %v5678_v30  ;;  %v4113_v58 = vpop.permute.xlu1 %4112  ;;  %v25888_v61 = vld [vmem:[#allocation3 + $0x99] sm:$0xff]  ;;  %v25925_v30 = vld [vmem:[#allocation3 + $0xf1] sm:$0xff] }
 0x3cb   : > { %4180 = vst.msk [vmem:[#allocation3 + $0x18a] sm:$0xff] %vm3960_vm3, %v4113_v58  ;;  %21162 = vmatmul.mubr.msk.f32.gmra.mrb[44].mxu0 %vm3960_vm3, %v25888_v61  ;;  %v4115_v18 = vpop.permute.xlu0 %4114  ;;  %v25893_v1 = vld [vmem:[#allocation3 + $0xa9] sm:$0xff]  ;;  %v5682_v6 = vld [vmem:[#allocation3 + $0x94] sm:$0xff]  ;;  %v5683_v48 = vld [vmem:[#allocation3 + $0x9c] sm:$0xff] }
 0x3cc   : > { %4181 = vst.msk [vmem:[#allocation3 + $0x19a] sm:$0xff] %vm3960_vm3, %v4115_v18  ;;  %21164 = vmatprep.mubr.msk.f32.mxu0 %vm3960_vm3, %v25893_v1  ;;  %v5686_v18 = vld [vmem:[#allocation3 + $0xc4] sm:$0xff] }
 0x3cd   : > { %21364 = vmatmul.mubr.msk.f32.gmra.mrb[24].mxu1 %vm3960_vm3, %v5679_v41  ;;  %v25931_v41 = vld [vmem:[#allocation3 + $0xf9] sm:$0xff] }
 0x3ce   : > { %21366 = vmatprep.mubr.msk.f32.mxu1 %vm3960_vm3, %v5680_v5  ;;  %v4117_v34 = vpop.permute.xlu1 %4116  ;;  %v25900_v40 = vld [vmem:[#allocation3 + $0xb1] sm:$0xff]  ;;  %v25935_v5 = vld [vmem:[#allocation3 + $0x109] sm:$0xff] }
 0x3cf   : > { %4182 = vst.msk [vmem:[#allocation3 + $0x1a2] sm:$0xff] %vm3960_vm3, %v4117_v34  ;;  %21165 = vmatmul.mubr.msk.f32.gmra.mrb[46].mxu0 %vm3960_vm3, %v25900_v40  ;;  %v5684_v52 = vld [vmem:[#allocation3 + $0xac] sm:$0xff]  ;;  %v5685_v58 = vld [vmem:[#allocation3 + $0xb4] sm:$0xff] }
 0x3d0   : > { %21167 = vmatprep.mubr.msk.f32.mxu0 %vm3960_vm3, %v25905_v47  ;;  %v5687_v34 = vld [vmem:[#allocation3 + $0xcc] sm:$0xff] }
 0x3d1   : > { %21367 = vmatmul.mubr.msk.f32.gmra.mrb[26].mxu1 %vm3960_vm3, %v5681_v8  ;;  %v5688_v8 = vld [vmem:[#allocation3 + $0xdc] sm:$0xff] }
 0x3d2   : > { %21369 = vmatprep.mubr.msk.f32.mxu1 %vm3960_vm3, %v5682_v6  ;;  %v25941_v6 = vld [vmem:[#allocation3 + $0x111] sm:$0xff] }
 0x3d3   : > { %21168 = vmatmul.mubr.msk.f32.gmra.mrb[48].mxu0 %vm3960_vm3, %v25911_v45 }
 0x3d4   : > { %21170 = vmatprep.mubr.msk.f32.mxu0 %vm3960_vm3, %v25915_v46 }
 0x3d5   : > { %21370 = vmatmul.mubr.msk.f32.gmra.mrb[28].mxu1 %vm3960_vm3, %v5683_v48  ;;  %v25945_v48 = vld [vmem:[#allocation3 + $0x121] sm:$0xff] }
 0x3d6   : > { %21372 = vmatprep.mubr.msk.f32.mxu1 %vm3960_vm3, %v5684_v52  ;;  %v5689_v52 = vld [vmem:[#allocation3 + $0xe4] sm:$0xff] }
 0x3d7   : > { %21171 = vmatmul.mubr.msk.f32.gmra.mrb[50].mxu0 %vm3960_vm3, %v25921_v56 }
 0x3d8   : > { %21173 = vmatprep.mubr.msk.f32.mxu0 %vm3960_vm3, %v25925_v30 }
 0x3d9   : > { %21373 = vmatmul.mubr.msk.f32.gmra.mrb[30].mxu1 %vm3960_vm3, %v5685_v58  ;;  %v5690_v58 = vld [vmem:[#allocation3 + $0xf4] sm:$0xff] }
 0x3da   : > { %21375 = vmatprep.mubr.msk.f32.mxu1 %vm3960_vm3, %v5686_v18  ;;  %v25951_v18 = vld [vmem:[#allocation3 + $0x129] sm:$0xff] }
 0x3db   : > { %21174 = vmatmul.mubr.msk.f32.gmra.mrb[52].mxu0 %vm3960_vm3, %v25931_v41 }
 0x3dc   : > { %21176 = vmatprep.mubr.msk.f32.mxu0 %vm3960_vm3, %v25935_v5 }
 0x3dd   : > { %21376 = vmatmul.mubr.msk.f32.gmra.mrb[0].mxu1 %vm3960_vm3, %v5687_v34  ;;  %v25955_v34 = vld [vmem:[#allocation3 + $0x139] sm:$0xff] }
 0x3de   : > { %21378 = vmatprep.mubr.msk.f32.mxu1 %vm3960_vm3, %v5688_v8  ;;  %v5691_v8 = vld [vmem:[#allocation3 + $0xfc] sm:$0xff] }
 0x3df   : > { %21177 = vmatmul.mubr.msk.f32.gmra.mrb[54].mxu0 %vm3960_vm3, %v25941_v6 }
 0x3e0   : > { %21179 = vmatprep.mubr.msk.f32.mxu0 %vm3960_vm3, %v25945_v48 }
 0x3e1   : > { %21379 = vmatmul.mubr.msk.f32.gmra.mrb[2].mxu1 %vm3960_vm3, %v5689_v52  ;;  %v25961_v52 = vld [vmem:[#allocation3 + $0x141] sm:$0xff] }
 0x3e2   : > { %21381 = vmatprep.mubr.msk.f32.mxu1 %vm3960_vm3, %v5690_v58  ;;  %v25965_v58 = vld [vmem:[#allocation3 + $0x151] sm:$0xff] }
 0x3e3   : > { %21180 = vmatmul.mubr.msk.f32.gmra.mrb[56].mxu0 %vm3960_vm3, %v25951_v18 }
 0x3e4   : > { %21182 = vmatprep.mubr.msk.f32.mxu0 %vm3960_vm3, %v25955_v34 }
 0x3e5   : > { %21382 = vmatmul.mubr.msk.f32.gmra.mrb[4].mxu1 %vm3960_vm3, %v5691_v8  ;;  %v25971_v8 = vld [vmem:[#allocation3 + $0x159] sm:$0xff] }
 0x3e6   : > { %21384 = vmatprep.mubr.msk.f32.mxu1 %vm3960_vm3, %v5692_v37  ;;  %v25975_v37 = vld [vmem:[#allocation3 + $0x169] sm:$0xff] }
 0x3e7   : > { %21183 = vmatmul.mubr.msk.f32.gmra.mrb[58].mxu0 %vm3960_vm3, %v25961_v52 }
 0x3e8   : > { %21185 = vmatprep.mubr.msk.f32.mxu0 %vm3960_vm3, %v25965_v58 }
 0x3e9   : > { %21385 = vmatmul.mubr.msk.f32.gmra.mrb[6].mxu1 %vm3960_vm3, %v5693_v38  ;;  %v25981_v38 = vld [vmem:[#allocation3 + $0x171] sm:$0xff] }
 0x3ea   : > { %21387 = vmatprep.mubr.msk.f32.mxu1 %vm3960_vm3, %v5694_v31  ;;  %v25985_v31 = vld [vmem:[#allocation3 + $0x144] sm:$0xff] }
 0x3eb   : > { %21186 = vmatmul.mubr.msk.f32.gmra.mrb[60].mxu0 %vm3960_vm3, %v25971_v8 }
 0x3ec   : > { %21188 = vmatprep.mubr.msk.f32.mxu0 %vm3960_vm3, %v25975_v37 }
 0x3ed   : > { %21388 = vmatmul.mubr.msk.f32.gmra.mrb[8].mxu1 %vm3960_vm3, %v5695_v33  ;;  %v4185_v33 = vld [vmem:[#allocation3 + $0x18] sm:$0xff] }
 0x3ee   : > { %21390 = vmatprep.mubr.msk.f32.mxu1 %vm3960_vm3, %v5696_v32  ;;  %v25995_v32 = vld [vmem:[#allocation3 + $0x15c] sm:$0xff] }
 0x3ef   : > { %21189 = vmatmul.mubr.msk.f32.gmra.mrb[62].mxu0 %vm3960_vm3, %v25981_v38 }
 0x3f0   : > { %21195 = vmatprep.mubr.msk.f32.mxu0 %vm3960_vm3, %v4183_v29  ;;  %v26001_v29 = vld [vmem:[#allocation3 + $0x16c] sm:$0xff] }
 0x3f1   : > { %21391 = vmatmul.mubr.msk.f32.gmra.mrb[10].mxu1 %vm3960_vm3, %v25985_v31 }
 0x3f2   : > { %21393 = vmatprep.mubr.msk.f32.mxu1 %vm3960_vm3, %v25990_v63 }
 0x3f3   : > { %21196 = vmatmul.mubr.msk.f32.vlgmr.msra.gmra.mrb[32].mxu0 %vm3960_vm3, %v4184_v17  ;;  %v4187_v17 = vld [vmem:[#allocation3 + $0x30] sm:$0xff] }
 0x3f4   : > { %21198 = vmatprep.mubr.msk.f32.mxu0 %vm3960_vm3, %v4185_v33  ;;  %22936 = vmatpush3.bf16.msra.mxu0 %v25814_v43  ;;  %v18298_v43 = vld [vmem:[%s29404_s3 + $0x70] sm:$0xff] }
 0x3f5   : > { %21394 = vmatmul.mubr.msk.f32.gmra.mrb[12].mxu1 %vm3960_vm3, %v25995_v32  ;;  %22938 = vmatprep.subr.bf16.mxu0 %v25557_v3  ;;  %v26020_v27 = vpack.c.bf16 %v18299_v60, %v18298_v43  ;;  %v26034_v60 = vld [vmem:[#allocation3 + $0x68] sm:$0xff] }
 0x3f6   : > { %21396 = vmatprep.mubr.msk.f32.mxu1 %vm3960_vm3, %v26001_v29  ;;  %v26081_v43 = vld [vmem:[#allocation3 + $0xc8] sm:$0xff] }
 0x3f7   : > { %21199 = vmatmul.mubr.msk.f32.gmra.mrb[34].mxu0 %vm3960_vm3, %v4186_v15 }
 0x3f8   : > { %21201 = vmatprep.mubr.msk.f32.mxu0 %vm3960_vm3, %v4187_v17 }
 0x3f9   : > { %21397 = vmatmul.mubr.msk.f32.gmra.mrb[14].mxu1 %vm3960_vm3, %v26008_v7 }
 0x3fa   : > { %21403 = vmatprep.mubr.msk.f32.mxu1 %vm3960_vm3, %v4185_v33  ;;  %v26069_v33 = vld [vmem:[#allocation3 + $0xb0] sm:$0xff] }
 0x3fb   : > { %21202 = vmatmul.mubr.msk.f32.gmra.mrb[36].mxu0 %vm3960_vm3, %v4188_v26 }
 0x3fc   : > { %21204 = vmatprep.mubr.msk.f32.mxu0 %vm3960_vm3, %v4189_v57 }
 0x3fd   : > { %21404 = vmatmul.mubr.msk.f32.vlgmr.msra.gmra.mrb[16].mxu1 %vm3960_vm3, %v4186_v15  ;;  %v26038_v15 = vld [vmem:[#allocation3 + $0x78] sm:$0xff] }
 0x3fe   : > { %22952 = vmatpush3.bf16.msra.mxu1 %v25843_v2  ;;  %21406 = vmatprep.mubr.msk.f32.mxu1 %vm3960_vm3, %v4187_v17  ;;  %v26045_v2 = vld [vmem:[#allocation3 + $0x80] sm:$0xff] }
 0x3ff   : > { %21205 = vmatmul.mubr.msk.f32.gmra.mrb[38].mxu0 %vm3960_vm3, %v26026_v54  ;;  %22954 = vmatprep.subr.bf16.mxu1 %v26020_v27  ;;  %v26073_v17 = vld [vmem:[#allocation3 + $0xc0] sm:$0xff] }
 0x400   : > { %21207 = vmatprep.mubr.msk.f32.mxu0 %vm3960_vm3, %v4191_v24 }
 0x401   : > { %21407 = vmatmul.mubr.msk.f32.gmra.mrb[18].mxu1 %vm3960_vm3, %v4188_v26  ;;  %v26057_v26 = vld [vmem:[#allocation3 + $0x98] sm:$0xff] }
 0x402   : > { %21409 = vmatprep.mubr.msk.f32.mxu1 %vm3960_vm3, %v4189_v57  ;;  %v26049_v57 = vld [vmem:[#allocation3 + $0x90] sm:$0xff] }
 0x403   : > { %21208 = vmatmul.mubr.msk.f32.gmra.mrb[40].mxu0 %vm3960_vm3, %v26034_v60 }
 0x404   : > { %21210 = vmatprep.mubr.msk.f32.mxu0 %vm3960_vm3, %v26038_v15 }
 0x405   : > { %21410 = vmatmul.mubr.msk.f32.gmra.mrb[20].mxu1 %vm3960_vm3, %v26026_v54 }
 0x406   : > { %21412 = vmatprep.mubr.msk.f32.mxu1 %vm3960_vm3, %v4191_v24  ;;  %v26061_v24 = vld [vmem:[#allocation3 + $0xa8] sm:$0xff] }
 0x407   : > { %21211 = vmatmul.mubr.msk.f32.gmra.mrb[42].mxu0 %vm3960_vm3, %v26045_v2 }
 0x408   : > { %21213 = vmatprep.mubr.msk.f32.mxu0 %vm3960_vm3, %v26049_v57 }
 0x409   : > { %21413 = vmatmul.mubr.msk.f32.gmra.mrb[22].mxu1 %vm3960_vm3, %v26034_v60 }
 0x40a   : > { %21415 = vmatprep.mubr.msk.f32.mxu1 %vm3960_vm3, %v26038_v15 }
 0x40b   : > { %21214 = vmatmul.mubr.msk.f32.gmra.mrb[44].mxu0 %vm3960_vm3, %v26057_v26 }
 0x40c   : > { %21216 = vmatprep.mubr.msk.f32.mxu0 %vm3960_vm3, %v26061_v24 }
 0x40d   : > { %21416 = vmatmul.mubr.msk.f32.gmra.mrb[24].mxu1 %vm3960_vm3, %v26045_v2 }
 0x40e   : > { %21418 = vmatprep.mubr.msk.f32.mxu1 %vm3960_vm3, %v26049_v57 }
 0x40f   : > { %21217 = vmatmul.mubr.msk.f32.gmra.mrb[46].mxu0 %vm3960_vm3, %v26069_v33 }
 0x410   : > { %21219 = vmatprep.mubr.msk.f32.mxu0 %vm3960_vm3, %v26073_v17 }
 0x411   : > { %21419 = vmatmul.mubr.msk.f32.gmra.mrb[26].mxu1 %vm3960_vm3, %v26057_v26 }
 0x412   : > { %21421 = vmatprep.mubr.msk.f32.mxu1 %vm3960_vm3, %v26061_v24 }
 0x413   : > { %21220 = vmatmul.mubr.msk.f32.gmra.mrb[48].mxu0 %vm3960_vm3, %v26081_v43 }
 0x414   : > { %21222 = vmatprep.mubr.msk.f32.mxu0 %vm3960_vm3, %v26085_v51 }
 0x415   : > { %21422 = vmatmul.mubr.msk.f32.gmra.mrb[28].mxu1 %vm3960_vm3, %v26069_v33 }
 0x416   : > { %21424 = vmatprep.mubr.msk.f32.mxu1 %vm3960_vm3, %v26073_v17 }
 0x417   : > { %21223 = vmatmul.mubr.msk.f32.gmra.mrb[50].mxu0 %vm3960_vm3, %v26093_v25 }
 0x418   : > { %21225 = vmatprep.mubr.msk.f32.mxu0 %vm3960_vm3, %v26097_v49 }
 0x419   : > { %21425 = vmatmul.mubr.msk.f32.gmra.mrb[30].mxu1 %vm3960_vm3, %v26081_v43 }
 0x41a   : > { %21427 = vmatprep.mubr.msk.f32.mxu1 %vm3960_vm3, %v26085_v51 }
 0x41b   : > { %21226 = vmatmul.mubr.msk.f32.gmra.mrb[52].mxu0 %vm3960_vm3, %v26105_v22 }
 0x41c   : > { %21228 = vmatprep.mubr.msk.f32.mxu0 %vm3960_vm3, %v26109_v44 }
 0x41d   : > { %21428 = vmatmul.mubr.msk.f32.gmra.mrb[0].mxu1 %vm3960_vm3, %v26093_v25 }
 0x41e   : > { %21430 = vmatprep.mubr.msk.f32.mxu1 %vm3960_vm3, %v26097_v49 }
 0x41f   : > { %21229 = vmatmul.mubr.msk.f32.gmra.mrb[54].mxu0 %vm3960_vm3, %v26117_v23 }
 0x420   : > { %21231 = vmatprep.mubr.msk.f32.mxu0 %vm3960_vm3, %v26121_v36 }
 0x421   : > { %21431 = vmatmul.mubr.msk.f32.gmra.mrb[2].mxu1 %vm3960_vm3, %v26105_v22 }
 0x422   : > { %21433 = vmatprep.mubr.msk.f32.mxu1 %vm3960_vm3, %v26109_v44 }
 0x423   : > { %21232 = vmatmul.mubr.msk.f32.gmra.mrb[56].mxu0 %vm3960_vm3, %v26129_v20 }
 0x424   : > { %21234 = vmatprep.mubr.msk.f32.mxu0 %vm3960_vm3, %v26133_v12 }
 0x425   : > { %21434 = vmatmul.mubr.msk.f32.gmra.mrb[4].mxu1 %vm3960_vm3, %v26117_v23 }
 0x426   : > { %21436 = vmatprep.mubr.msk.f32.mxu1 %vm3960_vm3, %v26121_v36 }
 0x427   : > { %21235 = vmatmul.mubr.msk.f32.gmra.mrb[58].mxu0 %vm3960_vm3, %v26141_v4 }
 0x428   : > { %21237 = vmatprep.mubr.msk.f32.mxu0 %vm3960_vm3, %v26145_v11 }
 0x429   : > { %21437 = vmatmul.mubr.msk.f32.gmra.mrb[6].mxu1 %vm3960_vm3, %v26129_v20 }
 0x42a   : > { %21439 = vmatprep.mubr.msk.f32.mxu1 %vm3960_vm3, %v26133_v12 }
 0x42b   : > { %21238 = vmatmul.mubr.msk.f32.gmra.mrb[60].mxu0 %vm3960_vm3, %v26153_v21 }
 0x42c   : > { %21240 = vmatprep.mubr.msk.f32.mxu0 %vm3960_vm3, %v26157_v9 }
 0x42d   : > { %21440 = vmatmul.mubr.msk.f32.gmra.mrb[8].mxu1 %vm3960_vm3, %v26141_v4 }
 0x42e   : > { %21442 = vmatprep.mubr.msk.f32.mxu1 %vm3960_vm3, %v26145_v11  ;;  %v26179_v11 = vld [vmem:[#allocation3 + $0x22] sm:$0xff] }
 0x42f   : > { %21241 = vmatmul.mubr.msk.f32.gmra.mrb[62].mxu0 %vm3960_vm3, %v26165_v0 }
 0x430   : > { %21247 = vmatprep.mubr.msk.f32.mxu0 %vm3960_vm3, %v4894_v42  ;;  %v26184_v42 = vld [vmem:[#allocation3 + $0x180] sm:$0xff] }
 0x431   : > { %21443 = vmatmul.mubr.msk.f32.gmra.mrb[10].mxu1 %vm3960_vm3, %v26153_v21  ;;  %29785 = vst [vmem:[#allocation42_spill] sm:$0xff] %v26184_v42  ;;  %v26210_v21 = vld [vmem:[#allocation3 + $0x4a] sm:$0xff] }
 0x432   : > { %21445 = vmatprep.mubr.msk.f32.mxu1 %vm3960_vm3, %v26157_v9  ;;  %v26190_v9 = vld [vmem:[#allocation3 + $0x32] sm:$0xff] }
 0x433   : > { %21248 = vmatmul.mubr.msk.f32.vlgmr.msra.gmra.mrb[32].mxu0 %vm3960_vm3, %v4895_v19  ;;  %v26194_v19 = vld [vmem:[#allocation3 + $0x188] sm:$0xff] }
 0x434   : > { %21250 = vmatprep.mubr.msk.f32.mxu0 %vm3960_vm3, %v26172_v62  ;;  %22940 = vmatpush3.bf16.msra.mxu0 %v25557_v3  ;;  %29786 = vst [vmem:[#allocation43_spill] sm:$0xff] %v26194_v19  ;;  %v18332_v3 = vld [vmem:[%s29404_s3 + $0x80] sm:$0xff] }
 0x435   : > { %21446 = vmatmul.mubr.msk.f32.gmra.mrb[12].mxu1 %vm3960_vm3, %v26165_v0  ;;  %v18333_v0 = vld [vmem:[%s29404_s3 + $0x88] sm:$0xff] }
 0x436   : > { %21448 = vmatprep.mubr.msk.f32.mxu1 %vm3960_vm3, %v26184_v42  ;;  %v26204_v42 = vld [vmem:[#allocation3 + $0x3a] sm:$0xff]  ;;  %v26212_v4 = vpack.c.bf16 %v18333_v0, %v18332_v3 }
 0x437   : > { %21251 = vmatmul.mubr.msk.f32.gmra.mrb[34].mxu0 %vm3960_vm3, %v26179_v11  ;;  %v26238_v0 = vld [vmem:[#allocation3 + $0x7a] sm:$0xff] }
 0x438   : > { %21253 = vmatprep.mubr.msk.f32.mxu0 %vm3960_vm3, %v26190_v9  ;;  %v18366_v3 = vld [vmem:[%s29404_s3 + $0x90] sm:$0xff] }
 0x439   : > { %21449 = vmatmul.mubr.msk.f32.gmra.mrb[14].mxu1 %vm3960_vm3, %v26194_v19  ;;  %v26221_v19 = vld [vmem:[#allocation3 + $0x52] sm:$0xff] }
 0x43a   : > { %21455 = vmatprep.mubr.msk.f32.mxu1 %vm3960_vm3, %v25648_v59  ;;  %v26225_v59 = vld [vmem:[#allocation3 + $0x62] sm:$0xff] }
 0x43b   : > { %21254 = vmatmul.mubr.msk.f32.gmra.mrb[36].mxu0 %vm3960_vm3, %v26204_v42 }
 0x43c   : > { %21256 = vmatprep.mubr.msk.f32.mxu0 %vm3960_vm3, %v26210_v21 }
 0x43d   : > { %21456 = vmatmul.mubr.msk.f32.vlgmr.msra.gmra.mrb[16].mxu1 %vm3960_vm3, %v25655_v14  ;;  %v26234_v14 = vld [vmem:[#allocation3 + $0x6a] sm:$0xff] }
 0x43e   : > { %22956 = vmatpush3.bf16.msra.mxu1 %v26020_v27  ;;  %21458 = vmatprep.mubr.msk.f32.mxu1 %vm3960_vm3, %v25823_v53  ;;  %v26246_v27 = vld [vmem:[#allocation3 + $0x82] sm:$0xff]  ;;  %v26250_v53 = vld [vmem:[#allocation3 + $0x92] sm:$0xff] }
 0x43f   : > { %21257 = vmatmul.mubr.msk.f32.gmra.mrb[38].mxu0 %vm3960_vm3, %v26221_v19  ;;  %22958 = vmatprep.subr.bf16.mxu1 %v26212_v4 }
 0x440   : > { %21259 = vmatprep.mubr.msk.f32.mxu0 %vm3960_vm3, %v26225_v59 }
 0x441   : > { %21459 = vmatmul.mubr.msk.f32.gmra.mrb[18].mxu1 %vm3960_vm3, %v25835_v16  ;;  %v26258_v16 = vld [vmem:[#allocation3 + $0x9a] sm:$0xff] }
 0x442   : > { %21461 = vmatprep.mubr.msk.f32.mxu1 %vm3960_vm3, %v25841_v39  ;;  %v26262_v39 = vld [vmem:[#allocation3 + $0xaa] sm:$0xff] }
 0x443   : > { %21260 = vmatmul.mubr.msk.f32.gmra.mrb[40].mxu0 %vm3960_vm3, %v26234_v14 }
 0x444   : > { %21262 = vmatprep.mubr.msk.f32.mxu0 %vm3960_vm3, %v26238_v0 }
 0x445   : > { %21462 = vmatmul.mubr.msk.f32.gmra.mrb[20].mxu1 %vm3960_vm3, %v25850_v28  ;;  %v26270_v28 = vld [vmem:[#allocation3 + $0xb2] sm:$0xff] }
 0x446   : > { %21464 = vmatprep.mubr.msk.f32.mxu1 %vm3960_vm3, %v25856_v35  ;;  %v26274_v35 = vld [vmem:[#allocation3 + $0xc2] sm:$0xff] }
 0x447   : > { %21263 = vmatmul.mubr.msk.f32.gmra.mrb[42].mxu0 %vm3960_vm3, %v26246_v27 }
 0x448   : > { %21265 = vmatprep.mubr.msk.f32.mxu0 %vm3960_vm3, %v26250_v53 }
 0x449   : > { %21465 = vmatmul.mubr.msk.f32.gmra.mrb[22].mxu1 %vm3960_vm3, %v25864_v10  ;;  %v26282_v10 = vld [vmem:[#allocation3 + $0xca] sm:$0xff] }
 0x44a   : > { %21467 = vmatprep.mubr.msk.f32.mxu1 %vm3960_vm3, %v25869_v13  ;;  %v26286_v13 = vld [vmem:[#allocation3 + $0xda] sm:$0xff] }
 0x44b   : > { %21266 = vmatmul.mubr.msk.f32.gmra.mrb[44].mxu0 %vm3960_vm3, %v26258_v16 }
 0x44c   : > { %21268 = vmatprep.mubr.msk.f32.mxu0 %vm3960_vm3, %v26262_v39 }
 0x44d   : > { %21468 = vmatmul.mubr.msk.f32.gmra.mrb[24].mxu1 %vm3960_vm3, %v25876_v50  ;;  %v26294_v50 = vld [vmem:[#allocation3 + $0xe2] sm:$0xff] }
 0x44e   : > { %21470 = vmatprep.mubr.msk.f32.mxu1 %vm3960_vm3, %v25881_v55  ;;  %v26298_v55 = vld [vmem:[#allocation3 + $0xf2] sm:$0xff] }
 0x44f   : > { %21269 = vmatmul.mubr.msk.f32.gmra.mrb[46].mxu0 %vm3960_vm3, %v26270_v28 }
 0x450   : > { %21271 = vmatprep.mubr.msk.f32.mxu0 %vm3960_vm3, %v26274_v35 }
 0x451   : > { %21471 = vmatmul.mubr.msk.f32.gmra.mrb[26].mxu1 %vm3960_vm3, %v25888_v61  ;;  %v26306_v61 = vld [vmem:[#allocation3 + $0xfa] sm:$0xff] }
 0x452   : > { %21473 = vmatprep.mubr.msk.f32.mxu1 %vm3960_vm3, %v25893_v1  ;;  %v26310_v1 = vld [vmem:[#allocation3 + $0x10a] sm:$0xff] }
 0x453   : > { %21272 = vmatmul.mubr.msk.f32.gmra.mrb[48].mxu0 %vm3960_vm3, %v26282_v10 }
 0x454   : > { %21274 = vmatprep.mubr.msk.f32.mxu0 %vm3960_vm3, %v26286_v13 }
 0x455   : > { %21474 = vmatmul.mubr.msk.f32.gmra.mrb[28].mxu1 %vm3960_vm3, %v25900_v40  ;;  %v26318_v40 = vld [vmem:[#allocation3 + $0x112] sm:$0xff] }
 0x456   : > { %21476 = vmatprep.mubr.msk.f32.mxu1 %vm3960_vm3, %v25905_v47  ;;  %v26322_v47 = vld [vmem:[#allocation3 + $0x122] sm:$0xff] }
 0x457   : > { %21275 = vmatmul.mubr.msk.f32.gmra.mrb[50].mxu0 %vm3960_vm3, %v26294_v50 }
 0x458   : > { %21277 = vmatprep.mubr.msk.f32.mxu0 %vm3960_vm3, %v26298_v55 }
 0x459   : > { %21477 = vmatmul.mubr.msk.f32.gmra.mrb[30].mxu1 %vm3960_vm3, %v25911_v45  ;;  %v26330_v45 = vld [vmem:[#allocation3 + $0x12a] sm:$0xff] }
 0x45a   : > { %21479 = vmatprep.mubr.msk.f32.mxu1 %vm3960_vm3, %v25915_v46  ;;  %v26334_v46 = vld [vmem:[#allocation3 + $0x13a] sm:$0xff] }
 0x45b   : > { %21278 = vmatmul.mubr.msk.f32.gmra.mrb[52].mxu0 %vm3960_vm3, %v26306_v61 }
 0x45c   : > { %21280 = vmatprep.mubr.msk.f32.mxu0 %vm3960_vm3, %v26310_v1 }
 0x45d   : > { %21480 = vmatmul.mubr.msk.f32.gmra.mrb[0].mxu1 %vm3960_vm3, %v25921_v56  ;;  %v26342_v56 = vld [vmem:[#allocation3 + $0x142] sm:$0xff] }
 0x45e   : > { %21482 = vmatprep.mubr.msk.f32.mxu1 %vm3960_vm3, %v25925_v30  ;;  %v26346_v30 = vld [vmem:[#allocation3 + $0x152] sm:$0xff] }
 0x45f   : > { %21281 = vmatmul.mubr.msk.f32.gmra.mrb[54].mxu0 %vm3960_vm3, %v26318_v40 }
 0x460   : > { %21283 = vmatprep.mubr.msk.f32.mxu0 %vm3960_vm3, %v26322_v47 }
 0x461   : > { %21483 = vmatmul.mubr.msk.f32.gmra.mrb[2].mxu1 %vm3960_vm3, %v25931_v41  ;;  %v26354_v41 = vld [vmem:[#allocation3 + $0x15a] sm:$0xff] }
 0x462   : > { %21485 = vmatprep.mubr.msk.f32.mxu1 %vm3960_vm3, %v25935_v5  ;;  %v26358_v5 = vld [vmem:[#allocation3 + $0x16a] sm:$0xff] }
 0x463   : > { %21284 = vmatmul.mubr.msk.f32.gmra.mrb[56].mxu0 %vm3960_vm3, %v26330_v45 }
 0x464   : > { %21286 = vmatprep.mubr.msk.f32.mxu0 %vm3960_vm3, %v26334_v46 }
 0x465   : > { %21486 = vmatmul.mubr.msk.f32.gmra.mrb[4].mxu1 %vm3960_vm3, %v25941_v6  ;;  %v5282_v6 = vld [vmem:[#allocation3 + $0x3] sm:$0xff] }
 0x466   : > { %21488 = vmatprep.mubr.msk.f32.mxu1 %vm3960_vm3, %v25945_v48  ;;  %v26366_v48 = vld [vmem:[#allocation3 + $0x172] sm:$0xff] }
 0x467   : > { %21287 = vmatmul.mubr.msk.f32.gmra.mrb[58].mxu0 %vm3960_vm3, %v26342_v56 }
 0x468   : > { %21289 = vmatprep.mubr.msk.f32.mxu0 %vm3960_vm3, %v26346_v30 }
 0x469   : > { %21489 = vmatmul.mubr.msk.f32.gmra.mrb[6].mxu1 %vm3960_vm3, %v25951_v18  ;;  %v5283_v18 = vld [vmem:[#allocation3 + $0xb] sm:$0xff] }
 0x46a   : > { %21491 = vmatprep.mubr.msk.f32.mxu1 %vm3960_vm3, %v25955_v34  ;;  %v26373_v34 = vld [vmem:[#allocation3 + $0x1b] sm:$0xff] }
 0x46b   : > { %21290 = vmatmul.mubr.msk.f32.gmra.mrb[60].mxu0 %vm3960_vm3, %v26354_v41 }
 0x46c   : > { %21292 = vmatprep.mubr.msk.f32.mxu0 %vm3960_vm3, %v26358_v5 }
 0x46d   : > { %21492 = vmatmul.mubr.msk.f32.gmra.mrb[8].mxu1 %vm3960_vm3, %v25961_v52  ;;  %v26380_v52 = vld [vmem:[#allocation3 + $0x23] sm:$0xff] }
 0x46e   : > { %21494 = vmatprep.mubr.msk.f32.mxu1 %vm3960_vm3, %v25965_v58  ;;  %v26384_v58 = vld [vmem:[#allocation3 + $0x181] sm:$0xff] }
 0x46f   : > { %21293 = vmatmul.mubr.msk.f32.gmra.mrb[62].mxu0 %vm3960_vm3, %v26366_v48  ;;  %29787 = vst [vmem:[#allocation44_spill] sm:$0xff] %v26384_v58 }
 0x470   : > { %21299 = vmatprep.mubr.msk.f32.mxu0 %vm3960_vm3, %v5282_v6  ;;  %v26404_v6 = vld [vmem:[#allocation3 + $0x3b] sm:$0xff] }
 0x471   : > { %21495 = vmatmul.mubr.msk.f32.gmra.mrb[10].mxu1 %vm3960_vm3, %v25971_v8  ;;  %v26390_v8 = vld [vmem:[#allocation3 + $0x33] sm:$0xff] }
 0x472   : > { %21497 = vmatprep.mubr.msk.f32.mxu1 %vm3960_vm3, %v25975_v37  ;;  %v26394_v37 = vld [vmem:[#allocation3 + $0x189] sm:$0xff] }
 0x473   : > { %21300 = vmatmul.mubr.msk.f32.vlgmr.msra.gmra.mrb[32].mxu0 %vm3960_vm3, %v5283_v18  ;;  %29788 = vst [vmem:[#allocation45_spill] sm:$0xff] %v26394_v37  ;;  %v26410_v18 = vld [vmem:[#allocation3 + $0x4b] sm:$0xff] }
 0x474   : > { %21302 = vmatprep.mubr.msk.f32.mxu0 %vm3960_vm3, %v26373_v34 }
 0x475   : > { %21498 = vmatmul.mubr.msk.f32.gmra.mrb[12].mxu1 %vm3960_vm3, %v25981_v38  ;;  %v18367_v38 = vld [vmem:[%s29404_s3 + $0x98] sm:$0xff] }
 0x476   : > { %21500 = vmatprep.mubr.msk.f32.mxu1 %vm3960_vm3, %v26384_v58  ;;  %v22961_v58 = vpack.c.bf16 %v18367_v38, %v18366_v3  ;;  %v26575_v3 = vld [vmem:[#allocation3 + $0x10b] sm:$0xff]  ;;  %v26579_v38 = vld [vmem:[#allocation3 + $0x113] sm:$0xff] }
 0x477   : > { %21303 = vmatmul.mubr.msk.f32.gmra.mrb[34].mxu0 %vm3960_vm3, %v26380_v52  ;;  %29793 = vst [vmem:[#allocation50_spill] sm:$0xff] %v26575_v3  ;;  %29794 = vst [vmem:[#allocation51_spill] sm:$0xff] %v26579_v38 }
 0x478   : > { %21305 = vmatprep.mubr.msk.f32.mxu0 %vm3960_vm3, %v26390_v8 }
 0x479   : > { %21501 = vmatmul.mubr.msk.f32.gmra.mrb[14].mxu1 %vm3960_vm3, %v26394_v37  ;;  %v26419_v37 = vld [vmem:[#allocation3 + $0x53] sm:$0xff] }
 0x47a   : > { %21507 = vmatprep.mubr.msk.f32.mxu1 %vm3960_vm3, %v26172_v62  ;;  %v26423_v62 = vld [vmem:[#allocation3 + $0x63] sm:$0xff] }
 0x47b   : > { %21306 = vmatmul.mubr.msk.f32.gmra.mrb[36].mxu0 %vm3960_vm3, %v26404_v6 }
 0x47c   : > { %21308 = vmatprep.mubr.msk.f32.mxu0 %vm3960_vm3, %v26410_v18 }
 0x47d   : > { %21508 = vmatmul.mubr.msk.f32.vlgmr.msra.gmra.mrb[16].mxu1 %vm3960_vm3, %v26179_v11  ;;  %v26431_v11 = vld [vmem:[#allocation3 + $0x6b] sm:$0xff] }
 0x47e   : > { %22960 = vmatpush3.bf16.msra.mxu1 %v26212_v4  ;;  %21510 = vmatprep.mubr.msk.f32.mxu1 %vm3960_vm3, %v26190_v9  ;;  %v26435_v9 = vld [vmem:[#allocation3 + $0x7b] sm:$0xff]  ;;  %v26443_v4 = vld [vmem:[#allocation3 + $0x83] sm:$0xff] }
 0x47f   : > { %21309 = vmatmul.mubr.msk.f32.gmra.mrb[38].mxu0 %vm3960_vm3, %v26419_v37  ;;  %22962 = vmatprep.subr.bf16.mxu1 %v22961_v58 }
 0x480   : > { %21311 = vmatprep.mubr.msk.f32.mxu0 %vm3960_vm3, %v26423_v62 }
 0x481   : > { %21511 = vmatmul.mubr.msk.f32.gmra.mrb[18].mxu1 %vm3960_vm3, %v26204_v42  ;;  %v26455_v42 = vld [vmem:[#allocation3 + $0x9b] sm:$0xff] }
 0x482   : > { %21513 = vmatprep.mubr.msk.f32.mxu1 %vm3960_vm3, %v26210_v21  ;;  %v26447_v21 = vld [vmem:[#allocation3 + $0x93] sm:$0xff] }
 0x483   : > { %21312 = vmatmul.mubr.msk.f32.gmra.mrb[40].mxu0 %vm3960_vm3, %v26431_v11 }
 0x484   : > { %21314 = vmatprep.mubr.msk.f32.mxu0 %vm3960_vm3, %v26435_v9 }
 0x485   : > { %21514 = vmatmul.mubr.msk.f32.gmra.mrb[20].mxu1 %vm3960_vm3, %v26221_v19  ;;  %v26459_v19 = vld [vmem:[#allocation3 + $0xab] sm:$0xff] }
 0x486   : > { %21516 = vmatprep.mubr.msk.f32.mxu1 %vm3960_vm3, %v26225_v59  ;;  %v26467_v59 = vld [vmem:[#allocation3 + $0xb3] sm:$0xff] }
 0x487   : > { %21315 = vmatmul.mubr.msk.f32.gmra.mrb[42].mxu0 %vm3960_vm3, %v26443_v4 }
 0x488   : > { %21317 = vmatprep.mubr.msk.f32.mxu0 %vm3960_vm3, %v26447_v21 }
 0x489   : > { %21517 = vmatmul.mubr.msk.f32.gmra.mrb[22].mxu1 %vm3960_vm3, %v26234_v14  ;;  %v26509_v14 = vld [vmem:[#allocation3 + $0x182] sm:$0xff] }
 0x48a   : > { %21519 = vmatprep.mubr.msk.f32.mxu1 %vm3960_vm3, %v26238_v0  ;;  %v26513_v0 = vld [vmem:[#allocation3 + $0x18a] sm:$0xff] }
 0x48b   : > { %21318 = vmatmul.mubr.msk.f32.gmra.mrb[44].mxu0 %vm3960_vm3, %v26455_v42 }
 0x48c   : > { %21320 = vmatprep.mubr.msk.f32.mxu0 %vm3960_vm3, %v26459_v19 }
 0x48d   : > { %21520 = vmatmul.mubr.msk.f32.gmra.mrb[24].mxu1 %vm3960_vm3, %v26246_v27  ;;  %v18400_v27 = vld [vmem:[%s29404_s3 + $0xa0] sm:$0xff] }
 0x48e   : > { %21522 = vmatprep.mubr.msk.f32.mxu1 %vm3960_vm3, %v26250_v53  ;;  %v18401_v53 = vld [vmem:[%s29404_s3 + $0xa8] sm:$0xff] }
 0x48f   : > { %21321 = vmatmul.mubr.msk.f32.gmra.mrb[46].mxu0 %vm3960_vm3, %v26467_v59 }
 0x491   : > { %21523 = vmatmul.mubr.msk.f32.gmra.mrb[26].mxu1 %vm3960_vm3, %v26258_v16  ;;  %v22965_v16 = vpack.c.bf16 %v18401_v53, %v18400_v27  ;;  %v26583_v27 = vld [vmem:[#allocation3 + $0x123] sm:$0xff]  ;;  %v26587_v53 = vld [vmem:[#allocation3 + $0x12b] sm:$0xff] }
 0x492   : > { %21525 = vmatprep.mubr.msk.f32.mxu1 %vm3960_vm3, %v26262_v39  ;;  %v26551_v39 = vld [vmem:[#allocation3 + $0xc3] sm:$0xff]  ;;  %29795 = vst [vmem:[#allocation52_spill] sm:$0xff] %v26583_v27  ;;  %29796 = vst [vmem:[#allocation53_spill] sm:$0xff] %v26587_v53 }
 0x495   : > { %21526 = vmatmul.mubr.msk.f32.gmra.mrb[28].mxu1 %vm3960_vm3, %v26270_v28  ;;  %v26555_v28 = vld [vmem:[#allocation3 + $0xcb] sm:$0xff] }
 0x496   : > { %21528 = vmatprep.mubr.msk.f32.mxu1 %vm3960_vm3, %v26274_v35  ;;  %v26559_v35 = vld [vmem:[#allocation3 + $0xdb] sm:$0xff] }
 0x497   : > { %29789 = vst [vmem:[#allocation46_spill] sm:$0xff] %v26559_v35 }
 0x499   : > { %21529 = vmatmul.mubr.msk.f32.gmra.mrb[30].mxu1 %vm3960_vm3, %v26282_v10 }
 0x49a   : > { %21531 = vmatprep.mubr.msk.f32.mxu1 %vm3960_vm3, %v26286_v13 }
 0x49d   : > { %21532 = vmatmul.mubr.msk.f32.gmra.mrb[0].mxu1 %vm3960_vm3, %v26294_v50 }
 0x49e   : > { %21534 = vmatprep.mubr.msk.f32.mxu1 %vm3960_vm3, %v26298_v55 }
 0x4a1   : > { %21535 = vmatmul.mubr.msk.f32.gmra.mrb[2].mxu1 %vm3960_vm3, %v26306_v61 }
 0x4a2   : > { %21537 = vmatprep.mubr.msk.f32.mxu1 %vm3960_vm3, %v26310_v1 }
 0x4a5   : > { %21538 = vmatmul.mubr.msk.f32.gmra.mrb[4].mxu1 %vm3960_vm3, %v26318_v40 }
 0x4a6   : > { %21540 = vmatprep.mubr.msk.f32.mxu1 %vm3960_vm3, %v26322_v47 }
 0x4a9   : > { %21541 = vmatmul.mubr.msk.f32.gmra.mrb[6].mxu1 %vm3960_vm3, %v26330_v45 }
 0x4aa   : > { %21543 = vmatprep.mubr.msk.f32.mxu1 %vm3960_vm3, %v26334_v46 }
 0x4ad   : > { %21544 = vmatmul.mubr.msk.f32.gmra.mrb[8].mxu1 %vm3960_vm3, %v26342_v56 }
 0x4ae   : > { %21546 = vmatprep.mubr.msk.f32.mxu1 %vm3960_vm3, %v26346_v30 }
 0x4b1   : > { %21547 = vmatmul.mubr.msk.f32.gmra.mrb[10].mxu1 %vm3960_vm3, %v26354_v41 }
 0x4b2   : > { %21549 = vmatprep.mubr.msk.f32.mxu1 %vm3960_vm3, %v26358_v5 }
 0x4b5   : > { %21550 = vmatmul.mubr.msk.f32.gmra.mrb[12].mxu1 %vm3960_vm3, %v26366_v48 }
 0x4b6   : > { %21552 = vmatprep.mubr.msk.f32.mxu1 %vm3960_vm3, %v26509_v14 }
 0x4b9   : > { %21553 = vmatmul.mubr.msk.f32.gmra.mrb[14].mxu1 %vm3960_vm3, %v26513_v0 }
 0x4ba   : > { %21559 = vmatprep.mubr.msk.f32.mxu1 %vm3960_vm3, %v26373_v34  ;;  %v26563_v34 = vld [vmem:[#allocation3 + $0xe3] sm:$0xff] }
 0x4bb   : > { %29790 = vst [vmem:[#allocation47_spill] sm:$0xff] %v26563_v34 }
 0x4bd   : > { %21560 = vmatmul.mubr.msk.f32.vlgmr.msra.gmra.mrb[16].mxu1 %vm3960_vm3, %v26380_v52  ;;  %v26567_v52 = vld [vmem:[#allocation3 + $0xf3] sm:$0xff] }
 0x4be   : > { %22964 = vmatpush3.bf16.msra.mxu1 %v22961_v58  ;;  %21562 = vmatprep.mubr.msk.f32.mxu1 %vm3960_vm3, %v26390_v8  ;;  %29791 = vst [vmem:[#allocation48_spill] sm:$0xff] %v26567_v52  ;;  %v26571_v58 = vld [vmem:[#allocation3 + $0xfb] sm:$0xff] }
 0x4bf   : > { %22966 = vmatprep.subr.bf16.mxu1 %v22965_v16  ;;  %29792 = vst [vmem:[#allocation49_spill] sm:$0xff] %v26571_v58 }
 0x4c1   : > { %21563 = vmatmul.mubr.msk.f32.gmra.mrb[18].mxu1 %vm3960_vm3, %v26404_v6 }
 0x4c2   : > { %21565 = vmatprep.mubr.msk.f32.mxu1 %vm3960_vm3, %v26410_v18 }
 0x4c5   : > { %21566 = vmatmul.mubr.msk.f32.gmra.mrb[20].mxu1 %vm3960_vm3, %v26419_v37 }
 0x4c6   : > { %21568 = vmatprep.mubr.msk.f32.mxu1 %vm3960_vm3, %v26423_v62 }
 0x4c9   : > { %21569 = vmatmul.mubr.msk.f32.gmra.mrb[22].mxu1 %vm3960_vm3, %v26431_v11 }
 0x4ca   : > { %21571 = vmatprep.mubr.msk.f32.mxu1 %vm3960_vm3, %v26435_v9 }
 0x4cd   : > { %21572 = vmatmul.mubr.msk.f32.gmra.mrb[24].mxu1 %vm3960_vm3, %v26443_v4 }
 0x4ce   : > { %21574 = vmatprep.mubr.msk.f32.mxu1 %vm3960_vm3, %v26447_v21 }
 0x4d1   : > { %21575 = vmatmul.mubr.msk.f32.gmra.mrb[26].mxu1 %vm3960_vm3, %v26455_v42 }
 0x4d2   : > { %21577 = vmatprep.mubr.msk.f32.mxu1 %vm3960_vm3, %v26459_v19 }
 0x4d5   : > { %21578 = vmatmul.mubr.msk.f32.gmra.mrb[28].mxu1 %vm3960_vm3, %v26467_v59 }
 0x4d6   : > { %21580 = vmatprep.mubr.msk.f32.mxu1 %vm3960_vm3, %v26551_v39 }
 0x4d9   : > { %21581 = vmatmul.mubr.msk.f32.gmra.mrb[30].mxu1 %vm3960_vm3, %v26555_v28 }
 0x4da   : > { %21583 = vmatprep.mubr.msk.f32.mxu1 %vm3960_vm3, %v26559_v35  ;;  %v26638_v35 = vld [vmem:[#allocation3 + $0x3c] sm:$0xff] }
 0x4db   : > { %29805 = vst [vmem:[#allocation62_spill] sm:$0xff] %v26638_v35 }
 0x4dd   : > { %21584 = vmatmul.mubr.msk.f32.gmra.mrb[0].mxu1 %vm3960_vm3, %v26563_v34 }
 0x4de   : > { %21586 = vmatprep.mubr.msk.f32.mxu1 %vm3960_vm3, %v26567_v52  ;;  %v26619_v52 = vld [vmem:[#allocation3 + $0x18b] sm:$0xff] }
 0x4df   : > { %29804 = vst [vmem:[#allocation61_spill] sm:$0xff] %v26619_v52 }
 0x4e1   : > { %21587 = vmatmul.mubr.msk.f32.gmra.mrb[2].mxu1 %vm3960_vm3, %v26571_v58  ;;  %v26591_v58 = vld [vmem:[#allocation3 + $0x13b] sm:$0xff] }
 0x4e2   : > { %21589 = vmatprep.mubr.msk.f32.mxu1 %vm3960_vm3, %v26575_v3  ;;  %29797 = vst [vmem:[#allocation54_spill] sm:$0xff] %v26591_v58  ;;  %v26595_v3 = vld [vmem:[#allocation3 + $0x143] sm:$0xff] }
 0x4e3   : > { %29798 = vst [vmem:[#allocation55_spill] sm:$0xff] %v26595_v3 }
 0x4e5   : > { %21590 = vmatmul.mubr.msk.f32.gmra.mrb[4].mxu1 %vm3960_vm3, %v26579_v38  ;;  %v26599_v38 = vld [vmem:[#allocation3 + $0x153] sm:$0xff] }
 0x4e6   : > { %21592 = vmatprep.mubr.msk.f32.mxu1 %vm3960_vm3, %v26583_v27  ;;  %29799 = vst [vmem:[#allocation56_spill] sm:$0xff] %v26599_v38  ;;  %v26603_v27 = vld [vmem:[#allocation3 + $0x15b] sm:$0xff] }
 0x4e7   : > { %29800 = vst [vmem:[#allocation57_spill] sm:$0xff] %v26603_v27 }
 0x4e9   : > { %21593 = vmatmul.mubr.msk.f32.gmra.mrb[6].mxu1 %vm3960_vm3, %v26587_v53  ;;  %v26607_v53 = vld [vmem:[#allocation3 + $0x16b] sm:$0xff] }
 0x4ea   : > { %21595 = vmatprep.mubr.msk.f32.mxu1 %vm3960_vm3, %v26591_v58  ;;  %29801 = vst [vmem:[#allocation58_spill] sm:$0xff] %v26607_v53  ;;  %v26611_v58 = vld [vmem:[#allocation3 + $0x173] sm:$0xff] }
 0x4eb   : > { %29802 = vst [vmem:[#allocation59_spill] sm:$0xff] %v26611_v58 }
 0x4ed   : > { %21596 = vmatmul.mubr.msk.f32.gmra.mrb[8].mxu1 %vm3960_vm3, %v26595_v3  ;;  %v26615_v3 = vld [vmem:[#allocation3 + $0x183] sm:$0xff] }
 0x4ee   : > { %21598 = vmatprep.mubr.msk.f32.mxu1 %vm3960_vm3, %v26599_v38  ;;  %29803 = vst [vmem:[#allocation60_spill] sm:$0xff] %v26615_v3  ;;  %v7611_v38 = vld [vmem:[#allocation3 + $0x1c] sm:$0xff] }
 0x4f1   : > { %21599 = vmatmul.mubr.msk.f32.gmra.mrb[10].mxu1 %vm3960_vm3, %v26603_v27  ;;  %v18434_v27 = vld [vmem:[%s29404_s3 + $0xb0] sm:$0xff] }
 0x4f2   : > { %21601 = vmatprep.mubr.msk.f32.mxu1 %vm3960_vm3, %v26607_v53  ;;  %v18435_v53 = vld [vmem:[%s29404_s3 + $0xb8] sm:$0xff] }
 0x4f3   : > { %v26630_v34 = vpack.c.bf16 %v18435_v53, %v18434_v27  ;;  %v26658_v27 = vld [vmem:[#allocation3 + $0x7c] sm:$0xff]  ;;  %v26662_v53 = vld [vmem:[#allocation3 + $0x84] sm:$0xff] }
 0x4f4   : > { %29810 = vst [vmem:[#allocation67_spill] sm:$0xff] %v26658_v27  ;;  %29811 = vst [vmem:[#allocation68_spill] sm:$0xff] %v26662_v53 }
 0x4f5   : > { %21602 = vmatmul.mubr.msk.f32.gmra.mrb[12].mxu1 %vm3960_vm3, %v26611_v58  ;;  %v7612_v58 = vld [vmem:[#allocation3 + $0x24] sm:$0xff] }
 0x4f6   : > { %21604 = vmatprep.mubr.msk.f32.mxu1 %vm3960_vm3, %v26615_v3  ;;  %v26633_v3 = vld [vmem:[#allocation3 + $0x34] sm:$0xff] }
 0x4f9   : > { %21605 = vmatmul.mubr.msk.f32.gmra.mrb[14].mxu1 %vm3960_vm3, %v26619_v52  ;;  %v26642_v52 = vld [vmem:[#allocation3 + $0x4c] sm:$0xff] }
 0x4fa   : > { %21611 = vmatprep.mubr.msk.f32.mxu1 %vm3960_vm3, %v7611_v38  ;;  %29806 = vst [vmem:[#allocation63_spill] sm:$0xff] %v26642_v52  ;;  %v26646_v38 = vld [vmem:[#allocation3 + $0x54] sm:$0xff] }
 0x4fb   : > { %29807 = vst [vmem:[#allocation64_spill] sm:$0xff] %v26646_v38 }
 0x4fd   : > { %21612 = vmatmul.mubr.msk.f32.vlgmr.msra.gmra.mrb[16].mxu1 %vm3960_vm3, %v7612_v58  ;;  %v26654_v58 = vld [vmem:[#allocation3 + $0x6c] sm:$0xff] }
 0x4fe   : > { %22968 = vmatpush3.bf16.msra.mxu1 %v22965_v16  ;;  %21614 = vmatprep.mubr.msk.f32.mxu1 %vm3960_vm3, %v26633_v3  ;;  %v26650_v16 = vld [vmem:[#allocation3 + $0x64] sm:$0xff]  ;;  %29809 = vst [vmem:[#allocation66_spill] sm:$0xff] %v26654_v58 }
 0x4ff   : > { %22970 = vmatprep.subr.bf16.mxu1 %v26630_v34  ;;  %29808 = vst [vmem:[#allocation65_spill] sm:$0xff] %v26650_v16 }
 0x501   : > { %21615 = vmatmul.mubr.msk.f32.gmra.mrb[18].mxu1 %vm3960_vm3, %v26638_v35 }
 0x502   : > { %21617 = vmatprep.mubr.msk.f32.mxu1 %vm3960_vm3, %v26642_v52 }
 0x505   : > { %21618 = vmatmul.mubr.msk.f32.gmra.mrb[20].mxu1 %vm3960_vm3, %v26646_v38  ;;  %v26666_v38 = vld [vmem:[#allocation3 + $0x94] sm:$0xff] }
 0x506   : > { %21620 = vmatprep.mubr.msk.f32.mxu1 %vm3960_vm3, %v26650_v16  ;;  %29812 = vst [vmem:[#allocation69_spill] sm:$0xff] %v26666_v38  ;;  %v26670_v16 = vld [vmem:[#allocation3 + $0x9c] sm:$0xff] }
 0x507   : > { %29813 = vst [vmem:[#allocation70_spill] sm:$0xff] %v26670_v16 }
 0x509   : > { %21621 = vmatmul.mubr.msk.f32.gmra.mrb[22].mxu1 %vm3960_vm3, %v26654_v58  ;;  %v26674_v58 = vld [vmem:[#allocation3 + $0xac] sm:$0xff] }
 0x50a   : > { %21623 = vmatprep.mubr.msk.f32.mxu1 %vm3960_vm3, %v26658_v27  ;;  %29814 = vst [vmem:[#allocation71_spill] sm:$0xff] %v26674_v58  ;;  %v26678_v27 = vld [vmem:[#allocation3 + $0xb4] sm:$0xff] }
 0x50b   : > { %29815 = vst [vmem:[#allocation72_spill] sm:$0xff] %v26678_v27 }
 0x50d   : > { %21624 = vmatmul.mubr.msk.f32.gmra.mrb[24].mxu1 %vm3960_vm3, %v26662_v53  ;;  %v26682_v53 = vld [vmem:[#allocation3 + $0xc4] sm:$0xff] }
 0x50e   : > { %21626 = vmatprep.mubr.msk.f32.mxu1 %vm3960_vm3, %v26666_v38  ;;  %29816 = vst [vmem:[#allocation73_spill] sm:$0xff] %v26682_v53  ;;  %v26686_v38 = vld [vmem:[#allocation3 + $0xcc] sm:$0xff] }
 0x50f   : > { %29817 = vst [vmem:[#allocation74_spill] sm:$0xff] %v26686_v38 }
 0x511   : > { %21627 = vmatmul.mubr.msk.f32.gmra.mrb[26].mxu1 %vm3960_vm3, %v26670_v16  ;;  %v26690_v16 = vld [vmem:[#allocation3 + $0xdc] sm:$0xff] }
 0x512   : > { %21629 = vmatprep.mubr.msk.f32.mxu1 %vm3960_vm3, %v26674_v58  ;;  %29818 = vst [vmem:[#allocation75_spill] sm:$0xff] %v26690_v16  ;;  %v26694_v58 = vld [vmem:[#allocation3 + $0xe4] sm:$0xff] }
 0x513   : > { %29819 = vst [vmem:[#allocation76_spill] sm:$0xff] %v26694_v58 }
 0x515   : > { %21630 = vmatmul.mubr.msk.f32.gmra.mrb[28].mxu1 %vm3960_vm3, %v26678_v27  ;;  %v26698_v27 = vld [vmem:[#allocation3 + $0xf4] sm:$0xff] }
 0x516   : > { %21632 = vmatprep.mubr.msk.f32.mxu1 %vm3960_vm3, %v26682_v53  ;;  %29820 = vst [vmem:[#allocation77_spill] sm:$0xff] %v26698_v27  ;;  %v26702_v53 = vld [vmem:[#allocation3 + $0xfc] sm:$0xff] }
 0x517   : > { %29821 = vst [vmem:[#allocation78_spill] sm:$0xff] %v26702_v53 }
 0x519   : > { %21633 = vmatmul.mubr.msk.f32.gmra.mrb[30].mxu1 %vm3960_vm3, %v26686_v38  ;;  %v26706_v38 = vld [vmem:[#allocation3 + $0x10c] sm:$0xff] }
 0x51a   : > { %21635 = vmatprep.mubr.msk.f32.mxu1 %vm3960_vm3, %v26690_v16  ;;  %29822 = vst [vmem:[#allocation79_spill] sm:$0xff] %v26706_v38  ;;  %v26710_v16 = vld [vmem:[#allocation3 + $0x114] sm:$0xff] }
 0x51b   : > { %29823 = vst [vmem:[#allocation80_spill] sm:$0xff] %v26710_v16 }
 0x51d   : > { %21636 = vmatmul.mubr.msk.f32.gmra.mrb[0].mxu1 %vm3960_vm3, %v26694_v58  ;;  %v26714_v58 = vld [vmem:[#allocation3 + $0x124] sm:$0xff] }
 0x51e   : > { %21638 = vmatprep.mubr.msk.f32.mxu1 %vm3960_vm3, %v26698_v27 }
 0x521   : > { %21639 = vmatmul.mubr.msk.f32.gmra.mrb[2].mxu1 %vm3960_vm3, %v26702_v53  ;;  %v26722_v53 = vld [vmem:[#allocation3 + $0x12c] sm:$0xff] }
 0x522   : > { %21641 = vmatprep.mubr.msk.f32.mxu1 %vm3960_vm3, %v26706_v38  ;;  %29826 = vst [vmem:[#allocation83_spill] sm:$0xff] %v26722_v53  ;;  %v26726_v38 = vld [vmem:[#allocation3 + $0x13c] sm:$0xff] }
 0x525   : > { %21642 = vmatmul.mubr.msk.f32.gmra.mrb[4].mxu1 %vm3960_vm3, %v26710_v16 }
 0x526   : > { %v26716_v52 = vpop.f32.mrb[48].mxu0  ;;  %21644 = vmatprep.mubr.msk.f32.mxu1 %vm3960_vm3, %v26714_v58 }
 0x527   : > { %29824 = vst [vmem:[#allocation81_spill] sm:$0xff] %v26716_v52  ;;  %v26720_v27 = vpop.f32.mrb[49].mxu0 }
 0x528   : > { %29825 = vst [vmem:[#allocation82_spill] sm:$0xff] %v26720_v27 }
 0x529   : > { %21645 = vmatmul.mubr.msk.f32.gmra.mrb[6].mxu1 %vm3960_vm3, %v26722_v53 }
 0x52a   : > { %v26728_v35 = vpop.f32.mrb[50].mxu0  ;;  %21647 = vmatprep.mubr.msk.f32.mxu1 %vm3960_vm3, %v26726_v38 }
 0x52b   : > { %29827 = vst [vmem:[#allocation84_spill] sm:$0xff] %v26728_v35  ;;  %v26732_v16 = vpop.f32.mrb[51].mxu0 }
 0x52c   : > { %29828 = vst [vmem:[#allocation85_spill] sm:$0xff] %v26732_v16  ;;  %v26778_v16 = vld [vmem:[#allocation3 + $0x48] sm:$0xff] }
 0x52d   : > { %21648 = vmatmul.mubr.msk.f32.gmra.mrb[8].mxu1 %vm3960_vm3, %v25985_v31  ;;  %v26752_v31 = vld [vmem:[#allocation3 + $0x184] sm:$0xff] }
 0x52e   : > { %v26736_v52 = vpop.f32.mrb[52].mxu0  ;;  %21650 = vmatprep.mubr.msk.f32.mxu1 %vm3960_vm3, %v25990_v63  ;;  %29833 = vst [vmem:[#allocation90_spill] sm:$0xff] %v26752_v31 }
 0x52f   : > { %29829 = vst [vmem:[#allocation86_spill] sm:$0xff] %v26736_v52  ;;  %v26740_v27 = vpop.f32.mrb[53].mxu0 }
 0x530   : > { %29830 = vst [vmem:[#allocation87_spill] sm:$0xff] %v26740_v27  ;;  %v8000_v27 = vld [vmem:[#allocation3 + $0x38] sm:$0xff] }
 0x531   : > { %21651 = vmatmul.mubr.msk.f32.gmra.mrb[10].mxu1 %vm3960_vm3, %v25995_v32  ;;  %v26760_v32 = vld [vmem:[#allocation3 + $0x18c] sm:$0xff] }
 0x532   : > { %v26744_v53 = vpop.f32.mrb[54].mxu0  ;;  %21653 = vmatprep.mubr.msk.f32.mxu1 %vm3960_vm3, %v26001_v29  ;;  %29836 = vst [vmem:[#allocation93_spill] sm:$0xff] %v26760_v32  ;;  %v18468_v29 = vld [vmem:[%s29404_s3 + $0xc0] sm:$0xff] }
 0x533   : > { %29831 = vst [vmem:[#allocation88_spill] sm:$0xff] %v26744_v53  ;;  %v26748_v35 = vpop.f32.mrb[55].mxu0 }
 0x534   : > { %29832 = vst [vmem:[#allocation89_spill] sm:$0xff] %v26748_v35  ;;  %v18469_v35 = vld [vmem:[%s29404_s3 + $0xc8] sm:$0xff] }
 0x535   : > { %21654 = vmatmul.mubr.msk.f32.gmra.mrb[12].mxu1 %vm3960_vm3, %v26008_v7  ;;  %v7999_v7 = vld [vmem:[#allocation3 + $0x30] sm:$0xff] }
 0x536   : > { %v26754_v52 = vpop.f32.mrb[56].mxu0  ;;  %21656 = vmatprep.mubr.msk.f32.mxu1 %vm3960_vm3, %v26752_v31 }
 0x537   : > { %29834 = vst [vmem:[#allocation91_spill] sm:$0xff] %v26754_v52  ;;  %v26758_v63 = vpop.f32.mrb[57].mxu0 }
 0x538   : > { %29835 = vst [vmem:[#allocation92_spill] sm:$0xff] %v26758_v63  ;;  %v26775_v63 = vpack.c.bf16 %v18469_v35, %v18468_v29  ;;  %v26790_v35 = vld [vmem:[#allocation3 + $0x60] sm:$0xff] }
 0x539   : > { %21657 = vmatmul.mubr.msk.f32.gmra.mrb[14].mxu1 %vm3960_vm3, %v26760_v32 }
 0x53a   : > { %v26770_v52 = vpop.f32.mrb[58].mxu0  ;;  %21663 = vmatprep.mubr.msk.f32.mxu1 %vm3960_vm3, %v7999_v7 }
 0x53b   : > { %29837 = vst [vmem:[#allocation94_spill] sm:$0xff] %v26770_v52  ;;  %v26773_v53 = vpop.f32.mrb[59].mxu0  ;;  %v26932_v52 = vld [vmem:[#allocation3 + $0xa9] sm:$0xff] }
 0x53c   : > { %29838 = vst [vmem:[#allocation95_spill] sm:$0xff] %v26773_v53  ;;  %v26928_v53 = vld [vmem:[#allocation3 + $0x99] sm:$0xff] }
 0x53d   : > { %21664 = vmatmul.mubr.msk.f32.vlgmr.msra.gmra.mrb[16].mxu1 %vm3960_vm3, %v8000_v27 }
 0x53e   : > { %22972 = vmatpush3.bf16.msra.mxu1 %v26630_v34  ;;  %v26781_v31 = vpop.f32.mrb[60].mxu0  ;;  %21666 = vmatprep.mubr.msk.f32.mxu1 %vm3960_vm3, %v26778_v16 }
 0x53f   : > { %29839 = vst [vmem:[#allocation96_spill] sm:$0xff] %v26781_v31  ;;  %v26785_v32 = vpop.f32.mrb[61].mxu0  ;;  %22974 = vmatprep.subr.bf16.mxu1 %v26775_v63  ;;  %v26904_v31 = vld [vmem:[#allocation3 + $0x51] sm:$0xff] }
 0x540   : > { %29840 = vst [vmem:[#allocation97_spill] sm:$0xff] %v26785_v32  ;;  %v29864_v32 = vld [vmem:[#allocation42_spill] sm:$0xff] }
 0x541   : > { %21667 = vmatmul.mubr.msk.f32.gmra.mrb[18].mxu1 %vm3960_vm3, %v26026_v54 }
 0x542   : > { %v26792_v29 = vpop.f32.mrb[62].mxu0  ;;  %21669 = vmatprep.mubr.msk.f32.mxu1 %vm3960_vm3, %v26790_v35 }
 0x543   : > { %29841 = vst [vmem:[#allocation98_spill] sm:$0xff] %v26792_v29  ;;  %v26796_v34 = vpop.f32.mrb[63].mxu0 }
 0x544   : > { %29842 = vst [vmem:[#allocation99_spill] sm:$0xff] %v26796_v34  ;;  %v29862_v34 = vld [vmem:[#allocation40_spill] sm:$0xff] }
 0x545   : > { %21670 = vmatmul.mubr.msk.f32.gmra.mrb[20].mxu1 %vm3960_vm3, %v26034_v60 }
 0x546   : > { %21672 = vmatprep.mubr.msk.f32.mxu1 %vm3960_vm3, %v26038_v15  ;;  %v26802_v27 = vpop.f32.mrb[32].mxu0 }
 0x547   : > { %29843 = vst [vmem:[#allocation100_spill] sm:$0xff] %v26802_v27  ;;  %v26804_v7 = vpop.f32.mrb[33].mxu0  ;;  %v26996_v27 = vld [vmem:[#allocation3 + $0x169] sm:$0xff] }
 0x548   : > { %29844 = vst [vmem:[#allocation101_spill] sm:$0xff] %v26804_v7  ;;  %v26992_v7 = vld [vmem:[#allocation3 + $0x159] sm:$0xff]  ;;  %29873 = vst [vmem:[#allocation116_spill] sm:$0xff] %v26996_v27 }
 0x549   : > { %21673 = vmatmul.mubr.msk.f32.gmra.mrb[22].mxu1 %vm3960_vm3, %v26045_v2 }
 0x54a   : > { %21675 = vmatprep.mubr.msk.f32.mxu1 %vm3960_vm3, %v26049_v57  ;;  %v26810_v54 = vpop.f32.mrb[34].mxu0 }
 0x54b   : > { %29845 = vst [vmem:[#allocation102_spill] sm:$0xff] %v26810_v54  ;;  %v26812_v29 = vpop.f32.mrb[35].mxu0  ;;  %v26988_v54 = vld [vmem:[#allocation3 + $0x151] sm:$0xff] }
 0x54c   : > { %29846 = vst [vmem:[#allocation103_spill] sm:$0xff] %v26812_v29  ;;  %v26984_v29 = vld [vmem:[#allocation3 + $0x141] sm:$0xff]  ;;  %29871 = vst [vmem:[#allocation42_spill] sm:$0xff] %v26988_v54 }
 0x54d   : > { %21676 = vmatmul.mubr.msk.f32.gmra.mrb[24].mxu1 %vm3960_vm3, %v26057_v26 }
 0x54e   : > { %v26816_v60 = vpop.f32.mrb[36].mxu0  ;;  %21678 = vmatprep.mubr.msk.f32.mxu1 %vm3960_vm3, %v26061_v24 }
 0x54f   : > { %29847 = vst [vmem:[#allocation104_spill] sm:$0xff] %v26816_v60  ;;  %v26820_v15 = vpop.f32.mrb[37].mxu0  ;;  %v26980_v60 = vld [vmem:[#allocation3 + $0x139] sm:$0xff] }
 0x550   : > { %29848 = vst [vmem:[#allocation105_spill] sm:$0xff] %v26820_v15  ;;  %v26976_v15 = vld [vmem:[#allocation3 + $0x129] sm:$0xff]  ;;  %29869 = vst [vmem:[#allocation40_spill] sm:$0xff] %v26980_v60 }
 0x551   : > { %21679 = vmatmul.mubr.msk.f32.gmra.mrb[26].mxu1 %vm3960_vm3, %v26069_v33 }
 0x552   : > { %v26824_v2 = vpop.f32.mrb[38].mxu0  ;;  %21681 = vmatprep.mubr.msk.f32.mxu1 %vm3960_vm3, %v26073_v17 }
 0x553   : > { %29849 = vst [vmem:[#allocation106_spill] sm:$0xff] %v26824_v2  ;;  %v26828_v57 = vpop.f32.mrb[39].mxu0  ;;  %v26972_v2 = vld [vmem:[#allocation3 + $0x121] sm:$0xff] }
 0x554   : > { %29850 = vst [vmem:[#allocation107_spill] sm:$0xff] %v26828_v57  ;;  %v26968_v57 = vld [vmem:[#allocation3 + $0x111] sm:$0xff] }
 0x555   : > { %21682 = vmatmul.mubr.msk.f32.gmra.mrb[28].mxu1 %vm3960_vm3, %v26081_v43 }
 0x556   : > { %v26832_v26 = vpop.f32.mrb[40].mxu0  ;;  %21684 = vmatprep.mubr.msk.f32.mxu1 %vm3960_vm3, %v26085_v51 }
 0x557   : > { %29851 = vst [vmem:[#allocation108_spill] sm:$0xff] %v26832_v26  ;;  %v26836_v24 = vpop.f32.mrb[41].mxu0  ;;  %v26964_v26 = vld [vmem:[#allocation3 + $0x109] sm:$0xff] }
 0x558   : > { %29852 = vst [vmem:[#allocation109_spill] sm:$0xff] %v26836_v24  ;;  %v26960_v24 = vld [vmem:[#allocation3 + $0xf9] sm:$0xff] }
 0x559   : > { %21685 = vmatmul.mubr.msk.f32.gmra.mrb[30].mxu1 %vm3960_vm3, %v26093_v25 }
 0x55a   : > { %v26840_v33 = vpop.f32.mrb[42].mxu0  ;;  %21687 = vmatprep.mubr.msk.f32.mxu1 %vm3960_vm3, %v26097_v49 }
 0x55b   : > { %29853 = vst [vmem:[#allocation110_spill] sm:$0xff] %v26840_v33  ;;  %v26844_v17 = vpop.f32.mrb[43].mxu0  ;;  %v26956_v33 = vld [vmem:[#allocation3 + $0xf1] sm:$0xff] }
 0x55c   : > { %29854 = vst [vmem:[#allocation111_spill] sm:$0xff] %v26844_v17  ;;  %v26952_v17 = vld [vmem:[#allocation3 + $0xe1] sm:$0xff] }
 0x55d   : > { %21688 = vmatmul.mubr.msk.f32.gmra.mrb[0].mxu1 %vm3960_vm3, %v26105_v22  ;;  %v29859_v22 = vld [vmem:[#allocation37_spill] sm:$0xff] }
 0x55e   : > { %v26848_v43 = vpop.f32.mrb[44].mxu0  ;;  %21690 = vmatprep.mubr.msk.f32.mxu1 %vm3960_vm3, %v26109_v44  ;;  %v29860_v44 = vld [vmem:[#allocation38_spill] sm:$0xff]  ;;  %29866 = vst [vmem:[#allocation37_spill] sm:$0xff] %v26968_v57 }
 0x55f   : > { %29855 = vst [vmem:[#allocation112_spill] sm:$0xff] %v26848_v43  ;;  %v26852_v51 = vpop.f32.mrb[45].mxu0  ;;  %v26948_v43 = vld [vmem:[#allocation3 + $0xd9] sm:$0xff]  ;;  %29867 = vst [vmem:[#allocation38_spill] sm:$0xff] %v26972_v2 }
 0x560   : > { %29856 = vst [vmem:[#allocation113_spill] sm:$0xff] %v26852_v51  ;;  %v26944_v51 = vld [vmem:[#allocation3 + $0xc9] sm:$0xff] }
 0x561   : > { %21691 = vmatmul.mubr.msk.f32.gmra.mrb[2].mxu1 %vm3960_vm3, %v26117_v23  ;;  %v29861_v23 = vld [vmem:[#allocation39_spill] sm:$0xff] }
 0x562   : > { %v26856_v25 = vpop.f32.mrb[46].mxu0  ;;  %21693 = vmatprep.mubr.msk.f32.mxu1 %vm3960_vm3, %v26121_v36  ;;  %v29863_v36 = vld [vmem:[#allocation41_spill] sm:$0xff]  ;;  %29868 = vst [vmem:[#allocation39_spill] sm:$0xff] %v26976_v15 }
 0x563   : > { %29857 = vst [vmem:[#allocation114_spill] sm:$0xff] %v26856_v25  ;;  %v26860_v49 = vpop.f32.mrb[47].mxu0  ;;  %v26940_v25 = vld [vmem:[#allocation3 + $0xc1] sm:$0xff]  ;;  %29870 = vst [vmem:[#allocation41_spill] sm:$0xff] %v26984_v29 }
 0x564   : > { %29858 = vst [vmem:[#allocation115_spill] sm:$0xff] %v26860_v49  ;;  %v26936_v49 = vld [vmem:[#allocation3 + $0xb1] sm:$0xff] }
 0x565   : > { %21694 = vmatmul.mubr.msk.f32.gmra.mrb[4].mxu1 %vm3960_vm3, %v26129_v20  ;;  %v29865_v20 = vld [vmem:[#allocation43_spill] sm:$0xff] }
 0x566   : > { %21696 = vmatprep.mubr.msk.f32.mxu1 %vm3960_vm3, %v26133_v12  ;;  %v26880_v12 = vld [vmem:[#allocation3 + $0x198] sm:$0xff]  ;;  %29872 = vst [vmem:[#allocation43_spill] sm:$0xff] %v26992_v7 }
 0x569   : > { %21697 = vmatmul.mubr.msk.f32.gmra.mrb[6].mxu1 %vm3960_vm3, %v29859_v22  ;;  %v26884_v22 = vld [vmem:[#allocation3 + $0x1a0] sm:$0xff] }
 0x56a   : > { %21699 = vmatprep.mubr.msk.f32.mxu1 %vm3960_vm3, %v29860_v44  ;;  %v18503_v44 = vld [vmem:[%s29404_s3 + $0xd8] sm:$0xff] }
 0x56d   : > { %21700 = vmatmul.mubr.msk.f32.gmra.mrb[8].mxu1 %vm3960_vm3, %v29861_v23 }
 0x56e   : > { %21702 = vmatprep.mubr.msk.f32.mxu1 %vm3960_vm3, %v29862_v34  ;;  %v18502_v34 = vld [vmem:[%s29404_s3 + $0xd0] sm:$0xff] }
 0x56f   : > { %v26895_v23 = vpack.c.bf16 %v18503_v44, %v18502_v34  ;;  %v26912_v34 = vld [vmem:[#allocation3 + $0x69] sm:$0xff]  ;;  %v26920_v44 = vld [vmem:[#allocation3 + $0x81] sm:$0xff] }
 0x571   : > { %21703 = vmatmul.mubr.msk.f32.gmra.mrb[10].mxu1 %vm3960_vm3, %v29863_v36  ;;  %v8388_v36 = vld [vmem:[#allocation3 + $0x39] sm:$0xff] }
 0x572   : > { %21705 = vmatprep.mubr.msk.f32.mxu1 %vm3960_vm3, %v29864_v32  ;;  %v8387_v32 = vld [vmem:[#allocation3 + $0x31] sm:$0xff] }
 0x575   : > { %21706 = vmatmul.mubr.msk.f32.gmra.mrb[12].mxu1 %vm3960_vm3, %v29865_v20  ;;  %v26898_v20 = vld [vmem:[#allocation3 + $0x49] sm:$0xff] }
 0x576   : > { %21708 = vmatprep.mubr.msk.f32.mxu1 %vm3960_vm3, %v26880_v12 }
 0x579   : > { %21709 = vmatmul.mubr.msk.f32.gmra.mrb[14].mxu1 %vm3960_vm3, %v26884_v22 }
 0x57a   : > { %21715 = vmatprep.mubr.msk.f32.mxu1 %vm3960_vm3, %v8387_v32  ;;  %v26908_v32 = vld [vmem:[#allocation3 + $0x61] sm:$0xff] }
 0x57d   : > { %21716 = vmatmul.mubr.msk.f32.vlgmr.msra.gmra.mrb[16].mxu1 %vm3960_vm3, %v8388_v36  ;;  %v26924_v36 = vld [vmem:[#allocation3 + $0x91] sm:$0xff] }
 0x57e   : > { %22976 = vmatpush3.bf16.msra.mxu1 %v26775_v63  ;;  %21718 = vmatprep.mubr.msk.f32.mxu1 %vm3960_vm3, %v26898_v20  ;;  %v26916_v63 = vld [vmem:[#allocation3 + $0x79] sm:$0xff] }
 0x57f   : > { %22978 = vmatprep.subr.bf16.mxu1 %v26895_v23 }
 0x581   : > { %21719 = vmatmul.mubr.msk.f32.gmra.mrb[18].mxu1 %vm3960_vm3, %v26904_v31 }
 0x582   : > { %21721 = vmatprep.mubr.msk.f32.mxu1 %vm3960_vm3, %v26908_v32 }
 0x585   : > { %21722 = vmatmul.mubr.msk.f32.gmra.mrb[20].mxu1 %vm3960_vm3, %v26912_v34 }
 0x586   : > { %21724 = vmatprep.mubr.msk.f32.mxu1 %vm3960_vm3, %v26916_v63 }
 0x589   : > { %21725 = vmatmul.mubr.msk.f32.gmra.mrb[22].mxu1 %vm3960_vm3, %v26920_v44 }
 0x58a   : > { %21727 = vmatprep.mubr.msk.f32.mxu1 %vm3960_vm3, %v26924_v36 }
 0x58d   : > { %21728 = vmatmul.mubr.msk.f32.gmra.mrb[24].mxu1 %vm3960_vm3, %v26928_v53 }
 0x58e   : > { %21730 = vmatprep.mubr.msk.f32.mxu1 %vm3960_vm3, %v26932_v52 }
 0x591   : > { %21731 = vmatmul.mubr.msk.f32.gmra.mrb[26].mxu1 %vm3960_vm3, %v26936_v49 }
 0x592   : > { %21733 = vmatprep.mubr.msk.f32.mxu1 %vm3960_vm3, %v26940_v25 }
 0x595   : > { %21734 = vmatmul.mubr.msk.f32.gmra.mrb[28].mxu1 %vm3960_vm3, %v26944_v51 }
 0x596   : > { %21736 = vmatprep.mubr.msk.f32.mxu1 %vm3960_vm3, %v26948_v43 }
 0x599   : > { %21737 = vmatmul.mubr.msk.f32.gmra.mrb[30].mxu1 %vm3960_vm3, %v26952_v17 }
 0x59a   : > { %21739 = vmatprep.mubr.msk.f32.mxu1 %vm3960_vm3, %v26956_v33 }
 0x59d   : > { %21740 = vmatmul.mubr.msk.f32.gmra.mrb[0].mxu1 %vm3960_vm3, %v26960_v24 }
 0x59e   : > { %21742 = vmatprep.mubr.msk.f32.mxu1 %vm3960_vm3, %v26964_v26 }
 0x5a1   : > { %21743 = vmatmul.mubr.msk.f32.gmra.mrb[2].mxu1 %vm3960_vm3, %v26968_v57  ;;  %v27029_v57 = vld [vmem:[#allocation3 + $0x52] sm:$0xff] }
 0x5a2   : > { %21745 = vmatprep.mubr.msk.f32.mxu1 %vm3960_vm3, %v26972_v2  ;;  %v8776_v2 = vld [vmem:[#allocation3 + $0x3a] sm:$0xff] }
 0x5a5   : > { %21746 = vmatmul.mubr.msk.f32.gmra.mrb[4].mxu1 %vm3960_vm3, %v26976_v15  ;;  %v29876_v15 = vld [vmem:[#allocation45_spill] sm:$0xff] }
 0x5a6   : > { %21748 = vmatprep.mubr.msk.f32.mxu1 %vm3960_vm3, %v26980_v60  ;;  %v27000_v60 = vld [vmem:[#allocation3 + $0x171] sm:$0xff] }
 0x5a7   : > { %29874 = vst [vmem:[#allocation117_spill] sm:$0xff] %v27000_v60 }
 0x5a9   : > { %21749 = vmatmul.mubr.msk.f32.gmra.mrb[6].mxu1 %vm3960_vm3, %v26984_v29  ;;  %v29875_v29 = vld [vmem:[#allocation44_spill] sm:$0xff] }
 0x5aa   : > { %21751 = vmatprep.mubr.msk.f32.mxu1 %vm3960_vm3, %v26988_v54  ;;  %v27008_v54 = vld [vmem:[#allocation3 + $0x199] sm:$0xff] }
 0x5ab   : > { %29877 = vst [vmem:[#allocation44_spill] sm:$0xff] %v27008_v54 }
 0x5ad   : > { %21752 = vmatmul.mubr.msk.f32.gmra.mrb[8].mxu1 %vm3960_vm3, %v26992_v7  ;;  %v27012_v7 = vld [vmem:[#allocation3 + $0x1a1] sm:$0xff] }
 0x5ae   : > { %21754 = vmatprep.mubr.msk.f32.mxu1 %vm3960_vm3, %v26996_v27  ;;  %29878 = vst [vmem:[#allocation45_spill] sm:$0xff] %v27012_v7  ;;  %v18536_v27 = vld [vmem:[%s29404_s3 + $0xe0] sm:$0xff] }
 0x5b1   : > { %21755 = vmatmul.mubr.msk.f32.gmra.mrb[10].mxu1 %vm3960_vm3, %v27000_v60  ;;  %v18537_v60 = vld [vmem:[%s29404_s3 + $0xe8] sm:$0xff] }
 0x5b2   : > { %21757 = vmatprep.mubr.msk.f32.mxu1 %vm3960_vm3, %v29875_v29  ;;  %v8775_v29 = vld [vmem:[#allocation3 + $0x32] sm:$0xff] }
 0x5b5   : > { %21758 = vmatmul.mubr.msk.f32.gmra.mrb[12].mxu1 %vm3960_vm3, %v29876_v15  ;;  %v22981_v15 = vpack.c.bf16 %v18537_v60, %v18536_v27  ;;  %v27037_v27 = vld [vmem:[#allocation3 + $0x6a] sm:$0xff]  ;;  %v27041_v60 = vld [vmem:[#allocation3 + $0x7a] sm:$0xff] }
 0x5b6   : > { %21760 = vmatprep.mubr.msk.f32.mxu1 %vm3960_vm3, %v27008_v54  ;;  %v27024_v54 = vld [vmem:[#allocation3 + $0x4a] sm:$0xff]  ;;  %29879 = vst [vmem:[#allocation118_spill] sm:$0xff] %v27037_v27  ;;  %29880 = vst [vmem:[#allocation119_spill] sm:$0xff] %v27041_v60 }
 0x5b9   : > { %21761 = vmatmul.mubr.msk.f32.gmra.mrb[14].mxu1 %vm3960_vm3, %v27012_v7  ;;  %v27033_v7 = vld [vmem:[#allocation3 + $0x62] sm:$0xff] }
 0x5ba   : > { %21767 = vmatprep.mubr.msk.f32.mxu1 %vm3960_vm3, %v8775_v29  ;;  %v27053_v29 = vld [vmem:[#allocation3 + $0x9a] sm:$0xff] }
 0x5bd   : > { %21768 = vmatmul.mubr.msk.f32.vlgmr.msra.gmra.mrb[16].mxu1 %vm3960_vm3, %v8776_v2  ;;  %v27045_v2 = vld [vmem:[#allocation3 + $0x82] sm:$0xff] }
 0x5be   : > { %22980 = vmatpush3.bf16.msra.mxu1 %v26895_v23  ;;  %21770 = vmatprep.mubr.msk.f32.mxu1 %vm3960_vm3, %v27024_v54  ;;  %29881 = vst [vmem:[#allocation120_spill] sm:$0xff] %v27045_v2  ;;  %v27049_v23 = vld [vmem:[#allocation3 + $0x92] sm:$0xff] }
 0x5bf   : > { %22982 = vmatprep.subr.bf16.mxu1 %v22981_v15 }
 0x5c1   : > { %21771 = vmatmul.mubr.msk.f32.gmra.mrb[18].mxu1 %vm3960_vm3, %v27029_v57 }
 0x5c2   : > { %21773 = vmatprep.mubr.msk.f32.mxu1 %vm3960_vm3, %v27033_v7 }
 0x5c5   : > { %21774 = vmatmul.mubr.msk.f32.gmra.mrb[20].mxu1 %vm3960_vm3, %v27037_v27  ;;  %v27057_v27 = vld [vmem:[#allocation3 + $0xaa] sm:$0xff] }
 0x5c6   : > { %21776 = vmatprep.mubr.msk.f32.mxu1 %vm3960_vm3, %v27041_v60  ;;  %v27061_v60 = vld [vmem:[#allocation3 + $0xb2] sm:$0xff] }
 0x5c9   : > { %21777 = vmatmul.mubr.msk.f32.gmra.mrb[22].mxu1 %vm3960_vm3, %v27045_v2  ;;  %v27065_v2 = vld [vmem:[#allocation3 + $0xc2] sm:$0xff] }
 0x5ca   : > { %21779 = vmatprep.mubr.msk.f32.mxu1 %vm3960_vm3, %v27049_v23 }
 0x5cd   : > { %21780 = vmatmul.mubr.msk.f32.gmra.mrb[24].mxu1 %vm3960_vm3, %v27053_v29 }
 0x5ce   : > { %21782 = vmatprep.mubr.msk.f32.mxu1 %vm3960_vm3, %v27057_v27 }
 0x5d1   : > { %21783 = vmatmul.mubr.msk.f32.gmra.mrb[26].mxu1 %vm3960_vm3, %v27061_v60 }
 0x5d2   : > { %21785 = vmatprep.mubr.msk.f32.mxu1 %vm3960_vm3, %v27065_v2 }
 0x5d5   : > { %21786 = vmatmul.mubr.msk.f32.gmra.mrb[28].mxu1 %vm3960_vm3, %v26282_v10  ;;  %v27103_v10 = vld [vmem:[#allocation3 + $0x19a] sm:$0xff] }
 0x5d6   : > { %21788 = vmatprep.mubr.msk.f32.mxu1 %vm3960_vm3, %v26286_v13  ;;  %v27107_v13 = vld [vmem:[#allocation3 + $0x1a2] sm:$0xff] }
 0x5d9   : > { %21789 = vmatmul.mubr.msk.f32.gmra.mrb[30].mxu1 %vm3960_vm3, %v26294_v50  ;;  %v18570_v50 = vld [vmem:[%s29404_s3 + $0xf0] sm:$0xff] }
 0x5da   : > { %21791 = vmatprep.mubr.msk.f32.mxu1 %vm3960_vm3, %v26298_v55  ;;  %v18571_v55 = vld [vmem:[%s29404_s3 + $0xf8] sm:$0xff] }
 0x5dd   : > { %21792 = vmatmul.mubr.msk.f32.gmra.mrb[0].mxu1 %vm3960_vm3, %v26306_v61  ;;  %v22985_v61 = vpack.c.bf16 %v18571_v55, %v18570_v50  ;;  %v29905_v50 = vld [vmem:[#allocation69_spill] sm:$0xff]  ;;  %v29906_v55 = vld [vmem:[#allocation70_spill] sm:$0xff] }
 0x5de   : > { %21794 = vmatprep.mubr.msk.f32.mxu1 %vm3960_vm3, %v26310_v1  ;;  %v29882_v1 = vld [vmem:[#allocation46_spill] sm:$0xff] }
 0x5e1   : > { %21795 = vmatmul.mubr.msk.f32.gmra.mrb[2].mxu1 %vm3960_vm3, %v26318_v40  ;;  %v29883_v40 = vld [vmem:[#allocation47_spill] sm:$0xff] }
 0x5e2   : > { %21797 = vmatprep.mubr.msk.f32.mxu1 %vm3960_vm3, %v26322_v47  ;;  %v29884_v47 = vld [vmem:[#allocation48_spill] sm:$0xff] }
 0x5e5   : > { %21798 = vmatmul.mubr.msk.f32.gmra.mrb[4].mxu1 %vm3960_vm3, %v26330_v45  ;;  %v29885_v45 = vld [vmem:[#allocation49_spill] sm:$0xff] }
 0x5e6   : > { %21800 = vmatprep.mubr.msk.f32.mxu1 %vm3960_vm3, %v26334_v46  ;;  %v29886_v46 = vld [vmem:[#allocation50_spill] sm:$0xff] }
 0x5e9   : > { %21801 = vmatmul.mubr.msk.f32.gmra.mrb[6].mxu1 %vm3960_vm3, %v26342_v56  ;;  %v29887_v56 = vld [vmem:[#allocation51_spill] sm:$0xff] }
 0x5ea   : > { %21803 = vmatprep.mubr.msk.f32.mxu1 %vm3960_vm3, %v26346_v30  ;;  %v29888_v30 = vld [vmem:[#allocation52_spill] sm:$0xff] }
 0x5ed   : > { %21804 = vmatmul.mubr.msk.f32.gmra.mrb[8].mxu1 %vm3960_vm3, %v26354_v41  ;;  %v29889_v41 = vld [vmem:[#allocation53_spill] sm:$0xff] }
 0x5ee   : > { %21806 = vmatprep.mubr.msk.f32.mxu1 %vm3960_vm3, %v26358_v5  ;;  %v29890_v5 = vld [vmem:[#allocation54_spill] sm:$0xff] }
 0x5f1   : > { %21807 = vmatmul.mubr.msk.f32.gmra.mrb[10].mxu1 %vm3960_vm3, %v26366_v48  ;;  %v29891_v48 = vld [vmem:[#allocation55_spill] sm:$0xff] }
 0x5f2   : > { %21809 = vmatprep.mubr.msk.f32.mxu1 %vm3960_vm3, %v26509_v14  ;;  %v29899_v14 = vld [vmem:[#allocation63_spill] sm:$0xff] }
 0x5f5   : > { %21810 = vmatmul.mubr.msk.f32.gmra.mrb[12].mxu1 %vm3960_vm3, %v26513_v0  ;;  %v29900_v0 = vld [vmem:[#allocation64_spill] sm:$0xff] }
 0x5f6   : > { %21812 = vmatprep.mubr.msk.f32.mxu1 %vm3960_vm3, %v27103_v10 }
 0x5f9   : > { %21813 = vmatmul.mubr.msk.f32.gmra.mrb[14].mxu1 %vm3960_vm3, %v27107_v13 }
 0x5fa   : > { %21819 = vmatprep.mubr.msk.f32.mxu1 %vm3960_vm3, %v26390_v8  ;;  %v29892_v8 = vld [vmem:[#allocation56_spill] sm:$0xff] }
 0x5fd   : > { %21820 = vmatmul.mubr.msk.f32.vlgmr.msra.gmra.mrb[16].mxu1 %vm3960_vm3, %v26404_v6  ;;  %v29894_v6 = vld [vmem:[#allocation58_spill] sm:$0xff] }
 0x5fe   : > { %22984 = vmatpush3.bf16.msra.mxu1 %v22981_v15  ;;  %21822 = vmatprep.mubr.msk.f32.mxu1 %vm3960_vm3, %v26410_v18  ;;  %v29895_v18 = vld [vmem:[#allocation59_spill] sm:$0xff] }
 0x5ff   : > { %22986 = vmatprep.subr.bf16.mxu1 %v22985_v61  ;;  %v29903_v15 = vld [vmem:[#allocation67_spill] sm:$0xff] }
 0x601   : > { %21823 = vmatmul.mubr.msk.f32.gmra.mrb[18].mxu1 %vm3960_vm3, %v26419_v37  ;;  %v29893_v37 = vld [vmem:[#allocation57_spill] sm:$0xff] }
 0x602   : > { %21825 = vmatprep.mubr.msk.f32.mxu1 %vm3960_vm3, %v26423_v62  ;;  %v29896_v62 = vld [vmem:[#allocation60_spill] sm:$0xff] }
 0x605   : > { %21826 = vmatmul.mubr.msk.f32.gmra.mrb[20].mxu1 %vm3960_vm3, %v26431_v11  ;;  %v29897_v11 = vld [vmem:[#allocation61_spill] sm:$0xff] }
 0x606   : > { %21828 = vmatprep.mubr.msk.f32.mxu1 %vm3960_vm3, %v26435_v9  ;;  %v27177_v9 = vld [vmem:[#allocation3 + $0x19b] sm:$0xff] }
 0x609   : > { %21829 = vmatmul.mubr.msk.f32.gmra.mrb[22].mxu1 %vm3960_vm3, %v26443_v4  ;;  %v27181_v4 = vld [vmem:[#allocation3 + $0x1a3] sm:$0xff] }
 0x60a   : > { %21831 = vmatprep.mubr.msk.f32.mxu1 %vm3960_vm3, %v26447_v21  ;;  %v18604_v21 = vld [vmem:[%s29404_s3 + $0x100] sm:$0xff] }
 0x60d   : > { %21832 = vmatmul.mubr.msk.f32.gmra.mrb[24].mxu1 %vm3960_vm3, %v26455_v42  ;;  %v18605_v42 = vld [vmem:[%s29404_s3 + $0x108] sm:$0xff] }
 0x60e   : > { %21834 = vmatprep.mubr.msk.f32.mxu1 %vm3960_vm3, %v26459_v19  ;;  %v22989_v19 = vpack.c.bf16 %v18605_v42, %v18604_v21  ;;  %v27265_v21 = vld [vmem:[#allocation3 + $0x1a4] sm:$0xff] }
 0x60f   : > { %v18638_v42 = vld [vmem:[%s29404_s3 + $0x110] sm:$0xff] }
 0x611   : > { %21835 = vmatmul.mubr.msk.f32.gmra.mrb[26].mxu1 %vm3960_vm3, %v26467_v59  ;;  %v29898_v59 = vld [vmem:[#allocation62_spill] sm:$0xff] }
 0x612   : > { %21837 = vmatprep.mubr.msk.f32.mxu1 %vm3960_vm3, %v26551_v39  ;;  %v29901_v39 = vld [vmem:[#allocation65_spill] sm:$0xff] }
 0x615   : > { %21838 = vmatmul.mubr.msk.f32.gmra.mrb[28].mxu1 %vm3960_vm3, %v26555_v28  ;;  %v29902_v28 = vld [vmem:[#allocation66_spill] sm:$0xff] }
 0x616   : > { %21840 = vmatprep.mubr.msk.f32.mxu1 %vm3960_vm3, %v29882_v1  ;;  %v29908_v1 = vld [vmem:[#allocation72_spill] sm:$0xff] }
 0x619   : > { %21841 = vmatmul.mubr.msk.f32.gmra.mrb[30].mxu1 %vm3960_vm3, %v29883_v40  ;;  %v29909_v40 = vld [vmem:[#allocation73_spill] sm:$0xff] }
 0x61a   : > { %21843 = vmatprep.mubr.msk.f32.mxu1 %vm3960_vm3, %v29884_v47  ;;  %v29910_v47 = vld [vmem:[#allocation74_spill] sm:$0xff] }
 0x61d   : > { %21844 = vmatmul.mubr.msk.f32.gmra.mrb[0].mxu1 %vm3960_vm3, %v29885_v45  ;;  %v29911_v45 = vld [vmem:[#allocation75_spill] sm:$0xff] }
 0x61e   : > { %21846 = vmatprep.mubr.msk.f32.mxu1 %vm3960_vm3, %v29886_v46  ;;  %v29912_v46 = vld [vmem:[#allocation76_spill] sm:$0xff] }
 0x621   : > { %21847 = vmatmul.mubr.msk.f32.gmra.mrb[2].mxu1 %vm3960_vm3, %v29887_v56  ;;  %v29913_v56 = vld [vmem:[#allocation77_spill] sm:$0xff] }
 0x622   : > { %21849 = vmatprep.mubr.msk.f32.mxu1 %vm3960_vm3, %v29888_v30  ;;  %v29914_v30 = vld [vmem:[#allocation78_spill] sm:$0xff] }
 0x625   : > { %21850 = vmatmul.mubr.msk.f32.gmra.mrb[4].mxu1 %vm3960_vm3, %v29889_v41  ;;  %v29915_v41 = vld [vmem:[#allocation79_spill] sm:$0xff] }
 0x626   : > { %21852 = vmatprep.mubr.msk.f32.mxu1 %vm3960_vm3, %v29890_v5  ;;  %v29916_v5 = vld [vmem:[#allocation80_spill] sm:$0xff] }
 0x629   : > { %21853 = vmatmul.mubr.msk.f32.gmra.mrb[6].mxu1 %vm3960_vm3, %v29891_v48  ;;  %v29917_v48 = vld [vmem:[#allocation83_spill] sm:$0xff] }
 0x62a   : > { %21855 = vmatprep.mubr.msk.f32.mxu1 %vm3960_vm3, %v29892_v8  ;;  %v27237_v8 = vld [vmem:[#allocation3 + $0x144] sm:$0xff] }
 0x62d   : > { %21856 = vmatmul.mubr.msk.f32.gmra.mrb[8].mxu1 %vm3960_vm3, %v29893_v37  ;;  %v27241_v37 = vld [vmem:[#allocation3 + $0x154] sm:$0xff] }
 0x62e   : > { %21858 = vmatprep.mubr.msk.f32.mxu1 %vm3960_vm3, %v29894_v6  ;;  %v27245_v6 = vld [vmem:[#allocation3 + $0x15c] sm:$0xff] }
 0x631   : > { %21859 = vmatmul.mubr.msk.f32.gmra.mrb[10].mxu1 %vm3960_vm3, %v29895_v18  ;;  %v29918_v18 = vld [vmem:[#allocation90_spill] sm:$0xff] }
 0x632   : > { %21861 = vmatprep.mubr.msk.f32.mxu1 %vm3960_vm3, %v29896_v62  ;;  %v29919_v62 = vld [vmem:[#allocation93_spill] sm:$0xff] }
 0x635   : > { %21862 = vmatmul.mubr.msk.f32.gmra.mrb[12].mxu1 %vm3960_vm3, %v29897_v11  ;;  %v27261_v11 = vld [vmem:[#allocation3 + $0x19c] sm:$0xff] }
 0x636   : > { %21864 = vmatprep.mubr.msk.f32.mxu1 %vm3960_vm3, %v27177_v9 }
 0x639   : > { %21865 = vmatmul.mubr.msk.f32.gmra.mrb[14].mxu1 %vm3960_vm3, %v27181_v4 }
 0x63a   : > { %21871 = vmatprep.mubr.msk.f32.mxu1 %vm3960_vm3, %v26633_v3  ;;  %v29904_v3 = vld [vmem:[#allocation68_spill] sm:$0xff] }
 0x63d   : > { %21872 = vmatmul.mubr.msk.f32.vlgmr.msra.gmra.mrb[16].mxu1 %vm3960_vm3, %v29898_v59  ;;  %v18639_v59 = vld [vmem:[%s29404_s3 + $0x118] sm:$0xff] }
 0x63e   : > { %22988 = vmatpush3.bf16.msra.mxu1 %v22985_v61  ;;  %21874 = vmatprep.mubr.msk.f32.mxu1 %vm3960_vm3, %v29899_v14  ;;  %v29907_v61 = vld [vmem:[#allocation71_spill] sm:$0xff]  ;;  %v27277_v14 = vpack.c.bf16 %v18639_v59, %v18638_v42  ;;  %v27371_v42 = vld [vmem:[#allocation3 + $0x170] sm:$0xff] }
 0x63f   : > { %22990 = vmatprep.subr.bf16.mxu1 %v22989_v19  ;;  %29921 = vst [vmem:[#allocation47_spill] sm:$0xff] %v27371_v42  ;;  %v27375_v59 = vld [vmem:[#allocation3 + $0x180] sm:$0xff] }
 0x640   : > { %29922 = vst [vmem:[#allocation48_spill] sm:$0xff] %v27375_v59 }
 0x641   : > { %21875 = vmatmul.mubr.msk.f32.gmra.mrb[18].mxu1 %vm3960_vm3, %v29900_v0  ;;  %v9941_v0 = vld [vmem:[#allocation3 + $0x50] sm:$0xff] }
 0x642   : > { %21877 = vmatprep.mubr.msk.f32.mxu1 %vm3960_vm3, %v29901_v39  ;;  %v27283_v39 = vld [vmem:[#allocation3 + $0x68] sm:$0xff] }
 0x645   : > { %21878 = vmatmul.mubr.msk.f32.gmra.mrb[20].mxu1 %vm3960_vm3, %v29902_v28  ;;  %v27287_v28 = vld [vmem:[#allocation3 + $0x78] sm:$0xff] }
 0x646   : > { %21880 = vmatprep.mubr.msk.f32.mxu1 %vm3960_vm3, %v29903_v15  ;;  %v27303_v15 = vld [vmem:[#allocation3 + $0xa8] sm:$0xff] }
 0x649   : > { %21881 = vmatmul.mubr.msk.f32.gmra.mrb[22].mxu1 %vm3960_vm3, %v29904_v3  ;;  %v27307_v3 = vld [vmem:[#allocation3 + $0xb0] sm:$0xff] }
 0x64a   : > { %21883 = vmatprep.mubr.msk.f32.mxu1 %vm3960_vm3, %v29905_v50  ;;  %v27311_v50 = vld [vmem:[#allocation3 + $0xc0] sm:$0xff] }
 0x64d   : > { %21884 = vmatmul.mubr.msk.f32.gmra.mrb[24].mxu1 %vm3960_vm3, %v29906_v55  ;;  %v27315_v55 = vld [vmem:[#allocation3 + $0xc8] sm:$0xff] }
 0x64e   : > { %21886 = vmatprep.mubr.msk.f32.mxu1 %vm3960_vm3, %v29907_v61  ;;  %v27319_v61 = vld [vmem:[#allocation3 + $0xd8] sm:$0xff] }
 0x651   : > { %21887 = vmatmul.mubr.msk.f32.gmra.mrb[26].mxu1 %vm3960_vm3, %v29908_v1  ;;  %v27323_v1 = vld [vmem:[#allocation3 + $0xe0] sm:$0xff] }
 0x652   : > { %21889 = vmatprep.mubr.msk.f32.mxu1 %vm3960_vm3, %v29909_v40  ;;  %v27327_v40 = vld [vmem:[#allocation3 + $0xf0] sm:$0xff] }
 0x655   : > { %21890 = vmatmul.mubr.msk.f32.gmra.mrb[28].mxu1 %vm3960_vm3, %v29910_v47  ;;  %v27331_v47 = vld [vmem:[#allocation3 + $0xf8] sm:$0xff] }
 0x656   : > { %21892 = vmatprep.mubr.msk.f32.mxu1 %vm3960_vm3, %v29911_v45  ;;  %v27335_v45 = vld [vmem:[#allocation3 + $0x108] sm:$0xff] }
 0x659   : > { %21893 = vmatmul.mubr.msk.f32.gmra.mrb[30].mxu1 %vm3960_vm3, %v29912_v46  ;;  %v27339_v46 = vld [vmem:[#allocation3 + $0x110] sm:$0xff] }
 0x65a   : > { %21895 = vmatprep.mubr.msk.f32.mxu1 %vm3960_vm3, %v29913_v56  ;;  %v27343_v56 = vld [vmem:[#allocation3 + $0x120] sm:$0xff] }
 0x65d   : > { %21896 = vmatmul.mubr.msk.f32.gmra.mrb[0].mxu1 %vm3960_vm3, %v29914_v30  ;;  %v27347_v30 = vld [vmem:[#allocation3 + $0x128] sm:$0xff] }
 0x65e   : > { %21898 = vmatprep.mubr.msk.f32.mxu1 %vm3960_vm3, %v29915_v41  ;;  %v27351_v41 = vld [vmem:[#allocation3 + $0x138] sm:$0xff] }
 0x661   : > { %21899 = vmatmul.mubr.msk.f32.gmra.mrb[2].mxu1 %vm3960_vm3, %v29916_v5  ;;  %v27355_v5 = vld [vmem:[#allocation3 + $0x140] sm:$0xff] }
 0x662   : > { %21901 = vmatprep.mubr.msk.f32.mxu1 %vm3960_vm3, %v26714_v58  ;;  %v27249_v58 = vld [vmem:[#allocation3 + $0x16c] sm:$0xff] }
 0x665   : > { %21902 = vmatmul.mubr.msk.f32.gmra.mrb[4].mxu1 %vm3960_vm3, %v29917_v48  ;;  %v27359_v48 = vld [vmem:[#allocation3 + $0x150] sm:$0xff] }
 0x666   : > { %21904 = vmatprep.mubr.msk.f32.mxu1 %vm3960_vm3, %v26726_v38  ;;  %v27253_v38 = vld [vmem:[#allocation3 + $0x174] sm:$0xff] }
 0x669   : > { %21905 = vmatmul.mubr.msk.f32.gmra.mrb[6].mxu1 %vm3960_vm3, %v27237_v8 }
 0x66a   : > { %21907 = vmatprep.mubr.msk.f32.mxu1 %vm3960_vm3, %v27241_v37 }
 0x66d   : > { %21908 = vmatmul.mubr.msk.f32.gmra.mrb[8].mxu1 %vm3960_vm3, %v27245_v6 }
 0x66e   : > { %21910 = vmatprep.mubr.msk.f32.mxu1 %vm3960_vm3, %v27249_v58 }
 0x671   : > { %21911 = vmatmul.mubr.msk.f32.gmra.mrb[10].mxu1 %vm3960_vm3, %v27253_v38 }
 0x672   : > { %21913 = vmatprep.mubr.msk.f32.mxu1 %vm3960_vm3, %v29918_v18  ;;  %v27363_v18 = vld [vmem:[#allocation3 + $0x158] sm:$0xff] }
 0x673   : > { %29920 = vst [vmem:[#allocation46_spill] sm:$0xff] %v27363_v18 }
 0x675   : > { %21914 = vmatmul.mubr.msk.f32.gmra.mrb[12].mxu1 %vm3960_vm3, %v29919_v62  ;;  %v27367_v62 = vld [vmem:[#allocation3 + $0x168] sm:$0xff] }
 0x676   : > { %21916 = vmatprep.mubr.msk.f32.mxu1 %vm3960_vm3, %v27261_v11 }
 0x679   : > { %21917 = vmatmul.mubr.msk.f32.gmra.mrb[14].mxu1 %vm3960_vm3, %v27265_v21 }
 0x67a   : > { %21923 = vmatprep.mubr.msk.f32.mxu1 %vm3960_vm3, %v26778_v16  ;;  %v27291_v16 = vld [vmem:[#allocation3 + $0x80] sm:$0xff] }
 0x67d   : > { %21924 = vmatmul.mubr.msk.f32.vlgmr.msra.gmra.mrb[16].mxu1 %vm3960_vm3, %v9941_v0  ;;  %v27379_v0 = vld [vmem:[#allocation3 + $0x188] sm:$0xff] }
 0x67e   : > { %22992 = vmatpush3.bf16.msra.mxu1 %v22989_v19  ;;  %21926 = vmatprep.mubr.msk.f32.mxu1 %vm3960_vm3, %v26790_v35  ;;  %v27295_v19 = vld [vmem:[#allocation3 + $0x90] sm:$0xff]  ;;  %v27299_v35 = vld [vmem:[#allocation3 + $0x98] sm:$0xff]  ;;  %29923 = vst [vmem:[#allocation49_spill] sm:$0xff] %v27379_v0 }
 0x67f   : > { %22994 = vmatprep.subr.bf16.mxu1 %v27277_v14 }
 0x681   : > { %21927 = vmatmul.mubr.msk.f32.gmra.mrb[18].mxu1 %vm3960_vm3, %v27283_v39 }
 0x682   : > { %21929 = vmatprep.mubr.msk.f32.mxu1 %vm3960_vm3, %v27287_v28 }
 0x685   : > { %21930 = vmatmul.mubr.msk.f32.gmra.mrb[20].mxu1 %vm3960_vm3, %v27291_v16 }
 0x686   : > { %21932 = vmatprep.mubr.msk.f32.mxu1 %vm3960_vm3, %v27295_v19 }
 0x689   : > { %21933 = vmatmul.mubr.msk.f32.gmra.mrb[22].mxu1 %vm3960_vm3, %v27299_v35 }
 0x68a   : > { %21935 = vmatprep.mubr.msk.f32.mxu1 %vm3960_vm3, %v27303_v15 }
 0x68d   : > { %21936 = vmatmul.mubr.msk.f32.gmra.mrb[24].mxu1 %vm3960_vm3, %v27307_v3 }
 0x68e   : > { %21938 = vmatprep.mubr.msk.f32.mxu1 %vm3960_vm3, %v27311_v50 }
 0x691   : > { %21939 = vmatmul.mubr.msk.f32.gmra.mrb[26].mxu1 %vm3960_vm3, %v27315_v55 }
 0x692   : > { %21941 = vmatprep.mubr.msk.f32.mxu1 %vm3960_vm3, %v27319_v61 }
 0x695   : > { %21942 = vmatmul.mubr.msk.f32.gmra.mrb[28].mxu1 %vm3960_vm3, %v27323_v1 }
 0x696   : > { %21944 = vmatprep.mubr.msk.f32.mxu1 %vm3960_vm3, %v27327_v40 }
 0x699   : > { %21945 = vmatmul.mubr.msk.f32.gmra.mrb[30].mxu1 %vm3960_vm3, %v27331_v47 }
 0x69a   : > { %21947 = vmatprep.mubr.msk.f32.mxu1 %vm3960_vm3, %v27335_v45 }
 0x69d   : > { %21948 = vmatmul.mubr.msk.f32.gmra.mrb[0].mxu1 %vm3960_vm3, %v27339_v46 }
 0x69e   : > { %21950 = vmatprep.mubr.msk.f32.mxu1 %vm3960_vm3, %v27343_v56 }
 0x6a1   : > { %21951 = vmatmul.mubr.msk.f32.gmra.mrb[2].mxu1 %vm3960_vm3, %v27347_v30 }
 0x6a2   : > { %21953 = vmatprep.mubr.msk.f32.mxu1 %vm3960_vm3, %v27351_v41 }
 0x6a5   : > { %21954 = vmatmul.mubr.msk.f32.gmra.mrb[4].mxu1 %vm3960_vm3, %v27355_v5 }
 0x6a6   : > { %21956 = vmatprep.mubr.msk.f32.mxu1 %vm3960_vm3, %v27359_v48 }
 0x6a9   : > { %21957 = vmatmul.mubr.msk.f32.gmra.mrb[6].mxu1 %vm3960_vm3, %v27363_v18  ;;  %v27385_v18 = vld [vmem:[#allocation3 + $0x1b0] sm:$0xff] }
 0x6aa   : > { %21959 = vmatprep.mubr.msk.f32.mxu1 %vm3960_vm3, %v27367_v62 }
 0x6ad   : > { %21960 = vmatmul.mubr.msk.f32.gmra.mrb[8].mxu1 %vm3960_vm3, %v27371_v42  ;;  %v27391_v42 = vld [vmem:[#allocation3 + $0x1b8] sm:$0xff] }
 0x6ae   : > { %21962 = vmatprep.mubr.msk.f32.mxu1 %vm3960_vm3, %v27375_v59  ;;  %v18672_v59 = vld [vmem:[%s29404_s3 + $0x120] sm:$0xff] }
 0x6b1   : > { %21963 = vmatmul.mubr.msk.f32.gmra.mrb[10].mxu1 %vm3960_vm3, %v27379_v0  ;;  %v18673_v0 = vld [vmem:[%s29404_s3 + $0x128] sm:$0xff] }
 0x6b2   : > { %21965 = vmatprep.mubr.msk.f32.mxu1 %vm3960_vm3, %v26880_v12  ;;  %v22997_v12 = vpack.c.bf16 %v18673_v0, %v18672_v59  ;;  %v29936_v59 = vld [vmem:[#allocation119_spill] sm:$0xff]  ;;  %v29937_v0 = vld [vmem:[#allocation120_spill] sm:$0xff] }
 0x6b5   : > { %21966 = vmatmul.mubr.msk.f32.gmra.mrb[12].mxu1 %vm3960_vm3, %v26884_v22  ;;  %v29933_v22 = vld [vmem:[#allocation44_spill] sm:$0xff] }
 0x6b6   : > { %21968 = vmatprep.mubr.msk.f32.mxu1 %vm3960_vm3, %v27385_v18 }
 0x6b9   : > { %21969 = vmatmul.mubr.msk.f32.gmra.mrb[14].mxu1 %vm3960_vm3, %v27391_v42 }
 0x6ba   : > { %21975 = vmatprep.mubr.msk.f32.mxu1 %vm3960_vm3, %v26898_v20  ;;  %v27464_v20 = vld [vmem:[#allocation3 + $0x1b1] sm:$0xff] }
 0x6bd   : > { %21976 = vmatmul.mubr.msk.f32.vlgmr.msra.gmra.mrb[16].mxu1 %vm3960_vm3, %v26904_v31  ;;  %v29926_v31 = vld [vmem:[#allocation39_spill] sm:$0xff] }
 0x6be   : > { %22996 = vmatpush3.bf16.msra.mxu1 %v27277_v14  ;;  %21978 = vmatprep.mubr.msk.f32.mxu1 %vm3960_vm3, %v26908_v32  ;;  %v29934_v32 = vld [vmem:[#allocation45_spill] sm:$0xff]  ;;  %v29935_v14 = vld [vmem:[#allocation118_spill] sm:$0xff] }
 0x6bf   : > { %22998 = vmatprep.subr.bf16.mxu1 %v22997_v12 }
 0x6c1   : > { %21979 = vmatmul.mubr.msk.f32.gmra.mrb[18].mxu1 %vm3960_vm3, %v26912_v34  ;;  %v27470_v34 = vld [vmem:[#allocation3 + $0x1b9] sm:$0xff] }
 0x6c2   : > { %21981 = vmatprep.mubr.msk.f32.mxu1 %vm3960_vm3, %v26916_v63  ;;  %v18706_v63 = vld [vmem:[%s29404_s3 + $0x130] sm:$0xff] }
 0x6c5   : > { %21982 = vmatmul.mubr.msk.f32.gmra.mrb[20].mxu1 %vm3960_vm3, %v26920_v44  ;;  %v18707_v44 = vld [vmem:[%s29404_s3 + $0x138] sm:$0xff] }
 0x6c6   : > { %21984 = vmatprep.mubr.msk.f32.mxu1 %vm3960_vm3, %v26924_v36  ;;  %v23001_v36 = vpack.c.bf16 %v18707_v44, %v18706_v63  ;;  %v18741_v63 = vld [vmem:[%s29404_s3 + $0x148] sm:$0xff] }
 0x6c7   : > { %v11105_v44 = vld [vmem:[#allocation3 + $0x53] sm:$0xff] }
 0x6c9   : > { %21985 = vmatmul.mubr.msk.f32.gmra.mrb[22].mxu1 %vm3960_vm3, %v26928_v53  ;;  %v29925_v53 = vld [vmem:[#allocation38_spill] sm:$0xff] }
 0x6ca   : > { %21987 = vmatprep.mubr.msk.f32.mxu1 %vm3960_vm3, %v26932_v52  ;;  %v29924_v52 = vld [vmem:[#allocation37_spill] sm:$0xff] }
 0x6cd   : > { %21988 = vmatmul.mubr.msk.f32.gmra.mrb[24].mxu1 %vm3960_vm3, %v26936_v49  ;;  %v27458_v49 = vld [vmem:[#allocation3 + $0x189] sm:$0xff] }
 0x6ce   : > { %21990 = vmatprep.mubr.msk.f32.mxu1 %vm3960_vm3, %v26940_v25  ;;  %v27454_v25 = vld [vmem:[#allocation3 + $0x181] sm:$0xff] }
 0x6d1   : > { %21991 = vmatmul.mubr.msk.f32.gmra.mrb[26].mxu1 %vm3960_vm3, %v26944_v51  ;;  %v29932_v51 = vld [vmem:[#allocation117_spill] sm:$0xff] }
 0x6d2   : > { %21993 = vmatprep.mubr.msk.f32.mxu1 %vm3960_vm3, %v26948_v43  ;;  %v29927_v43 = vld [vmem:[#allocation40_spill] sm:$0xff] }
 0x6d5   : > { %21994 = vmatmul.mubr.msk.f32.gmra.mrb[28].mxu1 %vm3960_vm3, %v26952_v17  ;;  %v29928_v17 = vld [vmem:[#allocation41_spill] sm:$0xff] }
 0x6d6   : > { %21996 = vmatprep.mubr.msk.f32.mxu1 %vm3960_vm3, %v26956_v33  ;;  %v29929_v33 = vld [vmem:[#allocation42_spill] sm:$0xff] }
 0x6d9   : > { %21997 = vmatmul.mubr.msk.f32.gmra.mrb[30].mxu1 %vm3960_vm3, %v26960_v24  ;;  %v29930_v24 = vld [vmem:[#allocation43_spill] sm:$0xff] }
 0x6da   : > { %21999 = vmatprep.mubr.msk.f32.mxu1 %vm3960_vm3, %v26964_v26  ;;  %v29931_v26 = vld [vmem:[#allocation116_spill] sm:$0xff] }
 0x6dd   : > { %22000 = vmatmul.mubr.msk.f32.gmra.mrb[0].mxu1 %vm3960_vm3, %v29924_v52  ;;  %v27538_v52 = vld [vmem:[#allocation3 + $0x13a] sm:$0xff] }
 0x6de   : > { %22002 = vmatprep.mubr.msk.f32.mxu1 %vm3960_vm3, %v29925_v53  ;;  %v27542_v53 = vld [vmem:[#allocation3 + $0x142] sm:$0xff] }
 0x6e1   : > { %22003 = vmatmul.mubr.msk.f32.gmra.mrb[2].mxu1 %vm3960_vm3, %v29926_v31  ;;  %v27546_v31 = vld [vmem:[#allocation3 + $0x152] sm:$0xff] }
 0x6e2   : > { %22005 = vmatprep.mubr.msk.f32.mxu1 %vm3960_vm3, %v29927_v43  ;;  %v27550_v43 = vld [vmem:[#allocation3 + $0x15a] sm:$0xff] }
 0x6e5   : > { %22006 = vmatmul.mubr.msk.f32.gmra.mrb[4].mxu1 %vm3960_vm3, %v29928_v17  ;;  %v27554_v17 = vld [vmem:[#allocation3 + $0x16a] sm:$0xff] }
 0x6e6   : > { %22008 = vmatprep.mubr.msk.f32.mxu1 %vm3960_vm3, %v29929_v33  ;;  %v27558_v33 = vld [vmem:[#allocation3 + $0x172] sm:$0xff] }
 0x6e9   : > { %22009 = vmatmul.mubr.msk.f32.gmra.mrb[6].mxu1 %vm3960_vm3, %v29930_v24  ;;  %v27562_v24 = vld [vmem:[#allocation3 + $0x182] sm:$0xff] }
 0x6ea   : > { %22011 = vmatprep.mubr.msk.f32.mxu1 %vm3960_vm3, %v29931_v26  ;;  %v27566_v26 = vld [vmem:[#allocation3 + $0x18a] sm:$0xff] }
 0x6ed   : > { %22012 = vmatmul.mubr.msk.f32.gmra.mrb[8].mxu1 %vm3960_vm3, %v29932_v51  ;;  %v27572_v51 = vld [vmem:[#allocation3 + $0x1b2] sm:$0xff] }
 0x6ee   : > { %22014 = vmatprep.mubr.msk.f32.mxu1 %vm3960_vm3, %v27454_v25 }
 0x6f1   : > { %22015 = vmatmul.mubr.msk.f32.gmra.mrb[10].mxu1 %vm3960_vm3, %v27458_v49 }
 0x6f2   : > { %22017 = vmatprep.mubr.msk.f32.mxu1 %vm3960_vm3, %v29933_v22  ;;  %v27578_v22 = vld [vmem:[#allocation3 + $0x1ba] sm:$0xff] }
 0x6f5   : > { %22018 = vmatmul.mubr.msk.f32.gmra.mrb[12].mxu1 %vm3960_vm3, %v29934_v32  ;;  %v18740_v32 = vld [vmem:[%s29404_s3 + $0x140] sm:$0xff] }
 0x6f6   : > { %22020 = vmatprep.mubr.msk.f32.mxu1 %vm3960_vm3, %v27464_v20 }
 0x6f9   : > { %22021 = vmatmul.mubr.msk.f32.gmra.mrb[14].mxu1 %vm3960_vm3, %v27470_v34 }
 0x6fa   : > { %22027 = vmatprep.mubr.msk.f32.mxu1 %vm3960_vm3, %v27024_v54  ;;  %v27506_v54 = vld [vmem:[#allocation3 + $0xda] sm:$0xff] }
 0x6fd   : > { %22028 = vmatmul.mubr.msk.f32.vlgmr.msra.gmra.mrb[16].mxu1 %vm3960_vm3, %v27029_v57  ;;  %v27510_v57 = vld [vmem:[#allocation3 + $0xe2] sm:$0xff] }
 0x6fe   : > { %23000 = vmatpush3.bf16.msra.mxu1 %v22997_v12  ;;  %22030 = vmatprep.mubr.msk.f32.mxu1 %vm3960_vm3, %v27033_v7  ;;  %v27502_v7 = vld [vmem:[#allocation3 + $0xca] sm:$0xff] }
 0x6ff   : > { %23002 = vmatprep.subr.bf16.mxu1 %v23001_v36  ;;  %v27534_v12 = vld [vmem:[#allocation3 + $0x12a] sm:$0xff] }
 0x701   : > { %22031 = vmatmul.mubr.msk.f32.gmra.mrb[18].mxu1 %vm3960_vm3, %v29935_v14  ;;  %v27592_v14 = vld [vmem:[#allocation3 + $0x63] sm:$0xff] }
 0x702   : > { %22033 = vmatprep.mubr.msk.f32.mxu1 %vm3960_vm3, %v29936_v59  ;;  %v27597_v59 = vld [vmem:[#allocation3 + $0x6b] sm:$0xff] }
 0x705   : > { %22034 = vmatmul.mubr.msk.f32.gmra.mrb[20].mxu1 %vm3960_vm3, %v29937_v0  ;;  %v27601_v0 = vld [vmem:[#allocation3 + $0x7b] sm:$0xff] }
 0x706   : > { %22036 = vmatprep.mubr.msk.f32.mxu1 %vm3960_vm3, %v27049_v23  ;;  %v27526_v23 = vld [vmem:[#allocation3 + $0x112] sm:$0xff]  ;;  %29938 = vst [vmem:[#allocation50_spill] sm:$0xff] %v27601_v0 }
 0x709   : > { %22037 = vmatmul.mubr.msk.f32.gmra.mrb[22].mxu1 %vm3960_vm3, %v27053_v29  ;;  %v27530_v29 = vld [vmem:[#allocation3 + $0x122] sm:$0xff] }
 0x70a   : > { %22039 = vmatprep.mubr.msk.f32.mxu1 %vm3960_vm3, %v27057_v27  ;;  %v27514_v27 = vld [vmem:[#allocation3 + $0xf2] sm:$0xff] }
 0x70d   : > { %22040 = vmatmul.mubr.msk.f32.gmra.mrb[24].mxu1 %vm3960_vm3, %v27061_v60  ;;  %v27518_v60 = vld [vmem:[#allocation3 + $0xfa] sm:$0xff] }
 0x70e   : > { %22042 = vmatprep.mubr.msk.f32.mxu1 %vm3960_vm3, %v27065_v2  ;;  %v27522_v2 = vld [vmem:[#allocation3 + $0x10a] sm:$0xff] }
 0x711   : > { %22043 = vmatmul.mubr.msk.f32.gmra.mrb[26].mxu1 %vm3960_vm3, %v27502_v7 }
 0x712   : > { %22045 = vmatprep.mubr.msk.f32.mxu1 %vm3960_vm3, %v27506_v54 }
 0x715   : > { %22046 = vmatmul.mubr.msk.f32.gmra.mrb[28].mxu1 %vm3960_vm3, %v27510_v57 }
 0x716   : > { %22048 = vmatprep.mubr.msk.f32.mxu1 %vm3960_vm3, %v27514_v27 }
 0x719   : > { %22049 = vmatmul.mubr.msk.f32.gmra.mrb[30].mxu1 %vm3960_vm3, %v27518_v60 }
 0x71a   : > { %22051 = vmatprep.mubr.msk.f32.mxu1 %vm3960_vm3, %v27522_v2 }
 0x71d   : > { %22052 = vmatmul.mubr.msk.f32.gmra.mrb[0].mxu1 %vm3960_vm3, %v27526_v23 }
 0x71e   : > { %22054 = vmatprep.mubr.msk.f32.mxu1 %vm3960_vm3, %v27530_v29 }
 0x721   : > { %22055 = vmatmul.mubr.msk.f32.gmra.mrb[2].mxu1 %vm3960_vm3, %v27534_v12 }
 0x722   : > { %22057 = vmatprep.mubr.msk.f32.mxu1 %vm3960_vm3, %v27538_v52 }
 0x725   : > { %22058 = vmatmul.mubr.msk.f32.gmra.mrb[4].mxu1 %vm3960_vm3, %v27542_v53 }
 0x726   : > { %22060 = vmatprep.mubr.msk.f32.mxu1 %vm3960_vm3, %v27546_v31 }
 0x729   : > { %22061 = vmatmul.mubr.msk.f32.gmra.mrb[6].mxu1 %vm3960_vm3, %v27550_v43 }
 0x72a   : > { %22063 = vmatprep.mubr.msk.f32.mxu1 %vm3960_vm3, %v27554_v17 }
 0x72d   : > { %22064 = vmatmul.mubr.msk.f32.gmra.mrb[8].mxu1 %vm3960_vm3, %v27558_v33 }
 0x72e   : > { %22066 = vmatprep.mubr.msk.f32.mxu1 %vm3960_vm3, %v27562_v24 }
 0x731   : > { %22067 = vmatmul.mubr.msk.f32.gmra.mrb[10].mxu1 %vm3960_vm3, %v27566_v26 }
 0x732   : > { %22069 = vmatprep.mubr.msk.f32.mxu1 %vm3960_vm3, %v27103_v10  ;;  %v11104_v10 = vld [vmem:[#allocation3 + $0x4b] sm:$0xff] }
 0x735   : > { %22070 = vmatmul.mubr.msk.f32.gmra.mrb[12].mxu1 %vm3960_vm3, %v27107_v13  ;;  %v27589_v13 = vpack.c.bf16 %v18741_v63, %v18740_v32  ;;  %v27605_v32 = vld [vmem:[#allocation3 + $0x83] sm:$0xff]  ;;  %v27613_v63 = vld [vmem:[#allocation3 + $0x9b] sm:$0xff] }
 0x736   : > { %22072 = vmatprep.mubr.msk.f32.mxu1 %vm3960_vm3, %v27572_v51  ;;  %29939 = vst [vmem:[#allocation51_spill] sm:$0xff] %v27605_v32  ;;  %29941 = vst [vmem:[#allocation53_spill] sm:$0xff] %v27613_v63 }
 0x739   : > { %22073 = vmatmul.mubr.msk.f32.gmra.mrb[14].mxu1 %vm3960_vm3, %v27578_v22 }
 0x73a   : > { %22079 = vmatprep.mubr.msk.f32.mxu1 %vm3960_vm3, %v11104_v10  ;;  %v27617_v10 = vld [vmem:[#allocation3 + $0xab] sm:$0xff] }
 0x73b   : > { %29942 = vst [vmem:[#allocation54_spill] sm:$0xff] %v27617_v10 }
 0x73d   : > { %22080 = vmatmul.mubr.msk.f32.vlgmr.msra.gmra.mrb[16].mxu1 %vm3960_vm3, %v11105_v44  ;;  %v27621_v44 = vld [vmem:[#allocation3 + $0xb3] sm:$0xff] }
 0x73e   : > { %23004 = vmatpush3.bf16.msra.mxu1 %v23001_v36  ;;  %22082 = vmatprep.mubr.msk.f32.mxu1 %vm3960_vm3, %v27592_v14  ;;  %v27609_v36 = vld [vmem:[#allocation3 + $0x93] sm:$0xff]  ;;  %29943 = vst [vmem:[#allocation55_spill] sm:$0xff] %v27621_v44 }
 0x73f   : > { %23006 = vmatprep.subr.bf16.mxu1 %v27589_v13  ;;  %29940 = vst [vmem:[#allocation52_spill] sm:$0xff] %v27609_v36 }
 0x741   : > { %22083 = vmatmul.mubr.msk.f32.gmra.mrb[18].mxu1 %vm3960_vm3, %v27597_v59 }
 0x742   : > { %22085 = vmatprep.mubr.msk.f32.mxu1 %vm3960_vm3, %v27601_v0  ;;  %v27725_v0 = vld [vmem:[#allocation3 + $0x6c] sm:$0xff] }
 0x745   : > { %22086 = vmatmul.mubr.msk.f32.gmra.mrb[20].mxu1 %vm3960_vm3, %v27605_v32  ;;  %v27625_v32 = vld [vmem:[#allocation3 + $0xc3] sm:$0xff] }
 0x746   : > { %22088 = vmatprep.mubr.msk.f32.mxu1 %vm3960_vm3, %v27609_v36  ;;  %29944 = vst [vmem:[#allocation56_spill] sm:$0xff] %v27625_v32  ;;  %v27629_v36 = vld [vmem:[#allocation3 + $0xcb] sm:$0xff] }
 0x747   : > { %29945 = vst [vmem:[#allocation57_spill] sm:$0xff] %v27629_v36 }
 0x749   : > { %22089 = vmatmul.mubr.msk.f32.gmra.mrb[22].mxu1 %vm3960_vm3, %v27613_v63  ;;  %v27633_v63 = vld [vmem:[#allocation3 + $0xdb] sm:$0xff] }
 0x74a   : > { %22091 = vmatprep.mubr.msk.f32.mxu1 %vm3960_vm3, %v27617_v10  ;;  %29946 = vst [vmem:[#allocation58_spill] sm:$0xff] %v27633_v63  ;;  %v27637_v10 = vld [vmem:[#allocation3 + $0xe3] sm:$0xff] }
 0x74b   : > { %29947 = vst [vmem:[#allocation59_spill] sm:$0xff] %v27637_v10 }
 0x74d   : > { %22092 = vmatmul.mubr.msk.f32.gmra.mrb[24].mxu1 %vm3960_vm3, %v27621_v44  ;;  %v27641_v44 = vld [vmem:[#allocation3 + $0xf3] sm:$0xff] }
 0x74e   : > { %22094 = vmatprep.mubr.msk.f32.mxu1 %vm3960_vm3, %v27625_v32  ;;  %29948 = vst [vmem:[#allocation60_spill] sm:$0xff] %v27641_v44  ;;  %v27645_v32 = vld [vmem:[#allocation3 + $0xfb] sm:$0xff] }
 0x74f   : > { %29949 = vst [vmem:[#allocation61_spill] sm:$0xff] %v27645_v32 }
 0x751   : > { %22095 = vmatmul.mubr.msk.f32.gmra.mrb[26].mxu1 %vm3960_vm3, %v27629_v36  ;;  %v27649_v36 = vld [vmem:[#allocation3 + $0x10b] sm:$0xff] }
 0x752   : > { %22097 = vmatprep.mubr.msk.f32.mxu1 %vm3960_vm3, %v27633_v63  ;;  %29950 = vst [vmem:[#allocation62_spill] sm:$0xff] %v27649_v36  ;;  %v27653_v63 = vld [vmem:[#allocation3 + $0x113] sm:$0xff] }
 0x753   : > { %29951 = vst [vmem:[#allocation63_spill] sm:$0xff] %v27653_v63 }
 0x755   : > { %22098 = vmatmul.mubr.msk.f32.gmra.mrb[28].mxu1 %vm3960_vm3, %v27637_v10  ;;  %v27657_v10 = vld [vmem:[#allocation3 + $0x123] sm:$0xff] }
 0x756   : > { %22100 = vmatprep.mubr.msk.f32.mxu1 %vm3960_vm3, %v27641_v44  ;;  %29952 = vst [vmem:[#allocation64_spill] sm:$0xff] %v27657_v10  ;;  %v27661_v44 = vld [vmem:[#allocation3 + $0x12b] sm:$0xff] }
 0x757   : > { %29953 = vst [vmem:[#allocation65_spill] sm:$0xff] %v27661_v44 }
 0x759   : > { %22101 = vmatmul.mubr.msk.f32.gmra.mrb[30].mxu1 %vm3960_vm3, %v27645_v32  ;;  %v27665_v32 = vld [vmem:[#allocation3 + $0x13b] sm:$0xff] }
 0x75a   : > { %22103 = vmatprep.mubr.msk.f32.mxu1 %vm3960_vm3, %v27649_v36  ;;  %29954 = vst [vmem:[#allocation66_spill] sm:$0xff] %v27665_v32  ;;  %v27669_v36 = vld [vmem:[#allocation3 + $0x143] sm:$0xff] }
 0x75b   : > { %29955 = vst [vmem:[#allocation67_spill] sm:$0xff] %v27669_v36 }
 0x75d   : > { %22104 = vmatmul.mubr.msk.f32.gmra.mrb[0].mxu1 %vm3960_vm3, %v27653_v63  ;;  %v27673_v63 = vld [vmem:[#allocation3 + $0x153] sm:$0xff] }
 0x75e   : > { %22106 = vmatprep.mubr.msk.f32.mxu1 %vm3960_vm3, %v27657_v10  ;;  %29956 = vst [vmem:[#allocation68_spill] sm:$0xff] %v27673_v63  ;;  %v27677_v10 = vld [vmem:[#allocation3 + $0x15b] sm:$0xff] }
 0x75f   : > { %29957 = vst [vmem:[#allocation69_spill] sm:$0xff] %v27677_v10 }
 0x761   : > { %22107 = vmatmul.mubr.msk.f32.gmra.mrb[2].mxu1 %vm3960_vm3, %v27661_v44  ;;  %v27681_v44 = vld [vmem:[#allocation3 + $0x16b] sm:$0xff] }
 0x762   : > { %22109 = vmatprep.mubr.msk.f32.mxu1 %vm3960_vm3, %v27665_v32  ;;  %29958 = vst [vmem:[#allocation70_spill] sm:$0xff] %v27681_v44  ;;  %v27685_v32 = vld [vmem:[#allocation3 + $0x173] sm:$0xff] }
 0x763   : > { %29959 = vst [vmem:[#allocation71_spill] sm:$0xff] %v27685_v32 }
 0x765   : > { %22110 = vmatmul.mubr.msk.f32.gmra.mrb[4].mxu1 %vm3960_vm3, %v27669_v36  ;;  %v27689_v36 = vld [vmem:[#allocation3 + $0x183] sm:$0xff] }
 0x766   : > { %22112 = vmatprep.mubr.msk.f32.mxu1 %vm3960_vm3, %v27673_v63  ;;  %29960 = vst [vmem:[#allocation72_spill] sm:$0xff] %v27689_v36  ;;  %v27693_v63 = vld [vmem:[#allocation3 + $0x18b] sm:$0xff] }
 0x767   : > { %29961 = vst [vmem:[#allocation73_spill] sm:$0xff] %v27693_v63 }
 0x769   : > { %22113 = vmatmul.mubr.msk.f32.gmra.mrb[6].mxu1 %vm3960_vm3, %v27677_v10  ;;  %v27699_v10 = vld [vmem:[#allocation3 + $0x1b3] sm:$0xff] }
 0x76a   : > { %22115 = vmatprep.mubr.msk.f32.mxu1 %vm3960_vm3, %v27681_v44  ;;  %29962 = vst [vmem:[#allocation74_spill] sm:$0xff] %v27699_v10  ;;  %v11493_v44 = vld [vmem:[#allocation3 + $0x54] sm:$0xff] }
 0x76d   : > { %22116 = vmatmul.mubr.msk.f32.gmra.mrb[8].mxu1 %vm3960_vm3, %v27685_v32  ;;  %v27705_v32 = vld [vmem:[#allocation3 + $0x1bb] sm:$0xff] }
 0x76e   : > { %22118 = vmatprep.mubr.msk.f32.mxu1 %vm3960_vm3, %v27689_v36  ;;  %v18774_v36 = vld [vmem:[%s29404_s3 + $0x150] sm:$0xff] }
 0x771   : > { %22119 = vmatmul.mubr.msk.f32.gmra.mrb[10].mxu1 %vm3960_vm3, %v27693_v63  ;;  %v18775_v63 = vld [vmem:[%s29404_s3 + $0x158] sm:$0xff] }
 0x772   : > { %22121 = vmatprep.mubr.msk.f32.mxu1 %vm3960_vm3, %v27177_v9  ;;  %v11492_v9 = vld [vmem:[#allocation3 + $0x4c] sm:$0xff] }
 0x775   : > { %22122 = vmatmul.mubr.msk.f32.gmra.mrb[12].mxu1 %vm3960_vm3, %v27181_v4  ;;  %v27716_v4 = vpack.c.bf16 %v18775_v63, %v18774_v36  ;;  %v27733_v36 = vld [vmem:[#allocation3 + $0x84] sm:$0xff]  ;;  %v27741_v63 = vld [vmem:[#allocation3 + $0x9c] sm:$0xff] }
 0x776   : > { %22124 = vmatprep.mubr.msk.f32.mxu1 %vm3960_vm3, %v27699_v10  ;;  %v27719_v10 = vld [vmem:[#allocation3 + $0x64] sm:$0xff]  ;;  %29964 = vst [vmem:[#allocation76_spill] sm:$0xff] %v27733_v36  ;;  %29966 = vst [vmem:[#allocation78_spill] sm:$0xff] %v27741_v63 }
 0x779   : > { %22125 = vmatmul.mubr.msk.f32.gmra.mrb[14].mxu1 %vm3960_vm3, %v27705_v32 }
 0x77a   : > { %22131 = vmatprep.mubr.msk.f32.mxu1 %vm3960_vm3, %v11492_v9  ;;  %v27729_v9 = vld [vmem:[#allocation3 + $0x7c] sm:$0xff] }
 0x77b   : > { %29963 = vst [vmem:[#allocation75_spill] sm:$0xff] %v27729_v9 }
 0x77d   : > { %22132 = vmatmul.mubr.msk.f32.vlgmr.msra.gmra.mrb[16].mxu1 %vm3960_vm3, %v11493_v44  ;;  %v27745_v44 = vld [vmem:[#allocation3 + $0xac] sm:$0xff] }
 0x77e   : > { %23008 = vmatpush3.bf16.msra.mxu1 %v27589_v13  ;;  %22134 = vmatprep.mubr.msk.f32.mxu1 %vm3960_vm3, %v27719_v10  ;;  %v27737_v13 = vld [vmem:[#allocation3 + $0x94] sm:$0xff]  ;;  %29967 = vst [vmem:[#allocation79_spill] sm:$0xff] %v27745_v44 }
 0x77f   : > { %23010 = vmatprep.subr.bf16.mxu1 %v27716_v4  ;;  %29965 = vst [vmem:[#allocation77_spill] sm:$0xff] %v27737_v13 }
 0x781   : > { %22135 = vmatmul.mubr.msk.f32.gmra.mrb[18].mxu1 %vm3960_vm3, %v27725_v0 }
 0x782   : > { %22137 = vmatprep.mubr.msk.f32.mxu1 %vm3960_vm3, %v27729_v9  ;;  %v27749_v9 = vld [vmem:[#allocation3 + $0xb4] sm:$0xff] }
 0x783   : > { %29968 = vst [vmem:[#allocation80_spill] sm:$0xff] %v27749_v9 }
 0x785   : > { %22138 = vmatmul.mubr.msk.f32.gmra.mrb[20].mxu1 %vm3960_vm3, %v27733_v36  ;;  %v27753_v36 = vld [vmem:[#allocation3 + $0xc4] sm:$0xff] }
 0x786   : > { %22140 = vmatprep.mubr.msk.f32.mxu1 %vm3960_vm3, %v27737_v13  ;;  %29969 = vst [vmem:[#allocation83_spill] sm:$0xff] %v27753_v36  ;;  %v27757_v13 = vld [vmem:[#allocation3 + $0xcc] sm:$0xff] }
 0x787   : > { %29970 = vst [vmem:[#allocation90_spill] sm:$0xff] %v27757_v13 }
 0x789   : > { %22141 = vmatmul.mubr.msk.f32.gmra.mrb[22].mxu1 %vm3960_vm3, %v27741_v63  ;;  %v27761_v63 = vld [vmem:[#allocation3 + $0xdc] sm:$0xff] }
 0x78a   : > { %22143 = vmatprep.mubr.msk.f32.mxu1 %vm3960_vm3, %v27745_v44  ;;  %29971 = vst [vmem:[#allocation93_spill] sm:$0xff] %v27761_v63  ;;  %v27765_v44 = vld [vmem:[#allocation3 + $0xe4] sm:$0xff] }
 0x78b   : > { %29972 = vst [vmem:[#allocation37_spill] sm:$0xff] %v27765_v44 }
 0x78d   : > { %22144 = vmatmul.mubr.msk.f32.gmra.mrb[24].mxu1 %vm3960_vm3, %v27749_v9  ;;  %v27769_v9 = vld [vmem:[#allocation3 + $0xf4] sm:$0xff] }
 0x78e   : > { %22146 = vmatprep.mubr.msk.f32.mxu1 %vm3960_vm3, %v27753_v36  ;;  %29973 = vst [vmem:[#allocation38_spill] sm:$0xff] %v27769_v9  ;;  %v27773_v36 = vld [vmem:[#allocation3 + $0xfc] sm:$0xff] }
 0x78f   : > { %29974 = vst [vmem:[#allocation39_spill] sm:$0xff] %v27773_v36 }
 0x791   : > { %22147 = vmatmul.mubr.msk.f32.gmra.mrb[26].mxu1 %vm3960_vm3, %v27757_v13  ;;  %v27777_v13 = vld [vmem:[#allocation3 + $0x10c] sm:$0xff] }
 0x792   : > { %22149 = vmatprep.mubr.msk.f32.mxu1 %vm3960_vm3, %v27761_v63  ;;  %v27781_v63 = vld [vmem:[#allocation3 + $0x114] sm:$0xff] }
 0x795   : > { %22150 = vmatmul.mubr.msk.f32.gmra.mrb[28].mxu1 %vm3960_vm3, %v27765_v44  ;;  %v27785_v44 = vld [vmem:[#allocation3 + $0x124] sm:$0xff] }
 0x796   : > { %22152 = vmatprep.mubr.msk.f32.mxu1 %vm3960_vm3, %v27769_v9  ;;  %v27789_v9 = vld [vmem:[#allocation3 + $0x12c] sm:$0xff] }
 0x797   : > { %29975 = vst [vmem:[#allocation40_spill] sm:$0xff] %v27789_v9 }
 0x799   : > { %22153 = vmatmul.mubr.msk.f32.gmra.mrb[30].mxu1 %vm3960_vm3, %v27773_v36  ;;  %v27793_v36 = vld [vmem:[#allocation3 + $0x13c] sm:$0xff] }
 0x79a   : > { %22155 = vmatprep.mubr.msk.f32.mxu1 %vm3960_vm3, %v27777_v13  ;;  %29976 = vst [vmem:[#allocation41_spill] sm:$0xff] %v27793_v36 }
 0x79d   : > { %22156 = vmatmul.mubr.msk.f32.gmra.mrb[0].mxu1 %vm3960_vm3, %v27781_v63 }
 0x79e   : > { %22158 = vmatprep.mubr.msk.f32.mxu1 %vm3960_vm3, %v27785_v44 }
 0x7a1   : > { %22159 = vmatmul.mubr.msk.f32.gmra.mrb[2].mxu1 %vm3960_vm3, %v27789_v9  ;;  %v27807_v9 = vld [vmem:[#allocation3 + $0x184] sm:$0xff] }
 0x7a2   : > { %22161 = vmatprep.mubr.msk.f32.mxu1 %vm3960_vm3, %v27793_v36  ;;  %v27811_v36 = vld [vmem:[#allocation3 + $0x18c] sm:$0xff] }
 0x7a5   : > { %22162 = vmatmul.mubr.msk.f32.gmra.mrb[4].mxu1 %vm3960_vm3, %v27237_v8  ;;  %v27817_v8 = vld [vmem:[#allocation3 + $0x1b4] sm:$0xff] }
 0x7a6   : > { %22164 = vmatprep.mubr.msk.f32.mxu1 %vm3960_vm3, %v27241_v37  ;;  %v27823_v37 = vld [vmem:[#allocation3 + $0x1bc] sm:$0xff] }
 0x7a9   : > { %22165 = vmatmul.mubr.msk.f32.gmra.mrb[6].mxu1 %vm3960_vm3, %v27245_v6  ;;  %v18808_v6 = vld [vmem:[%s29404_s3 + $0x160] sm:$0xff] }
 0x7aa   : > { %22167 = vmatprep.mubr.msk.f32.mxu1 %vm3960_vm3, %v27249_v58  ;;  %v18809_v58 = vld [vmem:[%s29404_s3 + $0x168] sm:$0xff] }
 0x7ad   : > { %22168 = vmatmul.mubr.msk.f32.gmra.mrb[8].mxu1 %vm3960_vm3, %v27253_v38  ;;  %v11881_v38 = vld [vmem:[#allocation3 + $0x60] sm:$0xff] }
 0x7ae   : > { %22170 = vmatprep.mubr.msk.f32.mxu1 %vm3960_vm3, %v27807_v9 }
 0x7b1   : > { %22171 = vmatmul.mubr.msk.f32.gmra.mrb[10].mxu1 %vm3960_vm3, %v27811_v36 }
 0x7b2   : > { %22173 = vmatprep.mubr.msk.f32.mxu1 %vm3960_vm3, %v27261_v11  ;;  %v23013_v11 = vpack.c.bf16 %v18809_v58, %v18808_v6  ;;  %v12283_v6 = vld [vmem:[#allocation3 + $0x109] sm:$0xff]  ;;  %v12284_v58 = vld [vmem:[#allocation3 + $0x111] sm:$0xff] }
 0x7b5   : > { %22174 = vmatmul.mubr.msk.f32.gmra.mrb[12].mxu1 %vm3960_vm3, %v27265_v21  ;;  %v29977_v21 = vld [vmem:[#allocation46_spill] sm:$0xff] }
 0x7b6   : > { %22176 = vmatprep.mubr.msk.f32.mxu1 %vm3960_vm3, %v27817_v8 }
 0x7b9   : > { %22177 = vmatmul.mubr.msk.f32.gmra.mrb[14].mxu1 %vm3960_vm3, %v27823_v37 }
 0x7ba   : > { %22183 = vmatprep.mubr.msk.f32.mxu1 %vm3960_vm3, %v11881_v38  ;;  %v12285_v38 = vld [vmem:[#allocation3 + $0x121] sm:$0xff] }
 0x7bd   : > { %22184 = vmatmul.mubr.msk.f32.vlgmr.msra.gmra.mrb[16].mxu1 %vm3960_vm3, %v27283_v39  ;;  %v29978_v39 = vld [vmem:[#allocation47_spill] sm:$0xff] }
 0x7be   : > { %23012 = vmatpush3.bf16.msra.mxu1 %v27716_v4  ;;  %22186 = vmatprep.mubr.msk.f32.mxu1 %vm3960_vm3, %v27287_v28  ;;  %v29979_v28 = vld [vmem:[#allocation48_spill] sm:$0xff]  ;;  %v12282_v4 = vld [vmem:[#allocation3 + $0xf9] sm:$0xff] }
 0x7bf   : > { %23014 = vmatprep.subr.bf16.mxu1 %v23013_v11 }
 0x7c1   : > { %22187 = vmatmul.mubr.msk.f32.gmra.mrb[18].mxu1 %vm3960_vm3, %v27291_v16  ;;  %v29980_v16 = vld [vmem:[#allocation49_spill] sm:$0xff] }
 0x7c2   : > { %22189 = vmatprep.mubr.msk.f32.mxu1 %vm3960_vm3, %v27295_v19  ;;  %v11907_v19 = vld [vmem:[#allocation3 + $0x198] sm:$0xff] }
 0x7c5   : > { %22190 = vmatmul.mubr.msk.f32.gmra.mrb[20].mxu1 %vm3960_vm3, %v27299_v35  ;;  %v11908_v35 = vld [vmem:[#allocation3 + $0x1a0] sm:$0xff] }
 0x7c6   : > { %22192 = vmatprep.mubr.msk.f32.mxu1 %vm3960_vm3, %v27303_v15  ;;  %v11911_v15 = vld [vmem:[#allocation3 + $0x1c8] sm:$0xff] }
 0x7c9   : > { %22193 = vmatmul.mubr.msk.f32.gmra.mrb[22].mxu1 %vm3960_vm3, %v27307_v3  ;;  %v11912_v3 = vld [vmem:[#allocation3 + $0x1d0] sm:$0xff] }
 0x7ca   : > { %22195 = vmatprep.mubr.msk.f32.mxu1 %vm3960_vm3, %v27311_v50  ;;  %v18842_v50 = vld [vmem:[%s29404_s3 + $0x170] sm:$0xff] }
 0x7cd   : > { %22196 = vmatmul.mubr.msk.f32.gmra.mrb[24].mxu1 %vm3960_vm3, %v27315_v55  ;;  %v18843_v55 = vld [vmem:[%s29404_s3 + $0x178] sm:$0xff] }
 0x7ce   : > { %22198 = vmatprep.mubr.msk.f32.mxu1 %vm3960_vm3, %v27319_v61  ;;  %v12269_v61 = vld [vmem:[#allocation3 + $0x61] sm:$0xff] }
 0x7d1   : > { %22199 = vmatmul.mubr.msk.f32.gmra.mrb[26].mxu1 %vm3960_vm3, %v27323_v1  ;;  %v27900_v1 = vpack.c.bf16 %v18843_v55, %v18842_v50  ;;  %v12299_v50 = vld [vmem:[#allocation3 + $0x1c9] sm:$0xff]  ;;  %v12300_v55 = vld [vmem:[#allocation3 + $0x1d1] sm:$0xff] }
 0x7d2   : > { %22201 = vmatprep.mubr.msk.f32.mxu1 %vm3960_vm3, %v27327_v40  ;;  %v12270_v40 = vld [vmem:[#allocation3 + $0x69] sm:$0xff] }
 0x7d5   : > { %22202 = vmatmul.mubr.msk.f32.gmra.mrb[28].mxu1 %vm3960_vm3, %v27331_v47  ;;  %v12271_v47 = vld [vmem:[#allocation3 + $0x79] sm:$0xff] }
 0x7d6   : > { %22204 = vmatprep.mubr.msk.f32.mxu1 %vm3960_vm3, %v27335_v45  ;;  %v12272_v45 = vld [vmem:[#allocation3 + $0x81] sm:$0xff] }
 0x7d9   : > { %22205 = vmatmul.mubr.msk.f32.gmra.mrb[30].mxu1 %vm3960_vm3, %v27339_v46  ;;  %v12273_v46 = vld [vmem:[#allocation3 + $0x91] sm:$0xff] }
 0x7da   : > { %22207 = vmatprep.mubr.msk.f32.mxu1 %vm3960_vm3, %v27343_v56  ;;  %v12274_v56 = vld [vmem:[#allocation3 + $0x99] sm:$0xff] }
 0x7dd   : > { %22208 = vmatmul.mubr.msk.f32.gmra.mrb[0].mxu1 %vm3960_vm3, %v27347_v30  ;;  %v12275_v30 = vld [vmem:[#allocation3 + $0xa9] sm:$0xff] }
 0x7de   : > { %22210 = vmatprep.mubr.msk.f32.mxu1 %vm3960_vm3, %v27351_v41  ;;  %v12276_v41 = vld [vmem:[#allocation3 + $0xb1] sm:$0xff] }
 0x7e1   : > { %22211 = vmatmul.mubr.msk.f32.gmra.mrb[2].mxu1 %vm3960_vm3, %v27355_v5  ;;  %v12277_v5 = vld [vmem:[#allocation3 + $0xc1] sm:$0xff] }
 0x7e2   : > { %22213 = vmatprep.mubr.msk.f32.mxu1 %vm3960_vm3, %v27359_v48  ;;  %v12278_v48 = vld [vmem:[#allocation3 + $0xc9] sm:$0xff] }
 0x7e5   : > { %22214 = vmatmul.mubr.msk.f32.gmra.mrb[4].mxu1 %vm3960_vm3, %v29977_v21  ;;  %v12287_v21 = vld [vmem:[#allocation3 + $0x139] sm:$0xff] }
 0x7e6   : > { %22216 = vmatprep.mubr.msk.f32.mxu1 %vm3960_vm3, %v27367_v62  ;;  %v12280_v62 = vld [vmem:[#allocation3 + $0xe1] sm:$0xff] }
 0x7e9   : > { %22217 = vmatmul.mubr.msk.f32.gmra.mrb[6].mxu1 %vm3960_vm3, %v29978_v39  ;;  %v12288_v39 = vld [vmem:[#allocation3 + $0x141] sm:$0xff] }
 0x7ea   : > { %22219 = vmatprep.mubr.msk.f32.mxu1 %vm3960_vm3, %v29979_v28  ;;  %v12289_v28 = vld [vmem:[#allocation3 + $0x151] sm:$0xff] }
 0x7ed   : > { %22220 = vmatmul.mubr.msk.f32.gmra.mrb[8].mxu1 %vm3960_vm3, %v29980_v16  ;;  %v12290_v16 = vld [vmem:[#allocation3 + $0x159] sm:$0xff] }
 0x7ee   : > { %22222 = vmatprep.mubr.msk.f32.mxu1 %vm3960_vm3, %v11907_v19  ;;  %v12291_v19 = vld [vmem:[#allocation3 + $0x169] sm:$0xff] }
 0x7f1   : > { %22223 = vmatmul.mubr.msk.f32.gmra.mrb[10].mxu1 %vm3960_vm3, %v11908_v35  ;;  %v12292_v35 = vld [vmem:[#allocation3 + $0x171] sm:$0xff] }
 0x7f2   : > { %22225 = vmatprep.mubr.msk.f32.mxu1 %vm3960_vm3, %v27385_v18  ;;  %v12279_v18 = vld [vmem:[#allocation3 + $0xd9] sm:$0xff] }
 0x7f5   : > { %22226 = vmatmul.mubr.msk.f32.gmra.mrb[12].mxu1 %vm3960_vm3, %v27391_v42  ;;  %v12281_v42 = vld [vmem:[#allocation3 + $0xf1] sm:$0xff] }
 0x7f6   : > { %22228 = vmatprep.mubr.msk.f32.mxu1 %vm3960_vm3, %v11911_v15  ;;  %v12295_v15 = vld [vmem:[#allocation3 + $0x199] sm:$0xff] }
 0x7f9   : > { %22229 = vmatmul.mubr.msk.f32.gmra.mrb[14].mxu1 %vm3960_vm3, %v11912_v3  ;;  %v12296_v3 = vld [vmem:[#allocation3 + $0x1a1] sm:$0xff] }
 0x7fa   : > { %22235 = vmatprep.mubr.msk.f32.mxu1 %vm3960_vm3, %v12269_v61  ;;  %v12657_v61 = vld [vmem:[#allocation3 + $0x62] sm:$0xff] }
 0x7fd   : > { %22236 = vmatmul.mubr.msk.f32.vlgmr.msra.gmra.mrb[16].mxu1 %vm3960_vm3, %v12270_v40  ;;  %v12658_v40 = vld [vmem:[#allocation3 + $0x6a] sm:$0xff] }
 0x7fe   : > { %23016 = vmatpush3.bf16.msra.mxu1 %v23013_v11  ;;  %22238 = vmatprep.mubr.msk.f32.mxu1 %vm3960_vm3, %v12271_v47  ;;  %v12286_v11 = vld [vmem:[#allocation3 + $0x129] sm:$0xff] }
 0x7ff   : > { %23018 = vmatprep.subr.bf16.mxu1 %v27900_v1  ;;  %v12660_v47 = vld [vmem:[#allocation3 + $0x82] sm:$0xff] }
 0x801   : > { %22239 = vmatmul.mubr.msk.f32.gmra.mrb[18].mxu1 %vm3960_vm3, %v12272_v45  ;;  %v12661_v45 = vld [vmem:[#allocation3 + $0x92] sm:$0xff] }
 0x802   : > { %22241 = vmatprep.mubr.msk.f32.mxu1 %vm3960_vm3, %v12273_v46  ;;  %v12662_v46 = vld [vmem:[#allocation3 + $0x9a] sm:$0xff] }
 0x805   : > { %22242 = vmatmul.mubr.msk.f32.gmra.mrb[20].mxu1 %vm3960_vm3, %v12274_v56  ;;  %v12663_v56 = vld [vmem:[#allocation3 + $0xaa] sm:$0xff] }
 0x806   : > { %22244 = vmatprep.mubr.msk.f32.mxu1 %vm3960_vm3, %v12275_v30  ;;  %v12664_v30 = vld [vmem:[#allocation3 + $0xb2] sm:$0xff] }
 0x809   : > { %22245 = vmatmul.mubr.msk.f32.gmra.mrb[22].mxu1 %vm3960_vm3, %v12276_v41  ;;  %v12665_v41 = vld [vmem:[#allocation3 + $0xc2] sm:$0xff] }
 0x80a   : > { %22247 = vmatprep.mubr.msk.f32.mxu1 %vm3960_vm3, %v12277_v5  ;;  %v29999_v5 = vld [vmem:[#allocation68_spill] sm:$0xff] }
 0x80d   : > { %22248 = vmatmul.mubr.msk.f32.gmra.mrb[24].mxu1 %vm3960_vm3, %v12278_v48  ;;  %v30000_v48 = vld [vmem:[#allocation69_spill] sm:$0xff] }
 0x80e   : > { %22250 = vmatprep.mubr.msk.f32.mxu1 %vm3960_vm3, %v12279_v18  ;;  %v30001_v18 = vld [vmem:[#allocation70_spill] sm:$0xff] }
 0x811   : > { %22251 = vmatmul.mubr.msk.f32.gmra.mrb[26].mxu1 %vm3960_vm3, %v12280_v62  ;;  %v30002_v62 = vld [vmem:[#allocation71_spill] sm:$0xff] }
 0x812   : > { %22253 = vmatprep.mubr.msk.f32.mxu1 %vm3960_vm3, %v12281_v42  ;;  %v30003_v42 = vld [vmem:[#allocation72_spill] sm:$0xff] }
 0x815   : > { %22254 = vmatmul.mubr.msk.f32.gmra.mrb[28].mxu1 %vm3960_vm3, %v12282_v4  ;;  %v30004_v4 = vld [vmem:[#allocation73_spill] sm:$0xff] }
 0x816   : > { %22256 = vmatprep.mubr.msk.f32.mxu1 %vm3960_vm3, %v12283_v6  ;;  %v13071_v6 = vld [vmem:[#allocation3 + $0x19b] sm:$0xff] }
 0x819   : > { %22257 = vmatmul.mubr.msk.f32.gmra.mrb[30].mxu1 %vm3960_vm3, %v12284_v58  ;;  %v13072_v58 = vld [vmem:[#allocation3 + $0x1a3] sm:$0xff] }
 0x81a   : > { %22259 = vmatprep.mubr.msk.f32.mxu1 %vm3960_vm3, %v12285_v38  ;;  %v30005_v38 = vld [vmem:[#allocation74_spill] sm:$0xff] }
 0x81d   : > { %22260 = vmatmul.mubr.msk.f32.gmra.mrb[0].mxu1 %vm3960_vm3, %v12286_v11  ;;  %v13075_v11 = vld [vmem:[#allocation3 + $0x1cb] sm:$0xff] }
 0x81e   : > { %22262 = vmatprep.mubr.msk.f32.mxu1 %vm3960_vm3, %v12287_v21  ;;  %v13076_v21 = vld [vmem:[#allocation3 + $0x1d3] sm:$0xff] }
 0x821   : > { %22263 = vmatmul.mubr.msk.f32.gmra.mrb[2].mxu1 %vm3960_vm3, %v12288_v39  ;;  %v30006_v39 = vld [vmem:[#allocation75_spill] sm:$0xff] }
 0x822   : > { %22265 = vmatprep.mubr.msk.f32.mxu1 %vm3960_vm3, %v12289_v28  ;;  %v30007_v28 = vld [vmem:[#allocation76_spill] sm:$0xff] }
 0x825   : > { %22266 = vmatmul.mubr.msk.f32.gmra.mrb[4].mxu1 %vm3960_vm3, %v12290_v16  ;;  %v30008_v16 = vld [vmem:[#allocation77_spill] sm:$0xff] }
 0x826   : > { %22268 = vmatprep.mubr.msk.f32.mxu1 %vm3960_vm3, %v12291_v19  ;;  %v30010_v19 = vld [vmem:[#allocation79_spill] sm:$0xff] }
 0x829   : > { %22269 = vmatmul.mubr.msk.f32.gmra.mrb[6].mxu1 %vm3960_vm3, %v12292_v35  ;;  %v30011_v35 = vld [vmem:[#allocation80_spill] sm:$0xff] }
 0x82a   : > { %22271 = vmatprep.mubr.msk.f32.mxu1 %vm3960_vm3, %v27454_v25  ;;  %v18876_v25 = vld [vmem:[%s29404_s3 + $0x180] sm:$0xff] }
 0x82d   : > { %22272 = vmatmul.mubr.msk.f32.gmra.mrb[8].mxu1 %vm3960_vm3, %v27458_v49  ;;  %v18877_v49 = vld [vmem:[%s29404_s3 + $0x188] sm:$0xff] }
 0x82e   : > { %22274 = vmatprep.mubr.msk.f32.mxu1 %vm3960_vm3, %v12295_v15  ;;  %v30014_v15 = vld [vmem:[#allocation93_spill] sm:$0xff] }
 0x831   : > { %22275 = vmatmul.mubr.msk.f32.gmra.mrb[10].mxu1 %vm3960_vm3, %v12296_v3  ;;  %v30015_v3 = vld [vmem:[#allocation37_spill] sm:$0xff] }
 0x832   : > { %22277 = vmatprep.mubr.msk.f32.mxu1 %vm3960_vm3, %v27464_v20  ;;  %v23021_v20 = vpack.c.bf16 %v18877_v49, %v18876_v25  ;;  %v30018_v25 = vld [vmem:[#allocation40_spill] sm:$0xff]  ;;  %v30019_v49 = vld [vmem:[#allocation41_spill] sm:$0xff] }
 0x835   : > { %22278 = vmatmul.mubr.msk.f32.gmra.mrb[12].mxu1 %vm3960_vm3, %v27470_v34  ;;  %v12659_v34 = vld [vmem:[#allocation3 + $0x7a] sm:$0xff] }
 0x836   : > { %22280 = vmatprep.mubr.msk.f32.mxu1 %vm3960_vm3, %v12299_v50  ;;  %v30016_v50 = vld [vmem:[#allocation38_spill] sm:$0xff] }
 0x839   : > { %22281 = vmatmul.mubr.msk.f32.gmra.mrb[14].mxu1 %vm3960_vm3, %v12300_v55  ;;  %v30017_v55 = vld [vmem:[#allocation39_spill] sm:$0xff] }
 0x83a   : > { %22287 = vmatprep.mubr.msk.f32.mxu1 %vm3960_vm3, %v12657_v61  ;;  %v13452_v61 = vld [vmem:[#allocation3 + $0x144] sm:$0xff] }
 0x83d   : > { %22288 = vmatmul.mubr.msk.f32.vlgmr.msra.gmra.mrb[16].mxu1 %vm3960_vm3, %v12658_v40  ;;  %v13454_v40 = vld [vmem:[#allocation3 + $0x15c] sm:$0xff] }
 0x83e   : > { %23020 = vmatpush3.bf16.msra.mxu1 %v27900_v1  ;;  %22290 = vmatprep.mubr.msk.f32.mxu1 %vm3960_vm3, %v12659_v34  ;;  %v29998_v1 = vld [vmem:[#allocation67_spill] sm:$0xff] }
 0x83f   : > { %23022 = vmatprep.subr.bf16.mxu1 %v23021_v20  ;;  %v13460_v34 = vld [vmem:[#allocation3 + $0x1a4] sm:$0xff] }
 0x841   : > { %22291 = vmatmul.mubr.msk.f32.gmra.mrb[18].mxu1 %vm3960_vm3, %v12660_v47  ;;  %v13463_v47 = vld [vmem:[#allocation3 + $0x1cc] sm:$0xff] }
 0x842   : > { %22293 = vmatprep.mubr.msk.f32.mxu1 %vm3960_vm3, %v12661_v45  ;;  %v13464_v45 = vld [vmem:[#allocation3 + $0x1d4] sm:$0xff] }
 0x845   : > { %22294 = vmatmul.mubr.msk.f32.gmra.mrb[20].mxu1 %vm3960_vm3, %v12662_v46 }
 0x846   : > { %22296 = vmatprep.mubr.msk.f32.mxu1 %vm3960_vm3, %v12663_v56  ;;  %v14179_v56 = vld [vmem:[%s29406_s5] sm:$0xff] }
 0x849   : > { %22297 = vmatmul.mubr.msk.f32.gmra.mrb[22].mxu1 %vm3960_vm3, %v12664_v30  ;;  %v14180_v30 = vld [vmem:[%s29406_s5 + $0x8] sm:$0xff] }
 0x84a   : > { %22299 = vmatprep.mubr.msk.f32.mxu1 %vm3960_vm3, %v12665_v41 }
 0x84d   : > { %22300 = vmatmul.mubr.msk.f32.gmra.mrb[24].mxu1 %vm3960_vm3, %v27502_v7  ;;  %v12683_v7 = vld [vmem:[#allocation3 + $0x19a] sm:$0xff] }
 0x84e   : > { %22302 = vmatprep.mubr.msk.f32.mxu1 %vm3960_vm3, %v27506_v54  ;;  %v12684_v54 = vld [vmem:[#allocation3 + $0x1a2] sm:$0xff] }
 0x851   : > { %22303 = vmatmul.mubr.msk.f32.gmra.mrb[26].mxu1 %vm3960_vm3, %v27510_v57  ;;  %v12687_v57 = vld [vmem:[#allocation3 + $0x1ca] sm:$0xff] }
 0x852   : > { %22305 = vmatprep.mubr.msk.f32.mxu1 %vm3960_vm3, %v27514_v27  ;;  %v12688_v27 = vld [vmem:[#allocation3 + $0x1d2] sm:$0xff] }
 0x855   : > { %22306 = vmatmul.mubr.msk.f32.gmra.mrb[28].mxu1 %vm3960_vm3, %v27518_v60  ;;  %v29981_v60 = vld [vmem:[#allocation50_spill] sm:$0xff] }
 0x856   : > { %22308 = vmatprep.mubr.msk.f32.mxu1 %vm3960_vm3, %v27522_v2  ;;  %v29982_v2 = vld [vmem:[#allocation51_spill] sm:$0xff] }
 0x859   : > { %22309 = vmatmul.mubr.msk.f32.gmra.mrb[30].mxu1 %vm3960_vm3, %v27526_v23  ;;  %v29983_v23 = vld [vmem:[#allocation52_spill] sm:$0xff] }
 0x85a   : > { %22311 = vmatprep.mubr.msk.f32.mxu1 %vm3960_vm3, %v27530_v29  ;;  %v29984_v29 = vld [vmem:[#allocation53_spill] sm:$0xff] }
 0x85d   : > { %22312 = vmatmul.mubr.msk.f32.gmra.mrb[0].mxu1 %vm3960_vm3, %v27534_v12  ;;  %v29985_v12 = vld [vmem:[#allocation54_spill] sm:$0xff] }
 0x85e   : > { %22314 = vmatprep.mubr.msk.f32.mxu1 %vm3960_vm3, %v27538_v52  ;;  %v29986_v52 = vld [vmem:[#allocation55_spill] sm:$0xff] }
 0x861   : > { %22315 = vmatmul.mubr.msk.f32.gmra.mrb[2].mxu1 %vm3960_vm3, %v27542_v53  ;;  %v29987_v53 = vld [vmem:[#allocation56_spill] sm:$0xff] }
 0x862   : > { %22317 = vmatprep.mubr.msk.f32.mxu1 %vm3960_vm3, %v27546_v31  ;;  %v29988_v31 = vld [vmem:[#allocation57_spill] sm:$0xff] }
 0x865   : > { %22318 = vmatmul.mubr.msk.f32.gmra.mrb[4].mxu1 %vm3960_vm3, %v27550_v43  ;;  %v29989_v43 = vld [vmem:[#allocation58_spill] sm:$0xff] }
 0x866   : > { %22320 = vmatprep.mubr.msk.f32.mxu1 %vm3960_vm3, %v27554_v17  ;;  %v29990_v17 = vld [vmem:[#allocation59_spill] sm:$0xff] }
 0x869   : > { %22321 = vmatmul.mubr.msk.f32.gmra.mrb[6].mxu1 %vm3960_vm3, %v27558_v33  ;;  %v29991_v33 = vld [vmem:[#allocation60_spill] sm:$0xff] }
 0x86a   : > { %22323 = vmatprep.mubr.msk.f32.mxu1 %vm3960_vm3, %v27562_v24  ;;  %v29992_v24 = vld [vmem:[#allocation61_spill] sm:$0xff] }
 0x86d   : > { %22324 = vmatmul.mubr.msk.f32.gmra.mrb[8].mxu1 %vm3960_vm3, %v27566_v26  ;;  %v29993_v26 = vld [vmem:[#allocation62_spill] sm:$0xff] }
 0x86e   : > { %22326 = vmatprep.mubr.msk.f32.mxu1 %vm3960_vm3, %v12683_v7  ;;  %v23029_v7 = vpack.c.bf16 %v14180_v30, %v14179_v56 }
 0x871   : > { %22327 = vmatmul.mubr.msk.f32.gmra.mrb[10].mxu1 %vm3960_vm3, %v12684_v54 }
 0x872   : > { %22329 = vmatprep.mubr.msk.f32.mxu1 %vm3960_vm3, %v27572_v51  ;;  %v29994_v51 = vld [vmem:[#allocation63_spill] sm:$0xff] }
 0x875   : > { %22330 = vmatmul.mubr.msk.f32.gmra.mrb[12].mxu1 %vm3960_vm3, %v27578_v22  ;;  %v29995_v22 = vld [vmem:[#allocation64_spill] sm:$0xff] }
 0x876   : > { %22332 = vmatprep.mubr.msk.f32.mxu1 %vm3960_vm3, %v12687_v57 }
 0x879   : > { %22333 = vmatmul.mubr.msk.f32.gmra.mrb[14].mxu1 %vm3960_vm3, %v12688_v27  ;;  %v28238_v27 = vld [vmem:[%s29405_s4] ss:$0 sm:$0xff] }
 0x87a   : > { %22339 = vmatprep.mubr.msk.f32.mxu1 %vm3960_vm3, %v27592_v14  ;;  %v29996_v14 = vld [vmem:[#allocation65_spill] sm:$0xff] }
 0x87d   : > { %22340 = vmatmul.mubr.msk.f32.vlgmr.msra.gmra.mrb[16].mxu1 %vm3960_vm3, %v27597_v59  ;;  %v29997_v59 = vld [vmem:[#allocation66_spill] sm:$0xff] }
 0x87e   : > { %23024 = vmatpush3.bf16.msra.mxu1 %v23021_v20  ;;  %22342 = vmatprep.mubr.msk.f32.mxu1 %vm3960_vm3, %v29981_v60  ;;  %v13453_v20 = vld [vmem:[#allocation3 + $0x154] sm:$0xff]  ;;  %v30021_v60 = vld [vmem:[#allocation100_spill] sm:$0xff] }
 0x881   : > { %22343 = vmatmul.mubr.msk.f32.gmra.mrb[18].mxu1 %vm3960_vm3, %v29982_v2 }
 0x882   : > { %22345 = vmatprep.mubr.msk.f32.mxu1 %vm3960_vm3, %v29983_v23 }
 0x885   : > { %22346 = vmatmul.mubr.msk.f32.gmra.mrb[20].mxu1 %vm3960_vm3, %v29984_v29  ;;  %v30022_v29 = vld [vmem:[#allocation101_spill] sm:$0xff] }
 0x886   : > { %22348 = vmatprep.mubr.msk.f32.mxu1 %vm3960_vm3, %v29985_v12 }
 0x889   : > { %22349 = vmatmul.mubr.msk.f32.gmra.mrb[22].mxu1 %vm3960_vm3, %v29986_v52 }
 0x88a   : > { %22351 = vmatprep.mubr.msk.f32.mxu1 %vm3960_vm3, %v29987_v53 }
 0x88d   : > { %22352 = vmatmul.mubr.msk.f32.gmra.mrb[24].mxu1 %vm3960_vm3, %v29988_v31 }
 0x88e   : > { %22354 = vmatprep.mubr.msk.f32.mxu1 %vm3960_vm3, %v29989_v43  ;;  %v30023_v43 = vld [vmem:[#allocation102_spill] sm:$0xff] }
 0x891   : > { %22355 = vmatmul.mubr.msk.f32.gmra.mrb[26].mxu1 %vm3960_vm3, %v29990_v17 }
 0x892   : > { %22357 = vmatprep.mubr.msk.f32.mxu1 %vm3960_vm3, %v29991_v33 }
 0x895   : > { %22358 = vmatmul.mubr.msk.f32.gmra.mrb[28].mxu1 %vm3960_vm3, %v29992_v24  ;;  %v30024_v24 = vld [vmem:[#allocation103_spill] sm:$0xff] }
 0x896   : > { %22360 = vmatprep.mubr.msk.f32.mxu1 %vm3960_vm3, %v29993_v26 }
 0x899   : > { %22361 = vmatmul.mubr.msk.f32.gmra.mrb[30].mxu1 %vm3960_vm3, %v29994_v51 }
 0x89a   : > { %22363 = vmatprep.mubr.msk.f32.mxu1 %vm3960_vm3, %v29995_v22 }
 0x89d   : > { %22364 = vmatmul.mubr.msk.f32.gmra.mrb[0].mxu1 %vm3960_vm3, %v29996_v14 }
 0x89e   : > { %22366 = vmatprep.mubr.msk.f32.mxu1 %vm3960_vm3, %v29997_v59  ;;  %v30025_v59 = vld [vmem:[#allocation104_spill] sm:$0xff] }
 0x8a1   : > { %22367 = vmatmul.mubr.msk.f32.gmra.mrb[2].mxu1 %vm3960_vm3, %v29998_v1 }
 0x8a2   : > { %22369 = vmatprep.mubr.msk.f32.mxu1 %vm3960_vm3, %v29999_v5 }
 0x8a5   : > { %22370 = vmatmul.mubr.msk.f32.gmra.mrb[4].mxu1 %vm3960_vm3, %v30000_v48  ;;  %v30026_v48 = vld [vmem:[#allocation105_spill] sm:$0xff] }
 0x8a6   : > { %22372 = vmatprep.mubr.msk.f32.mxu1 %vm3960_vm3, %v30001_v18 }
 0x8a9   : > { %22373 = vmatmul.mubr.msk.f32.gmra.mrb[6].mxu1 %vm3960_vm3, %v30002_v62 }
 0x8aa   : > { %22375 = vmatprep.mubr.msk.f32.mxu1 %vm3960_vm3, %v30003_v42 }
 0x8ad   : > { %22376 = vmatmul.mubr.msk.f32.gmra.mrb[8].mxu1 %vm3960_vm3, %v30004_v4 }
 0x8ae   : > { %22378 = vmatprep.mubr.msk.f32.mxu1 %vm3960_vm3, %v13071_v6  ;;  %v30027_v6 = vld [vmem:[#allocation106_spill] sm:$0xff] }
 0x8b1   : > { %22379 = vmatmul.mubr.msk.f32.gmra.mrb[10].mxu1 %vm3960_vm3, %v13072_v58 }
 0x8b2   : > { %22381 = vmatprep.mubr.msk.f32.mxu1 %vm3960_vm3, %v30005_v38 }
 0x8b5   : > { %22382 = vmatmul.mubr.msk.f32.gmra.mrb[12].mxu1 %vm3960_vm3, %v27705_v32  ;;  %v30009_v32 = vld [vmem:[#allocation78_spill] sm:$0xff] }
 0x8b6   : > { %22384 = vmatprep.mubr.msk.f32.mxu1 %vm3960_vm3, %v13075_v11  ;;  %v30028_v11 = vld [vmem:[#allocation107_spill] sm:$0xff] }
 0x8b9   : > { %22385 = vmatmul.mubr.msk.f32.gmra.mrb[14].mxu1 %vm3960_vm3, %v13076_v21 }
 0x8ba   : > { %22391 = vmatprep.mubr.msk.f32.mxu1 %vm3960_vm3, %v27719_v10  ;;  %v30012_v10 = vld [vmem:[#allocation83_spill] sm:$0xff] }
 0x8bd   : > { %22392 = vmatmul.mubr.msk.f32.vlgmr.msra.gmra.mrb[16].mxu1 %vm3960_vm3, %v27725_v0  ;;  %v30013_v0 = vld [vmem:[#allocation90_spill] sm:$0xff] }
 0x8be   : > { %22394 = vmatprep.mubr.msk.f32.mxu1 %vm3960_vm3, %v30006_v39 }
 0x8c1   : > { %22395 = vmatmul.mubr.msk.f32.gmra.mrb[18].mxu1 %vm3960_vm3, %v30007_v28 }
 0x8c2   : > { %22397 = vmatprep.mubr.msk.f32.mxu1 %vm3960_vm3, %v30008_v16 }
 0x8c5   : > { %22398 = vmatmul.mubr.msk.f32.gmra.mrb[20].mxu1 %vm3960_vm3, %v30009_v32  ;;  %v30029_v32 = vld [vmem:[#allocation108_spill] sm:$0xff] }
 0x8c6   : > { %22400 = vmatprep.mubr.msk.f32.mxu1 %vm3960_vm3, %v30010_v19 }
 0x8c9   : > { %22401 = vmatmul.mubr.msk.f32.gmra.mrb[22].mxu1 %vm3960_vm3, %v30011_v35 }
 0x8ca   : > { %22403 = vmatprep.mubr.msk.f32.mxu1 %vm3960_vm3, %v30012_v10  ;;  %v30030_v10 = vld [vmem:[#allocation109_spill] sm:$0xff] }
 0x8cd   : > { %22404 = vmatmul.mubr.msk.f32.gmra.mrb[24].mxu1 %vm3960_vm3, %v30013_v0 }
 0x8ce   : > { %22406 = vmatprep.mubr.msk.f32.mxu1 %vm3960_vm3, %v30014_v15 }
 0x8d1   : > { %22407 = vmatmul.mubr.msk.f32.gmra.mrb[26].mxu1 %vm3960_vm3, %v30015_v3 }
 0x8d2   : > { %22409 = vmatprep.mubr.msk.f32.mxu1 %vm3960_vm3, %v30016_v50 }
 0x8d5   : > { %22410 = vmatmul.mubr.msk.f32.gmra.mrb[28].mxu1 %vm3960_vm3, %v30017_v55  ;;  %v30031_v55 = vld [vmem:[#allocation110_spill] sm:$0xff] }
 0x8d6   : > { %22412 = vmatprep.mubr.msk.f32.mxu1 %vm3960_vm3, %v27777_v13  ;;  %v13455_v13 = vld [vmem:[#allocation3 + $0x16c] sm:$0xff] }
 0x8d9   : > { %22413 = vmatmul.mubr.msk.f32.gmra.mrb[30].mxu1 %vm3960_vm3, %v27781_v63  ;;  %v13456_v63 = vld [vmem:[#allocation3 + $0x174] sm:$0xff] }
 0x8da   : > { %22415 = vmatprep.mubr.msk.f32.mxu1 %vm3960_vm3, %v27785_v44  ;;  %v13459_v44 = vld [vmem:[#allocation3 + $0x19c] sm:$0xff] }
 0x8dd   : > { %22416 = vmatmul.mubr.msk.f32.gmra.mrb[0].mxu1 %vm3960_vm3, %v30018_v25 }
 0x8de   : > { %22418 = vmatprep.mubr.msk.f32.mxu1 %vm3960_vm3, %v30019_v49 }
 0x8e1   : > { %22419 = vmatmul.mubr.msk.f32.gmra.mrb[2].mxu1 %vm3960_vm3, %v13452_v61  ;;  %v30032_v61 = vld [vmem:[#allocation111_spill] sm:$0xff] }
 0x8e2   : > { %22421 = vmatprep.mubr.msk.f32.mxu1 %vm3960_vm3, %v13453_v20 }
 0x8e5   : > { %22422 = vmatmul.mubr.msk.f32.gmra.mrb[4].mxu1 %vm3960_vm3, %v13454_v40 }
 0x8e6   : > { %22424 = vmatprep.mubr.msk.f32.mxu1 %vm3960_vm3, %v13455_v13 }
 0x8e9   : > { %22425 = vmatmul.mubr.msk.f32.gmra.mrb[6].mxu1 %vm3960_vm3, %v13456_v63 }
 0x8ea   : > { %22427 = vmatprep.mubr.msk.f32.mxu1 %vm3960_vm3, %v27807_v9  ;;  %v18911_v9 = vld [vmem:[%s29406_s5 + $0x18] sm:$0xff] }
 0x8ed   : > { %22428 = vmatmul.mubr.msk.f32.gmra.mrb[8].mxu1 %vm3960_vm3, %v27811_v36  ;;  %v18912_v36 = vld [vmem:[%s29406_s5 + $0x20] sm:$0xff] }
 0x8ee   : > { %22430 = vmatprep.mubr.msk.f32.mxu1 %vm3960_vm3, %v13459_v44  ;;  %v23025_v46 = vpack.c.bf16 %v18912_v36, %v18911_v9  ;;  %v30033_v44 = vld [vmem:[#allocation112_spill] sm:$0xff] }
 0x8f0   : > { %23026 = vmatprep.subr.bf16.mxu0 %v23025_v46 }
 0x8f1   : > { %22431 = vmatmul.mubr.msk.f32.gmra.mrb[10].mxu1 %vm3960_vm3, %v13460_v34  ;;  %23028 = vmatpush3.bf16.msra.mxu0 %v23025_v46 }
 0x8f2   : > { %22433 = vmatprep.mubr.msk.f32.mxu1 %vm3960_vm3, %v27817_v8  ;;  %v18913_v8 = vld [vmem:[%s29406_s5 + $0x28] sm:$0xff] }
 0x8f3   : > { %22443 = vmatprep.subr.mxu0 %v18913_v8 }
 0x8f5   : > { %22434 = vmatmul.mubr.msk.f32.gmra.mrb[12].mxu1 %vm3960_vm3, %v27823_v37  ;;  %22444 = vmatpush3.msra.mxu0 %v18913_v8  ;;  %v30020_v37 = vmov 0.0  }
 0x8f6   : > { %22436 = vmatprep.mubr.msk.f32.mxu1 %vm3960_vm3, %v13463_v47  ;;  %13936 = vst.msk [vmem:[#allocation4 + $0x20] sm:$0xff] %vm13930_vm5, %v30020_v37  ;;  %13931 = vst.msk [vmem:[#allocation4] sm:$0xff] %vm13930_vm5, %v30020_v37  ;;  %23030 = vmatprep.subr.bf16.mxu0 %v23029_v7 }
 0x8f7   : > { %13937 = vst.msk [vmem:[#allocation4 + $0x28] sm:$0x3] %vm13933_vm6, %v30020_v37  ;;  %13934 = vst.msk [vmem:[#allocation4 + $0x10] sm:$0x3] %vm13933_vm6, %v30020_v37 }
 0x8f8   : > { %13932 = vst.msk [vmem:[#allocation4 + $0x8] sm:$0xff] %vm13930_vm5, %v30020_v37  ;;  %13935 = vst.msk [vmem:[#allocation4 + $0x18] sm:$0xff] %vm13930_vm5, %v30020_v37 }
 0x8f9   : > { %22437 = vmatmul.mubr.msk.f32.gmra.mrb[14].mxu1 %vm3960_vm3, %v13464_v45  ;;  %13938 = vst.msk [vmem:[#allocation4 + $0x30] sm:$0xff] %vm13930_vm5, %v30020_v37  ;;  %13939 = vst.msk [vmem:[#allocation4 + $0x38] sm:$0xff] %vm13930_vm5, %v30020_v37  ;;  %v30034_v45 = vld [vmem:[#allocation113_spill] sm:$0xff] }
 0x8fa   : > { %13940 = vst.msk [vmem:[#allocation4 + $0x40] sm:$0x3] %vm13933_vm6, %v30020_v37  ;;  %13943 = vst.msk [vmem:[#allocation4 + $0x58] sm:$0x3] %vm13933_vm6, %v30020_v37 }
 0x8fb   : > { %13941 = vst.msk [vmem:[#allocation4 + $0x48] sm:$0xff] %vm13930_vm5, %v30020_v37  ;;  %13942 = vst.msk [vmem:[#allocation4 + $0x50] sm:$0xff] %vm13930_vm5, %v30020_v37 }
 0x8fc   : > { %13944 = vst.msk [vmem:[#allocation4 + $0x60] sm:$0xff] %vm13930_vm5, %v30020_v37  ;;  %13945 = vst.msk [vmem:[#allocation4 + $0x68] sm:$0xff] %vm13930_vm5, %v30020_v37 }
 0x8fd   : > { %13946 = vst.msk [vmem:[#allocation4 + $0x70] sm:$0x3] %vm13933_vm6, %v30020_v37  ;;  %13949 = vst.msk [vmem:[#allocation4 + $0x88] sm:$0x3] %vm13933_vm6, %v30020_v37 }
 0x8fe   : > { %13947 = vst.msk [vmem:[#allocation4 + $0x78] sm:$0xff] %vm13930_vm5, %v30020_v37  ;;  %13948 = vst.msk [vmem:[#allocation4 + $0x80] sm:$0xff] %vm13930_vm5, %v30020_v37 }
 0x8ff   : > { %13950 = vst.msk [vmem:[#allocation4 + $0x90] sm:$0xff] %vm13930_vm5, %v30020_v37  ;;  %13951 = vst.msk [vmem:[#allocation4 + $0x98] sm:$0xff] %vm13930_vm5, %v30020_v37  ;;  %v14182_v41 = vld [vmem:[#allocation4 + $0x1] sm:$0xff]  ;;  %v14183_v54 = vld [vmem:[#allocation4 + $0x9] sm:$0xff] }
 0x900   : > { %13952 = vst.msk [vmem:[#allocation4 + $0xa0] sm:$0x3] %vm13933_vm6, %v30020_v37  ;;  %13955 = vst.msk [vmem:[#allocation4 + $0xb8] sm:$0x3] %vm13933_vm6, %v30020_v37  ;;  %22445 = vmatprep.mubr.msk.f32.mxu0 %vm13930_vm5, %v14182_v41  ;;  %v14181_v41 = vld [vmem:[%s29406_s5 + $0x10] sm:$0xff] }
 0x901   : > { %13953 = vst.msk [vmem:[#allocation4 + $0xa8] sm:$0xff] %vm13930_vm5, %v30020_v37  ;;  %13954 = vst.msk [vmem:[#allocation4 + $0xb0] sm:$0xff] %vm13930_vm5, %v30020_v37  ;;  %22446 = vmatmul.mubr.msk.f32.vlgmr.msra.gmra.mrb[64].mxu0 %vm13930_vm5, %v14183_v54 }
 0x902   : > { %13956 = vst.msk [vmem:[#allocation4 + $0xc0] sm:$0xff] %vm13930_vm5, %v30020_v37  ;;  %13957 = vst.msk [vmem:[#allocation4 + $0xc8] sm:$0xff] %vm13930_vm5, %v30020_v37  ;;  %23032 = vmatpush3.bf16.msra.mxu0 %v23029_v7  ;;  %v30036_v7 = vld [vmem:[#allocation115_spill] sm:$0xff] }
 0x903   : > { %13958 = vst.msk [vmem:[#allocation4 + $0xd0] sm:$0x3] %vm13933_vm6, %v30020_v37  ;;  %13961 = vst.msk [vmem:[#allocation4 + $0xe8] sm:$0x3] %vm13933_vm6, %v30020_v37  ;;  %22497 = vmatprep.subr.mxu0 %v14181_v41 }
 0x904   : > { %13959 = vst.msk [vmem:[#allocation4 + $0xd8] sm:$0xff] %vm13930_vm5, %v30020_v37  ;;  %13960 = vst.msk [vmem:[#allocation4 + $0xe0] sm:$0xff] %vm13930_vm5, %v30020_v37 }
 0x905   : > { %13962 = vst.msk [vmem:[#allocation4 + $0xf0] sm:$0xff] %vm13930_vm5, %v30020_v37  ;;  %13963 = vst.msk [vmem:[#allocation4 + $0xf8] sm:$0xff] %vm13930_vm5, %v30020_v37 }
 0x906   : > { %13964 = vst.msk [vmem:[#allocation4 + $0x100] sm:$0x3] %vm13933_vm6, %v30020_v37  ;;  %13967 = vst.msk [vmem:[#allocation4 + $0x118] sm:$0x3] %vm13933_vm6, %v30020_v37  ;;  %22498 = vmatpush3.msra.mxu0 %v14181_v41  ;;  %v30048_v41 = vld [vmem:[#allocation95_spill] sm:$0xff] }
 0x907   : > { %13965 = vst.msk [vmem:[#allocation4 + $0x108] sm:$0xff] %vm13930_vm5, %v30020_v37  ;;  %13966 = vst.msk [vmem:[#allocation4 + $0x110] sm:$0xff] %vm13930_vm5, %v30020_v37 }
 0x908   : > { %13968 = vst.msk [vmem:[#allocation4 + $0x120] sm:$0xff] %vm13930_vm5, %v30020_v37  ;;  %13969 = vst.msk [vmem:[#allocation4 + $0x128] sm:$0xff] %vm13930_vm5, %v30020_v37 }
 0x909   : > { %13970 = vst.msk [vmem:[#allocation4 + $0x130] sm:$0x3] %vm13933_vm6, %v30020_v37  ;;  %13973 = vst.msk [vmem:[#allocation4 + $0x148] sm:$0x3] %vm13933_vm6, %v30020_v37 }
 0x90a   : > { %13971 = vst.msk [vmem:[#allocation4 + $0x138] sm:$0xff] %vm13930_vm5, %v30020_v37  ;;  %13972 = vst.msk [vmem:[#allocation4 + $0x140] sm:$0xff] %vm13930_vm5, %v30020_v37 }
 0x90b   : > { %13974 = vst.msk [vmem:[#allocation4 + $0x150] sm:$0xff] %vm13930_vm5, %v30020_v37  ;;  %13975 = vst.msk [vmem:[#allocation4 + $0x158] sm:$0xff] %vm13930_vm5, %v30020_v37 }
 0x90c   : > { %13976 = vst.msk [vmem:[#allocation4 + $0x160] sm:$0x3] %vm13933_vm6, %v30020_v37  ;;  %13979 = vst.msk [vmem:[#allocation4 + $0x178] sm:$0x3] %vm13933_vm6, %v30020_v37 }
 0x90d   : > { %13977 = vst.msk [vmem:[#allocation4 + $0x168] sm:$0xff] %vm13930_vm5, %v30020_v37  ;;  %13978 = vst.msk [vmem:[#allocation4 + $0x170] sm:$0xff] %vm13930_vm5, %v30020_v37 }
 0x90e   : > { %13980 = vst.msk [vmem:[#allocation4 + $0x180] sm:$0xff] %vm13930_vm5, %v30020_v37  ;;  %13981 = vst.msk [vmem:[#allocation4 + $0x188] sm:$0xff] %vm13930_vm5, %v30020_v37 }
 0x90f   : > { %13982 = vst.msk [vmem:[#allocation4 + $0x190] sm:$0x3] %vm13933_vm6, %v30020_v37  ;;  %13985 = vst.msk [vmem:[#allocation4 + $0x1a8] sm:$0x3] %vm13933_vm6, %v30020_v37 }
 0x910   : > { %13983 = vst.msk [vmem:[#allocation4 + $0x198] sm:$0xff] %vm13930_vm5, %v30020_v37  ;;  %13984 = vst.msk [vmem:[#allocation4 + $0x1a0] sm:$0xff] %vm13930_vm5, %v30020_v37  ;;  %v30035_v37 = vld [vmem:[#allocation114_spill] sm:$0xff] }
 0x990   : > { %v22393_v57 = vpop.f32.mrb[16].mxu1 }
 0x991   : > { %v23063_v2 = vadd.f32 %v22393_v57, %v30021_v60  ;;  %v13630_v23 = vpop.f32.mrb[17].mxu1 }
 0x992   : > { %v23064_v12 = vadd.f32 %v13630_v23, %v30022_v29  ;;  %v30037_v23 = vld [vmem:[#allocation81_spill] sm:$0xff] }
 0x993   : > { %v28244_v52 = vadd.f32 %v23063_v2, %v28238_v27 }
 0x994   : > { %v28247_v53 = vadd.f32 %v23064_v12, %v28238_v27  ;;  %v22396_v31 = vpop.f32.mrb[18].mxu1 }
 0x995   : > { %v23065_v17 = vadd.f32 %v22396_v31, %v30023_v43  ;;  %14020 = vrot.lane.b32.xlu1 %v28244_v52, %s24365_s14  ;;  %v13640_v33 = vpop.f32.mrb[19].mxu1  ;;  %v30038_v31 = vld [vmem:[#allocation82_spill] sm:$0xff] }
 0x996   : > { %v23066_v26 = vadd.f32 %v13640_v33, %v30024_v24  ;;  %14018 = vrot.lane.b32.xlu0 %v28247_v53, %s24365_s14 }
 0x997   : > { %v28256_v51 = vadd.f32 %v23065_v17, %v28238_v27 }
 0x998   : > { %v28259_v22 = vadd.f32 %v23066_v26, %v28238_v27  ;;  %v22399_v14 = vpop.f32.mrb[20].mxu1  ;;  %v30039_v26 = vld [vmem:[#allocation84_spill] sm:$0xff] }
 0x999   : > { %v23067_v1 = vadd.f32 %v22399_v14, %v30025_v59  ;;  %14024 = vrot.lane.b32.xlu1 %v28256_v51, %s24365_s14  ;;  %v13650_v5 = vpop.f32.mrb[21].mxu1 }
 0x99a   : > { %v23068_v18 = vadd.f32 %v13650_v5, %v30026_v48  ;;  %14022 = vrot.lane.b32.xlu0 %v28259_v22, %s24365_s14 }
 0x99b   : > { %v28268_v62 = vadd.f32 %v23067_v1, %v28238_v27  ;;  %v30040_v1 = vld [vmem:[#allocation85_spill] sm:$0xff] }
 0x99c   : > { %v28271_v42 = vadd.f32 %v23068_v18, %v28238_v27  ;;  %v22402_v4 = vpop.f32.mrb[22].mxu1 }
 0x99d   : > { %v23069_v58 = vadd.f32 %v22402_v4, %v30027_v6  ;;  %14028 = vrot.lane.b32.xlu1 %v28268_v62, %s24365_s14  ;;  %v13660_v38 = vpop.f32.mrb[23].mxu1  ;;  %v30041_v6 = vld [vmem:[#allocation86_spill] sm:$0xff] }
 0x99e   : > { %v23070_v21 = vadd.f32 %v13660_v38, %v30028_v11  ;;  %14026 = vrot.lane.b32.xlu0 %v28271_v42, %s24365_s14  ;;  %v30042_v11 = vld [vmem:[#allocation87_spill] sm:$0xff] }
 0x99f   : > { %v28280_v39 = vadd.f32 %v23069_v58, %v28238_v27 }
 0x9a0   : > { %v28283_v28 = vadd.f32 %v23070_v21, %v28238_v27  ;;  %v22405_v16 = vpop.f32.mrb[24].mxu1 }
 0x9a1   : > { %v23071_v19 = vadd.f32 %v22405_v16, %v30029_v32  ;;  %14032 = vrot.lane.b32.xlu1 %v28280_v39, %s24365_s14  ;;  %v13670_v35 = vpop.f32.mrb[25].mxu1 }
 0x9a2   : > { %v23072_v0 = vadd.f32 %v13670_v35, %v30030_v10  ;;  %14030 = vrot.lane.b32.xlu0 %v28283_v28, %s24365_s14  ;;  %v30043_v35 = vld [vmem:[#allocation88_spill] sm:$0xff] }
 0x9a3   : > { %v28292_v15 = vadd.f32 %v23071_v19, %v28238_v27 }
 0x9a4   : > { %v28295_v3 = vadd.f32 %v23072_v0, %v28238_v27  ;;  %v22408_v50 = vpop.f32.mrb[26].mxu1 }
 0x9a5   : > { %v23073_v25 = vadd.f32 %v22408_v50, %v30031_v55  ;;  %14036 = vrot.lane.b32.xlu1 %v28292_v15, %s24365_s14  ;;  %v13680_v49 = vpop.f32.mrb[27].mxu1  ;;  %v30044_v50 = vld [vmem:[#allocation89_spill] sm:$0xff] }
 0x9a6   : > { %v23074_v20 = vadd.f32 %v13680_v49, %v30032_v61  ;;  %14034 = vrot.lane.b32.xlu0 %v28295_v3, %s24365_s14 }
 0x9a7   : > { %v28304_v40 = vadd.f32 %v23073_v25, %v28238_v27 }
 0x9a8   : > { %v28307_v13 = vadd.f32 %v23074_v20, %v28238_v27  ;;  %v22411_v63 = vpop.f32.mrb[28].mxu1  ;;  %v30045_v20 = vld [vmem:[#allocation91_spill] sm:$0xff] }
 0x9a9   : > { %v23075_v34 = vadd.f32 %v22411_v63, %v30033_v44  ;;  %14040 = vrot.lane.b32.xlu1 %v28304_v40, %s24365_s14  ;;  %v13690_v47 = vpop.f32.mrb[29].mxu1 }
 0x9aa   : > { %v23076_v9 = vadd.f32 %v13690_v47, %v30034_v45  ;;  %14038 = vrot.lane.b32.xlu0 %v28307_v13, %s24365_s14 }
 0x9ab   : > { %v28316_v36 = vadd.f32 %v23075_v34, %v28238_v27  ;;  %v30046_v34 = vld [vmem:[#allocation92_spill] sm:$0xff] }
 0x9ac   : > { %v28319_v46 = vadd.f32 %v23076_v9, %v28238_v27  ;;  %v22414_v8 = vpop.f32.mrb[30].mxu1 }
 0x9ad   : > { %v23077_v56 = vadd.f32 %v22414_v8, %v30035_v37  ;;  %14044 = vrot.lane.b32.xlu1 %v28316_v36, %s24365_s14  ;;  %v13700_v30 = vpop.f32.mrb[31].mxu1  ;;  %v30047_v37 = vld [vmem:[#allocation94_spill] sm:$0xff] }
 0x9ae   : > { %v23078_v54 = vadd.f32 %v13700_v30, %v30036_v7  ;;  %14042 = vrot.lane.b32.xlu0 %v28319_v46, %s24365_s14 }
 0x9af   : > { %v28331_v57 = vadd.f32 %v23077_v56, %v28238_v27 }
 0x9b0   : > { %v28334_v60 = vadd.f32 %v23078_v54, %v28238_v27  ;;  %v22417_v2 = vpop.f32.mrb[0].mxu1 }
 0x9b1   : > { %v23079_v29 = vadd.f32 %v22417_v2, %v30037_v23  ;;  %14048 = vrot.lane.b32.xlu1 %v28331_v57, %s24365_s14  ;;  %v13710_v12 = vpop.f32.mrb[1].mxu1 }
 0x9b2   : > { %v23080_v43 = vadd.f32 %v13710_v12, %v30038_v31  ;;  %14046 = vrot.lane.b32.xlu0 %v28334_v60, %s24365_s14 }
 0x9b3   : > { %v28343_v17 = vadd.f32 %v23079_v29, %v28238_v27  ;;  %v30049_v29 = vld [vmem:[#allocation96_spill] sm:$0xff] }
 0x9b4   : > { %v28346_v33 = vadd.f32 %v23080_v43, %v28238_v27  ;;  %v22420_v24 = vpop.f32.mrb[2].mxu1  ;;  %v30050_v43 = vld [vmem:[#allocation97_spill] sm:$0xff] }
 0x9b5   : > { %v23081_v14 = vadd.f32 %v22420_v24, %v30039_v26  ;;  %14052 = vrot.lane.b32.xlu1 %v28343_v17, %s24365_s14  ;;  %v13720_v59 = vpop.f32.mrb[3].mxu1 }
 0x9b6   : > { %v23082_v5 = vadd.f32 %v13720_v59, %v30040_v1  ;;  %14050 = vrot.lane.b32.xlu0 %v28346_v33, %s24365_s14  ;;  %v18978_v1 = vld [vmem:[%s29406_s5 + $0x30] sm:$0xff] }
 0x9b7   : > { %v28355_v48 = vadd.f32 %v23081_v14, %v28238_v27 }
 0x9b8   : > { %v28358_v18 = vadd.f32 %v23082_v5, %v28238_v27  ;;  %v22423_v4 = vpop.f32.mrb[4].mxu1  ;;  %v18979_v5 = vld [vmem:[%s29406_s5 + $0x38] sm:$0xff] }
 0x9b9   : > { %v23083_v58 = vadd.f32 %v22423_v4, %v30041_v6  ;;  %14056 = vrot.lane.b32.xlu1 %v28355_v48, %s24365_s14  ;;  %v13730_v38 = vpop.f32.mrb[5].mxu1  ;;  %v30051_v4 = vld [vmem:[#allocation98_spill] sm:$0xff] }
 0x9ba   : > { %v23084_v21 = vadd.f32 %v13730_v38, %v30042_v11  ;;  %14054 = vrot.lane.b32.xlu0 %v28358_v18, %s24365_s14  ;;  %v28429_v38 = vpack.c.bf16 %v18979_v5, %v18978_v1  ;;  %v30052_v11 = vld [vmem:[#allocation99_spill] sm:$0xff] }
 0x9bb   : > { %v28367_v16 = vadd.f32 %v23083_v58, %v28238_v27 }
 0x9bc   : > { %v28370_v32 = vadd.f32 %v23084_v21, %v28238_v27  ;;  %v22426_v19 = vpop.f32.mrb[6].mxu1  ;;  %23034 = vmatprep.subr.bf16.mxu0 %v28429_v38 }
 0x9bd   : > { %v23085_v10 = vadd.f32 %v22426_v19, %v30043_v35  ;;  %14060 = vrot.lane.b32.xlu1 %v28367_v16, %s24365_s14  ;;  %v13740_v0 = vpop.f32.mrb[7].mxu1 }
 0x9be   : > { %v23086_v55 = vadd.f32 %v13740_v0, %v30044_v50  ;;  %14058 = vrot.lane.b32.xlu0 %v28370_v32, %s24365_s14  ;;  %v30054_v0 = vld [vmem:[#allocation14_spill] sm:$0xff]  ;;  %v30055_v50 = vld [vmem:[#allocation15_spill] sm:$0xff] }
 0x9bf   : > { %v28379_v25 = vadd.f32 %v23085_v10, %v28238_v27  ;;  %v30053_v10 = vld [vmem:[#allocation13_spill] sm:$0xff] }
 0x9c0   : > { %v28382_v49 = vadd.f32 %v23086_v55, %v28238_v27  ;;  %v22429_v61 = vpop.f32.mrb[8].mxu1  ;;  %v30056_v55 = vld [vmem:[#allocation28_spill] sm:$0xff] }
 0x9c1   : > { %v23087_v63 = vadd.f32 %v22429_v61, %v30045_v20  ;;  %14064 = vrot.lane.b32.xlu1 %v28379_v25, %s24365_s14  ;;  %v13750_v44 = vpop.f32.mrb[9].mxu1  ;;  %v30057_v61 = vld [vmem:[#allocation16_spill] sm:$0xff]  ;;  %v30058_v20 = vld [vmem:[#allocation29_spill] sm:$0xff] }
 0x9c2   : > { %v23088_v47 = vadd.f32 %v13750_v44, %v30046_v34  ;;  %14062 = vrot.lane.b32.xlu0 %v28382_v49, %s24365_s14  ;;  %v30061_v44 = vld [vmem:[#allocation18_spill] sm:$0xff]  ;;  %v30062_v34 = vld [vmem:[#allocation33_spill] sm:$0xff] }
 0x9c3   : > { %v28391_v45 = vadd.f32 %v23087_v63, %v28238_v27  ;;  %v30060_v63 = vld [vmem:[#allocation31_spill] sm:$0xff] }
 0x9c4   : > { %v28394_v9 = vadd.f32 %v23088_v47, %v28238_v27  ;;  %v22432_v8 = vpop.f32.mrb[10].mxu1 }
 0x9c5   : > { %v23089_v56 = vadd.f32 %v22432_v8, %v30047_v37  ;;  %14068 = vrot.lane.b32.xlu1 %v28391_v45, %s24365_s14  ;;  %v13760_v30 = vpop.f32.mrb[11].mxu1  ;;  %v30063_v37 = vld [vmem:[#allocation19_spill] sm:$0xff] }
 0x9c6   : > { %v23090_v7 = vadd.f32 %v13760_v30, %v30048_v41  ;;  %14066 = vrot.lane.b32.xlu0 %v28394_v9, %s24365_s14 }
 0x9c7   : > { %v28403_v54 = vadd.f32 %v23089_v56, %v28238_v27  ;;  %v30064_v56 = vld [vmem:[#allocation5_spill] sm:$0xff] }
 0x9c8   : > { %v28406_v2 = vadd.f32 %v23090_v7, %v28238_v27  ;;  %v22435_v23 = vpop.f32.mrb[12].mxu1  ;;  %v30065_v7 = vld [vmem:[#allocation20_spill] sm:$0xff] }
 0x9c9   : > { %v23091_v12 = vadd.f32 %v22435_v23, %v30049_v29  ;;  %14072 = vrot.lane.b32.xlu1 %v28403_v54, %s24365_s14  ;;  %v13770_v31 = vpop.f32.mrb[13].mxu1  ;;  %v30066_v23 = vld [vmem:[#allocation6_spill] sm:$0xff] }
 0x9ca   : > { %v23092_v24 = vadd.f32 %v13770_v31, %v30050_v43  ;;  %14070 = vrot.lane.b32.xlu0 %v28406_v2, %s24365_s14  ;;  %v30067_v31 = vld [vmem:[#allocation21_spill] sm:$0xff] }
 0x9cb   : > { %v28415_v26 = vadd.f32 %v23091_v12, %v28238_v27 }
 0x9cc   : > { %v28418_v14 = vadd.f32 %v23092_v24, %v28238_v27  ;;  %v22438_v59 = vpop.f32.mrb[14].mxu1 }
 0x9cd   : > { %v23093_v6 = vadd.f32 %v22438_v59, %v30051_v4  ;;  %14076 = vrot.lane.b32.xlu1 %v28415_v26, %s24365_s14  ;;  %v13780_v58 = vpop.f32.mrb[15].mxu1  ;;  %v30068_v59 = vld [vmem:[#allocation7_spill] sm:$0xff]  ;;  %v30069_v4 = vld [vmem:[#allocation22_spill] sm:$0xff] }
 0x9ce   : > { %v23094_v21 = vadd.f32 %v13780_v58, %v30052_v11  ;;  %14074 = vrot.lane.b32.xlu0 %v28418_v14, %s24365_s14  ;;  %v30070_v11 = vld [vmem:[#allocation8_spill] sm:$0xff] }
 0x9cf   : > { %v28435_v19 = vadd.f32 %v23093_v6, %v28238_v27 }
 0x9d0   : > { %v28439_v35 = vadd.f32 %v23094_v21, %v28238_v27  ;;  %v30059_v27 = vld [vmem:[#allocation17_spill] sm:$0xff] }
 0x9d1   : > { %14080 = vrot.lane.b32.xlu1 %v28435_v19, %s24365_s14 }
 0x9d2   : > { %14078 = vrot.lane.b32.xlu0 %v28439_v35, %s24365_s14 }
 0x9f0   : > { %3886 = vxpose.xlu0.b32.start [1/16] (narrow) %v30053_v10, 40 }
 0x9f4   : > { %3887 = vxpose.xlu0.b32.cont [2/16] (narrow) %v30054_v0, 40  ;;  %v30071_v0 = vld [vmem:[#allocation23_spill] sm:$0xff] }
 0x9f8   : > { %3888 = vxpose.xlu0.b32.cont [3/16] (narrow) %v30055_v50, 40 }
 0x9fa   : > { %3918 = vxpose.xlu1.b32.start [1/16] (narrow) %v30056_v55, 40 }
 0x9fc   : > { %3889 = vxpose.xlu0.b32.cont [4/16] (narrow) %v30057_v61, 40  ;;  %v30072_v61 = vld [vmem:[#allocation35_spill] sm:$0xff] }
 0x9fe   : > { %3919 = vxpose.xlu1.b32.cont [2/16] (narrow) %v30058_v20, 40 }
 0xa00   : > { %3890 = vxpose.xlu0.b32.cont [5/16] (narrow) %v30059_v27, 40 }
 0xa02   : > { %3920 = vxpose.xlu1.b32.cont [3/16] (narrow) %v30060_v63, 40  ;;  %v30073_v63 = vld [vmem:[#allocation25_spill] sm:$0xff] }
 0xa04   : > { %3891 = vxpose.xlu0.b32.cont [6/16] (narrow) %v30061_v44, 40 }
 0xa06   : > { %3921 = vxpose.xlu1.b32.cont [4/16] (narrow) %v30062_v34, 40 }
 0xa07   : > { %v14021_v47 = vpop.permute.xlu1 %14020 }
 0xa08   : > { %14116 = vst.msk [vmem:[#allocation4 + $0x21] sm:$0xff] %vm13930_vm5, %v14021_v47  ;;  %v14019_v8 = vpop.permute.xlu0 %14018  ;;  %3892 = vxpose.xlu0.b32.cont [7/16] (narrow) %v30063_v37, 40  ;;  %v30074_v47 = vld [vmem:[#allocation36_spill] sm:$0xff] }
 0xa09   : > { %14115 = vst.msk [vmem:[#allocation4 + $0x19] sm:$0xff] %vm13930_vm5, %v14019_v8 }
 0xa0a   : > { %3922 = vxpose.xlu1.b32.cont [5/16] (narrow) %v30064_v56, 40  ;;  %v30075_v56 = vld [vmem:[#allocation9_spill] sm:$0xff] }
 0xa0b   : > { %v14025_v30 = vpop.permute.xlu1 %14024 }
 0xa0c   : > { %14118 = vst.msk [vmem:[#allocation4 + $0x39] sm:$0xff] %vm13930_vm5, %v14025_v30  ;;  %v14023_v41 = vpop.permute.xlu0 %14022  ;;  %3893 = vxpose.xlu0.b32.cont [8/16] (narrow) %v30065_v7, 40  ;;  %v30076_v7 = vld [vmem:[#allocation11_spill] sm:$0xff] }
 0xa0d   : > { %14117 = vst.msk [vmem:[#allocation4 + $0x31] sm:$0xff] %vm13930_vm5, %v14023_v41 }
 0xa0e   : > { %3923 = vxpose.xlu1.b32.cont [6/16] (narrow) %v30066_v23, 40 }
 0xa0f   : > { %v14029_v29 = vpop.permute.xlu1 %14028  ;;  %v28470_v24 = vld [vmem:[#allocation4 + $0x21] sm:$0xff] }
 0xa10   : > { %14120 = vst.msk [vmem:[#allocation4 + $0x51] sm:$0xff] %vm13930_vm5, %v14029_v29  ;;  %v14027_v12 = vpop.permute.xlu0 %14026  ;;  %3894 = vxpose.xlu0.b32.cont [9/16] (narrow) %v30067_v31, 40  ;;  %v28465_v43 = vld [vmem:[#allocation4 + $0x19] sm:$0xff] }
 0xa11   : > { %14119 = vst.msk [vmem:[#allocation4 + $0x49] sm:$0xff] %vm13930_vm5, %v14027_v12  ;;  %22448 = vmatprep.mubr.msk.f32.mxu0 %vm13930_vm5, %v28465_v43  ;;  %v30077_v12 = vld [vmem:[#allocation24_spill] sm:$0xff] }
 0xa12   : > { %22449 = vmatmul.mubr.msk.f32.gmra.mrb[66].mxu0 %vm13930_vm5, %v28470_v24  ;;  %3924 = vxpose.xlu1.b32.cont [7/16] (narrow) %v30068_v59, 40 }
 0xa13   : > { %v14033_v1 = vpop.permute.xlu1 %14032  ;;  %v28482_v58 = vld [vmem:[#allocation4 + $0x39] sm:$0xff] }
 0xa14   : > { %14122 = vst.msk [vmem:[#allocation4 + $0x69] sm:$0xff] %vm13930_vm5, %v14033_v1  ;;  %v14031_v5 = vpop.permute.xlu0 %14030  ;;  %3895 = vxpose.xlu0.b32.cont [10/16] (narrow) %v30069_v4, 40  ;;  %v28477_v6 = vld [vmem:[#allocation4 + $0x31] sm:$0xff]  ;;  %v30078_v1 = vld [vmem:[#allocation12_spill] sm:$0xff] }
 0xa15   : > { %14121 = vst.msk [vmem:[#allocation4 + $0x61] sm:$0xff] %vm13930_vm5, %v14031_v5  ;;  %22451 = vmatprep.mubr.msk.f32.mxu0 %vm13930_vm5, %v28477_v6 }
 0xa16   : > { %22452 = vmatmul.mubr.msk.f32.gmra.mrb[68].mxu0 %vm13930_vm5, %v28482_v58  ;;  %3925 = vxpose.xlu1.b32.cont [8/16] (narrow) %v30070_v11, 40  ;;  %v30079_v11 = vld [vmem:[#allocation26_spill] sm:$0xff] }
 0xa17   : > { %v14037_v21 = vpop.permute.xlu1 %14036  ;;  %v28494_v55 = vld [vmem:[#allocation4 + $0x51] sm:$0xff] }
 0xa18   : > { %14124 = vst.msk [vmem:[#allocation4 + $0x81] sm:$0xff] %vm13930_vm5, %v14037_v21  ;;  %v14035_v10 = vpop.permute.xlu0 %14034  ;;  %3896 = vxpose.xlu0.b32.cont [11/16] (narrow) %v30071_v0, 40  ;;  %v28489_v50 = vld [vmem:[#allocation4 + $0x49] sm:$0xff]  ;;  %v30080_v0 = vld [vmem:[#allocation27_spill] sm:$0xff] }
 0xa19   : > { %14123 = vst.msk [vmem:[#allocation4 + $0x79] sm:$0xff] %vm13930_vm5, %v14035_v10  ;;  %22454 = vmatprep.mubr.msk.f32.mxu0 %vm13930_vm5, %v28489_v50 }
 0xa1a   : > { %22455 = vmatmul.mubr.msk.f32.gmra.mrb[70].mxu0 %vm13930_vm5, %v28494_v55  ;;  %3926 = vxpose.xlu1.b32.cont [9/16] (narrow) %v30072_v61, 40 }
 0xa1b   : > { %v14041_v20 = vpop.permute.xlu1 %14040  ;;  %v28506_v34 = vld [vmem:[#allocation4 + $0x69] sm:$0xff] }
 0xa1c   : > { %14126 = vst.msk [vmem:[#allocation4 + $0x99] sm:$0xff] %vm13930_vm5, %v14041_v20  ;;  %v14039_v27 = vpop.permute.xlu0 %14038  ;;  %3897 = vxpose.xlu0.b32.cont [12/16] (narrow) %v30073_v63, 40  ;;  %v28501_v44 = vld [vmem:[#allocation4 + $0x61] sm:$0xff] }
 0xa1d   : > { %14125 = vst.msk [vmem:[#allocation4 + $0x91] sm:$0xff] %vm13930_vm5, %v14039_v27  ;;  %22457 = vmatprep.mubr.msk.f32.mxu0 %vm13930_vm5, %v28501_v44  ;;  %v30081_v27 = vld [vmem:[#allocation10_spill] sm:$0xff] }
 0xa1e   : > { %22458 = vmatmul.mubr.msk.f32.gmra.mrb[72].mxu0 %vm13930_vm5, %v28506_v34  ;;  %3927 = vxpose.xlu1.b32.cont [10/16] (narrow) %v30074_v47, 40 }
 0xa1f   : > { %v14045_v8 = vpop.permute.xlu1 %14044  ;;  %v28518_v41 = vld [vmem:[#allocation4 + $0x81] sm:$0xff] }
 0xa20   : > { %14128 = vst.msk [vmem:[#allocation4 + $0xb1] sm:$0xff] %vm13930_vm5, %v14045_v8  ;;  %v14043_v37 = vpop.permute.xlu0 %14042  ;;  %3898 = vxpose.xlu0.b32.cont [13/16] (narrow) %v30075_v56, 40  ;;  %v28513_v30 = vld [vmem:[#allocation4 + $0x79] sm:$0xff] }
 0xa21   : > { %14127 = vst.msk [vmem:[#allocation4 + $0xa9] sm:$0xff] %vm13930_vm5, %v14043_v37  ;;  %22460 = vmatprep.mubr.msk.f32.mxu0 %vm13930_vm5, %v28513_v30  ;;  %v30082_v8 = vld [vmem:[#allocation30_spill] sm:$0xff] }
 0xa22   : > { %22461 = vmatmul.mubr.msk.f32.gmra.mrb[74].mxu0 %vm13930_vm5, %v28518_v41  ;;  %3928 = vxpose.xlu1.b32.cont [11/16] (narrow) %v30076_v7, 40 }
 0xa23   : > { %v14049_v23 = vpop.permute.xlu1 %14048  ;;  %v28530_v59 = vld [vmem:[#allocation4 + $0x99] sm:$0xff] }
 0xa24   : > { %14130 = vst.msk [vmem:[#allocation4 + $0xc9] sm:$0xff] %vm13930_vm5, %v14049_v23  ;;  %v14047_v29 = vpop.permute.xlu0 %14046  ;;  %3899 = vxpose.xlu0.b32.cont [14/16] (narrow) %v30077_v12, 40  ;;  %v28525_v31 = vld [vmem:[#allocation4 + $0x91] sm:$0xff] }
 0xa25   : > { %14129 = vst.msk [vmem:[#allocation4 + $0xc1] sm:$0xff] %vm13930_vm5, %v14047_v29  ;;  %22463 = vmatprep.mubr.msk.f32.mxu0 %vm13930_vm5, %v28525_v31  ;;  %v30083_v29 = vld [vmem:[#allocation32_spill] sm:$0xff] }
 0xa26   : > { %22464 = vmatmul.mubr.msk.f32.gmra.mrb[76].mxu0 %vm13930_vm5, %v28530_v59  ;;  %3929 = vxpose.xlu1.b32.cont [12/16] (narrow) %v30078_v1, 40 }
 0xa27   : > { %v14053_v5 = vpop.permute.xlu1 %14052  ;;  %v28542_v10 = vld [vmem:[#allocation4 + $0xb1] sm:$0xff] }
 0xa28   : > { %14132 = vst.msk [vmem:[#allocation4 + $0xe1] sm:$0xff] %vm13930_vm5, %v14053_v5  ;;  %v14051_v4 = vpop.permute.xlu0 %14050  ;;  %3900 = vxpose.xlu0.b32.cont [15/16] (narrow) %v30079_v11, 40  ;;  %v28537_v21 = vld [vmem:[#allocation4 + $0xa9] sm:$0xff] }
 0xa29   : > { %14131 = vst.msk [vmem:[#allocation4 + $0xd9] sm:$0xff] %vm13930_vm5, %v14051_v4  ;;  %22466 = vmatprep.mubr.msk.f32.mxu0 %vm13930_vm5, %v28537_v21  ;;  %v30084_v4 = vld [vmem:[#allocation34_spill] sm:$0xff] }
 0xa2a   : > { %22467 = vmatmul.mubr.msk.f32.gmra.mrb[78].mxu0 %vm13930_vm5, %v28542_v10  ;;  %3930 = vxpose.xlu1.b32.cont [13/16] (narrow) %v30080_v0, 40 }
 0xa2b   : > { %v14057_v61 = vpop.permute.xlu1 %14056  ;;  %v28554_v47 = vld [vmem:[#allocation4 + $0xc9] sm:$0xff] }
 0xa2c   : > { %14134 = vst.msk [vmem:[#allocation4 + $0xf9] sm:$0xff] %vm13930_vm5, %v14057_v61  ;;  %v14055_v20 = vpop.permute.xlu0 %14054  ;;  %3901 = vxpose.xlu0.b32.end [16/16] (narrow) %v30081_v27, 40  ;;  %v28549_v63 = vld [vmem:[#allocation4 + $0xc1] sm:$0xff] }
 0xa2d   : > { %14133 = vst.msk [vmem:[#allocation4 + $0xf1] sm:$0xff] %vm13930_vm5, %v14055_v20  ;;  %22469 = vmatprep.mubr.msk.f32.mxu0 %vm13930_vm5, %v28549_v63 }
 0xa2e   : > { %22470 = vmatmul.mubr.msk.f32.gmra.mrb[80].mxu0 %vm13930_vm5, %v28554_v47  ;;  %3931 = vxpose.xlu1.b32.cont [14/16] (narrow) %v30082_v8, 40 }
 0xa2f   : > { %v14061_v37 = vpop.permute.xlu1 %14060  ;;  %v28566_v23 = vld [vmem:[#allocation4 + $0xe1] sm:$0xff] }
 0xa30   : > { %14136 = vst.msk [vmem:[#allocation4 + $0x111] sm:$0xff] %vm13930_vm5, %v14061_v37  ;;  %v14059_v56 = vpop.permute.xlu0 %14058  ;;  %13860 = vxpose.xlu0.b32.start [1/16] (narrow) %v28247_v53, 64  ;;  %v28561_v7 = vld [vmem:[#allocation4 + $0xd9] sm:$0xff] }
 0xa31   : > { %14135 = vst.msk [vmem:[#allocation4 + $0x109] sm:$0xff] %vm13930_vm5, %v14059_v56  ;;  %22472 = vmatprep.mubr.msk.f32.mxu0 %vm13930_vm5, %v28561_v7 }
 0xa32   : > { %22473 = vmatmul.mubr.msk.f32.gmra.mrb[82].mxu0 %vm13930_vm5, %v28566_v23  ;;  %3932 = vxpose.xlu1.b32.cont [15/16] (narrow) %v30083_v29, 40 }
 0xa33   : > { %v14065_v12 = vpop.permute.xlu1 %14064  ;;  %v28578_v5 = vld [vmem:[#allocation4 + $0xf9] sm:$0xff] }
 0xa34   : > { %14138 = vst.msk [vmem:[#allocation4 + $0x129] sm:$0xff] %vm13930_vm5, %v14065_v12  ;;  %v14063_v1 = vpop.permute.xlu0 %14062  ;;  %13861 = vxpose.xlu0.b32.cont [2/16] (narrow) %v28244_v52, 64  ;;  %v28573_v53 = vld [vmem:[#allocation4 + $0xf1] sm:$0xff] }
 0xa35   : > { %14137 = vst.msk [vmem:[#allocation4 + $0x121] sm:$0xff] %vm13930_vm5, %v14063_v1  ;;  %22475 = vmatprep.mubr.msk.f32.mxu0 %vm13930_vm5, %v28573_v53 }
 0xa36   : > { %22476 = vmatmul.mubr.msk.f32.gmra.mrb[84].mxu0 %vm13930_vm5, %v28578_v5  ;;  %3933 = vxpose.xlu1.b32.end [16/16] (narrow) %v30084_v4, 40  ;;  %v14148_v4 = vld [vmem:[#allocation4 + $0x8] sm:$0xff] }
 0xa37   : > { %v14069_v11 = vpop.permute.xlu1 %14068  ;;  %v28590_v61 = vld [vmem:[#allocation4 + $0x111] sm:$0xff] }
 0xa38   : > { %14140 = vst.msk [vmem:[#allocation4 + $0x141] sm:$0xff] %vm13930_vm5, %v14069_v11  ;;  %v14067_v0 = vpop.permute.xlu0 %14066  ;;  %13862 = vxpose.xlu0.b32.cont [3/16] (narrow) %v28259_v22, 64  ;;  %v28585_v52 = vld [vmem:[#allocation4 + $0x109] sm:$0xff]  ;;  %v19014_v11 = vld [vmem:[%s29406_s5 + $0x50] sm:$0xff] }
 0xa39   : > { %14139 = vst.msk [vmem:[#allocation4 + $0x139] sm:$0xff] %vm13930_vm5, %v14067_v0  ;;  %22478 = vmatprep.mubr.msk.f32.mxu0 %vm13930_vm5, %v28585_v52  ;;  %v28662_v0 = vld [vmem:[#allocation4 + $0x20] sm:$0xff] }
 0xa3a   : > { %22479 = vmatmul.mubr.msk.f32.gmra.mrb[86].mxu0 %vm13930_vm5, %v28590_v61  ;;  %13892 = vxpose.xlu1.b32.start [1/16] (narrow) %v28346_v33, 64 }
 0xa3b   : > { %v14073_v20 = vpop.permute.xlu1 %14072  ;;  %v28602_v8 = vld [vmem:[#allocation4 + $0x129] sm:$0xff] }
 0xa3c   : > { %14142 = vst.msk [vmem:[#allocation4 + $0x159] sm:$0xff] %vm13930_vm5, %v14073_v20  ;;  %v14071_v27 = vpop.permute.xlu0 %14070  ;;  %13863 = vxpose.xlu0.b32.cont [4/16] (narrow) %v28256_v51, 64  ;;  %v28597_v22 = vld [vmem:[#allocation4 + $0x121] sm:$0xff]  ;;  %v28751_v20 = vld [vmem:[#allocation4 + $0xf8] sm:$0xff] }
 0xa3d   : > { %14141 = vst.msk [vmem:[#allocation4 + $0x151] sm:$0xff] %vm13930_vm5, %v14071_v27  ;;  %22481 = vmatprep.mubr.msk.f32.mxu0 %vm13930_vm5, %v28597_v22  ;;  %v28760_v27 = vld [vmem:[#allocation4 + $0x110] sm:$0xff] }
 0xa3e   : > { %22482 = vmatmul.mubr.msk.f32.gmra.mrb[88].mxu0 %vm13930_vm5, %v28602_v8  ;;  %13893 = vxpose.xlu1.b32.cont [2/16] (narrow) %v28343_v17, 64 }
 0xa3f   : > { %v14077_v33 = vpop.permute.xlu1 %14076  ;;  %v28614_v56 = vld [vmem:[#allocation4 + $0x141] sm:$0xff] }
 0xa40   : > { %14144 = vst.msk [vmem:[#allocation4 + $0x171] sm:$0xff] %vm13930_vm5, %v14077_v33  ;;  %v14075_v37 = vpop.permute.xlu0 %14074  ;;  %13864 = vxpose.xlu0.b32.cont [5/16] (narrow) %v28271_v42, 64  ;;  %v28609_v51 = vld [vmem:[#allocation4 + $0x139] sm:$0xff]  ;;  %30085 = vst [vmem:[#allocation42_spill] sm:$0xff] %v28614_v56  ;;  %v28768_v33 = vld [vmem:[#allocation4 + $0x128] sm:$0xff] }
 0xa41   : > { %14143 = vst.msk [vmem:[#allocation4 + $0x169] sm:$0xff] %vm13930_vm5, %v14075_v37  ;;  %22484 = vmatprep.mubr.msk.f32.mxu0 %vm13930_vm5, %v28609_v51  ;;  %v28776_v37 = vld [vmem:[#allocation4 + $0x140] sm:$0xff] }
 0xa42   : > { %22485 = vmatmul.mubr.msk.f32.gmra.mrb[90].mxu0 %vm13930_vm5, %v28614_v56  ;;  %13894 = vxpose.xlu1.b32.cont [3/16] (narrow) %v28358_v18, 64  ;;  %v28818_v56 = vld [vmem:[#allocation4 + $0x32] sm:$0xff] }
 0xa43   : > { %v14081_v17 = vpop.permute.xlu1 %14080  ;;  %v28626_v12 = vld [vmem:[#allocation4 + $0x159] sm:$0xff] }
 0xa44   : > { %14146 = vst.msk [vmem:[#allocation4 + $0x189] sm:$0xff] %vm13930_vm5, %v14081_v17  ;;  %13865 = vxpose.xlu0.b32.cont [6/16] (narrow) %v28268_v62, 64  ;;  %v14079_v42 = vpop.permute.xlu0 %14078  ;;  %v28621_v29 = vld [vmem:[#allocation4 + $0x151] sm:$0xff]  ;;  %30087 = vst [vmem:[#allocation116_spill] sm:$0xff] %v28626_v12  ;;  %v14147_v62 = vld [vmem:[#allocation4] sm:$0xff] }
 0xa45   : > { %30086 = vst [vmem:[#allocation43_spill] sm:$0xff] %v28621_v29  ;;  %14145 = vst.msk [vmem:[#allocation4 + $0x181] sm:$0xff] %vm13930_vm5, %v14079_v42  ;;  %22487 = vmatprep.mubr.msk.f32.mxu0 %vm13930_vm5, %v28621_v29  ;;  %v28780_v17 = vld [vmem:[#allocation4 + $0x150] sm:$0xff]  ;;  %v28784_v42 = vld [vmem:[#allocation4 + $0x158] sm:$0xff] }
 0xa46   : > { %22488 = vmatmul.mubr.msk.f32.gmra.mrb[92].mxu0 %vm13930_vm5, %v28626_v12  ;;  %13895 = vxpose.xlu1.b32.cont [4/16] (narrow) %v28355_v48, 64  ;;  %v19013_v48 = vld [vmem:[%s29406_s5 + $0x48] sm:$0xff]  ;;  %v28814_v29 = vld [vmem:[#allocation4 + $0x22] sm:$0xff] }
 0xa47   : > { %v28636_v1 = vld [vmem:[#allocation4 + $0x171] sm:$0xff]  ;;  %v28807_v12 = vld [vmem:[#allocation4 + $0x1a] sm:$0xff] }
 0xa48   : > { %13866 = vxpose.xlu0.b32.cont [7/16] (narrow) %v28283_v28, 64  ;;  %v28632_v18 = vld [vmem:[#allocation4 + $0x169] sm:$0xff]  ;;  %30089 = vst [vmem:[#allocation44_spill] sm:$0xff] %v28636_v1 }
 0xa49   : > { %30088 = vst [vmem:[#allocation117_spill] sm:$0xff] %v28632_v18  ;;  %22490 = vmatprep.mubr.msk.f32.mxu0 %vm13930_vm5, %v28632_v18  ;;  %v18980_v28 = vld [vmem:[%s29406_s5 + $0x40] sm:$0xff]  ;;  %v19049_v18 = vld [vmem:[%s29406_s5 + $0x68] sm:$0xff] }
 0xa4a   : > { %22491 = vmatmul.mubr.msk.f32.gmra.mrb[94].mxu0 %vm13930_vm5, %v28636_v1  ;;  %13896 = vxpose.xlu1.b32.cont [5/16] (narrow) %v28370_v32, 64  ;;  %v28654_v32 = vld [vmem:[#allocation4 + $0x18] sm:$0xff]  ;;  %v19048_v1 = vld [vmem:[%s29406_s5 + $0x60] sm:$0xff] }
 0xa4b   : > { %22499 = vmatprep.mubr.msk.f32.mxu0 %vm13930_vm5, %v14147_v62  ;;  %v28788_v62 = vld [vmem:[#allocation4 + $0x168] sm:$0xff] }
 0xa4c   : > { %13867 = vxpose.xlu0.b32.cont [8/16] (narrow) %v28280_v39, 64  ;;  %v28660_v39 = vpack.c.bf16 %v19014_v11, %v19013_v48  ;;  %v14861_v48 = vld [vmem:[#allocation4 + $0xa] sm:$0xff] }
 0xa4d   : > { %v19015_v11 = vld [vmem:[%s29406_s5 + $0x58] sm:$0xff] }
 0xa4e   : > { %22500 = vmatmul.mubr.msk.f32.vlgmr.msra.gmra.mrb[64].mxu0 %vm13930_vm5, %v14148_v4  ;;  %13897 = vxpose.xlu1.b32.cont [6/16] (narrow) %v28367_v16, 64  ;;  %v28667_v16 = vld [vmem:[#allocation4 + $0x30] sm:$0xff]  ;;  %v14860_v4 = vld [vmem:[#allocation4 + $0x2] sm:$0xff] }
 0xa4f   : > { %23036 = vmatpush3.bf16.msra.mxu0 %v28429_v38  ;;  %22502 = vmatprep.mubr.msk.f32.mxu0 %vm13930_vm5, %v28654_v32  ;;  %v28678_v38 = vld [vmem:[#allocation4 + $0x48] sm:$0xff] }
 0xa50   : > { %13868 = vxpose.xlu0.b32.cont [9/16] (narrow) %v28295_v3, 64  ;;  %22551 = vmatprep.subr.mxu0 %v18980_v28  ;;  %v28673_v3 = vld [vmem:[#allocation4 + $0x38] sm:$0xff] }
 0xa52   : > { %22503 = vmatmul.mubr.msk.f32.gmra.mrb[66].mxu0 %vm13930_vm5, %v28662_v0  ;;  %13898 = vxpose.xlu1.b32.cont [7/16] (narrow) %v28382_v49, 64  ;;  %v28683_v49 = vld [vmem:[#allocation4 + $0x50] sm:$0xff] }
 0xa53   : > { %22505 = vmatprep.mubr.msk.f32.mxu0 %vm13930_vm5, %v28667_v16  ;;  %22552 = vmatpush3.msra.mxu0 %v18980_v28  ;;  %v28792_v28 = vld [vmem:[#allocation4 + $0x170] sm:$0xff] }
 0xa54   : > { %13869 = vxpose.xlu0.b32.cont [10/16] (narrow) %v28292_v15, 64  ;;  %23038 = vmatprep.subr.bf16.mxu0 %v28660_v39  ;;  %v28688_v15 = vld [vmem:[#allocation4 + $0x60] sm:$0xff] }
 0xa56   : > { %22506 = vmatmul.mubr.msk.f32.gmra.mrb[68].mxu0 %vm13930_vm5, %v28673_v3  ;;  %13899 = vxpose.xlu1.b32.cont [8/16] (narrow) %v28379_v25, 64  ;;  %v28693_v25 = vld [vmem:[#allocation4 + $0x68] sm:$0xff] }
 0xa57   : > { %22508 = vmatprep.mubr.msk.f32.mxu0 %vm13930_vm5, %v28678_v38 }
 0xa58   : > { %13870 = vxpose.xlu0.b32.cont [11/16] (narrow) %v28307_v13, 64  ;;  %v28698_v13 = vld [vmem:[#allocation4 + $0x78] sm:$0xff] }
 0xa5a   : > { %22509 = vmatmul.mubr.msk.f32.gmra.mrb[70].mxu0 %vm13930_vm5, %v28683_v49  ;;  %13900 = vxpose.xlu1.b32.cont [9/16] (narrow) %v28394_v9, 64  ;;  %v28703_v9 = vld [vmem:[#allocation4 + $0x80] sm:$0xff] }
 0xa5b   : > { %22511 = vmatprep.mubr.msk.f32.mxu0 %vm13930_vm5, %v28688_v15 }
 0xa5c   : > { %13871 = vxpose.xlu0.b32.cont [12/16] (narrow) %v28304_v40, 64  ;;  %v28708_v40 = vld [vmem:[#allocation4 + $0x90] sm:$0xff] }
 0xa5e   : > { %22512 = vmatmul.mubr.msk.f32.gmra.mrb[72].mxu0 %vm13930_vm5, %v28693_v25  ;;  %13901 = vxpose.xlu1.b32.cont [10/16] (narrow) %v28391_v45, 64  ;;  %v28713_v45 = vld [vmem:[#allocation4 + $0x98] sm:$0xff] }
 0xa5f   : > { %22514 = vmatprep.mubr.msk.f32.mxu0 %vm13930_vm5, %v28698_v13 }
 0xa60   : > { %13872 = vxpose.xlu0.b32.cont [13/16] (narrow) %v28319_v46, 64  ;;  %v28718_v46 = vld [vmem:[#allocation4 + $0xa8] sm:$0xff] }
 0xa62   : > { %22515 = vmatmul.mubr.msk.f32.gmra.mrb[74].mxu0 %vm13930_vm5, %v28703_v9  ;;  %13902 = vxpose.xlu1.b32.cont [11/16] (narrow) %v28406_v2, 64  ;;  %v28723_v2 = vld [vmem:[#allocation4 + $0xb0] sm:$0xff] }
 0xa63   : > { %22517 = vmatprep.mubr.msk.f32.mxu0 %vm13930_vm5, %v28708_v40 }
 0xa64   : > { %13873 = vxpose.xlu0.b32.cont [14/16] (narrow) %v28316_v36, 64  ;;  %v28728_v36 = vld [vmem:[#allocation4 + $0xc0] sm:$0xff] }
 0xa66   : > { %22518 = vmatmul.mubr.msk.f32.gmra.mrb[76].mxu0 %vm13930_vm5, %v28713_v45  ;;  %13903 = vxpose.xlu1.b32.cont [12/16] (narrow) %v28403_v54, 64  ;;  %v28733_v54 = vld [vmem:[#allocation4 + $0xc8] sm:$0xff] }
 0xa67   : > { %22520 = vmatprep.mubr.msk.f32.mxu0 %vm13930_vm5, %v28718_v46 }
 0xa68   : > { %13874 = vxpose.xlu0.b32.cont [15/16] (narrow) %v28334_v60, 64  ;;  %v28738_v60 = vld [vmem:[#allocation4 + $0xd8] sm:$0xff] }
 0xa6a   : > { %22521 = vmatmul.mubr.msk.f32.gmra.mrb[78].mxu0 %vm13930_vm5, %v28723_v2  ;;  %13904 = vxpose.xlu1.b32.cont [13/16] (narrow) %v28418_v14, 64  ;;  %v28742_v14 = vld [vmem:[#allocation4 + $0xe0] sm:$0xff] }
 0xa6b   : > { %22523 = vmatprep.mubr.msk.f32.mxu0 %vm13930_vm5, %v28728_v36 }
 0xa6c   : > { %13875 = vxpose.xlu0.b32.end [16/16] (narrow) %v28331_v57, 64  ;;  %v28747_v57 = vld [vmem:[#allocation4 + $0xf0] sm:$0xff] }
 0xa6e   : > { %22524 = vmatmul.mubr.msk.f32.gmra.mrb[80].mxu0 %vm13930_vm5, %v28733_v54  ;;  %13905 = vxpose.xlu1.b32.cont [14/16] (narrow) %v28415_v26, 64  ;;  %v28756_v26 = vld [vmem:[#allocation4 + $0x108] sm:$0xff] }
 0xa6f   : > { %22526 = vmatprep.mubr.msk.f32.mxu0 %vm13930_vm5, %v28738_v60 }
 0xa72   : > { %22527 = vmatmul.mubr.msk.f32.gmra.mrb[82].mxu0 %vm13930_vm5, %v28742_v14  ;;  %13906 = vxpose.xlu1.b32.cont [15/16] (narrow) %v28439_v35, 64  ;;  %v28764_v35 = vld [vmem:[#allocation4 + $0x120] sm:$0xff] }
 0xa73   : > { %22529 = vmatprep.mubr.msk.f32.mxu0 %vm13930_vm5, %v28747_v57 }
 0xa76   : > { %22530 = vmatmul.mubr.msk.f32.gmra.mrb[84].mxu0 %vm13930_vm5, %v28751_v20  ;;  %13907 = vxpose.xlu1.b32.end [16/16] (narrow) %v28435_v19, 64  ;;  %v28772_v19 = vld [vmem:[#allocation4 + $0x138] sm:$0xff] }
 0xa77   : > { %22532 = vmatprep.mubr.msk.f32.mxu0 %vm13930_vm5, %v28756_v26 }
 0xa7a   : > { %22533 = vmatmul.mubr.msk.f32.gmra.mrb[86].mxu0 %vm13930_vm5, %v28760_v27 }
 0xa7b   : > { %22535 = vmatprep.mubr.msk.f32.mxu0 %vm13930_vm5, %v28764_v35 }
 0xa7e   : > { %22536 = vmatmul.mubr.msk.f32.gmra.mrb[88].mxu0 %vm13930_vm5, %v28768_v33 }
 0xa7f   : > { %22538 = vmatprep.mubr.msk.f32.mxu0 %vm13930_vm5, %v28772_v19 }
 0xa82   : > { %22539 = vmatmul.mubr.msk.f32.gmra.mrb[90].mxu0 %vm13930_vm5, %v28776_v37 }
 0xa83   : > { %22541 = vmatprep.mubr.msk.f32.mxu0 %vm13930_vm5, %v28780_v17 }
 0xa86   : > { %22542 = vmatmul.mubr.msk.f32.gmra.mrb[92].mxu0 %vm13930_vm5, %v28784_v42 }
 0xa87   : > { %22544 = vmatprep.mubr.msk.f32.mxu0 %vm13930_vm5, %v28788_v62 }
 0xa8a   : > { %22545 = vmatmul.mubr.msk.f32.gmra.mrb[94].mxu0 %vm13930_vm5, %v28792_v28 }
 0xa8b   : > { %22553 = vmatprep.mubr.msk.f32.mxu0 %vm13930_vm5, %v14860_v4  ;;  %v28812_v4 = vpack.c.bf16 %v19049_v18, %v19048_v1  ;;  %v28827_v18 = vld [vmem:[#allocation4 + $0x4a] sm:$0xff]  ;;  %v28831_v1 = vld [vmem:[#allocation4 + $0x52] sm:$0xff] }
 0xa8c   : > { %30091 = vst [vmem:[#allocation118_spill] sm:$0xff] %v28827_v18  ;;  %30092 = vst [vmem:[#allocation119_spill] sm:$0xff] %v28831_v1 }
 0xa8e   : > { %22554 = vmatmul.mubr.msk.f32.vlgmr.msra.gmra.mrb[64].mxu0 %vm13930_vm5, %v14861_v48  ;;  %v28835_v48 = vld [vmem:[#allocation4 + $0x62] sm:$0xff] }
 0xa8f   : > { %23040 = vmatpush3.bf16.msra.mxu0 %v28660_v39  ;;  %22556 = vmatprep.mubr.msk.f32.mxu0 %vm13930_vm5, %v28807_v12  ;;  %v28823_v39 = vld [vmem:[#allocation4 + $0x3a] sm:$0xff]  ;;  %30093 = vst [vmem:[#allocation120_spill] sm:$0xff] %v28835_v48 }
 0xa90   : > { %22605 = vmatprep.subr.mxu0 %v19015_v11  ;;  %30090 = vst [vmem:[#allocation45_spill] sm:$0xff] %v28823_v39 }
 0xa92   : > { %22557 = vmatmul.mubr.msk.f32.gmra.mrb[66].mxu0 %vm13930_vm5, %v28814_v29 }
 0xa93   : > { %22559 = vmatprep.mubr.msk.f32.mxu0 %vm13930_vm5, %v28818_v56  ;;  %22606 = vmatpush3.msra.mxu0 %v19015_v11  ;;  %v28839_v11 = vld [vmem:[#allocation4 + $0x6a] sm:$0xff] }
 0xa94   : > { %23042 = vmatprep.subr.bf16.mxu0 %v28812_v4  ;;  %30094 = vst [vmem:[#allocation46_spill] sm:$0xff] %v28839_v11 }
 0xa96   : > { %22560 = vmatmul.mubr.msk.f32.gmra.mrb[68].mxu0 %vm13930_vm5, %v28823_v39  ;;  %v28843_v39 = vld [vmem:[#allocation4 + $0x7a] sm:$0xff] }
 0xa97   : > { %22562 = vmatprep.mubr.msk.f32.mxu0 %vm13930_vm5, %v28827_v18  ;;  %30095 = vst [vmem:[#allocation47_spill] sm:$0xff] %v28843_v39  ;;  %v28847_v18 = vld [vmem:[#allocation4 + $0x82] sm:$0xff] }
 0xa98   : > { %30096 = vst [vmem:[#allocation48_spill] sm:$0xff] %v28847_v18 }
 0xa9a   : > { %22563 = vmatmul.mubr.msk.f32.gmra.mrb[70].mxu0 %vm13930_vm5, %v28831_v1  ;;  %v28851_v1 = vld [vmem:[#allocation4 + $0x92] sm:$0xff] }
 0xa9b   : > { %22565 = vmatprep.mubr.msk.f32.mxu0 %vm13930_vm5, %v28835_v48  ;;  %30097 = vst [vmem:[#allocation49_spill] sm:$0xff] %v28851_v1  ;;  %v28855_v48 = vld [vmem:[#allocation4 + $0x9a] sm:$0xff] }
 0xa9c   : > { %30098 = vst [vmem:[#allocation50_spill] sm:$0xff] %v28855_v48 }
 0xa9e   : > { %22566 = vmatmul.mubr.msk.f32.gmra.mrb[72].mxu0 %vm13930_vm5, %v28839_v11  ;;  %v28859_v11 = vld [vmem:[#allocation4 + $0xaa] sm:$0xff] }
 0xa9f   : > { %22568 = vmatprep.mubr.msk.f32.mxu0 %vm13930_vm5, %v28843_v39  ;;  %30099 = vst [vmem:[#allocation51_spill] sm:$0xff] %v28859_v11  ;;  %v28863_v39 = vld [vmem:[#allocation4 + $0xb2] sm:$0xff] }
 0xaa0   : > { %30100 = vst [vmem:[#allocation52_spill] sm:$0xff] %v28863_v39 }
 0xaa2   : > { %22569 = vmatmul.mubr.msk.f32.gmra.mrb[74].mxu0 %vm13930_vm5, %v28847_v18  ;;  %v28867_v18 = vld [vmem:[#allocation4 + $0xc2] sm:$0xff] }
 0xaa3   : > { %22571 = vmatprep.mubr.msk.f32.mxu0 %vm13930_vm5, %v28851_v1  ;;  %30101 = vst [vmem:[#allocation53_spill] sm:$0xff] %v28867_v18  ;;  %v28871_v1 = vld [vmem:[#allocation4 + $0xca] sm:$0xff] }
 0xaa4   : > { %30102 = vst [vmem:[#allocation54_spill] sm:$0xff] %v28871_v1 }
 0xaa6   : > { %22572 = vmatmul.mubr.msk.f32.gmra.mrb[76].mxu0 %vm13930_vm5, %v28855_v48  ;;  %v28875_v48 = vld [vmem:[#allocation4 + $0xda] sm:$0xff] }
 0xaa7   : > { %22574 = vmatprep.mubr.msk.f32.mxu0 %vm13930_vm5, %v28859_v11  ;;  %30103 = vst [vmem:[#allocation55_spill] sm:$0xff] %v28875_v48  ;;  %v28879_v11 = vld [vmem:[#allocation4 + $0xe2] sm:$0xff] }
 0xaa8   : > { %30104 = vst [vmem:[#allocation56_spill] sm:$0xff] %v28879_v11 }
 0xaaa   : > { %22575 = vmatmul.mubr.msk.f32.gmra.mrb[78].mxu0 %vm13930_vm5, %v28863_v39  ;;  %v28883_v39 = vld [vmem:[#allocation4 + $0xf2] sm:$0xff] }
 0xaab   : > { %22577 = vmatprep.mubr.msk.f32.mxu0 %vm13930_vm5, %v28867_v18  ;;  %30105 = vst [vmem:[#allocation57_spill] sm:$0xff] %v28883_v39  ;;  %v28887_v18 = vld [vmem:[#allocation4 + $0xfa] sm:$0xff] }
 0xaac   : > { %30106 = vst [vmem:[#allocation58_spill] sm:$0xff] %v28887_v18 }
 0xaae   : > { %22578 = vmatmul.mubr.msk.f32.gmra.mrb[80].mxu0 %vm13930_vm5, %v28871_v1  ;;  %v28891_v1 = vld [vmem:[#allocation4 + $0x10a] sm:$0xff] }
 0xaaf   : > { %22580 = vmatprep.mubr.msk.f32.mxu0 %vm13930_vm5, %v28875_v48  ;;  %30107 = vst [vmem:[#allocation59_spill] sm:$0xff] %v28891_v1  ;;  %v28895_v48 = vld [vmem:[#allocation4 + $0x112] sm:$0xff] }
 0xab0   : > { %30108 = vst [vmem:[#allocation60_spill] sm:$0xff] %v28895_v48 }
 0xab2   : > { %22581 = vmatmul.mubr.msk.f32.gmra.mrb[82].mxu0 %vm13930_vm5, %v28879_v11  ;;  %v28899_v11 = vld [vmem:[#allocation4 + $0x122] sm:$0xff] }
 0xab3   : > { %22583 = vmatprep.mubr.msk.f32.mxu0 %vm13930_vm5, %v28883_v39  ;;  %30109 = vst [vmem:[#allocation61_spill] sm:$0xff] %v28899_v11  ;;  %v28903_v39 = vld [vmem:[#allocation4 + $0x12a] sm:$0xff] }
 0xab4   : > { %30110 = vst [vmem:[#allocation62_spill] sm:$0xff] %v28903_v39 }
 0xab6   : > { %22584 = vmatmul.mubr.msk.f32.gmra.mrb[84].mxu0 %vm13930_vm5, %v28887_v18  ;;  %v28907_v18 = vld [vmem:[#allocation4 + $0x13a] sm:$0xff] }
 0xab7   : > { %22586 = vmatprep.mubr.msk.f32.mxu0 %vm13930_vm5, %v28891_v1  ;;  %30111 = vst [vmem:[#allocation63_spill] sm:$0xff] %v28907_v18  ;;  %v28911_v1 = vld [vmem:[#allocation4 + $0x142] sm:$0xff] }
 0xaba   : > { %22587 = vmatmul.mubr.msk.f32.gmra.mrb[86].mxu0 %vm13930_vm5, %v28895_v48  ;;  %v28915_v48 = vld [vmem:[#allocation4 + $0x152] sm:$0xff] }
 0xabb   : > { %22589 = vmatprep.mubr.msk.f32.mxu0 %vm13930_vm5, %v28899_v11  ;;  %30112 = vst [vmem:[#allocation64_spill] sm:$0xff] %v28915_v48  ;;  %v28919_v11 = vld [vmem:[#allocation4 + $0x15a] sm:$0xff] }
 0xabc   : > { %30113 = vst [vmem:[#allocation65_spill] sm:$0xff] %v28919_v11 }
 0xabe   : > { %22590 = vmatmul.mubr.msk.f32.gmra.mrb[88].mxu0 %vm13930_vm5, %v28903_v39  ;;  %v28923_v39 = vld [vmem:[#allocation4 + $0x16a] sm:$0xff] }
 0xabf   : > { %22592 = vmatprep.mubr.msk.f32.mxu0 %vm13930_vm5, %v28907_v18  ;;  %30114 = vst [vmem:[#allocation66_spill] sm:$0xff] %v28923_v39  ;;  %v28927_v18 = vld [vmem:[#allocation4 + $0x172] sm:$0xff] }
 0xac0   : > { %30115 = vst [vmem:[#allocation67_spill] sm:$0xff] %v28927_v18 }
 0xac2   : > { %22593 = vmatmul.mubr.msk.f32.gmra.mrb[90].mxu0 %vm13930_vm5, %v28911_v1 }
 0xac3   : > { %22595 = vmatprep.mubr.msk.f32.mxu0 %vm13930_vm5, %v28915_v48  ;;  %v19050_v48 = vld [vmem:[%s29406_s5 + $0x70] sm:$0xff] }
 0xac6   : > { %22596 = vmatmul.mubr.msk.f32.gmra.mrb[92].mxu0 %vm13930_vm5, %v28919_v11  ;;  %v19083_v11 = vld [vmem:[%s29406_s5 + $0x78] sm:$0xff] }
 0xac7   : > { %22598 = vmatprep.mubr.msk.f32.mxu0 %vm13930_vm5, %v28923_v39  ;;  %v19084_v39 = vld [vmem:[%s29406_s5 + $0x80] sm:$0xff] }
 0xaca   : > { %22599 = vmatmul.mubr.msk.f32.gmra.mrb[94].mxu0 %vm13930_vm5, %v28927_v18 }
 0xacb   : > { %22607 = vmatprep.mubr.msk.f32.mxu0 %vm13930_vm5, %v28654_v32  ;;  %v23045_v32 = vpack.c.bf16 %v19084_v39, %v19083_v11  ;;  %v19085_v39 = vld [vmem:[%s29406_s5 + $0x88] sm:$0xff]  ;;  %v19119_v11 = vld [vmem:[%s29406_s5 + $0x98] sm:$0xff] }
 0xace   : > { %22608 = vmatmul.mubr.msk.f32.vlgmr.msra.gmra.mrb[64].mxu0 %vm13930_vm5, %v28662_v0  ;;  %v29001_v0 = vld [vmem:[#allocation4 + $0x180] sm:$0xff] }
 0xacf   : > { %23044 = vmatpush3.bf16.msra.mxu0 %v28812_v4  ;;  %22610 = vmatprep.mubr.msk.f32.mxu0 %vm13930_vm5, %v28667_v16  ;;  %v29005_v4 = vld [vmem:[#allocation4 + $0x188] sm:$0xff] }
 0xad0   : > { %22659 = vmatprep.subr.mxu0 %v19050_v48 }
 0xad2   : > { %22611 = vmatmul.mubr.msk.f32.gmra.mrb[66].mxu0 %vm13930_vm5, %v28673_v3 }
 0xad3   : > { %22613 = vmatprep.mubr.msk.f32.mxu0 %vm13930_vm5, %v28678_v38  ;;  %22660 = vmatpush3.msra.mxu0 %v19050_v48  ;;  %v19118_v48 = vld [vmem:[%s29406_s5 + $0x90] sm:$0xff] }
 0xad4   : > { %23046 = vmatprep.subr.bf16.mxu0 %v23045_v32 }
 0xad6   : > { %22614 = vmatmul.mubr.msk.f32.gmra.mrb[68].mxu0 %vm13930_vm5, %v28683_v49 }
 0xad7   : > { %22616 = vmatprep.mubr.msk.f32.mxu0 %vm13930_vm5, %v28688_v15 }
 0xada   : > { %22617 = vmatmul.mubr.msk.f32.gmra.mrb[70].mxu0 %vm13930_vm5, %v28693_v25 }
 0xadb   : > { %22619 = vmatprep.mubr.msk.f32.mxu0 %vm13930_vm5, %v28698_v13 }
 0xade   : > { %22620 = vmatmul.mubr.msk.f32.gmra.mrb[72].mxu0 %vm13930_vm5, %v28703_v9 }
 0xadf   : > { %22622 = vmatprep.mubr.msk.f32.mxu0 %vm13930_vm5, %v28708_v40 }
 0xae2   : > { %22623 = vmatmul.mubr.msk.f32.gmra.mrb[74].mxu0 %vm13930_vm5, %v28713_v45 }
 0xae3   : > { %22625 = vmatprep.mubr.msk.f32.mxu0 %vm13930_vm5, %v28718_v46 }
 0xae6   : > { %22626 = vmatmul.mubr.msk.f32.gmra.mrb[76].mxu0 %vm13930_vm5, %v28723_v2 }
 0xae7   : > { %22628 = vmatprep.mubr.msk.f32.mxu0 %vm13930_vm5, %v28728_v36 }
 0xaea   : > { %22629 = vmatmul.mubr.msk.f32.gmra.mrb[78].mxu0 %vm13930_vm5, %v28733_v54 }
 0xaeb   : > { %22631 = vmatprep.mubr.msk.f32.mxu0 %vm13930_vm5, %v28738_v60 }
 0xaee   : > { %22632 = vmatmul.mubr.msk.f32.gmra.mrb[80].mxu0 %vm13930_vm5, %v28742_v14 }
 0xaef   : > { %22634 = vmatprep.mubr.msk.f32.mxu0 %vm13930_vm5, %v28747_v57 }
 0xaf2   : > { %22635 = vmatmul.mubr.msk.f32.gmra.mrb[82].mxu0 %vm13930_vm5, %v28751_v20 }
 0xaf3   : > { %22637 = vmatprep.mubr.msk.f32.mxu0 %vm13930_vm5, %v28756_v26 }
 0xaf6   : > { %22638 = vmatmul.mubr.msk.f32.gmra.mrb[84].mxu0 %vm13930_vm5, %v28760_v27 }
 0xaf7   : > { %22640 = vmatprep.mubr.msk.f32.mxu0 %vm13930_vm5, %v28764_v35 }
 0xafa   : > { %22641 = vmatmul.mubr.msk.f32.gmra.mrb[86].mxu0 %vm13930_vm5, %v28768_v33 }
 0xafb   : > { %22643 = vmatprep.mubr.msk.f32.mxu0 %vm13930_vm5, %v28772_v19 }
 0xafe   : > { %22644 = vmatmul.mubr.msk.f32.gmra.mrb[88].mxu0 %vm13930_vm5, %v28776_v37 }
 0xaff   : > { %22646 = vmatprep.mubr.msk.f32.mxu0 %vm13930_vm5, %v28780_v17 }
 0xb02   : > { %22647 = vmatmul.mubr.msk.f32.gmra.mrb[90].mxu0 %vm13930_vm5, %v28784_v42 }
 0xb03   : > { %22649 = vmatprep.mubr.msk.f32.mxu0 %vm13930_vm5, %v28788_v62 }
 0xb06   : > { %22650 = vmatmul.mubr.msk.f32.gmra.mrb[92].mxu0 %vm13930_vm5, %v28792_v28 }
 0xb07   : > { %22652 = vmatprep.mubr.msk.f32.mxu0 %vm13930_vm5, %v29001_v0 }
 0xb0a   : > { %22653 = vmatmul.mubr.msk.f32.gmra.mrb[94].mxu0 %vm13930_vm5, %v29005_v4 }
 0xb0b   : > { %22661 = vmatprep.mubr.msk.f32.mxu0 %vm13930_vm5, %v28465_v43  ;;  %v23049_v43 = vpack.c.bf16 %v19119_v11, %v19118_v48  ;;  %v30138_v48 = vld [vmem:[#allocation59_spill] sm:$0xff]  ;;  %v30139_v11 = vld [vmem:[#allocation60_spill] sm:$0xff] }
 0xb0e   : > { %22662 = vmatmul.mubr.msk.f32.vlgmr.msra.gmra.mrb[64].mxu0 %vm13930_vm5, %v28470_v24  ;;  %v30116_v24 = vld [vmem:[#allocation42_spill] sm:$0xff] }
 0xb0f   : > { %23048 = vmatpush3.bf16.msra.mxu0 %v23045_v32  ;;  %22664 = vmatprep.mubr.msk.f32.mxu0 %vm13930_vm5, %v28477_v6  ;;  %v30117_v6 = vld [vmem:[#allocation43_spill] sm:$0xff]  ;;  %v30136_v32 = vld [vmem:[#allocation57_spill] sm:$0xff] }
 0xb10   : > { %22713 = vmatprep.subr.mxu0 %v19085_v39 }
 0xb12   : > { %22665 = vmatmul.mubr.msk.f32.gmra.mrb[66].mxu0 %vm13930_vm5, %v28482_v58  ;;  %v30118_v58 = vld [vmem:[#allocation116_spill] sm:$0xff] }
 0xb13   : > { %22667 = vmatprep.mubr.msk.f32.mxu0 %vm13930_vm5, %v28489_v50  ;;  %22714 = vmatpush3.msra.mxu0 %v19085_v39  ;;  %v30119_v50 = vld [vmem:[#allocation117_spill] sm:$0xff]  ;;  %v30137_v39 = vld [vmem:[#allocation58_spill] sm:$0xff] }
 0xb14   : > { %23050 = vmatprep.subr.bf16.mxu0 %v23049_v43 }
 0xb16   : > { %22668 = vmatmul.mubr.msk.f32.gmra.mrb[68].mxu0 %vm13930_vm5, %v28494_v55  ;;  %v30120_v55 = vld [vmem:[#allocation44_spill] sm:$0xff] }
 0xb17   : > { %22670 = vmatprep.mubr.msk.f32.mxu0 %vm13930_vm5, %v28501_v44  ;;  %v29078_v44 = vld [vmem:[#allocation4 + $0x181] sm:$0xff] }
 0xb1a   : > { %22671 = vmatmul.mubr.msk.f32.gmra.mrb[70].mxu0 %vm13930_vm5, %v28506_v34  ;;  %v29082_v34 = vld [vmem:[#allocation4 + $0x189] sm:$0xff] }
 0xb1b   : > { %22673 = vmatprep.mubr.msk.f32.mxu0 %vm13930_vm5, %v28513_v30  ;;  %v19120_v30 = vld [vmem:[%s29406_s5 + $0xa0] sm:$0xff] }
 0xb1e   : > { %22674 = vmatmul.mubr.msk.f32.gmra.mrb[72].mxu0 %vm13930_vm5, %v28518_v41  ;;  %v19153_v41 = vld [vmem:[%s29406_s5 + $0xa8] sm:$0xff] }
 0xb1f   : > { %22676 = vmatprep.mubr.msk.f32.mxu0 %vm13930_vm5, %v28525_v31  ;;  %v19154_v31 = vld [vmem:[%s29406_s5 + $0xb0] sm:$0xff] }
 0xb22   : > { %22677 = vmatmul.mubr.msk.f32.gmra.mrb[74].mxu0 %vm13930_vm5, %v28530_v59  ;;  %v23053_v59 = vpack.c.bf16 %v19154_v31, %v19153_v41  ;;  %v29159_v41 = vld [vmem:[#allocation4 + $0x18a] sm:$0xff] }
 0xb23   : > { %22679 = vmatprep.mubr.msk.f32.mxu0 %vm13930_vm5, %v28537_v21  ;;  %v30121_v21 = vld [vmem:[#allocation45_spill] sm:$0xff]  ;;  %v19155_v31 = vld [vmem:[%s29406_s5 + $0xb8] sm:$0xff] }
 0xb26   : > { %22680 = vmatmul.mubr.msk.f32.gmra.mrb[76].mxu0 %vm13930_vm5, %v28542_v10  ;;  %v30122_v10 = vld [vmem:[#allocation118_spill] sm:$0xff] }
 0xb27   : > { %22682 = vmatprep.mubr.msk.f32.mxu0 %vm13930_vm5, %v28549_v63  ;;  %v30123_v63 = vld [vmem:[#allocation119_spill] sm:$0xff] }
 0xb2a   : > { %22683 = vmatmul.mubr.msk.f32.gmra.mrb[78].mxu0 %vm13930_vm5, %v28554_v47  ;;  %v30124_v47 = vld [vmem:[#allocation120_spill] sm:$0xff] }
 0xb2b   : > { %22685 = vmatprep.mubr.msk.f32.mxu0 %vm13930_vm5, %v28561_v7  ;;  %v30125_v7 = vld [vmem:[#allocation46_spill] sm:$0xff] }
 0xb2e   : > { %22686 = vmatmul.mubr.msk.f32.gmra.mrb[80].mxu0 %vm13930_vm5, %v28566_v23  ;;  %v30126_v23 = vld [vmem:[#allocation47_spill] sm:$0xff] }
 0xb2f   : > { %22688 = vmatprep.mubr.msk.f32.mxu0 %vm13930_vm5, %v28573_v53  ;;  %v30127_v53 = vld [vmem:[#allocation48_spill] sm:$0xff] }
 0xb32   : > { %22689 = vmatmul.mubr.msk.f32.gmra.mrb[82].mxu0 %vm13930_vm5, %v28578_v5  ;;  %v30128_v5 = vld [vmem:[#allocation49_spill] sm:$0xff] }
 0xb33   : > { %22691 = vmatprep.mubr.msk.f32.mxu0 %vm13930_vm5, %v28585_v52  ;;  %v30129_v52 = vld [vmem:[#allocation50_spill] sm:$0xff] }
 0xb36   : > { %22692 = vmatmul.mubr.msk.f32.gmra.mrb[84].mxu0 %vm13930_vm5, %v28590_v61  ;;  %v30130_v61 = vld [vmem:[#allocation51_spill] sm:$0xff] }
 0xb37   : > { %22694 = vmatprep.mubr.msk.f32.mxu0 %vm13930_vm5, %v28597_v22  ;;  %v30131_v22 = vld [vmem:[#allocation52_spill] sm:$0xff] }
 0xb3a   : > { %22695 = vmatmul.mubr.msk.f32.gmra.mrb[86].mxu0 %vm13930_vm5, %v28602_v8  ;;  %v30132_v8 = vld [vmem:[#allocation53_spill] sm:$0xff] }
 0xb3b   : > { %22697 = vmatprep.mubr.msk.f32.mxu0 %vm13930_vm5, %v28609_v51  ;;  %v30133_v51 = vld [vmem:[#allocation54_spill] sm:$0xff] }
 0xb3e   : > { %22698 = vmatmul.mubr.msk.f32.gmra.mrb[88].mxu0 %vm13930_vm5, %v30116_v24  ;;  %v30141_v24 = vld [vmem:[#allocation62_spill] sm:$0xff] }
 0xb3f   : > { %22700 = vmatprep.mubr.msk.f32.mxu0 %vm13930_vm5, %v30117_v6  ;;  %v30142_v6 = vld [vmem:[#allocation63_spill] sm:$0xff] }
 0xb42   : > { %22701 = vmatmul.mubr.msk.f32.gmra.mrb[90].mxu0 %vm13930_vm5, %v30118_v58  ;;  %v30143_v58 = vld [vmem:[#allocation64_spill] sm:$0xff] }
 0xb43   : > { %22703 = vmatprep.mubr.msk.f32.mxu0 %vm13930_vm5, %v30119_v50  ;;  %v30144_v50 = vld [vmem:[#allocation65_spill] sm:$0xff] }
 0xb46   : > { %22704 = vmatmul.mubr.msk.f32.gmra.mrb[92].mxu0 %vm13930_vm5, %v30120_v55  ;;  %v30145_v55 = vld [vmem:[#allocation66_spill] sm:$0xff] }
 0xb47   : > { %22706 = vmatprep.mubr.msk.f32.mxu0 %vm13930_vm5, %v29078_v44 }
 0xb4a   : > { %22707 = vmatmul.mubr.msk.f32.gmra.mrb[94].mxu0 %vm13930_vm5, %v29082_v34 }
 0xb4b   : > { %22715 = vmatprep.mubr.msk.f32.mxu0 %vm13930_vm5, %v28807_v12  ;;  %v30135_v12 = vld [vmem:[#allocation56_spill] sm:$0xff] }
 0xb4e   : > { %22716 = vmatmul.mubr.msk.f32.vlgmr.msra.gmra.mrb[64].mxu0 %vm13930_vm5, %v28814_v29  ;;  %v30134_v29 = vld [vmem:[#allocation55_spill] sm:$0xff] }
 0xb4f   : > { %23052 = vmatpush3.bf16.msra.mxu0 %v23049_v43  ;;  %22718 = vmatprep.mubr.msk.f32.mxu0 %vm13930_vm5, %v28818_v56  ;;  %v30140_v43 = vld [vmem:[#allocation61_spill] sm:$0xff] }
 0xb50   : > { %22767 = vmatprep.subr.mxu0 %v19120_v30 }
 0xb52   : > { %22719 = vmatmul.mubr.msk.f32.gmra.mrb[66].mxu0 %vm13930_vm5, %v30121_v21 }
 0xb53   : > { %22721 = vmatprep.mubr.msk.f32.mxu0 %vm13930_vm5, %v30122_v10  ;;  %22768 = vmatpush3.msra.mxu0 %v19120_v30  ;;  %v29155_v30 = vld [vmem:[#allocation4 + $0x182] sm:$0xff] }
 0xb54   : > { %23054 = vmatprep.subr.bf16.mxu0 %v23053_v59  ;;  %30146 = vst [vmem:[#allocation68_spill] sm:$0xff] %v29155_v30 }
 0xb56   : > { %22722 = vmatmul.mubr.msk.f32.gmra.mrb[68].mxu0 %vm13930_vm5, %v30123_v63 }
 0xb57   : > { %22724 = vmatprep.mubr.msk.f32.mxu0 %vm13930_vm5, %v30124_v47 }
 0xb5a   : > { %22725 = vmatmul.mubr.msk.f32.gmra.mrb[70].mxu0 %vm13930_vm5, %v30125_v7 }
 0xb5b   : > { %22727 = vmatprep.mubr.msk.f32.mxu0 %vm13930_vm5, %v30126_v23 }
 0xb5e   : > { %22728 = vmatmul.mubr.msk.f32.gmra.mrb[72].mxu0 %vm13930_vm5, %v30127_v53 }
 0xb5f   : > { %22730 = vmatprep.mubr.msk.f32.mxu0 %vm13930_vm5, %v30128_v5 }
 0xb62   : > { %22731 = vmatmul.mubr.msk.f32.gmra.mrb[74].mxu0 %vm13930_vm5, %v30129_v52 }
 0xb63   : > { %22733 = vmatprep.mubr.msk.f32.mxu0 %vm13930_vm5, %v30130_v61 }
 0xb66   : > { %22734 = vmatmul.mubr.msk.f32.gmra.mrb[76].mxu0 %vm13930_vm5, %v30131_v22 }
 0xb67   : > { %22736 = vmatprep.mubr.msk.f32.mxu0 %vm13930_vm5, %v30132_v8 }
 0xb6a   : > { %22737 = vmatmul.mubr.msk.f32.gmra.mrb[78].mxu0 %vm13930_vm5, %v30133_v51 }
 0xb6b   : > { %22739 = vmatprep.mubr.msk.f32.mxu0 %vm13930_vm5, %v30134_v29 }
 0xb6e   : > { %22740 = vmatmul.mubr.msk.f32.gmra.mrb[80].mxu0 %vm13930_vm5, %v30135_v12 }
 0xb6f   : > { %22742 = vmatprep.mubr.msk.f32.mxu0 %vm13930_vm5, %v30136_v32 }
 0xb72   : > { %22743 = vmatmul.mubr.msk.f32.gmra.mrb[82].mxu0 %vm13930_vm5, %v30137_v39 }
 0xb73   : > { %22745 = vmatprep.mubr.msk.f32.mxu0 %vm13930_vm5, %v30138_v48 }
 0xb76   : > { %22746 = vmatmul.mubr.msk.f32.gmra.mrb[84].mxu0 %vm13930_vm5, %v30139_v11 }
 0xb77   : > { %22748 = vmatprep.mubr.msk.f32.mxu0 %vm13930_vm5, %v30140_v43 }
 0xb7a   : > { %22749 = vmatmul.mubr.msk.f32.gmra.mrb[86].mxu0 %vm13930_vm5, %v30141_v24 }
 0xb7b   : > { %22751 = vmatprep.mubr.msk.f32.mxu0 %vm13930_vm5, %v30142_v6 }
 0xb7e   : > { %22752 = vmatmul.mubr.msk.f32.gmra.mrb[88].mxu0 %vm13930_vm5, %v28911_v1 }
 0xb7f   : > { %22754 = vmatprep.mubr.msk.f32.mxu0 %vm13930_vm5, %v30143_v58 }
 0xb82   : > { %22755 = vmatmul.mubr.msk.f32.gmra.mrb[90].mxu0 %vm13930_vm5, %v30144_v50 }
 0xb83   : > { %22757 = vmatprep.mubr.msk.f32.mxu0 %vm13930_vm5, %v30145_v55 }
 0xb86   : > { %22758 = vmatmul.mubr.msk.f32.gmra.mrb[92].mxu0 %vm13930_vm5, %v28927_v18  ;;  %v19188_v18 = vld [vmem:[%s29406_s5 + $0xc0] sm:$0xff] }
 0xb87   : > { %22760 = vmatprep.mubr.msk.f32.mxu0 %vm13930_vm5, %v29155_v30  ;;  %v19189_v30 = vld [vmem:[%s29406_s5 + $0xc8] sm:$0xff] }
 0xb8a   : > { %22761 = vmatmul.mubr.msk.f32.gmra.mrb[94].mxu0 %vm13930_vm5, %v29159_v41 }
 0xb8b   : > { %22769 = vmatprep.mubr.msk.f32.mxu0 %vm13930_vm5, %v28667_v16  ;;  %v23057_v16 = vpack.c.bf16 %v19189_v30, %v19188_v18  ;;  %v16830_v18 = vld [vmem:[#allocation4 + $0x151] sm:$0xff]  ;;  %v16836_v30 = vld [vmem:[#allocation4 + $0x199] sm:$0xff] }
 0xb8e   : > { %22770 = vmatmul.mubr.msk.f32.vlgmr.msra.gmra.mrb[64].mxu0 %vm13930_vm5, %v28673_v3  ;;  %v16447_v3 = vld [vmem:[#allocation4 + $0x198] sm:$0xff] }
 0xb8f   : > { %23056 = vmatpush3.bf16.msra.mxu0 %v23053_v59  ;;  %22772 = vmatprep.mubr.msk.f32.mxu0 %vm13930_vm5, %v28678_v38  ;;  %v16448_v38 = vld [vmem:[#allocation4 + $0x1a0] sm:$0xff]  ;;  %v16833_v59 = vld [vmem:[#allocation4 + $0x171] sm:$0xff] }
 0xb90   : > { %22821 = vmatprep.subr.mxu0 %v19155_v31 }
 0xb92   : > { %22773 = vmatmul.mubr.msk.f32.gmra.mrb[66].mxu0 %vm13930_vm5, %v28683_v49  ;;  %v16806_v49 = vld [vmem:[#allocation4 + $0x31] sm:$0xff] }
 0xb93   : > { %22775 = vmatprep.mubr.msk.f32.mxu0 %vm13930_vm5, %v28688_v15  ;;  %22822 = vmatpush3.msra.mxu0 %v19155_v31  ;;  %v16807_v15 = vld [vmem:[#allocation4 + $0x39] sm:$0xff]  ;;  %v16837_v31 = vld [vmem:[#allocation4 + $0x1a1] sm:$0xff] }
 0xb94   : > { %23058 = vmatprep.subr.bf16.mxu0 %v23057_v16 }
 0xb96   : > { %22776 = vmatmul.mubr.msk.f32.gmra.mrb[68].mxu0 %vm13930_vm5, %v28693_v25  ;;  %v19190_v25 = vld [vmem:[%s29406_s5 + $0xd0] sm:$0xff] }
 0xb97   : > { %22778 = vmatprep.mubr.msk.f32.mxu0 %vm13930_vm5, %v28698_v13  ;;  %v16808_v13 = vld [vmem:[#allocation4 + $0x49] sm:$0xff] }
 0xb9a   : > { %22779 = vmatmul.mubr.msk.f32.gmra.mrb[70].mxu0 %vm13930_vm5, %v28703_v9  ;;  %v16809_v9 = vld [vmem:[#allocation4 + $0x51] sm:$0xff] }
 0xb9b   : > { %22781 = vmatprep.mubr.msk.f32.mxu0 %vm13930_vm5, %v28708_v40  ;;  %v16810_v40 = vld [vmem:[#allocation4 + $0x61] sm:$0xff] }
 0xb9e   : > { %22782 = vmatmul.mubr.msk.f32.gmra.mrb[72].mxu0 %vm13930_vm5, %v28713_v45  ;;  %v16811_v45 = vld [vmem:[#allocation4 + $0x69] sm:$0xff] }
 0xb9f   : > { %22784 = vmatprep.mubr.msk.f32.mxu0 %vm13930_vm5, %v28718_v46  ;;  %v16812_v46 = vld [vmem:[#allocation4 + $0x79] sm:$0xff] }
 0xba2   : > { %22785 = vmatmul.mubr.msk.f32.gmra.mrb[74].mxu0 %vm13930_vm5, %v28723_v2  ;;  %v16813_v2 = vld [vmem:[#allocation4 + $0x81] sm:$0xff] }
 0xba3   : > { %22787 = vmatprep.mubr.msk.f32.mxu0 %vm13930_vm5, %v28728_v36  ;;  %v16814_v36 = vld [vmem:[#allocation4 + $0x91] sm:$0xff] }
 0xba6   : > { %22788 = vmatmul.mubr.msk.f32.gmra.mrb[76].mxu0 %vm13930_vm5, %v28733_v54  ;;  %v16815_v54 = vld [vmem:[#allocation4 + $0x99] sm:$0xff] }
 0xba7   : > { %22790 = vmatprep.mubr.msk.f32.mxu0 %vm13930_vm5, %v28738_v60  ;;  %v16816_v60 = vld [vmem:[#allocation4 + $0xa9] sm:$0xff] }
 0xbaa   : > { %22791 = vmatmul.mubr.msk.f32.gmra.mrb[78].mxu0 %vm13930_vm5, %v28742_v14  ;;  %v16817_v14 = vld [vmem:[#allocation4 + $0xb1] sm:$0xff] }
 0xbab   : > { %22793 = vmatprep.mubr.msk.f32.mxu0 %vm13930_vm5, %v28747_v57  ;;  %v16818_v57 = vld [vmem:[#allocation4 + $0xc1] sm:$0xff] }
 0xbae   : > { %22794 = vmatmul.mubr.msk.f32.gmra.mrb[80].mxu0 %vm13930_vm5, %v28751_v20  ;;  %v16819_v20 = vld [vmem:[#allocation4 + $0xc9] sm:$0xff] }
 0xbaf   : > { %22796 = vmatprep.mubr.msk.f32.mxu0 %vm13930_vm5, %v28756_v26  ;;  %v16820_v26 = vld [vmem:[#allocation4 + $0xd9] sm:$0xff] }
 0xbb2   : > { %22797 = vmatmul.mubr.msk.f32.gmra.mrb[82].mxu0 %vm13930_vm5, %v28760_v27  ;;  %v16821_v27 = vld [vmem:[#allocation4 + $0xe1] sm:$0xff] }
 0xbb3   : > { %22799 = vmatprep.mubr.msk.f32.mxu0 %vm13930_vm5, %v28764_v35  ;;  %v16822_v35 = vld [vmem:[#allocation4 + $0xf1] sm:$0xff] }
 0xbb6   : > { %22800 = vmatmul.mubr.msk.f32.gmra.mrb[84].mxu0 %vm13930_vm5, %v28768_v33  ;;  %v16823_v33 = vld [vmem:[#allocation4 + $0xf9] sm:$0xff] }
 0xbb7   : > { %22802 = vmatprep.mubr.msk.f32.mxu0 %vm13930_vm5, %v28772_v19  ;;  %v16824_v19 = vld [vmem:[#allocation4 + $0x109] sm:$0xff] }
 0xbba   : > { %22803 = vmatmul.mubr.msk.f32.gmra.mrb[86].mxu0 %vm13930_vm5, %v28776_v37  ;;  %v16825_v37 = vld [vmem:[#allocation4 + $0x111] sm:$0xff] }
 0xbbb   : > { %22805 = vmatprep.mubr.msk.f32.mxu0 %vm13930_vm5, %v28780_v17  ;;  %v16826_v17 = vld [vmem:[#allocation4 + $0x121] sm:$0xff] }
 0xbbe   : > { %22806 = vmatmul.mubr.msk.f32.gmra.mrb[88].mxu0 %vm13930_vm5, %v28784_v42  ;;  %v16827_v42 = vld [vmem:[#allocation4 + $0x129] sm:$0xff] }
 0xbbf   : > { %22808 = vmatprep.mubr.msk.f32.mxu0 %vm13930_vm5, %v28788_v62  ;;  %v16828_v62 = vld [vmem:[#allocation4 + $0x139] sm:$0xff] }
 0xbc2   : > { %22809 = vmatmul.mubr.msk.f32.gmra.mrb[90].mxu0 %vm13930_vm5, %v28792_v28  ;;  %v16829_v28 = vld [vmem:[#allocation4 + $0x141] sm:$0xff] }
 0xbc3   : > { %22811 = vmatprep.mubr.msk.f32.mxu0 %vm13930_vm5, %v29001_v0  ;;  %v16831_v0 = vld [vmem:[#allocation4 + $0x159] sm:$0xff] }
 0xbc6   : > { %22812 = vmatmul.mubr.msk.f32.gmra.mrb[92].mxu0 %vm13930_vm5, %v29005_v4  ;;  %v16832_v4 = vld [vmem:[#allocation4 + $0x169] sm:$0xff] }
 0xbc7   : > { %22814 = vmatprep.mubr.msk.f32.mxu0 %vm13930_vm5, %v16447_v3 }
 0xbca   : > { %22815 = vmatmul.mubr.msk.f32.gmra.mrb[94].mxu0 %vm13930_vm5, %v16448_v38 }
 0xbcb   : > { %22823 = vmatprep.mubr.msk.f32.mxu0 %vm13930_vm5, %v16806_v49 }
 0xbce   : > { %22824 = vmatmul.mubr.msk.f32.vlgmr.msra.gmra.mrb[64].mxu0 %vm13930_vm5, %v16807_v15 }
 0xbcf   : > { %23060 = vmatpush3.bf16.msra.mxu0 %v23057_v16  ;;  %22826 = vmatprep.mubr.msk.f32.mxu0 %vm13930_vm5, %v16808_v13 }
 0xbd0   : > { %22875 = vmatprep.subr.mxu0 %v19190_v25 }
 0xbd2   : > { %22827 = vmatmul.mubr.msk.f32.gmra.mrb[66].mxu0 %vm13930_vm5, %v16809_v9 }
 0xbd3   : > { %22829 = vmatprep.mubr.msk.f32.mxu0 %vm13930_vm5, %v16810_v40  ;;  %22876 = vmatpush3.msra.mxu0 %v19190_v25 }
 0xbd6   : > { %22830 = vmatmul.mubr.msk.f32.gmra.mrb[68].mxu0 %vm13930_vm5, %v16811_v45 }
 0xbd7   : > { %22832 = vmatprep.mubr.msk.f32.mxu0 %vm13930_vm5, %v16812_v46 }
 0xbda   : > { %22833 = vmatmul.mubr.msk.f32.gmra.mrb[70].mxu0 %vm13930_vm5, %v16813_v2 }
 0xbdb   : > { %22835 = vmatprep.mubr.msk.f32.mxu0 %vm13930_vm5, %v16814_v36 }
 0xbde   : > { %22836 = vmatmul.mubr.msk.f32.gmra.mrb[72].mxu0 %vm13930_vm5, %v16815_v54 }
 0xbdf   : > { %22838 = vmatprep.mubr.msk.f32.mxu0 %vm13930_vm5, %v16816_v60 }
 0xbe2   : > { %22839 = vmatmul.mubr.msk.f32.gmra.mrb[74].mxu0 %vm13930_vm5, %v16817_v14 }
 0xbe3   : > { %22841 = vmatprep.mubr.msk.f32.mxu0 %vm13930_vm5, %v16818_v57 }
 0xbe6   : > { %22842 = vmatmul.mubr.msk.f32.gmra.mrb[76].mxu0 %vm13930_vm5, %v16819_v20 }
 0xbe7   : > { %22844 = vmatprep.mubr.msk.f32.mxu0 %vm13930_vm5, %v16820_v26 }
 0xbea   : > { %22845 = vmatmul.mubr.msk.f32.gmra.mrb[78].mxu0 %vm13930_vm5, %v16821_v27 }
 0xbeb   : > { %22847 = vmatprep.mubr.msk.f32.mxu0 %vm13930_vm5, %v16822_v35 }
 0xbee   : > { %22848 = vmatmul.mubr.msk.f32.gmra.mrb[80].mxu0 %vm13930_vm5, %v16823_v33 }
 0xbef   : > { %22850 = vmatprep.mubr.msk.f32.mxu0 %vm13930_vm5, %v16824_v19 }
 0xbf2   : > { %22851 = vmatmul.mubr.msk.f32.gmra.mrb[82].mxu0 %vm13930_vm5, %v16825_v37 }
 0xbf3   : > { %22853 = vmatprep.mubr.msk.f32.mxu0 %vm13930_vm5, %v16826_v17 }
 0xbf6   : > { %22854 = vmatmul.mubr.msk.f32.gmra.mrb[84].mxu0 %vm13930_vm5, %v16827_v42 }
 0xbf7   : > { %22856 = vmatprep.mubr.msk.f32.mxu0 %vm13930_vm5, %v16828_v62 }
 0xbfa   : > { %22857 = vmatmul.mubr.msk.f32.gmra.mrb[86].mxu0 %vm13930_vm5, %v16829_v28 }
 0xbfb   : > { %22859 = vmatprep.mubr.msk.f32.mxu0 %vm13930_vm5, %v16830_v18 }
 0xbfe   : > { %22860 = vmatmul.mubr.msk.f32.gmra.mrb[88].mxu0 %vm13930_vm5, %v16831_v0 }
 0xbff   : > { %22862 = vmatprep.mubr.msk.f32.mxu0 %vm13930_vm5, %v16832_v4 }
 0xc02   : > { %22863 = vmatmul.mubr.msk.f32.gmra.mrb[90].mxu0 %vm13930_vm5, %v16833_v59 }
 0xc03   : > { %22865 = vmatprep.mubr.msk.f32.mxu0 %vm13930_vm5, %v29078_v44  ;;  %v30148_v44 = vld [vmem:[#allocation68_spill] sm:$0xff] }
 0xc06   : > { %22866 = vmatmul.mubr.msk.f32.gmra.mrb[92].mxu0 %vm13930_vm5, %v29082_v34  ;;  %v17225_v34 = vld [vmem:[#allocation4 + $0x19a] sm:$0xff] }
 0xc07   : > { %22868 = vmatprep.mubr.msk.f32.mxu0 %vm13930_vm5, %v16836_v30 }
 0xc0a   : > { %22869 = vmatmul.mubr.msk.f32.gmra.mrb[94].mxu0 %vm13930_vm5, %v16837_v31 }
 0xc0b   : > { %22877 = vmatprep.mubr.msk.f32.mxu0 %vm13930_vm5, %v28818_v56  ;;  %v30147_v56 = vld [vmem:[#allocation67_spill] sm:$0xff] }
 0xc0e   : > { %22878 = vmatmul.mubr.msk.f32.vlgmr.msra.gmra.mrb[64].mxu0 %vm13930_vm5, %v30121_v21  ;;  %v3934_v21 = vpop.trf.xlu1 }
 0xc0f   : > { %22880 = vmatprep.mubr.msk.f32.mxu0 %vm13930_vm5, %v30122_v10  ;;  %v3902_v10 = vpop.trf.xlu0  ;;  %3951 = vst [vmem:[%s29337_s20 + $0x8] sm:$0xff] %v3934_v21 }
 0xc10   : > { %3950 = vst [vmem:[%s29337_s20] sm:$0xff] %v3902_v10 }
 0xc12   : > { %22881 = vmatmul.mubr.msk.f32.gmra.mrb[66].mxu0 %vm13930_vm5, %v30123_v63  ;;  %v3935_v63 = vpop.trf.xlu1 }
 0xc13   : > { %22883 = vmatprep.mubr.msk.f32.mxu0 %vm13930_vm5, %v30124_v47  ;;  %v3903_v47 = vpop.trf.xlu0  ;;  %3953 = vst [vmem:[%s29337_s20 + $0x18] sm:$0xff] %v3935_v63 }
 0xc14   : > { %3952 = vst [vmem:[%s29337_s20 + $0x10] sm:$0xff] %v3903_v47 }
 0xc16   : > { %22884 = vmatmul.mubr.msk.f32.gmra.mrb[68].mxu0 %vm13930_vm5, %v30125_v7  ;;  %v3936_v7 = vpop.trf.xlu1 }
 0xc17   : > { %22886 = vmatprep.mubr.msk.f32.mxu0 %vm13930_vm5, %v30126_v23  ;;  %v3904_v23 = vpop.trf.xlu0  ;;  %3955 = vst [vmem:[%s29337_s20 + $0x28] sm:$0xff] %v3936_v7 }
 0xc18   : > { %3954 = vst [vmem:[%s29337_s20 + $0x20] sm:$0xff] %v3904_v23 }
 0xc1a   : > { %22887 = vmatmul.mubr.msk.f32.gmra.mrb[70].mxu0 %vm13930_vm5, %v30127_v53  ;;  %v3937_v53 = vpop.trf.xlu1 }
 0xc1b   : > { %22889 = vmatprep.mubr.msk.f32.mxu0 %vm13930_vm5, %v30128_v5  ;;  %v3905_v5 = vpop.trf.xlu0  ;;  %3957 = vst [vmem:[%s29337_s20 + $0x38] sm:$0xff] %v3937_v53 }
 0xc1c   : > { %3956 = vst [vmem:[%s29337_s20 + $0x30] sm:$0xff] %v3905_v5 }
 0xc1e   : > { %22890 = vmatmul.mubr.msk.f32.gmra.mrb[72].mxu0 %vm13930_vm5, %v30129_v52  ;;  %v3938_v52 = vpop.trf.xlu1 }
 0xc1f   : > { %22892 = vmatprep.mubr.msk.f32.mxu0 %vm13930_vm5, %v30130_v61  ;;  %v3906_v61 = vpop.trf.xlu0  ;;  %3959 = vst [vmem:[%s29337_s20 + $0x48] sm:$0xff] %v3938_v52 }
 0xc20   : > { %3958 = vst [vmem:[%s29337_s20 + $0x40] sm:$0xff] %v3906_v61 }
 0xc22   : > { %22893 = vmatmul.mubr.msk.f32.gmra.mrb[74].mxu0 %vm13930_vm5, %v30131_v22  ;;  %v13908_v22 = vpop.trf.xlu1 }
 0xc23   : > { %22895 = vmatprep.mubr.msk.f32.mxu0 %vm13930_vm5, %v30132_v8  ;;  %v13876_v8 = vpop.trf.xlu0 }
 0xc26   : > { %22896 = vmatmul.mubr.msk.f32.gmra.mrb[76].mxu0 %vm13930_vm5, %v30133_v51  ;;  %v13909_v51 = vpop.trf.xlu1 }
 0xc27   : > { %22898 = vmatprep.mubr.msk.f32.mxu0 %vm13930_vm5, %v30134_v29  ;;  %v13877_v29 = vpop.trf.xlu0 }
 0xc2a   : > { %22899 = vmatmul.mubr.msk.f32.gmra.mrb[78].mxu0 %vm13930_vm5, %v30135_v12  ;;  %v13910_v12 = vpop.trf.xlu1 }
 0xc2b   : > { %22901 = vmatprep.mubr.msk.f32.mxu0 %vm13930_vm5, %v30136_v32  ;;  %v13878_v32 = vpop.trf.xlu0 }
 0xc2e   : > { %22902 = vmatmul.mubr.msk.f32.gmra.mrb[80].mxu0 %vm13930_vm5, %v30137_v39  ;;  %v29352_v39 = vld [vmem:[%s29407_s6] ss:$0 sm:$0xff] }
 0xc2f   : > { %22904 = vmatprep.mubr.msk.f32.mxu0 %vm13930_vm5, %v30138_v48 }
 0xc32   : > { %22905 = vmatmul.mubr.msk.f32.gmra.mrb[82].mxu0 %vm13930_vm5, %v30139_v11  ;;  %v13911_v11 = vpop.trf.xlu1 }
 0xc33   : > { %22907 = vmatprep.mubr.msk.f32.mxu0 %vm13930_vm5, %v30140_v43 }
 0xc36   : > { %22908 = vmatmul.mubr.msk.f32.gmra.mrb[84].mxu0 %vm13930_vm5, %v30141_v24  ;;  %v13879_v24 = vpop.trf.xlu0 }
 0xc37   : > { %22910 = vmatprep.mubr.msk.f32.mxu0 %vm13930_vm5, %v30142_v6 }
 0xc3a   : > { %22911 = vmatmul.mubr.msk.f32.gmra.mrb[86].mxu0 %vm13930_vm5, %v28911_v1  ;;  %v17226_v1 = vld [vmem:[#allocation4 + $0x1a2] sm:$0xff] }
 0xc3b   : > { %22913 = vmatprep.mubr.msk.f32.mxu0 %vm13930_vm5, %v30143_v58 }
 0xc3e   : > { %22914 = vmatmul.mubr.msk.f32.gmra.mrb[88].mxu0 %vm13930_vm5, %v30144_v50  ;;  %v13912_v50 = vpop.trf.xlu1 }
 0xc3f   : > { %22916 = vmatprep.mubr.msk.f32.mxu0 %vm13930_vm5, %v30145_v55 }
 0xc42   : > { %22917 = vmatmul.mubr.msk.f32.gmra.mrb[90].mxu0 %vm13930_vm5, %v30147_v56  ;;  %v13913_v38 = vpop.trf.xlu1 }
 0xc43   : > { %22919 = vmatprep.mubr.msk.f32.mxu0 %vm13930_vm5, %v30148_v44  ;;  %13925 = vst [vmem:[%s29337_s20 + $0x58] sm:$0xff] %v13913_v38 }
 0xc46   : > { %22920 = vmatmul.mubr.msk.f32.gmra.mrb[92].mxu0 %vm13930_vm5, %v29159_v41  ;;  %v13880_v41 = vpop.trf.xlu0  ;;  %v13914_v9 = vpop.trf.xlu1 }
 0xc47   : > { %22922 = vmatprep.mubr.msk.f32.mxu0 %vm13930_vm5, %v17225_v34  ;;  %13927 = vst [vmem:[%s29337_s20 + $0x68] sm:$0xff] %v13914_v9 }
 0xc4a   : > { %22923 = vmatmul.mubr.msk.f32.gmra.mrb[94].mxu0 %vm13930_vm5, %v17226_v1  ;;  %v13881_v15 = vpop.trf.xlu0  ;;  %v13915_v36 = vpop.trf.xlu1 }
 0xc4b   : > { %13924 = vst [vmem:[%s29337_s20 + $0x50] sm:$0xff] %v13881_v15  ;;  %13929 = vst [vmem:[%s29337_s20 + $0x78] sm:$0xff] %v13915_v36 }
 0xc4e   : > { %v13882_v45 = vpop.trf.xlu0 }
 0xc4f   : > { %13926 = vst [vmem:[%s29337_s20 + $0x60] sm:$0xff] %v13882_v45 }
 0xc52   : > { %v13883_v60 = vpop.trf.xlu0 }
 0xc53   : > { %13928 = vst [vmem:[%s29337_s20 + $0x70] sm:$0xff] %v13883_v60 }
 0xce1   : > { %v22879_v48 = vpop.f32.mrb[64].mxu0 }
 0xce2   : > { %v17393_v43 = vpop.f32.mrb[65].mxu0  ;;  %v17592_v16 = vadd.f32 %v22879_v48, %v29352_v39 }
 0xce3   : > { %v17591_v6 = vadd.f32 %v29352_v39, %v17393_v43 }
 0xce5   : > { %17623 = vxpose.xlu0.b32.start [1/16] (narrow) %v17591_v6, 88  ;;  %v22882_v58 = vpop.f32.mrb[66].mxu0 }
 0xce6   : > { %v17403_v55 = vpop.f32.mrb[67].mxu0  ;;  %v17594_v46 = vadd.f32 %v22882_v58, %v29352_v39 }
 0xce7   : > { %v17593_v25 = vadd.f32 %v29352_v39, %v17403_v55 }
 0xce9   : > { %17624 = vxpose.xlu0.b32.cont [2/16] (narrow) %v17592_v16, 88  ;;  %v22885_v3 = vpop.f32.mrb[68].mxu0 }
 0xcea   : > { %v17413_v49 = vpop.f32.mrb[69].mxu0  ;;  %v17596_v26 = vadd.f32 %v22885_v3, %v29352_v39 }
 0xceb   : > { %v17595_v14 = vadd.f32 %v29352_v39, %v17413_v49 }
 0xced   : > { %17625 = vxpose.xlu0.b32.cont [3/16] (narrow) %v17593_v25, 88  ;;  %v22888_v13 = vpop.f32.mrb[70].mxu0 }
 0xcee   : > { %v17423_v40 = vpop.f32.mrb[71].mxu0  ;;  %v17598_v17 = vadd.f32 %v22888_v13, %v29352_v39 }
 0xcef   : > { %v17597_v33 = vadd.f32 %v29352_v39, %v17423_v40 }
 0xcf1   : > { %17626 = vxpose.xlu0.b32.cont [4/16] (narrow) %v17594_v46, 88  ;;  %v22891_v2 = vpop.f32.mrb[72].mxu0 }
 0xcf2   : > { %v17433_v54 = vpop.f32.mrb[73].mxu0  ;;  %v17600_v59 = vadd.f32 %v22891_v2, %v29352_v39 }
 0xcf3   : > { %v17599_v28 = vadd.f32 %v29352_v39, %v17433_v54 }
 0xcf5   : > { %17627 = vxpose.xlu0.b32.cont [5/16] (narrow) %v17595_v14, 88  ;;  %v22894_v57 = vpop.f32.mrb[74].mxu0 }
 0xcf6   : > { %v17443_v20 = vpop.f32.mrb[75].mxu0  ;;  %v17602_v10 = vadd.f32 %v22894_v57, %v29352_v39 }
 0xcf7   : > { %v17601_v44 = vadd.f32 %v29352_v39, %v17443_v20 }
 0xcf9   : > { %17628 = vxpose.xlu0.b32.cont [6/16] (narrow) %v17596_v26, 88  ;;  %v22897_v27 = vpop.f32.mrb[76].mxu0 }
 0xcfa   : > { %v17453_v35 = vpop.f32.mrb[77].mxu0  ;;  %v17604_v51 = vadd.f32 %v22897_v27, %v29352_v39 }
 0xcfb   : > { %v17603_v53 = vadd.f32 %v29352_v39, %v17453_v35 }
 0xcfd   : > { %17629 = vxpose.xlu0.b32.cont [7/16] (narrow) %v17597_v33, 88  ;;  %v22900_v19 = vpop.f32.mrb[78].mxu0 }
 0xcfe   : > { %v17463_v37 = vpop.f32.mrb[79].mxu0  ;;  %v17606_v41 = vadd.f32 %v22900_v19, %v29352_v39 }
 0xcff   : > { %v17605_v43 = vadd.f32 %v29352_v39, %v17463_v37 }
 0xd01   : > { %17630 = vxpose.xlu0.b32.cont [8/16] (narrow) %v17598_v17, 88  ;;  %v22903_v42 = vpop.f32.mrb[80].mxu0 }
 0xd02   : > { %v17473_v62 = vpop.f32.mrb[81].mxu0  ;;  %v17608_v30 = vadd.f32 %v22903_v42, %v29352_v39 }
 0xd03   : > { %v17607_v18 = vadd.f32 %v29352_v39, %v17473_v62 }
 0xd05   : > { %17631 = vxpose.xlu0.b32.cont [9/16] (narrow) %v17599_v28, 88  ;;  %17655 = vxpose.xlu1.b32.start [1/16] (narrow) %v17607_v18, 88  ;;  %v22906_v0 = vpop.f32.mrb[82].mxu0 }
 0xd06   : > { %v17483_v4 = vpop.f32.mrb[83].mxu0  ;;  %v17610_v63 = vadd.f32 %v22906_v0, %v29352_v39 }
 0xd07   : > { %v17609_v34 = vadd.f32 %v29352_v39, %v17483_v4 }
 0xd09   : > { %17632 = vxpose.xlu0.b32.cont [10/16] (narrow) %v17600_v59, 88  ;;  %17656 = vxpose.xlu1.b32.cont [2/16] (narrow) %v17608_v30, 88  ;;  %v22909_v31 = vpop.f32.mrb[84].mxu0 }
 0xd0a   : > { %v17493_v56 = vpop.f32.mrb[85].mxu0  ;;  %v17612_v29 = vadd.f32 %v22909_v31, %v29352_v39 }
 0xd0b   : > { %v17611_v5 = vadd.f32 %v29352_v39, %v17493_v56 }
 0xd0d   : > { %17633 = vxpose.xlu0.b32.cont [11/16] (narrow) %v17601_v44, 88  ;;  %17657 = vxpose.xlu1.b32.cont [3/16] (narrow) %v17609_v34, 88  ;;  %v22912_v1 = vpop.f32.mrb[86].mxu0 }
 0xd0e   : > { %v17503_v21 = vpop.f32.mrb[87].mxu0  ;;  %v17614_v16 = vadd.f32 %v22912_v1, %v29352_v39 }
 0xd0f   : > { %v17613_v24 = vadd.f32 %v29352_v39, %v17503_v21 }
 0xd11   : > { %17634 = vxpose.xlu0.b32.cont [12/16] (narrow) %v17602_v10, 88  ;;  %17658 = vxpose.xlu1.b32.cont [4/16] (narrow) %v17610_v63, 88  ;;  %v22915_v47 = vpop.f32.mrb[88].mxu0 }
 0xd12   : > { %v17616_v7 = vadd.f32 %v22915_v47, %v29352_v39  ;;  %v17513_v23 = vpop.f32.mrb[89].mxu0 }
 0xd13   : > { %v17615_v52 = vadd.f32 %v29352_v39, %v17513_v23 }
 0xd15   : > { %17635 = vxpose.xlu0.b32.cont [13/16] (narrow) %v17603_v53, 88  ;;  %17659 = vxpose.xlu1.b32.cont [5/16] (narrow) %v17611_v5, 88  ;;  %v22918_v61 = vpop.f32.mrb[90].mxu0 }
 0xd16   : > { %v17618_v22 = vadd.f32 %v22918_v61, %v29352_v39  ;;  %v17523_v8 = vpop.f32.mrb[91].mxu0 }
 0xd17   : > { %v17617_v12 = vadd.f32 %v29352_v39, %v17523_v8 }
 0xd19   : > { %17636 = vxpose.xlu0.b32.cont [14/16] (narrow) %v17604_v51, 88  ;;  %17660 = vxpose.xlu1.b32.cont [6/16] (narrow) %v17612_v29, 88  ;;  %v22921_v32 = vpop.f32.mrb[92].mxu0 }
 0xd1a   : > { %v17620_v48 = vadd.f32 %v22921_v32, %v29352_v39  ;;  %v17533_v11 = vpop.f32.mrb[93].mxu0 }
 0xd1b   : > { %v17619_v6 = vadd.f32 %v29352_v39, %v17533_v11 }
 0xd1d   : > { %17637 = vxpose.xlu0.b32.cont [15/16] (narrow) %v17605_v43, 88  ;;  %17661 = vxpose.xlu1.b32.cont [7/16] (narrow) %v17613_v24, 88  ;;  %v22924_v58 = vpop.f32.mrb[94].mxu0 }
 0xd1e   : > { %v17622_v50 = vadd.f32 %v22924_v58, %v29352_v39  ;;  %v17543_v55 = vpop.f32.mrb[95].mxu0 }
 0xd1f   : > { %v17621_v3 = vadd.f32 %v29352_v39, %v17543_v55 }
 0xd21   : > { %17638 = vxpose.xlu0.b32.end [16/16] (narrow) %v17606_v41, 88  ;;  %17662 = vxpose.xlu1.b32.cont [8/16] (narrow) %v17614_v16, 88 }
 0xd25   : > { %17663 = vxpose.xlu1.b32.cont [9/16] (narrow) %v17615_v52, 88 }
 0xd29   : > { %17664 = vxpose.xlu1.b32.cont [10/16] (narrow) %v17616_v7, 88 }
 0xd2d   : > { %17665 = vxpose.xlu1.b32.cont [11/16] (narrow) %v17617_v12, 88 }
 0xd31   : > { %17666 = vxpose.xlu1.b32.cont [12/16] (narrow) %v17618_v22, 88 }
 0xd35   : > { %17667 = vxpose.xlu1.b32.cont [13/16] (narrow) %v17619_v6, 88 }
 0xd39   : > { %17668 = vxpose.xlu1.b32.cont [14/16] (narrow) %v17620_v48, 88 }
 0xd3d   : > { %17669 = vxpose.xlu1.b32.cont [15/16] (narrow) %v17621_v3, 88 }
 0xd41   : > { %17670 = vxpose.xlu1.b32.end [16/16] (narrow) %v17622_v50, 88 }
 0xd65   : > { %v17639_v38 = vpop.trf.xlu0 }
 0xd69   : > { %v17640_v49 = vpop.trf.xlu0 }
 0xd6d   : > { %v17641_v15 = vpop.trf.xlu0 }
 0xd71   : > { %v17642_v25 = vpop.trf.xlu0 }
 0xd75   : > { %v17643_v13 = vpop.trf.xlu0 }
 0xd79   : > { %v17644_v9 = vpop.trf.xlu0 }
 0xd7d   : > { %v17645_v39 = vpop.trf.xlu0 }
 0xd81   : > { %v17646_v40 = vpop.trf.xlu0 }
 0xd85   : > { %v17671_v45 = vpop.trf.xlu1  ;;  %v17647_v46 = vpop.trf.xlu0 }
 0xd86   : > { %17687 = vst [vmem:[%s29337_s20 + $0x80] sm:$0xff] %v17647_v46 }
 0xd89   : > { %v17672_v2 = vpop.trf.xlu1  ;;  %v17648_v36 = vpop.trf.xlu0 }
 0xd8a   : > { %17689 = vst [vmem:[%s29337_s20 + $0x90] sm:$0xff] %v17648_v36 }
 0xd8d   : > { %v17673_v54 = vpop.trf.xlu1  ;;  %v17649_v60 = vpop.trf.xlu0 }
 0xd8e   : > { %17691 = vst [vmem:[%s29337_s20 + $0xa0] sm:$0xff] %v17649_v60 }
 0xd91   : > { %v17674_v14 = vpop.trf.xlu1 }
 0xd95   : > { %v17675_v57 = vpop.trf.xlu1 }
 0xd99   : > { %v17676_v20 = vpop.trf.xlu1 }
 0xd9d   : > { %v17677_v26 = vpop.trf.xlu1 }
 0xda1   : > { %v17678_v27 = vpop.trf.xlu1 }
 0xda5   : > { %v17679_v35 = vpop.trf.xlu1 }
 0xda6   : > { %17688 = vst [vmem:[%s29337_s20 + $0x88] sm:$0xff] %v17679_v35 }
 0xda9   : > { %v17680_v33 = vpop.trf.xlu1 }
 0xdaa   : > { %17690 = vst [vmem:[%s29337_s20 + $0x98] sm:$0xff] %v17680_v33 }
 0xdad   : > { %v17681_v19 = vpop.trf.xlu1 }
 0xdae   : > { %17692 = vst [vmem:[%s29337_s20 + $0xa8] sm:$0xff] %v17681_v19 }
 0xdaf PF: > { %s17_s24 = sadd.s32 1, %s24361_s24  }
 0xdb0   : > { %p14_p4 = scmp.ge.s32.totalorder %s17_s24, 4  }
 0xdb2   :  { %16 = sbr.rel (!%p14_p4) target bundleno = 1 (0x1), region = 126 }

</bundles_post_ra>
